<compile_context>
chip_gen: v7x
topology: tpu7x:2x2x1
jax: 0.10.0
libtpu: 0.0.40
codegen_flags: <defaults>
</compile_context>

<pallas_src>
import jax
import jax.numpy as jnp
from jax.experimental import pallas as pl
from jax.experimental.pallas import tpu as pltpu


def _round_up(x, m):
    return ((x + m - 1) // m) * m


# ----------------------------------------------------------------------------
# Fused kernel: [Conv3x3 + bias + ReLU] * L  ->  AvgPool2d(3, 1, 1)
# ----------------------------------------------------------------------------
def _vgg_block_kernel(x_ref, w_ref, b_ref, o_ref, act_ref):
    # x_ref:   (1, H, W, Cin)   bf16  input tile (one batch element)
    # w_ref:   (L, 9, Cp, Cp)   bf16  per-tap weights, channel-padded to Cp
    # b_ref:   (L, 1, Cp)       f32   biases, zero-padded to Cp
    # o_ref:   (1, Cout, H*W)   f32   pooled output, channels in sublanes,
    #                                 H*W (multiple of 128) in lanes
    # act_ref: (H+2, W+2, Cp)   bf16  padded activation, VMEM resident
    H = x_ref.shape[1]
    W = x_ref.shape[2]
    Cin = x_ref.shape[3]
    Cp = act_ref.shape[2]
    L = w_ref.shape[0]
    Cout = o_ref.shape[1]
    bf16 = jnp.bfloat16

    # Zero only the 1-px halo ring (never written elsewhere).  Done every grid
    # step: with megacore sharding a core's first step need not be n == 0 and
    # scratch VMEM starts uninitialized.  ~17 KB of stores, negligible.
    act_ref[0:1, :, :] = jnp.zeros((1, W + 2, Cp), bf16)
    act_ref[H + 1:H + 2, :, :] = jnp.zeros((1, W + 2, Cp), bf16)
    act_ref[1:H + 1, 0:1, :] = jnp.zeros((H, 1, Cp), bf16)
    act_ref[1:H + 1, W + 1:W + 2, :] = jnp.zeros((H, 1, Cp), bf16)

    # Stage the input into the interior.  Padded channels [Cin:Cp] must be
    # written too (first step per core would otherwise contract uninitialized
    # VMEM, which may contain NaN bit patterns).  Two stores, same bytes as a
    # single full-lane store; layer outputs keep [Cout:Cp] at exact zero.
    act_ref[1:H + 1, 1:W + 1, Cin:Cp] = jnp.zeros((H, W, Cp - Cin), bf16)
    act_ref[1:H + 1, 1:W + 1, 0:Cin] = x_ref[0]

    # Conv stack; the bf16 activation stays resident in VMEM between layers.
    # Slab-free form: 9 accumulated tap matmuls per layer, f32 partial sums.
    for l in range(L):
        acc = None
        for tap in range(9):
            dy, dx = tap // 3, tap % 3
            lhs = act_ref[dy:dy + H, dx:dx + W, :].reshape(H * W, Cp)
            part = jnp.dot(lhs, w_ref[l, tap],
                           preferred_element_type=jnp.float32)
            acc = part if acc is None else acc + part
        y = jnp.maximum(acc + b_ref[l], 0.0)          # bias + ReLU in f32
        # Write back in bf16.  Halo stays 0; padded channels (zero weights,
        # zero bias) come out exactly 0, so they are clean next-layer input.
        act_ref[1:H + 1, 1:W + 1, :] = y.reshape(H, W, Cp).astype(bf16)

    # AvgPool2d(kernel_size=3, stride=1, padding=1), count_include_pad=True
    # -> always divide by 9.  Separable: 3 column-shifted adds + 3 row-shifted
    # adds on values (no row-sum scratch buffer), f32 math on bf16 input.
    a = act_ref[...].astype(jnp.float32)                       # (H+2, W+2, Cp)
    col = a[:, 0:W, :] + a[:, 1:W + 1, :] + a[:, 2:W + 2, :]    # (H+2, W, Cp)
    pooled = (col[0:H] + col[1:H + 1] + col[2:H + 2]) * (1.0 / 9.0)  # (H,W,Cp)

    # Channels-in-sublanes, H*W-in-lanes output: one XLU transpose, then store
    # only the real Cout channels (lane-dense, unmasked store).
    t = jnp.transpose(pooled.reshape(H * W, Cp))                 # (Cp, H*W)
    o_ref[0] = t[0:Cout, :]


def vgg_block_fused(x_nhwc, w_all, b_all, c_out):
    """x_nhwc: (N,H,W,Cin) bf16; w_all: (L,9,Cp,Cp) bf16; b_all: (L,1,Cp) f32."""
    N, H, W, Cin = x_nhwc.shape
    L, _, Cp, _ = w_all.shape
    return pl.pallas_call(
        _vgg_block_kernel,
        out_shape=jax.ShapeDtypeStruct((N, c_out, H * W), jnp.float32),
        grid_spec=pltpu.PrefetchScalarGridSpec(
            num_scalar_prefetch=0,
            grid=(N,),
            in_specs=[
                pl.BlockSpec((1, H, W, Cin), lambda n: (n, 0, 0, 0)),
                pl.BlockSpec((L, 9, Cp, Cp), lambda n: (0, 0, 0, 0)),
                pl.BlockSpec((L, 1, Cp), lambda n: (0, 0, 0)),
            ],
            out_specs=pl.BlockSpec((1, c_out, H * W), lambda n: (n, 0, 0)),
            scratch_shapes=[
                pltpu.VMEM((H + 2, W + 2, Cp), jnp.bfloat16),  # resident act
            ],
        ),
        compiler_params=pltpu.CompilerParams(
            dimension_semantics=("parallel",)),
    )(x_nhwc, w_all, b_all)


# ----------------------------------------------------------------------------
# Parameter handling + public wrapper (NCHW in / NCHW out, like PyTorch)
# ----------------------------------------------------------------------------
def init_vgg_block_params(key, in_channels, out_channels, num_conv_layers):
    """Returns [(w_hwio (3,3,Cin,Cout), b (Cout,)), ...] in f32."""
    params = []
    c_in = in_channels
    for _ in range(num_conv_layers):
        key, kw, kb = jax.random.split(key, 3)
        fan_in = c_in * 9
        bound = 1.0 / (fan_in ** 0.5)
        w_oihw = jax.random.uniform(kw, (out_channels, c_in, 3, 3),
                                    jnp.float32, -bound, bound)
        b = jax.random.uniform(kb, (out_channels,), jnp.float32, -bound, bound)
        params.append((jnp.transpose(w_oihw, (2, 3, 1, 0)), b))  # (3,3,Cin,Cout)
        c_in = out_channels
    return params


def _pack_params(params, cp):
    """Zero-pad channels to cp; per layer weight -> (9, cp, cp), bias -> (1, cp)."""
    ws, bs = [], []
    for w_hwio, b in params:
        _, _, cin, cout = w_hwio.shape
        wp = jnp.zeros((3, 3, cp, cp), jnp.float32)
        wp = wp.at[:, :, :cin, :cout].set(w_hwio)   # padded rows/cols stay 0
        ws.append(wp.reshape(9, cp, cp))
        bs.append(jnp.zeros((cp,), jnp.float32).at[:cout].set(b))
    return (jnp.stack(ws).astype(jnp.bfloat16),
            jnp.stack(bs).reshape(len(params), 1, cp))


@jax.jit
def vgg_block_forward(x_nchw, params):
    N, c_in, H, W = x_nchw.shape
    c_out = params[-1][1].shape[0]
    # Lane-dense channel padding.  Note for v6e/v7x (256-wide MXU): when
    # 128 < c_out <= 256, round to 256 instead to keep the array full.
    cp = _round_up(max(c_in, c_out), 128)
    w_all, b_all = _pack_params(params, cp)
    # NCHW -> NHWC once at the block boundary; bf16 cast fuses into it.
    x = jnp.transpose(x_nchw, (0, 2, 3, 1)).astype(jnp.bfloat16)
    out = vgg_block_fused(x, w_all, b_all, c_out)    # (N, c_out, H*W) f32
    return out.reshape(N, c_out, H, W)               # already NCHW: free reshape


# ----------------------------------------------------------------------------
# Pure-JAX reference (mirrors the PyTorch semantics) for a sanity check.
# ----------------------------------------------------------------------------
def vgg_block_reference(x_nchw, params):
    x = x_nchw
    for w_hwio, b in params:
        x = jax.lax.conv_general_dilated(
            x, w_hwio,
            window_strides=(1, 1), padding=((1, 1), (1, 1)),
            dimension_numbers=("NCHW", "HWIO", "NCHW"),
        ) + b.reshape(1, -1, 1, 1)
        x = jnp.maximum(x, 0.0)
    xp = jnp.pad(x, ((0, 0), (0, 0), (1, 1), (1, 1)))
    return jax.lax.reduce_window(
        xp, 0.0, jax.lax.add, (1, 1, 3, 3), (1, 1, 1, 1), "VALID") / 9.0


if __name__ == "__main__":
    key = jax.random.PRNGKey(0)
    key, kx = jax.random.split(key)

    N, Cin, Cout, H, W, num_conv_layers = 2, 4, 8, 16, 16, 2
    x = jax.random.normal(kx, (N, Cin, H, W), jnp.float32)
    params = init_vgg_block_params(key, Cin, Cout, num_conv_layers)

    out = jax.block_until_ready(vgg_block_forward(x, params))
    ref = vgg_block_reference(x, params)

    assert out.shape == (N, Cout, H, W), out.shape
    # bf16 resident activations + bf16 MXU inputs with f32 accumulation.
    max_err = float(jnp.max(jnp.abs(out - ref)))
    assert jnp.allclose(out, ref, rtol=5e-2, atol=5e-2), max_err

    print("KERNEL_OK")
</pallas_src>

<mosaic_0001>
module attributes {stable_mosaic.version = 11 : i64} {
  func.func @_vgg_block_kernel(%arg0: i32, %arg1: memref<1x16x16x4xbf16, #tpu.memory_space<vmem>>, %arg2: memref<2x9x128x128xbf16, #tpu.memory_space<vmem>>, %arg3: memref<2x1x128xf32, #tpu.memory_space<vmem>>, %arg4: memref<1x8x256xf32, #tpu.memory_space<vmem>>, %arg5: memref<18x18x128xbf16, #tpu.memory_space<vmem>>) attributes {dimension_semantics = [#tpu.dimension_semantics<parallel>], iteration_bounds = array<i64: 2>, scalar_prefetch = 0 : i64, scratch_operands = 1 : i64, tpu.core_type = #tpu.core_type<tc>, window_params = [{transform_indices = @transform_0, window_bounds = array<i64: 1, 16, 16, 4>}, {pipeline_mode = #tpu.pipeline_mode<synchronous>, transform_indices = @transform_1, window_bounds = array<i64: 2, 9, 128, 128>}, {pipeline_mode = #tpu.pipeline_mode<synchronous>, transform_indices = @transform_2, window_bounds = array<i64: 2, 1, 128>}, {transform_indices = @transform_3, window_bounds = array<i64: 1, 8, 256>}]} {
    %cst = arith.constant 0.000000e+00 : bf16
    %0 = vector.broadcast %cst : bf16 to vector<1x18x128xbf16>
    %c0 = arith.constant 0 : index
    %c0_0 = arith.constant 0 : index
    %c0_1 = arith.constant 0 : index
    %1 = vector.load %arg5[%c0, %c0_0, %c0_1] : memref<18x18x128xbf16, #tpu.memory_space<vmem>>, vector<1x18x128xbf16>
    tpu.vector_store %arg5[%c0, %c0_0, %c0_1], %0 {strides = array<i32>} : memref<18x18x128xbf16, #tpu.memory_space<vmem>>, vector<1x18x128xbf16>,
    %cst_2 = arith.constant 0.000000e+00 : bf16
    %2 = vector.broadcast %cst_2 : bf16 to vector<1x18x128xbf16>
    %c17 = arith.constant 17 : index
    %c0_3 = arith.constant 0 : index
    %c0_4 = arith.constant 0 : index
    %3 = vector.load %arg5[%c17, %c0_3, %c0_4] : memref<18x18x128xbf16, #tpu.memory_space<vmem>>, vector<1x18x128xbf16>
    tpu.vector_store %arg5[%c17, %c0_3, %c0_4], %2 {strides = array<i32>} : memref<18x18x128xbf16, #tpu.memory_space<vmem>>, vector<1x18x128xbf16>,
    %cst_5 = arith.constant 0.000000e+00 : bf16
    %4 = vector.broadcast %cst_5 : bf16 to vector<16x1x128xbf16>
    %c1 = arith.constant 1 : index
    %c0_6 = arith.constant 0 : index
    %c0_7 = arith.constant 0 : index
    %5 = vector.load %arg5[%c1, %c0_6, %c0_7] : memref<18x18x128xbf16, #tpu.memory_space<vmem>>, vector<16x1x128xbf16>
    tpu.vector_store %arg5[%c1, %c0_6, %c0_7], %4 {strides = array<i32>} : memref<18x18x128xbf16, #tpu.memory_space<vmem>>, vector<16x1x128xbf16>,
    %cst_8 = arith.constant 0.000000e+00 : bf16
    %6 = vector.broadcast %cst_8 : bf16 to vector<16x1x128xbf16>
    %c1_9 = arith.constant 1 : index
    %c17_10 = arith.constant 17 : index
    %c0_11 = arith.constant 0 : index
    %7 = vector.load %arg5[%c1_9, %c17_10, %c0_11] : memref<18x18x128xbf16, #tpu.memory_space<vmem>>, vector<16x1x128xbf16>
    tpu.vector_store %arg5[%c1_9, %c17_10, %c0_11], %6 {strides = array<i32>} : memref<18x18x128xbf16, #tpu.memory_space<vmem>>, vector<16x1x128xbf16>,
    %cst_12 = arith.constant 0.000000e+00 : bf16
    %8 = vector.broadcast %cst_12 : bf16 to vector<16x16x124xbf16>
    %c1_13 = arith.constant 1 : index
    %c1_14 = arith.constant 1 : index
    %c4 = arith.constant 4 : index
    %9 = vector.load %arg5[%c1_13, %c1_14, %c4] : memref<18x18x128xbf16, #tpu.memory_space<vmem>>, vector<16x16x124xbf16>
    tpu.vector_store %arg5[%c1_13, %c1_14, %c4], %8 {strides = array<i32>} : memref<18x18x128xbf16, #tpu.memory_space<vmem>>, vector<16x16x124xbf16>,
    %c0_15 = arith.constant 0 : index
    %c0_16 = arith.constant 0 : index
    %c0_17 = arith.constant 0 : index
    %c0_18 = arith.constant 0 : index
    %10 = vector.load %arg1[%c0_15, %c0_16, %c0_17, %c0_18] : memref<1x16x16x4xbf16, #tpu.memory_space<vmem>>, vector<1x16x16x4xbf16>
    %11 = vector.shape_cast %10 : vector<1x16x16x4xbf16> to vector<16x16x4xbf16>
    %c1_19 = arith.constant 1 : index
    %c1_20 = arith.constant 1 : index
    %c0_21 = arith.constant 0 : index
    %12 = vector.load %arg5[%c1_19, %c1_20, %c0_21] : memref<18x18x128xbf16, #tpu.memory_space<vmem>>, vector<16x16x4xbf16>
    tpu.vector_store %arg5[%c1_19, %c1_20, %c0_21], %11 {strides = array<i32>} : memref<18x18x128xbf16, #tpu.memory_space<vmem>>, vector<16x16x4xbf16>,
    %c0_22 = arith.constant 0 : index
    %c0_23 = arith.constant 0 : index
    %c0_24 = arith.constant 0 : index
    %13 = vector.load %arg5[%c0_22, %c0_23, %c0_24] : memref<18x18x128xbf16, #tpu.memory_space<vmem>>, vector<16x16x128xbf16>
    %14 = vector.shape_cast %13 : vector<16x16x128xbf16> to vector<256x128xbf16>
    %c0_25 = arith.constant 0 : index
    %c0_26 = arith.constant 0 : index
    %c0_27 = arith.constant 0 : index
    %c0_28 = arith.constant 0 : index
    %15 = vector.load %arg2[%c0_25, %c0_26, %c0_27, %c0_28] : memref<2x9x128x128xbf16, #tpu.memory_space<vmem>>, vector<1x1x128x128xbf16>
    %16 = vector.shape_cast %15 : vector<1x1x128x128xbf16> to vector<128x128xbf16>
    %cst_29 = arith.constant dense<0.000000e+00> : vector<256x128xf32>
    %17 = tpu.matmul %14, %16, %cst_29 {dimension_numbers = #tpu.dot_dimension_numbers<[1], [0], [0], [1], [0, 0, 1, 1], [], []>} : vector<256x128xbf16>, vector<128x128xbf16>, vector<256x128xf32> -> vector<256x128xf32>
    %c0_30 = arith.constant 0 : index
    %c1_31 = arith.constant 1 : index
    %c0_32 = arith.constant 0 : index
    %18 = vector.load %arg5[%c0_30, %c1_31, %c0_32] : memref<18x18x128xbf16, #tpu.memory_space<vmem>>, vector<16x16x128xbf16>
    %19 = vector.shape_cast %18 : vector<16x16x128xbf16> to vector<256x128xbf16>
    %c0_33 = arith.constant 0 : index
    %c1_34 = arith.constant 1 : index
    %c0_35 = arith.constant 0 : index
    %c0_36 = arith.constant 0 : index
    %20 = vector.load %arg2[%c0_33, %c1_34, %c0_35, %c0_36] : memref<2x9x128x128xbf16, #tpu.memory_space<vmem>>, vector<1x1x128x128xbf16>
    %21 = vector.shape_cast %20 : vector<1x1x128x128xbf16> to vector<128x128xbf16>
    %cst_37 = arith.constant dense<0.000000e+00> : vector<256x128xf32>
    %22 = tpu.matmul %19, %21, %cst_37 {dimension_numbers = #tpu.dot_dimension_numbers<[1], [0], [0], [1], [0, 0, 1, 1], [], []>} : vector<256x128xbf16>, vector<128x128xbf16>, vector<256x128xf32> -> vector<256x128xf32>
    %23 = arith.addf %17, %22 : vector<256x128xf32>
    %c0_38 = arith.constant 0 : index
    %c2 = arith.constant 2 : index
    %c0_39 = arith.constant 0 : index
    %24 = vector.load %arg5[%c0_38, %c2, %c0_39] : memref<18x18x128xbf16, #tpu.memory_space<vmem>>, vector<16x16x128xbf16>
    %25 = vector.shape_cast %24 : vector<16x16x128xbf16> to vector<256x128xbf16>
    %c0_40 = arith.constant 0 : index
    %c2_41 = arith.constant 2 : index
    %c0_42 = arith.constant 0 : index
    %c0_43 = arith.constant 0 : index
    %26 = vector.load %arg2[%c0_40, %c2_41, %c0_42, %c0_43] : memref<2x9x128x128xbf16, #tpu.memory_space<vmem>>, vector<1x1x128x128xbf16>
    %27 = vector.shape_cast %26 : vector<1x1x128x128xbf16> to vector<128x128xbf16>
    %cst_44 = arith.constant dense<0.000000e+00> : vector<256x128xf32>
    %28 = tpu.matmul %25, %27, %cst_44 {dimension_numbers = #tpu.dot_dimension_numbers<[1], [0], [0], [1], [0, 0, 1, 1], [], []>} : vector<256x128xbf16>, vector<128x128xbf16>, vector<256x128xf32> -> vector<256x128xf32>
    %29 = arith.addf %23, %28 : vector<256x128xf32>
    %c1_45 = arith.constant 1 : index
    %c0_46 = arith.constant 0 : index
    %c0_47 = arith.constant 0 : index
    %30 = vector.load %arg5[%c1_45, %c0_46, %c0_47] : memref<18x18x128xbf16, #tpu.memory_space<vmem>>, vector<16x16x128xbf16>
    %31 = vector.shape_cast %30 : vector<16x16x128xbf16> to vector<256x128xbf16>
    %c0_48 = arith.constant 0 : index
    %c3 = arith.constant 3 : index
    %c0_49 = arith.constant 0 : index
    %c0_50 = arith.constant 0 : index
    %32 = vector.load %arg2[%c0_48, %c3, %c0_49, %c0_50] : memref<2x9x128x128xbf16, #tpu.memory_space<vmem>>, vector<1x1x128x128xbf16>
    %33 = vector.shape_cast %32 : vector<1x1x128x128xbf16> to vector<128x128xbf16>
    %cst_51 = arith.constant dense<0.000000e+00> : vector<256x128xf32>
    %34 = tpu.matmul %31, %33, %cst_51 {dimension_numbers = #tpu.dot_dimension_numbers<[1], [0], [0], [1], [0, 0, 1, 1], [], []>} : vector<256x128xbf16>, vector<128x128xbf16>, vector<256x128xf32> -> vector<256x128xf32>
    %35 = arith.addf %29, %34 : vector<256x128xf32>
    %c1_52 = arith.constant 1 : index
    %c1_53 = arith.constant 1 : index
    %c0_54 = arith.constant 0 : index
    %36 = vector.load %arg5[%c1_52, %c1_53, %c0_54] : memref<18x18x128xbf16, #tpu.memory_space<vmem>>, vector<16x16x128xbf16>
    %37 = vector.shape_cast %36 : vector<16x16x128xbf16> to vector<256x128xbf16>
    %c0_55 = arith.constant 0 : index
    %c4_56 = arith.constant 4 : index
    %c0_57 = arith.constant 0 : index
    %c0_58 = arith.constant 0 : index
    %38 = vector.load %arg2[%c0_55, %c4_56, %c0_57, %c0_58] : memref<2x9x128x128xbf16, #tpu.memory_space<vmem>>, vector<1x1x128x128xbf16>
    %39 = vector.shape_cast %38 : vector<1x1x128x128xbf16> to vector<128x128xbf16>
    %cst_59 = arith.constant dense<0.000000e+00> : vector<256x128xf32>
    %40 = tpu.matmul %37, %39, %cst_59 {dimension_numbers = #tpu.dot_dimension_numbers<[1], [0], [0], [1], [0, 0, 1, 1], [], []>} : vector<256x128xbf16>, vector<128x128xbf16>, vector<256x128xf32> -> vector<256x128xf32>
    %41 = arith.addf %35, %40 : vector<256x128xf32>
    %c1_60 = arith.constant 1 : index
    %c2_61 = arith.constant 2 : index
    %c0_62 = arith.constant 0 : index
    %42 = vector.load %arg5[%c1_60, %c2_61, %c0_62] : memref<18x18x128xbf16, #tpu.memory_space<vmem>>, vector<16x16x128xbf16>
    %43 = vector.shape_cast %42 : vector<16x16x128xbf16> to vector<256x128xbf16>
    %c0_63 = arith.constant 0 : index
    %c5 = arith.constant 5 : index
    %c0_64 = arith.constant 0 : index
    %c0_65 = arith.constant 0 : index
    %44 = vector.load %arg2[%c0_63, %c5, %c0_64, %c0_65] : memref<2x9x128x128xbf16, #tpu.memory_space<vmem>>, vector<1x1x128x128xbf16>
    %45 = vector.shape_cast %44 : vector<1x1x128x128xbf16> to vector<128x128xbf16>
    %cst_66 = arith.constant dense<0.000000e+00> : vector<256x128xf32>
    %46 = tpu.matmul %43, %45, %cst_66 {dimension_numbers = #tpu.dot_dimension_numbers<[1], [0], [0], [1], [0, 0, 1, 1], [], []>} : vector<256x128xbf16>, vector<128x128xbf16>, vector<256x128xf32> -> vector<256x128xf32>
    %47 = arith.addf %41, %46 : vector<256x128xf32>
    %c2_67 = arith.constant 2 : index
    %c0_68 = arith.constant 0 : index
    %c0_69 = arith.constant 0 : index
    %48 = vector.load %arg5[%c2_67, %c0_68, %c0_69] : memref<18x18x128xbf16, #tpu.memory_space<vmem>>, vector<16x16x128xbf16>
    %49 = vector.shape_cast %48 : vector<16x16x128xbf16> to vector<256x128xbf16>
    %c0_70 = arith.constant 0 : index
    %c6 = arith.constant 6 : index
    %c0_71 = arith.constant 0 : index
    %c0_72 = arith.constant 0 : index
    %50 = vector.load %arg2[%c0_70, %c6, %c0_71, %c0_72] : memref<2x9x128x128xbf16, #tpu.memory_space<vmem>>, vector<1x1x128x128xbf16>
    %51 = vector.shape_cast %50 : vector<1x1x128x128xbf16> to vector<128x128xbf16>
    %cst_73 = arith.constant dense<0.000000e+00> : vector<256x128xf32>
    %52 = tpu.matmul %49, %51, %cst_73 {dimension_numbers = #tpu.dot_dimension_numbers<[1], [0], [0], [1], [0, 0, 1, 1], [], []>} : vector<256x128xbf16>, vector<128x128xbf16>, vector<256x128xf32> -> vector<256x128xf32>
    %53 = arith.addf %47, %52 : vector<256x128xf32>
    %c2_74 = arith.constant 2 : index
    %c1_75 = arith.constant 1 : index
    %c0_76 = arith.constant 0 : index
    %54 = vector.load %arg5[%c2_74, %c1_75, %c0_76] : memref<18x18x128xbf16, #tpu.memory_space<vmem>>, vector<16x16x128xbf16>
    %55 = vector.shape_cast %54 : vector<16x16x128xbf16> to vector<256x128xbf16>
    %c0_77 = arith.constant 0 : index
    %c7 = arith.constant 7 : index
    %c0_78 = arith.constant 0 : index
    %c0_79 = arith.constant 0 : index
    %56 = vector.load %arg2[%c0_77, %c7, %c0_78, %c0_79] : memref<2x9x128x128xbf16, #tpu.memory_space<vmem>>, vector<1x1x128x128xbf16>
    %57 = vector.shape_cast %56 : vector<1x1x128x128xbf16> to vector<128x128xbf16>
    %cst_80 = arith.constant dense<0.000000e+00> : vector<256x128xf32>
    %58 = tpu.matmul %55, %57, %cst_80 {dimension_numbers = #tpu.dot_dimension_numbers<[1], [0], [0], [1], [0, 0, 1, 1], [], []>} : vector<256x128xbf16>, vector<128x128xbf16>, vector<256x128xf32> -> vector<256x128xf32>
    %59 = arith.addf %53, %58 : vector<256x128xf32>
    %c2_81 = arith.constant 2 : index
    %c2_82 = arith.constant 2 : index
    %c0_83 = arith.constant 0 : index
    %60 = vector.load %arg5[%c2_81, %c2_82, %c0_83] : memref<18x18x128xbf16, #tpu.memory_space<vmem>>, vector<16x16x128xbf16>
    %61 = vector.shape_cast %60 : vector<16x16x128xbf16> to vector<256x128xbf16>
    %c0_84 = arith.constant 0 : index
    %c8 = arith.constant 8 : index
    %c0_85 = arith.constant 0 : index
    %c0_86 = arith.constant 0 : index
    %62 = vector.load %arg2[%c0_84, %c8, %c0_85, %c0_86] : memref<2x9x128x128xbf16, #tpu.memory_space<vmem>>, vector<1x1x128x128xbf16>
    %63 = vector.shape_cast %62 : vector<1x1x128x128xbf16> to vector<128x128xbf16>
    %cst_87 = arith.constant dense<0.000000e+00> : vector<256x128xf32>
    %64 = tpu.matmul %61, %63, %cst_87 {dimension_numbers = #tpu.dot_dimension_numbers<[1], [0], [0], [1], [0, 0, 1, 1], [], []>} : vector<256x128xbf16>, vector<128x128xbf16>, vector<256x128xf32> -> vector<256x128xf32>
    %65 = arith.addf %59, %64 : vector<256x128xf32>
    %c0_88 = arith.constant 0 : index
    %c0_89 = arith.constant 0 : index
    %c0_90 = arith.constant 0 : index
    %66 = vector.load %arg3[%c0_88, %c0_89, %c0_90] : memref<2x1x128xf32, #tpu.memory_space<vmem>>, vector<1x1x128xf32>
    %67 = vector.shape_cast %66 : vector<1x1x128xf32> to vector<1x128xf32>
    %68 = vector.broadcast %67 : vector<1x128xf32> to vector<256x128xf32>
    %69 = arith.addf %65, %68 : vector<256x128xf32>
    %cst_91 = arith.constant 0.000000e+00 : f32
    %70 = vector.broadcast %cst_91 : f32 to vector<256x128xf32>
    %71 = arith.maximumf %69, %70 : vector<256x128xf32>
    %72 = vector.shape_cast %71 : vector<256x128xf32> to vector<16x16x128xf32>
    %73 = arith.truncf %72 : vector<16x16x128xf32> to vector<16x16x128xbf16>
    %c1_92 = arith.constant 1 : index
    %c1_93 = arith.constant 1 : index
    %c0_94 = arith.constant 0 : index
    %74 = vector.load %arg5[%c1_92, %c1_93, %c0_94] : memref<18x18x128xbf16, #tpu.memory_space<vmem>>, vector<16x16x128xbf16>
    tpu.vector_store %arg5[%c1_92, %c1_93, %c0_94], %73 {strides = array<i32>} : memref<18x18x128xbf16, #tpu.memory_space<vmem>>, vector<16x16x128xbf16>,
    %c0_95 = arith.constant 0 : index
    %c0_96 = arith.constant 0 : index
    %c0_97 = arith.constant 0 : index
    %75 = vector.load %arg5[%c0_95, %c0_96, %c0_97] : memref<18x18x128xbf16, #tpu.memory_space<vmem>>, vector<16x16x128xbf16>
    %76 = vector.shape_cast %75 : vector<16x16x128xbf16> to vector<256x128xbf16>
    %c1_98 = arith.constant 1 : index
    %c0_99 = arith.constant 0 : index
    %c0_100 = arith.constant 0 : index
    %c0_101 = arith.constant 0 : index
    %77 = vector.load %arg2[%c1_98, %c0_99, %c0_100, %c0_101] : memref<2x9x128x128xbf16, #tpu.memory_space<vmem>>, vector<1x1x128x128xbf16>
    %78 = vector.shape_cast %77 : vector<1x1x128x128xbf16> to vector<128x128xbf16>
    %cst_102 = arith.constant dense<0.000000e+00> : vector<256x128xf32>
    %79 = tpu.matmul %76, %78, %cst_102 {dimension_numbers = #tpu.dot_dimension_numbers<[1], [0], [0], [1], [0, 0, 1, 1], [], []>} : vector<256x128xbf16>, vector<128x128xbf16>, vector<256x128xf32> -> vector<256x128xf32>
    %c0_103 = arith.constant 0 : index
    %c1_104 = arith.constant 1 : index
    %c0_105 = arith.constant 0 : index
    %80 = vector.load %arg5[%c0_103, %c1_104, %c0_105] : memref<18x18x128xbf16, #tpu.memory_space<vmem>>, vector<16x16x128xbf16>
    %81 = vector.shape_cast %80 : vector<16x16x128xbf16> to vector<256x128xbf16>
    %c1_106 = arith.constant 1 : index
    %c1_107 = arith.constant 1 : index
    %c0_108 = arith.constant 0 : index
    %c0_109 = arith.constant 0 : index
    %82 = vector.load %arg2[%c1_106, %c1_107, %c0_108, %c0_109] : memref<2x9x128x128xbf16, #tpu.memory_space<vmem>>, vector<1x1x128x128xbf16>
    %83 = vector.shape_cast %82 : vector<1x1x128x128xbf16> to vector<128x128xbf16>
    %cst_110 = arith.constant dense<0.000000e+00> : vector<256x128xf32>
    %84 = tpu.matmul %81, %83, %cst_110 {dimension_numbers = #tpu.dot_dimension_numbers<[1], [0], [0], [1], [0, 0, 1, 1], [], []>} : vector<256x128xbf16>, vector<128x128xbf16>, vector<256x128xf32> -> vector<256x128xf32>
    %85 = arith.addf %79, %84 : vector<256x128xf32>
    %c0_111 = arith.constant 0 : index
    %c2_112 = arith.constant 2 : index
    %c0_113 = arith.constant 0 : index
    %86 = vector.load %arg5[%c0_111, %c2_112, %c0_113] : memref<18x18x128xbf16, #tpu.memory_space<vmem>>, vector<16x16x128xbf16>
    %87 = vector.shape_cast %86 : vector<16x16x128xbf16> to vector<256x128xbf16>
    %c1_114 = arith.constant 1 : index
    %c2_115 = arith.constant 2 : index
    %c0_116 = arith.constant 0 : index
    %c0_117 = arith.constant 0 : index
    %88 = vector.load %arg2[%c1_114, %c2_115, %c0_116, %c0_117] : memref<2x9x128x128xbf16, #tpu.memory_space<vmem>>, vector<1x1x128x128xbf16>
    %89 = vector.shape_cast %88 : vector<1x1x128x128xbf16> to vector<128x128xbf16>
    %cst_118 = arith.constant dense<0.000000e+00> : vector<256x128xf32>
    %90 = tpu.matmul %87, %89, %cst_118 {dimension_numbers = #tpu.dot_dimension_numbers<[1], [0], [0], [1], [0, 0, 1, 1], [], []>} : vector<256x128xbf16>, vector<128x128xbf16>, vector<256x128xf32> -> vector<256x128xf32>
    %91 = arith.addf %85, %90 : vector<256x128xf32>
    %c1_119 = arith.constant 1 : index
    %c0_120 = arith.constant 0 : index
    %c0_121 = arith.constant 0 : index
    %92 = vector.load %arg5[%c1_119, %c0_120, %c0_121] : memref<18x18x128xbf16, #tpu.memory_space<vmem>>, vector<16x16x128xbf16>
    %93 = vector.shape_cast %92 : vector<16x16x128xbf16> to vector<256x128xbf16>
    %c1_122 = arith.constant 1 : index
    %c3_123 = arith.constant 3 : index
    %c0_124 = arith.constant 0 : index
    %c0_125 = arith.constant 0 : index
    %94 = vector.load %arg2[%c1_122, %c3_123, %c0_124, %c0_125] : memref<2x9x128x128xbf16, #tpu.memory_space<vmem>>, vector<1x1x128x128xbf16>
    %95 = vector.shape_cast %94 : vector<1x1x128x128xbf16> to vector<128x128xbf16>
    %cst_126 = arith.constant dense<0.000000e+00> : vector<256x128xf32>
    %96 = tpu.matmul %93, %95, %cst_126 {dimension_numbers = #tpu.dot_dimension_numbers<[1], [0], [0], [1], [0, 0, 1, 1], [], []>} : vector<256x128xbf16>, vector<128x128xbf16>, vector<256x128xf32> -> vector<256x128xf32>
    %97 = arith.addf %91, %96 : vector<256x128xf32>
    %c1_127 = arith.constant 1 : index
    %c1_128 = arith.constant 1 : index
    %c0_129 = arith.constant 0 : index
    %98 = vector.load %arg5[%c1_127, %c1_128, %c0_129] : memref<18x18x128xbf16, #tpu.memory_space<vmem>>, vector<16x16x128xbf16>
    %99 = vector.shape_cast %98 : vector<16x16x128xbf16> to vector<256x128xbf16>
    %c1_130 = arith.constant 1 : index
    %c4_131 = arith.constant 4 : index
    %c0_132 = arith.constant 0 : index
    %c0_133 = arith.constant 0 : index
    %100 = vector.load %arg2[%c1_130, %c4_131, %c0_132, %c0_133] : memref<2x9x128x128xbf16, #tpu.memory_space<vmem>>, vector<1x1x128x128xbf16>
    %101 = vector.shape_cast %100 : vector<1x1x128x128xbf16> to vector<128x128xbf16>
    %cst_134 = arith.constant dense<0.000000e+00> : vector<256x128xf32>
    %102 = tpu.matmul %99, %101, %cst_134 {dimension_numbers = #tpu.dot_dimension_numbers<[1], [0], [0], [1], [0, 0, 1, 1], [], []>} : vector<256x128xbf16>, vector<128x128xbf16>, vector<256x128xf32> -> vector<256x128xf32>
    %103 = arith.addf %97, %102 : vector<256x128xf32>
    %c1_135 = arith.constant 1 : index
    %c2_136 = arith.constant 2 : index
    %c0_137 = arith.constant 0 : index
    %104 = vector.load %arg5[%c1_135, %c2_136, %c0_137] : memref<18x18x128xbf16, #tpu.memory_space<vmem>>, vector<16x16x128xbf16>
    %105 = vector.shape_cast %104 : vector<16x16x128xbf16> to vector<256x128xbf16>
    %c1_138 = arith.constant 1 : index
    %c5_139 = arith.constant 5 : index
    %c0_140 = arith.constant 0 : index
    %c0_141 = arith.constant 0 : index
    %106 = vector.load %arg2[%c1_138, %c5_139, %c0_140, %c0_141] : memref<2x9x128x128xbf16, #tpu.memory_space<vmem>>, vector<1x1x128x128xbf16>
    %107 = vector.shape_cast %106 : vector<1x1x128x128xbf16> to vector<128x128xbf16>
    %cst_142 = arith.constant dense<0.000000e+00> : vector<256x128xf32>
    %108 = tpu.matmul %105, %107, %cst_142 {dimension_numbers = #tpu.dot_dimension_numbers<[1], [0], [0], [1], [0, 0, 1, 1], [], []>} : vector<256x128xbf16>, vector<128x128xbf16>, vector<256x128xf32> -> vector<256x128xf32>
    %109 = arith.addf %103, %108 : vector<256x128xf32>
    %c2_143 = arith.constant 2 : index
    %c0_144 = arith.constant 0 : index
    %c0_145 = arith.constant 0 : index
    %110 = vector.load %arg5[%c2_143, %c0_144, %c0_145] : memref<18x18x128xbf16, #tpu.memory_space<vmem>>, vector<16x16x128xbf16>
    %111 = vector.shape_cast %110 : vector<16x16x128xbf16> to vector<256x128xbf16>
    %c1_146 = arith.constant 1 : index
    %c6_147 = arith.constant 6 : index
    %c0_148 = arith.constant 0 : index
    %c0_149 = arith.constant 0 : index
    %112 = vector.load %arg2[%c1_146, %c6_147, %c0_148, %c0_149] : memref<2x9x128x128xbf16, #tpu.memory_space<vmem>>, vector<1x1x128x128xbf16>
    %113 = vector.shape_cast %112 : vector<1x1x128x128xbf16> to vector<128x128xbf16>
    %cst_150 = arith.constant dense<0.000000e+00> : vector<256x128xf32>
    %114 = tpu.matmul %111, %113, %cst_150 {dimension_numbers = #tpu.dot_dimension_numbers<[1], [0], [0], [1], [0, 0, 1, 1], [], []>} : vector<256x128xbf16>, vector<128x128xbf16>, vector<256x128xf32> -> vector<256x128xf32>
    %115 = arith.addf %109, %114 : vector<256x128xf32>
    %c2_151 = arith.constant 2 : index
    %c1_152 = arith.constant 1 : index
    %c0_153 = arith.constant 0 : index
    %116 = vector.load %arg5[%c2_151, %c1_152, %c0_153] : memref<18x18x128xbf16, #tpu.memory_space<vmem>>, vector<16x16x128xbf16>
    %117 = vector.shape_cast %116 : vector<16x16x128xbf16> to vector<256x128xbf16>
    %c1_154 = arith.constant 1 : index
    %c7_155 = arith.constant 7 : index
    %c0_156 = arith.constant 0 : index
    %c0_157 = arith.constant 0 : index
    %118 = vector.load %arg2[%c1_154, %c7_155, %c0_156, %c0_157] : memref<2x9x128x128xbf16, #tpu.memory_space<vmem>>, vector<1x1x128x128xbf16>
    %119 = vector.shape_cast %118 : vector<1x1x128x128xbf16> to vector<128x128xbf16>
    %cst_158 = arith.constant dense<0.000000e+00> : vector<256x128xf32>
    %120 = tpu.matmul %117, %119, %cst_158 {dimension_numbers = #tpu.dot_dimension_numbers<[1], [0], [0], [1], [0, 0, 1, 1], [], []>} : vector<256x128xbf16>, vector<128x128xbf16>, vector<256x128xf32> -> vector<256x128xf32>
    %121 = arith.addf %115, %120 : vector<256x128xf32>
    %c2_159 = arith.constant 2 : index
    %c2_160 = arith.constant 2 : index
    %c0_161 = arith.constant 0 : index
    %122 = vector.load %arg5[%c2_159, %c2_160, %c0_161] : memref<18x18x128xbf16, #tpu.memory_space<vmem>>, vector<16x16x128xbf16>
    %123 = vector.shape_cast %122 : vector<16x16x128xbf16> to vector<256x128xbf16>
    %c1_162 = arith.constant 1 : index
    %c8_163 = arith.constant 8 : index
    %c0_164 = arith.constant 0 : index
    %c0_165 = arith.constant 0 : index
    %124 = vector.load %arg2[%c1_162, %c8_163, %c0_164, %c0_165] : memref<2x9x128x128xbf16, #tpu.memory_space<vmem>>, vector<1x1x128x128xbf16>
    %125 = vector.shape_cast %124 : vector<1x1x128x128xbf16> to vector<128x128xbf16>
    %cst_166 = arith.constant dense<0.000000e+00> : vector<256x128xf32>
    %126 = tpu.matmul %123, %125, %cst_166 {dimension_numbers = #tpu.dot_dimension_numbers<[1], [0], [0], [1], [0, 0, 1, 1], [], []>} : vector<256x128xbf16>, vector<128x128xbf16>, vector<256x128xf32> -> vector<256x128xf32>
    %127 = arith.addf %121, %126 : vector<256x128xf32>
    %c1_167 = arith.constant 1 : index
    %c0_168 = arith.constant 0 : index
    %c0_169 = arith.constant 0 : index
    %128 = vector.load %arg3[%c1_167, %c0_168, %c0_169] : memref<2x1x128xf32, #tpu.memory_space<vmem>>, vector<1x1x128xf32>
    %129 = vector.shape_cast %128 : vector<1x1x128xf32> to vector<1x128xf32>
    %130 = vector.broadcast %129 : vector<1x128xf32> to vector<256x128xf32>
    %131 = arith.addf %127, %130 : vector<256x128xf32>
    %cst_170 = arith.constant 0.000000e+00 : f32
    %132 = vector.broadcast %cst_170 : f32 to vector<256x128xf32>
    %133 = arith.maximumf %131, %132 : vector<256x128xf32>
    %134 = vector.shape_cast %133 : vector<256x128xf32> to vector<16x16x128xf32>
    %135 = arith.truncf %134 : vector<16x16x128xf32> to vector<16x16x128xbf16>
    %c1_171 = arith.constant 1 : index
    %c1_172 = arith.constant 1 : index
    %c0_173 = arith.constant 0 : index
    %136 = vector.load %arg5[%c1_171, %c1_172, %c0_173] : memref<18x18x128xbf16, #tpu.memory_space<vmem>>, vector<16x16x128xbf16>
    tpu.vector_store %arg5[%c1_171, %c1_172, %c0_173], %135 {strides = array<i32>} : memref<18x18x128xbf16, #tpu.memory_space<vmem>>, vector<16x16x128xbf16>,
    %c0_174 = arith.constant 0 : index
    %c0_175 = arith.constant 0 : index
    %c0_176 = arith.constant 0 : index
    %137 = vector.load %arg5[%c0_174, %c0_175, %c0_176] : memref<18x18x128xbf16, #tpu.memory_space<vmem>>, vector<18x18x128xbf16>
    %138 = arith.extf %137 : vector<18x18x128xbf16> to vector<18x18x128xf32>
    %139 = vector.extract_strided_slice %138 {offsets = [0, 0, 0], sizes = [18, 16, 128], strides = [1, 1, 1]} : vector<18x18x128xf32> to vector<18x16x128xf32>
    %140 = vector.extract_strided_slice %138 {offsets = [0, 1, 0], sizes = [18, 16, 128], strides = [1, 1, 1]} : vector<18x18x128xf32> to vector<18x16x128xf32>
    %141 = arith.addf %139, %140 : vector<18x16x128xf32>
    %142 = vector.extract_strided_slice %138 {offsets = [0, 2, 0], sizes = [18, 16, 128], strides = [1, 1, 1]} : vector<18x18x128xf32> to vector<18x16x128xf32>
    %143 = arith.addf %141, %142 : vector<18x16x128xf32>
    %144 = vector.extract_strided_slice %143 {offsets = [0, 0, 0], sizes = [16, 16, 128], strides = [1, 1, 1]} : vector<18x16x128xf32> to vector<16x16x128xf32>
    %145 = vector.extract_strided_slice %143 {offsets = [1, 0, 0], sizes = [16, 16, 128], strides = [1, 1, 1]} : vector<18x16x128xf32> to vector<16x16x128xf32>
    %146 = arith.addf %144, %145 : vector<16x16x128xf32>
    %147 = vector.extract_strided_slice %143 {offsets = [2, 0, 0], sizes = [16, 16, 128], strides = [1, 1, 1]} : vector<18x16x128xf32> to vector<16x16x128xf32>
    %148 = arith.addf %146, %147 : vector<16x16x128xf32>
    %cst_177 = arith.constant 0.111111112 : f32
    %149 = vector.broadcast %cst_177 : f32 to vector<16x16x128xf32>
    %150 = arith.mulf %148, %149 : vector<16x16x128xf32>
    %151 = vector.shape_cast %150 : vector<16x16x128xf32> to vector<256x128xf32>
    %152 = tpu.transpose %151, [1, 0] : vector<256x128xf32> -> vector<128x256xf32>
    %153 = vector.extract_strided_slice %152 {offsets = [0, 0], sizes = [8, 256], strides = [1, 1]} : vector<128x256xf32> to vector<8x256xf32>
    %c0_178 = arith.constant 0 : index
    %c0_179 = arith.constant 0 : index
    %c0_180 = arith.constant 0 : index
    %154 = vector.load %arg4[%c0_178, %c0_179, %c0_180] : memref<1x8x256xf32, #tpu.memory_space<vmem>>, vector<1x8x256xf32>
    %155 = vector.shape_cast %154 : vector<1x8x256xf32> to vector<8x256xf32>
    %156 = vector.shape_cast %153 : vector<8x256xf32> to vector<1x8x256xf32>
    tpu.vector_store %arg4[%c0_178, %c0_179, %c0_180], %156 {strides = array<i32>} : memref<1x8x256xf32, #tpu.memory_space<vmem>>, vector<1x8x256xf32>,
    return
  }
  func.func @transform_0(%arg0: i32) -> (i32, i32, i32, i32) {
    %c0_i32 = arith.constant 0 : i32
    %c0_i32_0 = arith.constant 0 : i32
    %c0_i32_1 = arith.constant 0 : i32
    %c0_i32_2 = arith.constant 0 : i32
    return %arg0, %c0_i32, %c0_i32_0, %c0_i32_1 : i32, i32, i32, i32
  }
  func.func @transform_1(%arg0: i32) -> (i32, i32, i32, i32) {
    %c0_i32 = arith.constant 0 : i32
    %c0_i32_0 = arith.constant 0 : i32
    %c0_i32_1 = arith.constant 0 : i32
    %c0_i32_2 = arith.constant 0 : i32
    %c0_i32_3 = arith.constant 0 : i32
    return %c0_i32, %c0_i32_0, %c0_i32_1, %c0_i32_2 : i32, i32, i32, i32
  }
  func.func @transform_2(%arg0: i32) -> (i32, i32, i32) {
    %c0_i32 = arith.constant 0 : i32
    %c0_i32_0 = arith.constant 0 : i32
    %c0_i32_1 = arith.constant 0 : i32
    %c0_i32_2 = arith.constant 0 : i32
    return %c0_i32, %c0_i32_0, %c0_i32_1 : i32, i32, i32
  }
  func.func @transform_3(%arg0: i32) -> (i32, i32, i32) {
    %c0_i32 = arith.constant 0 : i32
    %c0_i32_0 = arith.constant 0 : i32
    %c0_i32_1 = arith.constant 0 : i32
    return %arg0, %c0_i32, %c0_i32_0 : i32, i32, i32
  }
}

</mosaic_0001>

<bundles_post_ra>
// kernel: vgg_block_forward.1
= control target key start
LH: loop header
LB: loop body
LE: loop exit
PB: predicated region body
PF: predicated region fallthrough
CT: control target
= control target key end

     0   :  { %s15488_s12 = smov 0   ;;  %s19152_s0 = inlined_call_operand.vmem [shape: bf16[2,16,16,4], index: 0, kind: input, shape index: {}]   ;;  %s19153_s1 = inlined_call_operand.vmem [shape: bf16[2,9,128,128], index: 1, kind: input, shape index: {}]   ;;  %s19154_s2 = inlined_call_operand.vmem [shape: f32[2,1,128], index: 2, kind: input, shape index: {}]   ;;  %s19155_s3 = inlined_call_operand.vmem [shape: f32[2,8,256], index: 3, kind: output, shape index: {}]  }
   0x1 LB: > { %s12383_s13 = sadd.s32 4294967295, %s15465_s12   ;;  %p12387_p0 = scmp.ge.s32.totalorder %s15465_s12, 1  ;;  %s15465_s12 = sphi %s15488_s12, %s13_s12  }
   0x2   : > { %p137_p1 = scmp.lt.s32.totalorder %s15465_s12, 3 }
   0x4   : > { %p138_p2 = pnand %p12387_p0, %p137_p1 }
   0x6   : > { %141 = sbr.rel (%p138_p2) target bundleno = 1952 (0x7a0), region = 32 }
   0xd   : > { %v15188_v0 = vld [vmem:[%s19153_s1 + $0x40] sm:$0xff]   ;;  %v15189_v1 = vld [vmem:[%s19153_s1 + $0x48] sm:$0xff]   ;;  %v15467_v2 = vmov 0   ;;  %p161_p3 = scmp.lt.s32.totalorder %s12383_s13, 1  ;;  %v15190_v3 = vld [vmem:[%s19153_s1 + $0x50] sm:$0xff]   ;;  %vm281_vm0 = vcmask 1043488  }
   0xe   : > { %172 = vst [vmem:[#allocation2] sm:$0xf] %v15467_v2  ;;  %173 = vst [vmem:[#allocation2 + $0x4] sm:$0xf] %v15467_v2  ;;  %13803 = vmatprep.subr.bf16.mxu0 %v15188_v0  ;;  %v15191_v4 = vld [vmem:[%s19153_s1 + $0x58] sm:$0xff]   ;;  %vm180_vm3 = vcmask 1040384  }
   0xf   : > { %174 = vst [vmem:[#allocation2 + $0x8] sm:$0x1] %v15467_v2  ;;  %176 = vst [vmem:[#allocation2 + $0xcc] sm:$0xf] %v15467_v2  ;;  %13804 = vmatpush3.bf16.msra.mxu0 %v15188_v0  ;;  %s19246_s13 = smov (!%p161_p3, %s12383_s13), 1  ;;  %v15192_v15 = vld [vmem:[%s19153_s1 + $0x60] sm:$0xff]  }
  0x10   : > { %177 = vst [vmem:[#allocation2 + $0xd0] sm:$0xf] %v15467_v2  ;;  %178 = vst [vmem:[#allocation2 + $0xd4] sm:$0x1] %v15467_v2  ;;  %13805 = vmatprep.subr.bf16.mxu0 %v15189_v1  ;;  %s13261_s22 = sshll.u32 %s19246_s13, 7  ;;  %v19183_v20 = vmov 0 }
  0x11   : > { %287 = vst.msk [vmem:[#allocation2 + $0x10] sm:$0xf] %vm281_vm0, %v15467_v2  ;;  %296 = vst.msk [vmem:[#allocation2 + $0x1c] sm:$0xf] %vm281_vm0, %v15467_v2  ;;  %vm933_vm1 = vsmask.f32 3328  ;;  %s15530_s25 = scalar_lea.vmem %s19152_s0, %s13261_s22 }
  0x12   : > { %303 = vst.msk [vmem:[#allocation2 + $0x28] sm:$0xf] %vm281_vm0, %v15467_v2  ;;  %310 = vst.msk [vmem:[#allocation2 + $0x34] sm:$0xf] %vm281_vm0, %v15467_v2  ;;  %vm934_vm2 = vsmask.f32 7440 }
  0x13   : > { %317 = vst.msk [vmem:[#allocation2 + $0x40] sm:$0xf] %vm281_vm0, %v15467_v2  ;;  %324 = vst.msk [vmem:[#allocation2 + $0x4c] sm:$0xf] %vm281_vm0, %v15467_v2  ;;  %13806 = vmatpush3.bf16.msra.mxu0 %v15189_v1  ;;  %vm181_vm5 = vsmask.f32 256 }
  0x14   : > { %331 = vst.msk [vmem:[#allocation2 + $0x58] sm:$0xf] %vm281_vm0, %v15467_v2  ;;  %338 = vst.msk [vmem:[#allocation2 + $0x64] sm:$0xf] %vm281_vm0, %v15467_v2  ;;  %13807 = vmatprep.subr.bf16.mxu0 %v15190_v3  ;;  %v183_v21 = vld [vmem:[#allocation2 + $0xc] sm:$0x1] }
  0x15   : > { %345 = vst.msk [vmem:[#allocation2 + $0x70] sm:$0xf] %vm281_vm0, %v15467_v2  ;;  %352 = vst.msk [vmem:[#allocation2 + $0x7c] sm:$0xf] %vm281_vm0, %v15467_v2  ;;  %v869_v5 = vld [vmem:[#allocation2] sm:$0xf] }
  0x16   : > { %359 = vst.msk [vmem:[#allocation2 + $0x88] sm:$0xf] %vm281_vm0, %v15467_v2  ;;  %366 = vst.msk [vmem:[#allocation2 + $0x94] sm:$0xf] %vm281_vm0, %v15467_v2  ;;  %v870_v6 = vld [vmem:[#allocation2 + $0x4] sm:$0xf] }
  0x17   : > { %373 = vst.msk [vmem:[#allocation2 + $0xa0] sm:$0xf] %vm281_vm0, %v15467_v2  ;;  %380 = vst.msk [vmem:[#allocation2 + $0xac] sm:$0xf] %vm281_vm0, %v15467_v2  ;;  %v917_v7 = vld [vmem:[#allocation2 + $0x8] sm:$0x1]  ;;  %13808 = vmatpush3.bf16.msra.mxu0 %v15190_v3 }
  0x18   : > { %387 = vst.msk [vmem:[#allocation2 + $0xb8] sm:$0xf] %vm281_vm0, %v15467_v2  ;;  %394 = vst.msk [vmem:[#allocation2 + $0xc4] sm:$0xf] %vm281_vm0, %v15467_v2  ;;  %v937_v8 = vshrl.u32 %v869_v5, 16  ;;  %v940_v9 = vshll.u32 %v869_v5, 16  ;;  %13809 = vmatprep.subr.bf16.mxu0 %v15191_v4 }
  0x19   : > { %v946_v10 = vshll.u32 %v870_v6, 16  ;;  %v950_v11 = vshrl.u32 %v870_v6, 16  ;;  %v956_v12 = vshll.u32 %v917_v7, 16  ;;  %vm15535_vm4 = vmor %vm933_vm1, %vm934_vm2  ;;  %vm231_vm7 = vsmask.f32 7938  ;;  %v15193_v29 = vld [vmem:[%s19153_s1 + $0x68] sm:$0xff]  }
  0x1a   : > { %v939_v13 = vrot.slane %v937_v8, 4  ;;  %v942_v14 = vrot.slane %v940_v9, 5  ;;  %vm15541_vm6 = vmand %vm180_vm3, %vm181_vm5  ;;  %v233_v22 = vld [vmem:[#allocation2 + $0x14] sm:$0x1]  ;;  %v15554_v27 = vld [vmem:[%s15530_s25] sm:$0xf] }
  0x1b   : > { %v948_v17 = vrot.slane %v946_v10, 5  ;;  %v952_v18 = vrot.slane %v950_v11, 4  ;;  %v19184_v20 = vsel %vm15541_vm6, 4294967295, %v19183_v20  ;;  %v958_v24 = vrot.slane %v956_v12, 5  ;;  %vm15549_vm8 = vmand %vm180_vm3, %vm231_vm7  ;;  %v399_v28 = vld [vmem:[%s15530_s25 + $0x4] sm:$0xf]  ;;  %13810 = vmatpush3.bf16.msra.mxu0 %v15191_v4 }
  0x1c   : > { %v943_v19 = vor.u32 %v942_v14, %v939_v13  ;;  %19185 = vst [vmem:[#allocation3_spill] sm:$0xff] %v19184_v20  ;;  %v184_v25 = vsel %vm15541_vm6, 0, %v183_v21  ;;  %v234_v31 = vsel %vm15549_vm8, 0, %v233_v22  ;;  %vm430_vm9 = vsmask.f32 4368  ;;  %13811 = vmatprep.subr.bf16.mxu0 %v15192_v15  ;;  %v15194_v50 = vld [vmem:[%s19153_s1 + $0x70] sm:$0xff]   ;;  %vm15589_vm13 = vmand %vm281_vm0, %vm231_vm7 }
  0x1d   : > { %v953_v23 = vor.u32 %v952_v18, %v948_v17  ;;  %185 = vst [vmem:[#allocation2 + $0xc] sm:$0x1] %v184_v25  ;;  %v433_v32 = vshrl.u32 %v15554_v27, 16  ;;  %235 = vst [vmem:[#allocation2 + $0x14] sm:$0x1] %v234_v31  ;;  %vm288_vm10 = vcmask 1040416  }
  0x1e   : > { %v944_v30 = vrot.slane %v943_v19, 4  ;;  %v441_v34 = vshrl.u32 %v399_v28, 16  ;;  %v444_v35 = vshll.u32 %v399_v28, 16  ;;  %v186_v36 = vld [vmem:[#allocation2 + $0x18] sm:$0x1]  ;;  %vm15580_vm11 = vmor %vm181_vm5, %vm430_vm9  ;;  %v19188_v48 = vmov 0 }
  0x1f   : > { %v954_v33 = vrot.slane %v953_v23, 4  ;;  %v435_v38 = vrot.slane %v433_v32, 7  ;;  %v187_v39 = vsel %vm15541_vm6, 0, %v186_v36  ;;  %v236_v40 = vld [vmem:[#allocation2 + $0x20] sm:$0x1]  ;;  %13812 = vmatpush3.bf16.msra.mxu0 %v15192_v15  ;;  %v19189_v48 = vsel %vm15580_vm11, 4294967295, %v19188_v48  ;;  %vm15599_vm14 = vmand %vm288_vm10, %vm181_vm5 }
  0x20   : > { %v949_v37 = vsel %vm15535_vm4, %v944_v30, %v948_v17  ;;  %v15568_v41 = vld [vmem:[%s15530_s25 + $0x8] sm:$0xf]  ;;  %v15572_v43 = vrot.slane %v441_v34, 7  ;;  %188 = vst [vmem:[#allocation2 + $0x18] sm:$0x1] %v187_v39  ;;  %v237_v44 = vsel %vm15549_vm8, 0, %v236_v40  ;;  %13813 = vmatprep.subr.bf16.mxu0 %v15193_v29 }
  0x21   : > { %v959_v42 = vsel %vm15535_vm4, %v954_v33, %v958_v24  ;;  %v401_v45 = vld [vmem:[%s15530_s25 + $0xc] sm:$0xf]  ;;  %v450_v46 = vshrl.u32 %v15568_v41, 16  ;;  %19190 = vst [vmem:[#allocation4_spill] sm:$0xff] %v19189_v48  ;;  %v439_v49 = vrot.slane %v435_v38, 4  ;;  %vm752_vm12 = vcmask 27648  }
  0x22   : > { %v12408_v47 = vcombine.low %v949_v37, %v959_v42  ;;  %238 = vst [vmem:[#allocation2 + $0x20] sm:$0x1] %v237_v44  ;;  %v436_v52 = vshll.u32 %v15554_v27, 16  ;;  %v446_v53 = vor.u32 %v444_v35, %v15572_v43  ;;  %v458_v55 = vshrl.u32 %v401_v45, 16  ;;  %v189_v56 = vld [vmem:[#allocation2 + $0x24] sm:$0x1]  ;;  %vm15657_vm0 = vmand %vm752_vm12, %vm231_vm7 }
  0x23   : > { %v15595_v54 = vrot.slane %v450_v46, 7  ;;  %v461_v58 = vshll.u32 %v401_v45, 16  ;;  %v190_v59 = vsel %vm15541_vm6, 0, %v189_v56  ;;  %v239_v60 = vld [vmem:[#allocation2 + $0x2c] sm:$0x1]  ;;  %13814 = vmatpush3.bf16.msra.mxu0 %v15193_v29  ;;  %vm759_vm15 = vcmask 24576  }
  0x24   : > { %13819 = vmatprep.mubr.bf16.mxu0 %v12408_v47  ;;  %v15606_v61 = vld [vmem:[%s15530_s25 + $0x10] sm:$0xf]  ;;  %v283_v62 = vld [vmem:[#allocation2 + $0xc] sm:$0xf]  ;;  %v447_v63 = vsel %vm15580_vm11, %v439_v49, %v446_v53  ;;  %v15611_v1 = vrot.slane %v458_v55, 7  ;;  %v240_v5 = vsel %vm15549_vm8, 0, %v239_v60  ;;  %13815 = vmatprep.subr.bf16.mxu0 %v15194_v50  ;;  %v438_v19 = vor.u32 %v436_v52, %v435_v38  ;;  %vm15663_vm1 = vmand %vm759_vm15, %vm181_vm5 }
  0x25   : > { %v456_v0 = vrot.slane %v15595_v54, 4  ;;  %191 = vst [vmem:[#allocation2 + $0x24] sm:$0x1] %v190_v59  ;;  %v403_v2 = vld [vmem:[%s15530_s25 + $0x14] sm:$0xf]  ;;  %v284_v3 = vsel %vm15589_vm13, 0, %v283_v62 }
  0x26   : > { %v290_v4 = vld [vmem:[#allocation2 + $0x14] sm:$0x1]  ;;  %758 = vst.msk [vmem:[#allocation2 + $0x10] sm:$0xf] %vm752_vm12, %v447_v63  ;;  %v467_v6 = vshrl.u32 %v15606_v61, 16  ;;  %v15195_v7 = vld [vmem:[%s19153_s1 + $0x78] sm:$0xff]   ;;  %v463_v10 = vor.u32 %v461_v58, %v15611_v1 }
  0x27   : > { %285 = vst [vmem:[#allocation2 + $0xc] sm:$0xf] %v284_v3  ;;  %v291_v8 = vsel %vm15599_vm14, 0, %v290_v4  ;;  %v453_v9 = vshll.u32 %v15568_v41, 16  ;;  %241 = vst [vmem:[#allocation2 + $0x2c] sm:$0x1] %v240_v5  ;;  %13816 = vmatpush3.bf16.msra.mxu0 %v15194_v50 }
  0x28   : > { %v475_v11 = vshrl.u32 %v403_v2, 16  ;;  %v192_v12 = vld [vmem:[#allocation2 + $0x30] sm:$0x1]  ;;  %292 = vst [vmem:[#allocation2 + $0x14] sm:$0x1] %v291_v8  ;;  %v448_v13 = vrot.slane %v15572_v43, 4  ;;  %v464_v23 = vsel %vm15580_vm11, %v456_v0, %v463_v10  ;;  %13817 = vmatprep.subr.bf16.mxu0 %v15195_v7 }
  0x29   : > { %v293_v14 = vld [vmem:[#allocation2 + $0x18] sm:$0xf]  ;;  %v469_v15 = vrot.slane %v467_v6, 7  ;;  %v478_v17 = vshll.u32 %v403_v2, 16  ;;  %v193_v18 = vsel %vm15541_vm6, 0, %v192_v12  ;;  %v470_v28 = vshll.u32 %v15606_v61, 16 }
  0x2a   : > { %v294_v21 = vsel %vm15589_vm13, 0, %v293_v14  ;;  %v297_v22 = vld [vmem:[#allocation2 + $0x20] sm:$0x1]  ;;  %v15634_v24 = vrot.slane %v475_v11, 7  ;;  %194 = vst [vmem:[#allocation2 + $0x30] sm:$0x1] %v193_v18  ;;  %v455_v52 = vor.u32 %v453_v9, %v15595_v54 }
  0x2b   : > { %v242_v25 = vld [vmem:[#allocation2 + $0x38] sm:$0x1]  ;;  %295 = vst [vmem:[#allocation2 + $0x18] sm:$0xf] %v294_v21  ;;  %v298_v27 = vsel %vm15599_vm14, 0, %v297_v22  ;;  %v473_v29 = vrot.slane %v469_v15, 4  ;;  %13818 = vmatpush3.bf16.msra.mxu0 %v15195_v7  ;;  %v472_v3 = vor.u32 %v470_v28, %v469_v15 }
  0x2c   : > { %767 = vst.msk [vmem:[#allocation2 + $0x1c] sm:$0xf] %vm752_vm12, %v464_v23  ;;  %v243_v30 = vsel %vm15549_vm8, 0, %v242_v25  ;;  %v15643_v31 = vld [vmem:[%s15530_s25 + $0x18] sm:$0xf]  ;;  %v15648_v32 = vld [vmem:[%s19153_s1] sm:$0xff]   ;;  %v480_v34 = vor.u32 %v478_v17, %v15634_v24 }
  0x2d   : > { %299 = vst [vmem:[#allocation2 + $0x20] sm:$0x1] %v298_v27  ;;  %v465_v33 = vrot.slane %v15611_v1, 4  ;;  %244 = vst [vmem:[#allocation2 + $0x38] sm:$0x1] %v243_v30  ;;  %v484_v36 = vshrl.u32 %v15643_v31, 16  ;;  %13851 = vmatprep.subr.bf16.mxu0 %v15648_v32 }
  0x2e   : > { %v405_v35 = vld [vmem:[%s15530_s25 + $0x1c] sm:$0xf]  ;;  %v487_v37 = vshll.u32 %v15643_v31, 16  ;;  %v300_v39 = vld [vmem:[#allocation2 + $0x24] sm:$0xf]  ;;  %v481_v45 = vsel %vm15580_vm11, %v473_v29, %v480_v34  ;;  %vm1963_vm2 = vcmask 1042432  }
  0x2f   : > { %v492_v40 = vshrl.u32 %v405_v35, 16  ;;  %v495_v41 = vshll.u32 %v405_v35, 16  ;;  %v872_v43 = vld [vmem:[#allocation2 + $0x10] sm:$0xf]  ;;  %v301_v44 = vsel %vm15589_vm13, 0, %v300_v39  ;;  %v486_v46 = vrot.slane %v484_v36, 7 }
  0x30   : > { %v754_v47 = vld [vmem:[#allocation2 + $0xc] sm:$0xf]  ;;  %v970_v49 = vshll.u32 %v872_v43, 16  ;;  %v974_v50 = vshrl.u32 %v872_v43, 16  ;;  %302 = vst [vmem:[#allocation2 + $0x24] sm:$0xf] %v301_v44 }
  0x31   : > { %v304_v53 = vld [vmem:[#allocation2 + $0x2c] sm:$0x1]  ;;  %774 = vst.msk [vmem:[#allocation2 + $0x28] sm:$0xf] %vm752_vm12, %v481_v45  ;;  %v755_v55 = vsel %vm15657_vm0, %v438_v19, %v754_v47  ;;  %v761_v56 = vld [vmem:[#allocation2 + $0x14] sm:$0x1]  ;;  %v489_v29 = vor.u32 %v487_v37, %v486_v46 }
  0x32   : > { %v305_v58 = vsel %vm15599_vm14, 0, %v304_v53  ;;  %v490_v59 = vrot.slane %v486_v46, 4  ;;  %v195_v60 = vld [vmem:[#allocation2 + $0x3c] sm:$0x1]  ;;  %756 = vst [vmem:[#allocation2 + $0xc] sm:$0xf] %v755_v55  ;;  %v762_v61 = vsel %vm15663_vm1, %v448_v13, %v761_v56 }
  0x33   : > { %v15680_v54 = vrot.slane %v970_v49, 5  ;;  %v976_v62 = vrot.slane %v974_v50, 4  ;;  %306 = vst [vmem:[#allocation2 + $0x2c] sm:$0x1] %v305_v58  ;;  %v307_v63 = vld [vmem:[#allocation2 + $0x30] sm:$0xf] }
  0x34   : > { %v15682_v0 = vrot.slane %v492_v40, 7  ;;  %763 = vst [vmem:[#allocation2 + $0x14] sm:$0x1] %v762_v61  ;;  %v764_v1 = vld [vmem:[#allocation2 + $0x18] sm:$0xf]  ;;  %v308_v4 = vsel %vm15589_vm13, 0, %v307_v63 }
  0x35   : > { %v874_v2 = vld [vmem:[#allocation2 + $0x1c] sm:$0xf]  ;;  %v196_v5 = vsel %vm15541_vm6, 0, %v195_v60  ;;  %v977_v6 = vor.u32 %v976_v62, %v15680_v54  ;;  %v765_v7 = vsel %vm15657_vm0, %v455_v52, %v764_v1  ;;  %v768_v8 = vld [vmem:[#allocation2 + $0x20] sm:$0x1]  ;;  %v482_v13 = vrot.slane %v15634_v24, 4 }
  0x36   : > { %v994_v9 = vshll.u32 %v874_v2, 16  ;;  %v998_v10 = vshrl.u32 %v874_v2, 16  ;;  %309 = vst [vmem:[#allocation2 + $0x30] sm:$0xf] %v308_v4  ;;  %v311_v11 = vld [vmem:[#allocation2 + $0x38] sm:$0x1]  ;;  %v769_v12 = vsel %vm15663_vm1, %v465_v33, %v768_v8  ;;  %v497_v15 = vor.u32 %v495_v41, %v15682_v0 }
  0x37   : > { %197 = vst [vmem:[#allocation2 + $0x3c] sm:$0x1] %v196_v5  ;;  %766 = vst [vmem:[#allocation2 + $0x18] sm:$0xf] %v765_v7  ;;  %v312_v14 = vsel %vm15599_vm14, 0, %v311_v11  ;;  %v499_v22 = vrot.slane %v15682_v0, 4 }
  0x38   : > { %v245_v17 = vld [vmem:[#allocation2 + $0x44] sm:$0x1]  ;;  %v406_v18 = vld [vmem:[%s15530_s25 + $0x20] sm:$0xf]  ;;  %770 = vst [vmem:[#allocation2 + $0x20] sm:$0x1] %v769_v12  ;;  %v498_v30 = vsel %vm15580_vm11, %v490_v59, %v497_v15 }
  0x39   : > { %v15698_v19 = vrot.slane %v994_v9, 5  ;;  %v1000_v21 = vrot.slane %v998_v10, 4  ;;  %313 = vst [vmem:[#allocation2 + $0x38] sm:$0x1] %v312_v14  ;;  %v246_v23 = vsel %vm15549_vm8, 0, %v245_v17  ;;  %v15706_v24 = vrot.slane %v977_v6, 4 }
  0x3a   : > { %v15704_v25 = vld [vmem:[%s15530_s25 + $0x24] sm:$0xf]  ;;  %v876_v28 = vld [vmem:[#allocation2 + $0x28] sm:$0xf]  ;;  %247 = vst [vmem:[#allocation2 + $0x44] sm:$0x1] %v246_v23 }
  0x3b   : > { %v771_v27 = vld [vmem:[#allocation2 + $0x24] sm:$0xf]  ;;  %v501_v31 = vshrl.u32 %v406_v18, 16  ;;  %v1001_v33 = vor.u32 %v1000_v21, %v15698_v19  ;;  %v1018_v35 = vshll.u32 %v876_v28, 16  ;;  %v1022_v36 = vshrl.u32 %v876_v28, 16  ;;  %s13262_s11 = sshll.u32 %s19246_s13, 4 }
  0x3c   : > { %v772_v34 = vsel %vm15657_vm0, %v472_v3, %v771_v27  ;;  %781 = vst.msk [vmem:[#allocation2 + $0x34] sm:$0xf] %vm752_vm12, %v498_v30  ;;  %v871_v39 = vld [vmem:[#allocation2 + $0xc] sm:$0xf]  ;;  %v504_v37 = vshll.u32 %v406_v18, 16  ;;  %v509_v47 = vshrl.u32 %v15704_v25, 16  ;;  %s170_s16 = scalar_lea.vmem %s19155_s3, %s13262_s11 }
  0x3d   : > { %773 = vst [vmem:[#allocation2 + $0x24] sm:$0xf] %v772_v34  ;;  %v775_v40 = vld [vmem:[#allocation2 + $0x2c] sm:$0x1]  ;;  %v15714_v41 = vrot.slane %v501_v31, 7  ;;  %v961_v44 = vshrl.u32 %v871_v39, 16 }
  0x3e   : > { %v918_v43 = vld [vmem:[#allocation2 + $0x14] sm:$0x1]  ;;  %v964_v45 = vshll.u32 %v871_v39, 16  ;;  %v776_v46 = vsel %vm15663_vm1, %v482_v13, %v775_v40  ;;  %v15719_v50 = vrot.slane %v1001_v33, 4  ;;  %v15721_v52 = vrot.slane %v1018_v35, 5 }
  0x3f   : > { %v980_v49 = vshll.u32 %v918_v43, 16  ;;  %777 = vst [vmem:[#allocation2 + $0x2c] sm:$0x1] %v776_v46  ;;  %v1024_v53 = vrot.slane %v1022_v36, 4  ;;  %v778_v55 = vld [vmem:[#allocation2 + $0x30] sm:$0xf]  ;;  %v15729_v8 = vor.u32 %v504_v37, %v15714_v41 }
  0x40   : > { %v963_v56 = vrot.slane %v961_v44, 4  ;;  %v966_v58 = vrot.slane %v964_v45, 5  ;;  %v873_v59 = vld [vmem:[#allocation2 + $0x18] sm:$0xf]  ;;  %v779_v60 = vsel %vm15657_vm0, %v489_v29, %v778_v55  ;;  %v314_v61 = vld [vmem:[#allocation2 + $0x3c] sm:$0xf] }
  0x41   : > { %v982_v62 = vrot.slane %v980_v49, 5  ;;  %v919_v63 = vld [vmem:[#allocation2 + $0x20] sm:$0x1]  ;;  %v985_v0 = vshrl.u32 %v873_v59, 16  ;;  %v988_v1 = vshll.u32 %v873_v59, 16  ;;  %v1025_v2 = vor.u32 %v1024_v53, %v15721_v52  ;;  %v15197_v36 = vld [vmem:[%s19153_s1 + $0x8] sm:$0xff]  }
  0x42   : > { %780 = vst [vmem:[#allocation2 + $0x30] sm:$0xf] %v779_v60  ;;  %v967_v3 = vor.u32 %v966_v58, %v963_v56  ;;  %v1004_v4 = vshll.u32 %v919_v63, 16  ;;  %v782_v5 = vld [vmem:[#allocation2 + $0x38] sm:$0x1]  ;;  %v315_v6 = vsel %vm15589_vm13, 0, %v314_v61 }
  0x43   : > { %v318_v7 = vld [vmem:[#allocation2 + $0x44] sm:$0x1]  ;;  %v983_v9 = vsel %vm15535_vm4, %v15706_v24, %v982_v62  ;;  %v987_v10 = vrot.slane %v985_v0, 4  ;;  %v990_v11 = vrot.slane %v988_v1, 5  ;;  %v15734_v12 = vrot.slane %v1025_v2, 4  ;;  %v15198_v55 = vld [vmem:[%s19153_s1 + $0x10] sm:$0xff]  }
  0x44   : > { %v878_v13 = vld [vmem:[#allocation2 + $0x34] sm:$0xf]  ;;  %316 = vst [vmem:[#allocation2 + $0x3c] sm:$0xf] %v315_v6  ;;  %v968_v14 = vrot.slane %v967_v3, 4  ;;  %v1006_v15 = vrot.slane %v1004_v4, 5  ;;  %v783_v18 = vsel %vm15663_vm1, %v499_v22, %v782_v5 }
  0x45   : > { %v875_v17 = vld [vmem:[#allocation2 + $0x24] sm:$0xf]  ;;  %v1042_v21 = vshll.u32 %v878_v13, 16  ;;  %v991_v23 = vor.u32 %v990_v11, %v987_v10  ;;  %784 = vst [vmem:[#allocation2 + $0x38] sm:$0x1] %v783_v18  ;;  %v1046_v29 = vshrl.u32 %v878_v13, 16 }
  0x46   : > { %v1009_v27 = vshrl.u32 %v875_v17, 16  ;;  %v1012_v28 = vshll.u32 %v875_v17, 16  ;;  %v973_v24 = vsel %vm15535_vm4, %v968_v14, %v15680_v54  ;;  %v1007_v30 = vsel %vm15535_vm4, %v15719_v50, %v1006_v15  ;;  %v920_v31 = vld [vmem:[#allocation2 + $0x2c] sm:$0x1]  ;;  %v198_v56 = vld [vmem:[#allocation2 + $0x48] sm:$0x1] }
  0x47   : > { %v15744_v33 = vrot.slane %v1042_v21, 5  ;;  %v319_v22 = vsel %vm15599_vm14, 0, %v318_v7  ;;  %v12409_v34 = vcombine.low %v973_v24, %v983_v9  ;;  %v992_v35 = vrot.slane %v991_v23, 4  ;;  %v15762_v1 = vld [vmem:[%s15530_s25 + $0x28] sm:$0xf]  ;;  %v15779_v11 = vld [vmem:[%s19153_s1 + $0x18] sm:$0xff]  }
  0x48   : > { %v1011_v39 = vrot.slane %v1009_v27, 4  ;;  %v1014_v40 = vrot.slane %v1012_v28, 5  ;;  %320 = vst [vmem:[#allocation2 + $0x44] sm:$0x1] %v319_v22  ;;  %v1028_v54 = vshll.u32 %v920_v31, 16  ;;  %v1048_v43 = vrot.slane %v1046_v29, 4 }
  0x49   : > { %v877_v37 = vld [vmem:[#allocation2 + $0x30] sm:$0xf]  ;;  %v507_v44 = vrot.slane %v15714_v41, 4  ;;  %v511_v45 = vrot.slane %v509_v47, 7  ;;  %13820 = vmatmul.mubr.bf16.vlgmr.msra.gmra.mrb[0].mxu0 %v12409_v34  ;;  %v997_v46 = vsel %vm15535_vm4, %v992_v35, %v15698_v19  ;;  %v512_v47 = vshll.u32 %v15704_v25, 16 }
  0x4a   : > { %v1015_v49 = vor.u32 %v1014_v40, %v1011_v39  ;;  %v1033_v50 = vshrl.u32 %v877_v37, 16  ;;  %v1036_v53 = vshll.u32 %v877_v37, 16  ;;  %13852 = vmatpush3.bf16.msra.mxu0 %v15648_v32  ;;  %v12410_v58 = vcombine.low %v997_v46, %v1007_v30  ;;  %v248_v19 = vld [vmem:[#allocation2 + $0x50] sm:$0x1]  ;;  %v409_v5 = vld [vmem:[%s15530_s25 + $0x2c] sm:$0xf] }
  0x4b   : > { %v1030_v59 = vrot.slane %v1028_v54, 5  ;;  %v1049_v41 = vor.u32 %v1048_v43, %v15744_v33  ;;  %v785_v60 = vld [vmem:[#allocation2 + $0x3c] sm:$0xf]  ;;  %13853 = vmatprep.subr.bf16.mxu0 %v15197_v36  ;;  %v516_v0 = vrot.slane %v511_v45, 4  ;;  %v514_v4 = vor.u32 %v512_v47, %v511_v45  ;;  %v15787_v18 = vld [vmem:[%s15530_s25 + $0x30] sm:$0xf] }
  0x4c   : > { %v1016_v61 = vrot.slane %v1015_v49, 4  ;;  %v1035_v62 = vrot.slane %v1033_v50, 4  ;;  %v1038_v63 = vrot.slane %v1036_v53, 5  ;;  %13823 = vmatprep.mubr.bf16.mxu0 %v12410_v58  ;;  %v921_v2 = vld [vmem:[#allocation2 + $0x38] sm:$0x1]  ;;  %v786_v25 = vsel %vm15657_vm0, %v15729_v8, %v785_v60  ;;  %v15200_v49 = vld [vmem:[%s19153_s1 + $0x20] sm:$0xff]  }
  0x4d   : > { %v1031_v32 = vsel %vm15535_vm4, %v15734_v12, %v1030_v59  ;;  %v1050_v3 = vrot.slane %v1049_v41, 4  ;;  %v1052_v9 = vshll.u32 %v921_v2, 16  ;;  %787 = vst [vmem:[#allocation2 + $0x3c] sm:$0xf] %v786_v25  ;;  %v199_v10 = vsel %vm15541_vm6, 0, %v198_v56 }
  0x4e   : > { %v1021_v6 = vsel %vm15535_vm4, %v1016_v61, %v15721_v52  ;;  %v1039_v7 = vor.u32 %v1038_v63, %v1035_v62  ;;  %v201_v12 = vld [vmem:[#allocation2 + $0x54] sm:$0x1]  ;;  %v251_v8 = vld [vmem:[#allocation2 + $0x5c] sm:$0x1]  ;;  %13854 = vmatpush3.bf16.msra.mxu0 %v15197_v36  ;;  %v515_v14 = vsel %vm15580_vm11, %v507_v44, %v514_v4  ;;  %200 = vst [vmem:[#allocation2 + $0x48] sm:$0x1] %v199_v10 }
  0x4f   : > { %v12411_v13 = vcombine.low %v1021_v6, %v1031_v32  ;;  %v789_v52 = vld [vmem:[#allocation2 + $0x44] sm:$0x1]  ;;  %v249_v15 = vsel %vm15549_vm8, 0, %v248_v19  ;;  %v518_v17 = vshrl.u32 %v15762_v1, 16  ;;  %v1054_v23 = vrot.slane %v1052_v9, 5  ;;  %13855 = vmatprep.subr.bf16.mxu0 %v15198_v55  ;;  %v15201_v62 = vld [vmem:[%s19153_s1 + $0x28] sm:$0xff]  }
  0x50   : > { %v1040_v21 = vrot.slane %v1039_v7, 4  ;;  %788 = vst.msk [vmem:[#allocation2 + $0x40] sm:$0xf] %vm752_vm12, %v515_v14  ;;  %v790_v27 = vsel %vm15663_vm1, %v516_v0, %v789_v52  ;;  %250 = vst [vmem:[#allocation2 + $0x50] sm:$0x1] %v249_v15  ;;  %v526_v30 = vshrl.u32 %v409_v5, 16 }
  0x51   : > { %v411_v28 = vld [vmem:[%s15530_s25 + $0x34] sm:$0xf]  ;;  %v204_v29 = vld [vmem:[#allocation2 + $0x60] sm:$0x1]  ;;  %791 = vst [vmem:[#allocation2 + $0x44] sm:$0x1] %v790_v27  ;;  %13824 = vmatmul.mubr.bf16.gmra.mrb[4].mxu0 %v12411_v13  ;;  %v1055_v35 = vsel %vm15535_vm4, %v1050_v3, %v1054_v23 }
  0x52   : > { %v520_v24 = vrot.slane %v518_v17, 7  ;;  %v529_v31 = vshll.u32 %v409_v5, 16  ;;  %v202_v22 = vsel %vm15541_vm6, 0, %v201_v12  ;;  %v1045_v34 = vsel %vm15535_vm4, %v1040_v21, %v15744_v33  ;;  %v254_v40 = vld [vmem:[#allocation2 + $0x68] sm:$0x1]  ;;  %13856 = vmatpush3.bf16.msra.mxu0 %v15198_v55 }
  0x53   : > { %203 = vst [vmem:[#allocation2 + $0x54] sm:$0x1] %v202_v22  ;;  %v252_v36 = vsel %vm15549_vm8, 0, %v251_v8  ;;  %v535_v39 = vshrl.u32 %v15787_v18, 16  ;;  %v12412_v54 = vcombine.low %v1045_v34, %v1055_v35  ;;  %v521_v37 = vshll.u32 %v15762_v1, 16  ;;  %13857 = vmatprep.subr.bf16.mxu0 %v15779_v11  ;;  %v15202_v35 = vld [vmem:[%s19153_s1 + $0x30] sm:$0xff]  }
  0x54   : > { %v524_v43 = vrot.slane %v520_v24, 4  ;;  %v15804_v44 = vrot.slane %v526_v30, 7  ;;  %253 = vst [vmem:[#allocation2 + $0x5c] sm:$0x1] %v252_v36  ;;  %v538_v45 = vshll.u32 %v15787_v18, 16  ;;  %v543_v46 = vshrl.u32 %v411_v28, 16 }
  0x55   : > { %v15807_v33 = vrot.slane %v535_v39, 7  ;;  %13827 = vmatprep.mubr.bf16.mxu0 %v12412_v54  ;;  %v879_v50 = vld [vmem:[#allocation2 + $0x3c] sm:$0xf]  ;;  %v546_v55 = vshll.u32 %v411_v28, 16  ;;  %v205_v56 = vsel %vm15541_vm6, 0, %v204_v29  ;;  %v255_v58 = vsel %vm15549_vm8, 0, %v254_v40 }
  0x56   : > { %v531_v53 = vor.u32 %v529_v31, %v15804_v44  ;;  %v1057_v59 = vshrl.u32 %v879_v50, 16  ;;  %v1060_v41 = vshll.u32 %v879_v50, 16  ;;  %v321_v47 = vld [vmem:[#allocation2 + $0x48] sm:$0xf]  ;;  %v533_v60 = vrot.slane %v15804_v44, 4  ;;  %13858 = vmatpush3.bf16.msra.mxu0 %v15779_v11 }
  0x57   : > { %v541_v19 = vrot.slane %v15807_v33, 4  ;;  %206 = vst [vmem:[#allocation2 + $0x60] sm:$0x1] %v205_v56  ;;  %256 = vst [vmem:[#allocation2 + $0x68] sm:$0x1] %v255_v58  ;;  %v322_v0 = vsel %vm15589_vm13, 0, %v321_v47  ;;  %v15828_v32 = vor.u32 %v521_v37, %v520_v24  ;;  %13859 = vmatprep.subr.bf16.mxu0 %v15200_v49  ;;  %v540_v58 = vor.u32 %v538_v45, %v15807_v33 }
  0x58   : > { %v15821_v61 = vld [vmem:[%s15530_s25 + $0x38] sm:$0xf]  ;;  %v880_v63 = vld [vmem:[#allocation2 + $0x40] sm:$0xf]  ;;  %v325_v1 = vld [vmem:[#allocation2 + $0x50] sm:$0x1]  ;;  %v532_v2 = vsel %vm15580_vm11, %v524_v43, %v531_v53 }
  0x59   : > { %v15832_v3 = vrot.slane %v543_v46, 7  ;;  %v15836_v4 = vld [vmem:[%s15530_s25 + $0x3c] sm:$0xf]  ;;  %v922_v25 = vld [vmem:[#allocation2 + $0x44] sm:$0x1]  ;;  %v1059_v5 = vrot.slane %v1057_v59, 4 }
  0x5a   : > { %v1062_v6 = vrot.slane %v1060_v41, 5  ;;  %v1066_v7 = vshll.u32 %v880_v63, 16  ;;  %v1070_v9 = vshrl.u32 %v880_v63, 16  ;;  %323 = vst [vmem:[#allocation2 + $0x48] sm:$0xf] %v322_v0  ;;  %v1076_v10 = vshll.u32 %v922_v25, 16  ;;  %13860 = vmatpush3.bf16.msra.mxu0 %v15200_v49 }
  0x5b   : > { %795 = vst.msk [vmem:[#allocation2 + $0x4c] sm:$0xf] %vm752_vm12, %v532_v2  ;;  %v326_v12 = vsel %vm15599_vm14, 0, %v325_v1  ;;  %v328_v8 = vld [vmem:[#allocation2 + $0x54] sm:$0xf]  ;;  %v548_v13 = vor.u32 %v546_v55, %v15832_v3  ;;  %v550_v11 = vrot.slane %v15832_v3, 4  ;;  %13861 = vmatprep.subr.bf16.mxu0 %v15201_v62 }
  0x5c   : > { %v1063_v14 = vor.u32 %v1062_v6, %v1059_v5  ;;  %v1068_v52 = vrot.slane %v1066_v7, 5  ;;  %v1072_v15 = vrot.slane %v1070_v9, 4  ;;  %327 = vst [vmem:[#allocation2 + $0x50] sm:$0x1] %v326_v12  ;;  %v329_v17 = vsel %vm15589_vm13, 0, %v328_v8 }
  0x5d   : > { %v332_v21 = vld [vmem:[#allocation2 + $0x5c] sm:$0x1]  ;;  %v1078_v23 = vrot.slane %v1076_v10, 5  ;;  %330 = vst [vmem:[#allocation2 + $0x54] sm:$0xf] %v329_v17  ;;  %v549_v28 = vsel %vm15580_vm11, %v541_v19, %v548_v13  ;;  %v552_v29 = vshrl.u32 %v15821_v61, 16 }
  0x5e   : > { %v333_v27 = vsel %vm15599_vm14, 0, %v332_v21  ;;  %v1064_v24 = vrot.slane %v1063_v14, 4  ;;  %v1073_v30 = vor.u32 %v1072_v15, %v1068_v52  ;;  %802 = vst.msk [vmem:[#allocation2 + $0x58] sm:$0xf] %vm752_vm12, %v549_v28  ;;  %v555_v31 = vshll.u32 %v15821_v61, 16  ;;  %13862 = vmatpush3.bf16.msra.mxu0 %v15201_v62  ;;  %v15908_v21 = vld [vmem:[%s19153_s1 + $0x80] sm:$0xff]  }
  0x5f   : > { %334 = vst [vmem:[#allocation2 + $0x5c] sm:$0x1] %v333_v27  ;;  %v560_v22 = vshrl.u32 %v15836_v4, 16  ;;  %v207_v34 = vld [vmem:[#allocation2 + $0x6c] sm:$0x1]  ;;  %v554_v40 = vrot.slane %v552_v29, 7  ;;  %13863 = vmatprep.subr.bf16.mxu0 %v15202_v35 }
  0x60   : > { %v335_v36 = vld [vmem:[#allocation2 + $0x60] sm:$0xf]  ;;  %v339_v39 = vld [vmem:[#allocation2 + $0x68] sm:$0x1]  ;;  %v563_v54 = vshll.u32 %v15836_v4, 16  ;;  %v1069_v43 = vsel %vm15535_vm4, %v1064_v24, %v1068_v52  ;;  %v1074_v46 = vrot.slane %v1073_v30, 4 }
  0x61   : > { %v257_v37 = vld [vmem:[#allocation2 + $0x74] sm:$0x1]  ;;  %v336_v49 = vsel %vm15589_vm13, 0, %v335_v36  ;;  %v340_v50 = vsel %vm15599_vm14, 0, %v339_v39  ;;  %v15864_v53 = vld [vmem:[%s15530_s25 + $0x40] sm:$0xf]  ;;  %v557_v45 = vor.u32 %v555_v31, %v554_v40 }
  0x62   : > { %v792_v55 = vld [vmem:[#allocation2 + $0x48] sm:$0xf]  ;;  %v882_v56 = vld [vmem:[#allocation2 + $0x4c] sm:$0xf]  ;;  %337 = vst [vmem:[#allocation2 + $0x60] sm:$0xf] %v336_v49  ;;  %v1079_v47 = vsel %vm15535_vm4, %v1074_v46, %v1078_v23  ;;  %13864 = vmatpush3.bf16.msra.mxu0 %v15202_v35 }
  0x63   : > { %341 = vst [vmem:[#allocation2 + $0x68] sm:$0x1] %v340_v50  ;;  %v558_v59 = vrot.slane %v554_v40, 4  ;;  %v15869_v41 = vrot.slane %v560_v22, 7  ;;  %v793_v19 = vsel %vm15657_vm0, %v15828_v32, %v792_v55  ;;  %v1090_v61 = vshll.u32 %v882_v56, 16  ;;  %v15203_v32 = vld [vmem:[%s19153_s1 + $0x38] sm:$0xff]  }
  0x64   : > { %v1094_v63 = vshrl.u32 %v882_v56, 16  ;;  %v15877_v0 = vld [vmem:[%s15530_s25 + $0x44] sm:$0xf]  ;;  %v210_v1 = vld [vmem:[#allocation2 + $0x78] sm:$0x1]  ;;  %v12413_v18 = vcombine.low %v1069_v43, %v1079_v47  ;;  %v208_v62 = vsel %vm15541_vm6, 0, %v207_v34  ;;  %13865 = vmatprep.subr.bf16.mxu0 %v15203_v32 }
  0x65   : > { %794 = vst [vmem:[#allocation2 + $0x48] sm:$0xf] %v793_v19  ;;  %v796_v33 = vld [vmem:[#allocation2 + $0x50] sm:$0x1]  ;;  %v565_v2 = vor.u32 %v563_v54, %v15869_v41  ;;  %v260_v4 = vld [vmem:[#allocation2 + $0x80] sm:$0x1] }
  0x66   : > { %v797_v25 = vsel %vm15663_vm1, %v533_v60, %v796_v33  ;;  %v15889_v5 = vrot.slane %v1090_v61, 5  ;;  %v1096_v6 = vrot.slane %v1094_v63, 4  ;;  %v799_v7 = vld [vmem:[#allocation2 + $0x54] sm:$0xf]  ;;  %209 = vst [vmem:[#allocation2 + $0x6c] sm:$0x1] %v208_v62  ;;  %13828 = vmatmul.mubr.bf16.gmra.mrb[8].mxu0 %v12413_v18 }
  0x67   : > { %v258_v9 = vsel %vm15549_vm8, 0, %v257_v37  ;;  %798 = vst [vmem:[#allocation2 + $0x50] sm:$0x1] %v797_v25  ;;  %v800_v10 = vsel %vm15657_vm0, %v540_v58, %v799_v7  ;;  %v803_v12 = vld [vmem:[#allocation2 + $0x5c] sm:$0x1]  ;;  %v566_v44 = vsel %vm15580_vm11, %v558_v59, %v565_v2  ;;  %v567_v60 = vrot.slane %v15869_v41, 4  ;;  %13866 = vmatpush3.bf16.msra.mxu0 %v15203_v32 }
  0x68   : > { %v884_v8 = vld [vmem:[#allocation2 + $0x58] sm:$0xf]  ;;  %259 = vst [vmem:[#allocation2 + $0x74] sm:$0x1] %v258_v9  ;;  %v569_v13 = vshrl.u32 %v15864_v53, 16  ;;  %v1097_v14 = vor.u32 %v1096_v6, %v15889_v5  ;;  %v804_v52 = vsel %vm15663_vm1, %v550_v11, %v803_v12  ;;  %v577_v27 = vshrl.u32 %v15877_v0, 16  ;;  %13899 = vmatprep.subr.bf16.mxu0 %v15908_v21 }
  0x69   : > { %801 = vst [vmem:[#allocation2 + $0x54] sm:$0xf] %v800_v10  ;;  %v1114_v15 = vshll.u32 %v884_v8, 16  ;;  %v1118_v17 = vshrl.u32 %v884_v8, 16  ;;  %809 = vst.msk [vmem:[#allocation2 + $0x64] sm:$0xf] %vm752_vm12, %v566_v44 }
  0x6a   : > { %805 = vst [vmem:[#allocation2 + $0x5c] sm:$0x1] %v804_v52  ;;  %v571_v23 = vrot.slane %v569_v13, 7  ;;  %v580_v28 = vshll.u32 %v15877_v0, 16  ;;  %v211_v3 = vsel %vm15541_vm6, 0, %v210_v1  ;;  %v572_v31 = vshll.u32 %v15864_v53, 16 }
  0x6b   : > { %v15915_v11 = vld [vmem:[%s15530_s25 + $0x48] sm:$0xf]  ;;  %v15917_v29 = vrot.slane %v1114_v15, 5  ;;  %v1120_v24 = vrot.slane %v1118_v17, 4  ;;  %v806_v30 = vld [vmem:[#allocation2 + $0x60] sm:$0xf] }
  0x6c   : > { %212 = vst [vmem:[#allocation2 + $0x78] sm:$0x1] %v211_v3  ;;  %v261_v22 = vsel %vm15549_vm8, 0, %v260_v4  ;;  %v15922_v34 = vrot.slane %v1097_v14, 4  ;;  %v807_v35 = vsel %vm15657_vm0, %v557_v45, %v806_v30  ;;  %v810_v36 = vld [vmem:[#allocation2 + $0x68] sm:$0x1]  ;;  %v574_v4 = vor.u32 %v572_v31, %v571_v23 }
  0x6d   : > { %v575_v39 = vrot.slane %v571_v23, 4  ;;  %v15926_v40 = vrot.slane %v577_v27, 7  ;;  %262 = vst [vmem:[#allocation2 + $0x80] sm:$0x1] %v261_v22  ;;  %v15928_v54 = vld [vmem:[#allocation2 + $0x48] sm:$0xf]  ;;  %v1121_v37 = vor.u32 %v1120_v24, %v15917_v29  ;;  %v811_v43 = vsel %vm15663_vm1, %v567_v60, %v810_v36 }
  0x6e   : > { %808 = vst [vmem:[#allocation2 + $0x60] sm:$0xf] %v807_v35  ;;  %v586_v46 = vshrl.u32 %v15915_v11, 16  ;;  %v589_v49 = vshll.u32 %v15915_v11, 16  ;;  %v1081_v50 = vshrl.u32 %v15928_v54, 16  ;;  %v1084_v53 = vshll.u32 %v15928_v54, 16 }
  0x6f   : > { %812 = vst [vmem:[#allocation2 + $0x68] sm:$0x1] %v811_v43  ;;  %v342_v55 = vld [vmem:[#allocation2 + $0x6c] sm:$0xf]  ;;  %v582_v56 = vor.u32 %v580_v28, %v15926_v40  ;;  %v584_v58 = vrot.slane %v15926_v40, 4  ;;  %v15940_v41 = vrot.slane %v1121_v37, 4 }
  0x70   : > { %v923_v59 = vld [vmem:[#allocation2 + $0x50] sm:$0x1]  ;;  %v343_v47 = vsel %vm15589_vm13, 0, %v342_v55  ;;  %v346_v19 = vld [vmem:[#allocation2 + $0x74] sm:$0x1]  ;;  %v1083_v61 = vrot.slane %v1081_v50, 4 }
  0x71   : > { %v1086_v63 = vrot.slane %v1084_v53, 5  ;;  %v1100_v0 = vshll.u32 %v923_v59, 16  ;;  %v15944_v1 = vld [vmem:[#allocation2 + $0x54] sm:$0xf]  ;;  %344 = vst [vmem:[#allocation2 + $0x6c] sm:$0xf] %v343_v47  ;;  %v583_v32 = vsel %vm15580_vm11, %v575_v39, %v582_v56 }
  0x72   : > { %v347_v18 = vsel %vm15599_vm14, 0, %v346_v19  ;;  %v924_v33 = vld [vmem:[#allocation2 + $0x5c] sm:$0x1]  ;;  %v1105_v45 = vshrl.u32 %v15944_v1, 16  ;;  %v1108_v2 = vshll.u32 %v15944_v1, 16  ;;  %vm1964_vm3 = vcmask 1046532  }
  0x73   : > { %v15950_v62 = vld [vmem:[#allocation2 + $0x64] sm:$0xf]  ;;  %348 = vst [vmem:[#allocation2 + $0x74] sm:$0x1] %v347_v18  ;;  %v1087_v25 = vor.u32 %v1086_v63, %v1083_v61  ;;  %v1102_v6 = vrot.slane %v1100_v0, 5  ;;  %v1124_v7 = vshll.u32 %v924_v33, 16  ;;  %vm16312_vm5 = vmor %vm1963_vm2, %vm1964_vm3 }
  0x74   : > { %v1138_v9 = vshll.u32 %v15950_v62, 16  ;;  %816 = vst.msk [vmem:[#allocation2 + $0x70] sm:$0xf] %vm752_vm12, %v583_v32  ;;  %v349_v10 = vld [vmem:[#allocation2 + $0x78] sm:$0xf]  ;;  %v1107_v12 = vrot.slane %v1105_v45, 4 }
  0x75   : > { %v1110_v8 = vrot.slane %v1108_v2, 5  ;;  %v1142_v44 = vshrl.u32 %v15950_v62, 16  ;;  %v350_v60 = vsel %vm15589_vm13, 0, %v349_v10  ;;  %v353_v13 = vld [vmem:[#allocation2 + $0x80] sm:$0x1]  ;;  %v1088_v14 = vrot.slane %v1087_v25, 4 }
  0x76   : > { %v1103_v52 = vsel %vm15535_vm4, %v15922_v34, %v1102_v6  ;;  %v1126_v15 = vrot.slane %v1124_v7, 5  ;;  %v15962_v17 = vld [vmem:[#allocation2 + $0x60] sm:$0xf]  ;;  %v1140_v23 = vrot.slane %v1138_v9, 5  ;;  %351 = vst [vmem:[#allocation2 + $0x78] sm:$0xf] %v350_v60 }
  0x77   : > { %v1111_v27 = vor.u32 %v1110_v8, %v1107_v12  ;;  %v925_v28 = vld [vmem:[#allocation2 + $0x68] sm:$0x1]  ;;  %v1129_v3 = vshrl.u32 %v15962_v17, 16  ;;  %v1132_v24 = vshll.u32 %v15962_v17, 16  ;;  %v1144_v30 = vrot.slane %v1142_v44, 4 }
  0x78   : > { %v1093_v31 = vsel %vm15535_vm4, %v1088_v14, %v15889_v5  ;;  %v1127_v22 = vsel %vm15535_vm4, %v15940_v41, %v1126_v15  ;;  %v1148_v34 = vshll.u32 %v925_v28, 16  ;;  %v354_v35 = vsel %vm15599_vm14, 0, %v353_v13  ;;  %v417_v36 = vld [vmem:[%s15530_s25 + $0x4c] sm:$0xf]  ;;  %v213_v47 = vld [vmem:[#allocation2 + $0x84] sm:$0x1] }
  0x79   : > { %v12414_v39 = vcombine.low %v1093_v31, %v1103_v52  ;;  %v1112_v37 = vrot.slane %v1111_v27, 4  ;;  %v1131_v43 = vrot.slane %v1129_v3, 4  ;;  %v1134_v50 = vrot.slane %v1132_v24, 5  ;;  %v813_v53 = vld [vmem:[#allocation2 + $0x6c] sm:$0xf] }
  0x7a   : > { %355 = vst [vmem:[#allocation2 + $0x80] sm:$0x1] %v354_v35  ;;  %v1145_v55 = vor.u32 %v1144_v30, %v1140_v23  ;;  %v1150_v56 = vrot.slane %v1148_v34, 5  ;;  %v814_v5 = vsel %vm15657_vm0, %v574_v4, %v813_v53  ;;  %v817_v59 = vld [vmem:[#allocation2 + $0x74] sm:$0x1]  ;;  %v588_v41 = vrot.slane %v586_v46, 7 }
  0x7b   : > { %13831 = vmatprep.mubr.bf16.mxu0 %v12414_v39  ;;  %v1117_v19 = vsel %vm15535_vm4, %v1112_v37, %v15917_v29  ;;  %v1135_v61 = vor.u32 %v1134_v50, %v1131_v43  ;;  %815 = vst [vmem:[#allocation2 + $0x6c] sm:$0xf] %v814_v5  ;;  %v818_v63 = vsel %vm15663_vm1, %v584_v58, %v817_v59  ;;  %v15986_v0 = vld [vmem:[#allocation2 + $0x70] sm:$0xf]  ;;  %v594_v18 = vshrl.u32 %v417_v36, 16 }
  0x7c   : > { %v263_v33 = vld [vmem:[#allocation2 + $0x8c] sm:$0x1]  ;;  %v12415_v45 = vcombine.low %v1117_v19, %v1127_v22  ;;  %v1146_v46 = vrot.slane %v1145_v55, 4  ;;  %819 = vst [vmem:[#allocation2 + $0x74] sm:$0x1] %v818_v63  ;;  %v1162_v2 = vshll.u32 %v15986_v0, 16  ;;  %v591_v40 = vor.u32 %v589_v49, %v588_v41 }
  0x7d   : > { %v1166_v4 = vshrl.u32 %v15986_v0, 16  ;;  %v418_v29 = vld [vmem:[%s15530_s25 + $0x50] sm:$0xf]  ;;  %v1136_v32 = vrot.slane %v1135_v61, 4  ;;  %v592_v25 = vrot.slane %v588_v41, 4  ;;  %v596_v6 = vrot.slane %v594_v18, 7 }
  0x7e   : > { %v820_v58 = vld [vmem:[#allocation2 + $0x78] sm:$0xf]  ;;  %13832 = vmatmul.mubr.bf16.gmra.mrb[12].mxu0 %v12415_v45  ;;  %v1151_v7 = vsel %vm15535_vm4, %v1146_v46, %v1150_v56  ;;  %v15995_v9 = vrot.slane %v1162_v2, 5  ;;  %v597_v12 = vshll.u32 %v417_v36, 16  ;;  %v419_v8 = vld [vmem:[%s15530_s25 + $0x54] sm:$0xf] }
  0x7f   : > { %v1168_v10 = vrot.slane %v1166_v4, 4  ;;  %v1141_v44 = vsel %vm15535_vm4, %v1136_v32, %v1140_v23  ;;  %v601_v60 = vrot.slane %v596_v6, 4  ;;  %v821_v11 = vsel %vm15657_vm0, %v591_v40, %v820_v58  ;;  %v216_v13 = vld [vmem:[#allocation2 + $0x90] sm:$0x1]  ;;  %v266_v30 = vld [vmem:[#allocation2 + $0x98] sm:$0x1] }
  0x80   : > { %v214_v49 = vsel %vm15541_vm6, 0, %v213_v47  ;;  %v12416_v14 = vcombine.low %v1141_v44, %v1151_v7  ;;  %v599_v52 = vor.u32 %v597_v12, %v596_v6  ;;  %822 = vst [vmem:[#allocation2 + $0x78] sm:$0xf] %v821_v11  ;;  %v264_v27 = vsel %vm15549_vm8, 0, %v263_v33  ;;  %v16010_v31 = vld [vmem:[%s15530_s25 + $0x58] sm:$0xf] }
  0x81   : > { %v824_v15 = vld [vmem:[#allocation2 + $0x80] sm:$0x1]  ;;  %215 = vst [vmem:[#allocation2 + $0x84] sm:$0x1] %v214_v49  ;;  %v1169_v28 = vor.u32 %v1168_v10, %v15995_v9  ;;  %265 = vst [vmem:[#allocation2 + $0x8c] sm:$0x1] %v264_v27 }
  0x82   : > { %v825_v23 = vsel %vm15663_vm1, %v601_v60, %v824_v15  ;;  %v603_v3 = vshrl.u32 %v418_v29, 16  ;;  %v611_v24 = vshrl.u32 %v419_v8, 16  ;;  %13835 = vmatprep.mubr.bf16.mxu0 %v12416_v14  ;;  %v16012_v22 = vld [vmem:[#allocation2 + $0x6c] sm:$0xf]  ;;  %v600_v34 = vsel %vm15580_vm11, %v592_v25, %v599_v52  ;;  %v421_v59 = vld [vmem:[%s15530_s25 + $0x5c] sm:$0xf] }
  0x83   : > { %826 = vst [vmem:[#allocation2 + $0x80] sm:$0x1] %v825_v23  ;;  %v606_v35 = vshll.u32 %v418_v29, 16  ;;  %v614_v36 = vshll.u32 %v419_v8, 16  ;;  %v217_v39 = vsel %vm15541_vm6, 0, %v216_v13  ;;  %v1153_v43 = vshrl.u32 %v16012_v22, 16 }
  0x84   : > { %v926_v37 = vld [vmem:[#allocation2 + $0x74] sm:$0x1]  ;;  %v1156_v50 = vshll.u32 %v16012_v22, 16  ;;  %823 = vst.msk [vmem:[#allocation2 + $0x7c] sm:$0xf] %vm752_vm12, %v600_v34  ;;  %v605_v53 = vrot.slane %v603_v3, 7 }
  0x85   : > { %v16021_v55 = vrot.slane %v611_v24, 7  ;;  %218 = vst [vmem:[#allocation2 + $0x90] sm:$0x1] %v217_v39  ;;  %v1172_v56 = vshll.u32 %v926_v37, 16  ;;  %v267_v5 = vsel %vm15549_vm8, 0, %v266_v30  ;;  %v620_v41 = vshrl.u32 %v16010_v31, 16 }
  0x86   : > { %v1155_v47 = vrot.slane %v1153_v43, 4  ;;  %v1158_v19 = vrot.slane %v1156_v50, 5  ;;  %v1170_v61 = vrot.slane %v1169_v28, 4  ;;  %v609_v63 = vrot.slane %v605_v53, 4  ;;  %268 = vst [vmem:[#allocation2 + $0x98] sm:$0x1] %v267_v5 }
  0x87   : > { %v1174_v18 = vrot.slane %v1172_v56, 5  ;;  %v616_v33 = vor.u32 %v614_v36, %v16021_v55  ;;  %v622_v45 = vrot.slane %v620_v41, 7  ;;  %v623_v46 = vshll.u32 %v16010_v31, 16  ;;  %v16029_v4 = vld [vmem:[#allocation2 + $0x78] sm:$0xf] }
  0x88   : > { %v1159_v2 = vor.u32 %v1158_v19, %v1155_v47  ;;  %v356_v29 = vld [vmem:[#allocation2 + $0x84] sm:$0xf]  ;;  %v16031_v32 = vor.u32 %v606_v35, %v605_v53  ;;  %v618_v40 = vrot.slane %v16021_v55, 4  ;;  %v628_v25 = vshrl.u32 %v421_v59, 16  ;;  %v360_v10 = vld [vmem:[#allocation2 + $0x8c] sm:$0x1] }
  0x89   : > { %v1177_v6 = vshrl.u32 %v16029_v4, 16  ;;  %v1180_v58 = vshll.u32 %v16029_v4, 16  ;;  %v357_v7 = vsel %vm15589_vm13, 0, %v356_v29  ;;  %v631_v12 = vshll.u32 %v421_v59, 16  ;;  %v219_v13 = vld [vmem:[#allocation2 + $0x9c] sm:$0x1] }
  0x8a   : > { %v1160_v8 = vrot.slane %v1159_v2, 4  ;;  %v1175_v44 = vsel %vm15535_vm4, %v1170_v61, %v1174_v18  ;;  %v927_v60 = vld [vmem:[#allocation2 + $0x80] sm:$0x1]  ;;  %358 = vst [vmem:[#allocation2 + $0x84] sm:$0xf] %v357_v7  ;;  %v361_v11 = vsel %vm15599_vm14, 0, %v360_v10  ;;  %v617_v49 = vsel %vm15580_vm11, %v609_v63, %v616_v33 }
  0x8b   : > { %v269_v14 = vld [vmem:[#allocation2 + $0xa4] sm:$0x1]  ;;  %v16044_v52 = vld [vmem:[#allocation2 + $0x7c] sm:$0xf]  ;;  %v1179_v15 = vrot.slane %v1177_v6, 4  ;;  %v1182_v27 = vrot.slane %v1180_v58, 5  ;;  %v625_v53 = vor.u32 %v623_v46, %v622_v45 }
  0x8c   : > { %v1196_v28 = vshll.u32 %v927_v60, 16  ;;  %362 = vst [vmem:[#allocation2 + $0x8c] sm:$0x1] %v361_v11  ;;  %830 = vst.msk [vmem:[#allocation2 + $0x88] sm:$0xf] %vm752_vm12, %v617_v49  ;;  %v626_v23 = vrot.slane %v622_v45, 4  ;;  %v1165_v24 = vsel %vm15535_vm4, %v1160_v8, %v15995_v9 }
  0x8d   : > { %v422_v3 = vld [vmem:[%s15530_s25 + $0x60] sm:$0xf]  ;;  %v1186_v30 = vshll.u32 %v16044_v52, 16  ;;  %v1190_v31 = vshrl.u32 %v16044_v52, 16  ;;  %v363_v34 = vld [vmem:[#allocation2 + $0x90] sm:$0xf]  ;;  %v12417_v39 = vcombine.low %v1165_v24, %v1175_v44  ;;  %v1183_v37 = vor.u32 %v1182_v27, %v1179_v15 }
  0x8e   : > { %v16053_v35 = vrot.slane %v628_v25, 7  ;;  %v423_v36 = vld [vmem:[%s15530_s25 + $0x64] sm:$0xf]  ;;  %v364_v43 = vsel %vm15589_vm13, 0, %v363_v34  ;;  %v367_v50 = vld [vmem:[#allocation2 + $0x98] sm:$0x1] }
  0x8f   : > { %v1188_v56 = vrot.slane %v1186_v30, 5  ;;  %v1192_v5 = vrot.slane %v1190_v31, 4  ;;  %365 = vst [vmem:[#allocation2 + $0x90] sm:$0xf] %v364_v43  ;;  %v368_v9 = vsel %vm15599_vm14, 0, %v367_v50  ;;  %13836 = vmatmul.mubr.bf16.gmra.mrb[16].mxu0 %v12417_v39  ;;  %v1184_v47 = vrot.slane %v1183_v37, 4 }
  0x90   : > { %v633_v59 = vor.u32 %v631_v12, %v16053_v35  ;;  %v222_v41 = vld [vmem:[#allocation2 + $0xa8] sm:$0x1]  ;;  %v1198_v19 = vrot.slane %v1196_v28, 5  ;;  %369 = vst [vmem:[#allocation2 + $0x98] sm:$0x1] %v368_v9  ;;  %v220_v61 = vsel %vm15541_vm6, 0, %v219_v13 }
  0x91   : > { %v270_v63 = vsel %vm15549_vm8, 0, %v269_v14  ;;  %v1193_v18 = vor.u32 %v1192_v5, %v1188_v56  ;;  %221 = vst [vmem:[#allocation2 + $0x9c] sm:$0x1] %v220_v61  ;;  %v637_v45 = vshrl.u32 %v422_v3, 16  ;;  %v640_v46 = vshll.u32 %v422_v3, 16 }
  0x92   : > { %v634_v33 = vsel %vm15580_vm11, %v626_v23, %v633_v59  ;;  %271 = vst [vmem:[#allocation2 + $0xa4] sm:$0x1] %v270_v63  ;;  %v272_v2 = vld [vmem:[#allocation2 + $0xb0] sm:$0x1]  ;;  %v827_v29 = vld [vmem:[#allocation2 + $0x84] sm:$0xf]  ;;  %v1189_v12 = vsel %vm15535_vm4, %v1184_v47, %v1188_v56 }
  0x93   : > { %v635_v25 = vrot.slane %v16053_v35, 4  ;;  %837 = vst.msk [vmem:[#allocation2 + $0x94] sm:$0xf] %vm752_vm12, %v634_v33  ;;  %v645_v6 = vshrl.u32 %v423_v36, 16  ;;  %v648_v58 = vshll.u32 %v423_v36, 16  ;;  %v223_v7 = vsel %vm15541_vm6, 0, %v222_v41 }
  0x94   : > { %v424_v10 = vld [vmem:[%s15530_s25 + $0x68] sm:$0xf]  ;;  %v1194_v8 = vrot.slane %v1193_v18, 4  ;;  %v828_v44 = vsel %vm15657_vm0, %v16031_v32, %v827_v29  ;;  %v831_v60 = vld [vmem:[#allocation2 + $0x8c] sm:$0x1]  ;;  %v639_v49 = vrot.slane %v637_v45, 7 }
  0x95   : > { %v16077_v11 = vld [vmem:[#allocation2 + $0x88] sm:$0xf]  ;;  %224 = vst [vmem:[#allocation2 + $0xa8] sm:$0x1] %v223_v7  ;;  %v425_v13 = vld [vmem:[%s15530_s25 + $0x6c] sm:$0xf]  ;;  %v832_v14 = vsel %vm15663_vm1, %v618_v40, %v831_v60 }
  0x96   : > { %829 = vst [vmem:[#allocation2 + $0x84] sm:$0xf] %v828_v44  ;;  %v1210_v15 = vshll.u32 %v16077_v11, 16  ;;  %v1214_v27 = vshrl.u32 %v16077_v11, 16  ;;  %v16086_v28 = vrot.slane %v645_v6, 7  ;;  %v1199_v32 = vsel %vm15535_vm4, %v1194_v8, %v1198_v19 }
  0x97   : > { %833 = vst [vmem:[#allocation2 + $0x8c] sm:$0x1] %v832_v14  ;;  %v16090_v23 = vor.u32 %v640_v46, %v639_v49  ;;  %v643_v3 = vrot.slane %v639_v49, 4  ;;  %v273_v24 = vsel %vm15549_vm8, 0, %v272_v2  ;;  %v12418_v55 = vcombine.low %v1189_v12, %v1199_v32  ;;  %v834_v31 = vld [vmem:[#allocation2 + $0x90] sm:$0xf] }
  0x98   : > { %v16094_v30 = vrot.slane %v1210_v15, 5  ;;  %v1216_v40 = vrot.slane %v1214_v27, 4  ;;  %v650_v34 = vor.u32 %v648_v58, %v16086_v28  ;;  %274 = vst [vmem:[#allocation2 + $0xb0] sm:$0x1] %v273_v24  ;;  %v225_v35 = vld [vmem:[#allocation2 + $0xb4] sm:$0x1]  ;;  %v835_v36 = vsel %vm15657_vm0, %v625_v53, %v834_v31 }
  0x99   : > { %v838_v39 = vld [vmem:[#allocation2 + $0x98] sm:$0x1]  ;;  %v652_v37 = vrot.slane %v16086_v28, 4  ;;  %v654_v43 = vshrl.u32 %v424_v10, 16  ;;  %v657_v50 = vshll.u32 %v424_v10, 16  ;;  %13839 = vmatprep.mubr.bf16.mxu0 %v12418_v55  ;;  %v662_v47 = vshrl.u32 %v425_v13, 16 }
  0x9a   : > { %v1217_v56 = vor.u32 %v1216_v40, %v16094_v30  ;;  %836 = vst [vmem:[#allocation2 + $0x90] sm:$0xf] %v835_v36  ;;  %v839_v5 = vsel %vm15663_vm1, %v635_v25, %v838_v39  ;;  %v370_v9 = vld [vmem:[#allocation2 + $0x9c] sm:$0xf]  ;;  %v374_v59 = vld [vmem:[#allocation2 + $0xa4] sm:$0x1]  ;;  %v651_v41 = vsel %vm15580_vm11, %v643_v3, %v650_v34 }
  0x9b   : > { %v275_v53 = vld [vmem:[#allocation2 + $0xbc] sm:$0x1]  ;;  %840 = vst [vmem:[#allocation2 + $0x98] sm:$0x1] %v839_v5  ;;  %v16105_v19 = vld [vmem:[#allocation2 + $0x94] sm:$0xf] }
  0x9c   : > { %v371_v61 = vsel %vm15589_vm13, 0, %v370_v9  ;;  %v375_v63 = vsel %vm15599_vm14, 0, %v374_v59  ;;  %844 = vst.msk [vmem:[#allocation2 + $0xa0] sm:$0xf] %vm752_vm12, %v651_v41  ;;  %v656_v18 = vrot.slane %v654_v43, 7  ;;  %v665_v33 = vshll.u32 %v425_v13, 16 }
  0x9d   : > { %v16112_v45 = vrot.slane %v1217_v56, 4  ;;  %v1234_v46 = vshll.u32 %v16105_v19, 16  ;;  %v1238_v2 = vshrl.u32 %v16105_v19, 16  ;;  %372 = vst [vmem:[#allocation2 + $0x9c] sm:$0xf] %v371_v61  ;;  %v16116_v25 = vrot.slane %v662_v47, 7 }
  0x9e   : > { %376 = vst [vmem:[#allocation2 + $0xa4] sm:$0x1] %v375_v63  ;;  %v377_v29 = vld [vmem:[#allocation2 + $0xa8] sm:$0xf]  ;;  %v16119_v6 = vld [vmem:[%s15530_s25 + $0x70] sm:$0xf]  ;;  %v659_v10 = vor.u32 %v657_v50, %v656_v18 }
  0x9f   : > { %v16121_v58 = vld [vmem:[#allocation2 + $0x84] sm:$0xf]  ;;  %v378_v7 = vsel %vm15589_vm13, 0, %v377_v29  ;;  %v660_v12 = vrot.slane %v656_v18, 4  ;;  %v226_v8 = vsel %vm15541_vm6, 0, %v225_v35  ;;  %v16129_v13 = vrot.slane %v1234_v46, 5 }
  0xa0   : > { %v928_v44 = vld [vmem:[#allocation2 + $0x8c] sm:$0x1]  ;;  %v1201_v60 = vshrl.u32 %v16121_v58, 16  ;;  %v1204_v49 = vshll.u32 %v16121_v58, 16  ;;  %v1240_v14 = vrot.slane %v1238_v2, 4  ;;  %v667_v32 = vor.u32 %v665_v33, %v16116_v25 }
  0xa1   : > { %379 = vst [vmem:[#allocation2 + $0xa8] sm:$0xf] %v378_v7  ;;  %227 = vst [vmem:[#allocation2 + $0xb4] sm:$0x1] %v226_v8  ;;  %v1220_v15 = vshll.u32 %v928_v44, 16  ;;  %v669_v3 = vrot.slane %v16116_v25, 4 }
  0xa2   : > { %v381_v27 = vld [vmem:[#allocation2 + $0xb0] sm:$0x1]  ;;  %v276_v24 = vsel %vm15549_vm8, 0, %v275_v53  ;;  %v1203_v55 = vrot.slane %v1201_v60, 4  ;;  %v1206_v40 = vrot.slane %v1204_v49, 5  ;;  %v1241_v31 = vor.u32 %v1240_v14, %v16129_v13 }
  0xa3   : > { %v382_v34 = vsel %vm15599_vm14, 0, %v381_v27  ;;  %277 = vst [vmem:[#allocation2 + $0xbc] sm:$0x1] %v276_v24  ;;  %v1222_v35 = vrot.slane %v1220_v15, 5  ;;  %v16138_v36 = vld [vmem:[#allocation2 + $0x90] sm:$0xf]  ;;  %v668_v39 = vsel %vm15580_vm11, %v660_v12, %v667_v32 }
  0xa4   : > { %383 = vst [vmem:[#allocation2 + $0xb0] sm:$0x1] %v382_v34  ;;  %v671_v43 = vshrl.u32 %v16119_v6, 16  ;;  %v674_v50 = vshll.u32 %v16119_v6, 16  ;;  %v1207_v56 = vor.u32 %v1206_v40, %v1203_v55  ;;  %v16144_v5 = vld [vmem:[#allocation2 + $0x98] sm:$0x1] }
  0xa5   : > { %v1225_v9 = vshrl.u32 %v16138_v36, 16  ;;  %v1228_v59 = vshll.u32 %v16138_v36, 16  ;;  %v1242_v41 = vrot.slane %v1241_v31, 4  ;;  %851 = vst.msk [vmem:[#allocation2 + $0xac] sm:$0xf] %vm752_vm12, %v668_v39  ;;  %v1223_v47 = vsel %vm15535_vm4, %v16112_v45, %v1222_v35 }
  0xa6   : > { %v1244_v53 = vshll.u32 %v16144_v5, 16  ;;  %v841_v61 = vld [vmem:[#allocation2 + $0x9c] sm:$0xf]  ;;  %v845_v63 = vld [vmem:[#allocation2 + $0xa4] sm:$0x1]  ;;  %v16153_v18 = vrot.slane %v671_v43, 7 }
  0xa7   : > { %v1208_v33 = vrot.slane %v1207_v56, 4  ;;  %v1227_v46 = vrot.slane %v1225_v9, 4  ;;  %v1230_v2 = vrot.slane %v1228_v59, 5  ;;  %v842_v29 = vsel %vm15657_vm0, %v16090_v23, %v841_v61  ;;  %v16158_v25 = vld [vmem:[#allocation2 + $0xa0] sm:$0xf] }
  0xa8   : > { %v427_v6 = vld [vmem:[%s15530_s25 + $0x74] sm:$0xf]  ;;  %v1246_v7 = vrot.slane %v1244_v53, 5  ;;  %843 = vst [vmem:[#allocation2 + $0x9c] sm:$0xf] %v842_v29  ;;  %v846_v45 = vsel %vm15663_vm1, %v652_v37, %v845_v63  ;;  %v1258_v12 = vshll.u32 %v16158_v25, 16  ;;  %v676_v63 = vor.u32 %v674_v50, %v16153_v18 }
  0xa9   : > { %v1262_v8 = vshrl.u32 %v16158_v25, 16  ;;  %v848_v44 = vld [vmem:[#allocation2 + $0xa8] sm:$0xf]  ;;  %v1213_v60 = vsel %vm15535_vm4, %v1208_v33, %v16094_v30  ;;  %v1231_v23 = vor.u32 %v1230_v2, %v1227_v46  ;;  %847 = vst [vmem:[#allocation2 + $0xa4] sm:$0x1] %v846_v45  ;;  %v679_v35 = vshrl.u32 %v427_v6, 16 }
  0xaa   : > { %v849_v49 = vsel %vm15657_vm0, %v659_v10, %v848_v44  ;;  %v384_v14 = vld [vmem:[#allocation2 + $0xb4] sm:$0xf]  ;;  %v12419_v15 = vcombine.low %v1213_v60, %v1223_v47  ;;  %v16172_v28 = vrot.slane %v1258_v12, 5  ;;  %v388_v37 = vld [vmem:[#allocation2 + $0xbc] sm:$0x1]  ;;  %v1247_v24 = vsel %vm15535_vm4, %v1242_v41, %v1246_v7 }
  0xab   : > { %v1264_v27 = vrot.slane %v1262_v8, 4  ;;  %850 = vst [vmem:[#allocation2 + $0xa8] sm:$0xf] %v849_v49  ;;  %v1232_v32 = vrot.slane %v1231_v23, 4  ;;  %v852_v55 = vld [vmem:[#allocation2 + $0xb0] sm:$0x1] }
  0xac   : > { %v385_v30 = vsel %vm15589_vm13, 0, %v384_v14  ;;  %v389_v40 = vsel %vm15599_vm14, 0, %v388_v37  ;;  %13840 = vmatmul.mubr.bf16.gmra.mrb[20].mxu0 %v12419_v15  ;;  %v853_v31 = vsel %vm15663_vm1, %v669_v3, %v852_v55  ;;  %v16183_v34 = vld [vmem:[#allocation2 + $0xac] sm:$0xf]  ;;  %v682_v39 = vshll.u32 %v427_v6, 16 }
  0xad   : > { %v1265_v10 = vor.u32 %v1264_v27, %v16172_v28  ;;  %386 = vst [vmem:[#allocation2 + $0xb4] sm:$0xf] %v385_v30  ;;  %390 = vst [vmem:[#allocation2 + $0xbc] sm:$0x1] %v389_v40  ;;  %v1237_v43 = vsel %vm15535_vm4, %v1232_v32, %v16129_v13  ;;  %v1282_v56 = vshll.u32 %v16183_v34, 16  ;;  %v1286_v9 = vshrl.u32 %v16183_v34, 16 }
  0xae   : > { %854 = vst [vmem:[#allocation2 + $0xb0] sm:$0x1] %v853_v31  ;;  %v12420_v59 = vcombine.low %v1237_v43, %v1247_v24  ;;  %v677_v41 = vrot.slane %v16153_v18, 4  ;;  %v681_v47 = vrot.slane %v679_v35, 7  ;;  %v16443_v57 = vld [vmem:[#allocation2 + $0x10] sm:$0xf] }
  0xaf   : > { %v16191_v3 = vld [vmem:[#allocation2 + $0x9c] sm:$0xf]  ;;  %v1284_v53 = vrot.slane %v1282_v56, 5  ;;  %v1288_v61 = vrot.slane %v1286_v9, 4  ;;  %v1266_v2 = vrot.slane %v1265_v10, 4  ;;  %v2848_v42 = vshrl.u32 %v16443_v57, 16 }
  0xb0   : > { %13843 = vmatprep.mubr.bf16.mxu0 %v12420_v59  ;;  %v16194_v33 = vld [vmem:[#allocation2 + $0xa4] sm:$0x1]  ;;  %v1249_v13 = vshrl.u32 %v16191_v3, 16  ;;  %v1252_v46 = vshll.u32 %v16191_v3, 16  ;;  %v684_v29 = vor.u32 %v682_v39, %v681_v47  ;;  %v686_v12 = vrot.slane %v681_v47, 4 }
  0xb1   : > { %v1268_v6 = vshll.u32 %v16194_v33, 16  ;;  %v1289_v45 = vor.u32 %v1288_v61, %v1284_v53 }
  0xb2   : > { %v16199_v7 = vld [vmem:[#allocation2 + $0xa8] sm:$0xf]  ;;  %v1251_v8 = vrot.slane %v1249_v13, 4  ;;  %v1254_v44 = vrot.slane %v1252_v46, 5  ;;  %v685_v23 = vsel %vm15580_vm11, %v677_v41, %v684_v29 }
  0xb3   : > { %v1273_v60 = vshrl.u32 %v16199_v7, 16  ;;  %v1276_v50 = vshll.u32 %v16199_v7, 16  ;;  %v1270_v18 = vrot.slane %v1268_v6, 5  ;;  %858 = vst.msk [vmem:[#allocation2 + $0xb8] sm:$0xf] %vm752_vm12, %v685_v23  ;;  %v1290_v55 = vrot.slane %v1289_v45, 4 }
  0xb4   : > { %v855_v49 = vld [vmem:[#allocation2 + $0xb4] sm:$0xf]  ;;  %v859_v14 = vld [vmem:[#allocation2 + $0xbc] sm:$0x1]  ;;  %v1255_v15 = vor.u32 %v1254_v44, %v1251_v8 }
  0xb5   : > { %v16205_v27 = vld [vmem:[#allocation2 + $0xb0] sm:$0x1]  ;;  %v1275_v37 = vrot.slane %v1273_v60, 4  ;;  %v1278_v32 = vrot.slane %v1276_v50, 5  ;;  %v856_v24 = vsel %vm15657_vm0, %v676_v63, %v855_v49  ;;  %v860_v40 = vsel %vm15663_vm1, %v686_v12, %v859_v14 }
  0xb6   : > { %v1292_v30 = vshll.u32 %v16205_v27, 16  ;;  %857 = vst [vmem:[#allocation2 + $0xb4] sm:$0xf] %v856_v24  ;;  %v1256_v10 = vrot.slane %v1255_v15, 4  ;;  %v1271_v31 = vsel %vm15535_vm4, %v1266_v2, %v1270_v18  ;;  %861 = vst [vmem:[#allocation2 + $0xbc] sm:$0x1] %v860_v40 }
  0xb7   : > { %v1279_v35 = vor.u32 %v1278_v32, %v1275_v37  ;;  %v15413_v15 = vld [vmem:[#allocation2] sm:$0xf]  ;;  %v16237_v37 = vld [vmem:[#allocation2 + $0x4] sm:$0xf] }
  0xb8   : > { %v1294_v39 = vrot.slane %v1292_v30, 5  ;;  %v1261_v43 = vsel %vm15535_vm4, %v1256_v10, %v16172_v28  ;;  %v12432_v32 = vcombine.low %v15413_v15, %v16237_v37  ;;  %v15416_v30 = vld [vmem:[#allocation2 + $0xc] sm:$0xf]  ;;  %v16243_v10 = vld [vmem:[#allocation2 + $0x1c] sm:$0xf] }
  0xb9   : > { %v1280_v56 = vrot.slane %v1279_v35, 4  ;;  %v12421_v9 = vcombine.low %v1261_v43, %v1271_v31  ;;  %v15418_v31 = vld [vmem:[#allocation2 + $0x18] sm:$0xf]  ;;  %v15206_v43 = vld [vmem:[%s19153_s1 + $0x90] sm:$0xff]  }
  0xba   : > { %v1295_v59 = vsel %vm15535_vm4, %v1290_v55, %v1294_v39  ;;  %v16222_v61 = vld [vmem:[#allocation2 + $0xb8] sm:$0xf]  ;;  %v16240_v55 = vld [vmem:[#allocation2 + $0x10] sm:$0xf]  ;;  %v12434_v35 = vcombine.low %v15418_v31, %v16243_v10  ;;  %v15205_v39 = vld [vmem:[%s19153_s1 + $0x88] sm:$0xff]  }
  0xbb   : > { %v1285_v41 = vsel %vm15535_vm4, %v1280_v56, %v1284_v53  ;;  %13844 = vmatmul.mubr.bf16.gmra.mrb[24].mxu0 %v12421_v9  ;;  %v1306_v13 = vshll.u32 %v16222_v61, 16  ;;  %v1310_v46 = vshrl.u32 %v16222_v61, 16  ;;  %v12433_v40 = vcombine.low %v15416_v30, %v16240_v55  ;;  %v16253_v56 = vld [vmem:[#allocation2 + $0x28] sm:$0xf]  ;;  %v15420_v9 = vld [vmem:[#allocation2 + $0x24] sm:$0xf] }
  0xbc   : > { %v12422_v47 = vcombine.low %v1285_v41, %v1295_v59  ;;  %v12435_v59 = vcombine.low %v15420_v9, %v16253_v56  ;;  %v16256_v41 = vld [vmem:[#allocation2 + $0x34] sm:$0xf] }
  0xbd   : > { %v16224_v63 = vld [vmem:[#allocation2 + $0xb4] sm:$0xf]  ;;  %v16228_v28 = vld [vmem:[#allocation2 + $0xbc] sm:$0x1]  ;;  %v1308_v6 = vrot.slane %v1306_v13, 5  ;;  %v1312_v45 = vrot.slane %v1310_v46, 4 }
  0xbe   : > { %13847 = vmatprep.mubr.bf16.mxu0 %v12422_v47  ;;  %v1297_v2 = vshrl.u32 %v16224_v63, 16  ;;  %v1300_v29 = vshll.u32 %v16224_v63, 16  ;;  %v1316_v53 = vshll.u32 %v16228_v28, 16  ;;  %v15422_v47 = vld [vmem:[#allocation2 + $0x30] sm:$0xf]  ;;  %v15208_v46 = vld [vmem:[%s19153_s1 + $0xa0] sm:$0xff]   ;;  %v12447_v38 = vcombine.low %v16224_v63, %v16222_v61 }
  0xbf   : > { %v1313_v44 = vor.u32 %v1312_v45, %v1308_v6  ;;  %v12436_v13 = vcombine.low %v15422_v47, %v16256_v41  ;;  %v15209_v45 = vld [vmem:[%s19153_s1 + $0xa8] sm:$0xff]   ;;  %v12446_v47 = vcombine.low %v16199_v7, %v16183_v34  ;;  %v1989_v63 = vrot.slane %v16253_v56, 5 }
  0xc0   : > { %v1299_v12 = vrot.slane %v1297_v2, 4  ;;  %v1302_v8 = vrot.slane %v1300_v29, 5  ;;  %v1318_v60 = vrot.slane %v1316_v53, 5  ;;  %v15423_v2 = vld [vmem:[#allocation2 + $0x3c] sm:$0xf] }
  0xc1   : > { %v1314_v18 = vrot.slane %v1313_v44, 4  ;;  %v16265_v29 = vld [vmem:[#allocation2 + $0x40] sm:$0xf]  ;;  %v16271_v53 = vld [vmem:[#allocation2 + $0x4c] sm:$0xf] }
  0xc2   : > { %v1303_v50 = vor.u32 %v1302_v8, %v1299_v12  ;;  %v12438_v12 = vcombine.low %v15928_v54, %v16271_v53  ;;  %v15210_v8 = vld [vmem:[%s19153_s1 + $0xb0] sm:$0xff]   ;;  %v16278_v44 = vld [vmem:[#allocation2 + $0x58] sm:$0xf]  ;;  %v12440_v54 = vcombine.low %v15962_v17, %v15950_v62  ;;  %v12442_v17 = vcombine.low %v16029_v4, %v16044_v52  ;;  %v429_v4 = vld [vmem:[%s15530_s25 + $0x7c] sm:$0xf] }
  0xc3   : > { %v1319_v49 = vsel %vm15535_vm4, %v1314_v18, %v1318_v60  ;;  %v12439_v60 = vcombine.low %v15944_v1, %v16278_v44  ;;  %v16290_v18 = vld [vmem:[%s19153_s1 + $0xc0] sm:$0xff]   ;;  %v1968_v52 = vrot.slane %v16237_v37, 5  ;;  %v696_v30 = vshrl.u32 %v429_v4, 16 }
  0xc4   : > { %v1304_v23 = vrot.slane %v1303_v50, 4  ;;  %v15211_v50 = vld [vmem:[%s19153_s1 + $0xb8] sm:$0xff]   ;;  %v228_v1 = vld [vmem:[#allocation2 + $0xc0] sm:$0x1]  ;;  %v699_v51 = vshll.u32 %v429_v4, 16 }
  0xc5   : > { %v229_v62 = vsel %vm15541_vm6, 0, %v228_v1  ;;  %v1970_v37 = vrot.slane %v1968_v52, 4 }
  0xc6   : > { %v1309_v14 = vsel %vm15535_vm4, %v1304_v23, %v1308_v6  ;;  %v12437_v6 = vcombine.low %v15423_v2, %v16265_v29  ;;  %v12441_v23 = vcombine.low %v16012_v22, %v15986_v0  ;;  %230 = vst [vmem:[#allocation2 + $0xc0] sm:$0x1] %v229_v62  ;;  %v12444_v0 = vcombine.low %v16138_v36, %v16105_v19  ;;  %v1917_v2 = vld [vmem:[#allocation2 + $0x18] sm:$0xe] }
  0xc7   : > { %v12423_v24 = vcombine.low %v1309_v14, %v1319_v49  ;;  %v12443_v49 = vcombine.low %v16121_v58, %v16077_v11  ;;  %v1915_v14 = vld [vmem:[#allocation2] sm:$0xe]  ;;  %v16308_v19 = vrot.slane %v696_v30, 7  ;;  %v12445_v36 = vcombine.low %v16191_v3, %v16158_v25  ;;  %v1916_v3 = vld [vmem:[#allocation2 + $0xc] sm:$0xe] }
  0xc8   : > { %v12456_v11 = vrot.slane %v1915_v14, 9  ;;  %v15214_v30 = vld [vmem:[%s19153_s1 + $0xc8] sm:$0xff]  }
  0xc9   : > { %13848 = vmatmul.mubr.bf16.gmra.mrb[28].mxu0 %v12423_v24  ;;  %v703_v26 = vrot.slane %v16308_v19, 4 }
  0xca   : > { %13867 = vmatprep.mubr.bf16.mxu0 %v12432_v32  ;;  %v428_v32 = vld [vmem:[%s15530_s25 + $0x78] sm:$0xf]  ;;  %v1969_v7 = vsel %vm16312_vm5, %v12456_v11, %v1968_v52 }
  0xcb   : > { %v688_v24 = vshrl.u32 %v428_v32, 16 }
  0xcd   : > { %v391_v15 = vld [vmem:[#allocation2 + $0xc0] sm:$0xf]  ;;  %v690_v58 = vrot.slane %v688_v24, 7 }
  0xce   : > { %v392_v22 = vsel %vm15589_vm13, 0, %v391_v15 }
  0xcf   : > { %393 = vst [vmem:[#allocation2 + $0xc0] sm:$0xf] %v392_v22  ;;  %v694_v9 = vrot.slane %v690_v58, 4  ;;  %v1919_v22 = vld [vmem:[#allocation2 + $0x30] sm:$0xe] }
  0xd0   : > { %v12460_v56 = vrot.slane %v1919_v22, 9 }
  0xd1   : > { %13868 = vmatmul.mubr.bf16.vlgmr.msra.gmra.mrb[0].mxu0 %v12433_v40  ;;  %v15427_v40 = vld [vmem:[#allocation2 + $0x8] sm:$0x1] }
  0xd2   : > { %13900 = vmatpush3.bf16.msra.mxu0 %v15908_v21  ;;  %13871 = vmatprep.mubr.bf16.mxu0 %v12434_v35  ;;  %v15207_v21 = vld [vmem:[%s19153_s1 + $0x98] sm:$0xff]   ;;  %v1971_v31 = vrot.slane %v15427_v40, 5  ;;  %v691_v35 = vshll.u32 %v428_v32, 16  ;;  %v1996_v32 = vrot.slane %v16256_v41, 5  ;;  %v1991_v40 = vrot.slane %v1989_v63, 4 }
  0xd3   : > { %13901 = vmatprep.subr.bf16.mxu0 %v15205_v39 }
  0xd6   : > { %13902 = vmatpush3.bf16.msra.mxu0 %v15205_v39  ;;  %v18722_v39 = vld [vmem:[%s19154_s2 + $0x1] ss:$0 sm:$0xff] }
  0xd7   : > { %13903 = vmatprep.subr.bf16.mxu0 %v15206_v43 }
  0xd9   : > { %13872 = vmatmul.mubr.bf16.gmra.mrb[4].mxu0 %v12435_v59  ;;  %v701_v59 = vor.u32 %v699_v51, %v16308_v19 }
  0xda   : > { %13875 = vmatprep.mubr.bf16.mxu0 %v12436_v13  ;;  %13904 = vmatpush3.bf16.msra.mxu0 %v15206_v43  ;;  %v693_v43 = vor.u32 %v691_v35, %v690_v58  ;;  %v862_v13 = vld [vmem:[#allocation2 + $0xc0] sm:$0xf]  ;;  %v1998_v58 = vrot.slane %v1996_v32, 4  ;;  %v15431_v35 = vld [vmem:[#allocation2 + $0x38] sm:$0x1] }
  0xdb   : > { %13905 = vmatprep.subr.bf16.mxu0 %v15207_v21  ;;  %v1999_v51 = vrot.slane %v15431_v35, 5  ;;  %v1924_v35 = vld [vmem:[#allocation2 + $0x6c] sm:$0xe] }
  0xde   : > { %13906 = vmatpush3.bf16.msra.mxu0 %v15207_v21  ;;  %v702_v21 = vsel %vm15580_vm11, %v694_v9, %v701_v59  ;;  %v1997_v9 = vsel %vm16312_vm5, %v12460_v56, %v1996_v32  ;;  %v2000_v59 = vsel %vm16312_vm5, %v1998_v58, %v1999_v51  ;;  %v15438_v51 = vld [vmem:[#allocation2 + $0x7c] sm:$0xf] }
  0xdf   : > { %13907 = vmatprep.subr.bf16.mxu0 %v15208_v46  ;;  %865 = vst.msk [vmem:[#allocation2 + $0xc4] sm:$0xf] %vm752_vm12, %v702_v21 }
  0xe1   : > { %13876 = vmatmul.mubr.bf16.gmra.mrb[8].mxu0 %v12437_v6  ;;  %v1975_v6 = vrot.slane %v16240_v55, 5 }
  0xe2   : > { %13879 = vmatprep.mubr.bf16.mxu0 %v12438_v12  ;;  %13908 = vmatpush3.bf16.msra.mxu0 %v15208_v46  ;;  %v863_v46 = vsel %vm15657_vm0, %v693_v43, %v862_v13  ;;  %v1972_v12 = vsel %vm16312_vm5, %v1970_v37, %v1971_v31  ;;  %v15430_v31 = vld [vmem:[#allocation2 + $0x2c] sm:$0x1]  ;;  %v2003_v43 = vrot.slane %v16265_v29, 5  ;;  %v2010_v13 = vrot.slane %v16271_v53, 5  ;;  %v15432_v29 = vld [vmem:[#allocation2 + $0x44] sm:$0x1] }
  0xe3   : > { %13909 = vmatprep.subr.bf16.mxu0 %v15209_v45  ;;  %864 = vst [vmem:[#allocation2 + $0xc0] sm:$0xf] %v863_v46  ;;  %v1992_v11 = vrot.slane %v15430_v31, 5  ;;  %v15437_v31 = vld [vmem:[#allocation2 + $0x70] sm:$0xf] }
  0xe5   : > { %v1993_v37 = vsel %vm16312_vm5, %v1991_v40, %v1992_v11  ;;  %v2031_v11 = vrot.slane %v15437_v31, 5 }
  0xe6   : > { %13910 = vmatpush3.bf16.msra.mxu0 %v15209_v45  ;;  %v1982_v45 = vrot.slane %v16243_v10, 5  ;;  %v1918_v10 = vld [vmem:[#allocation2 + $0x24] sm:$0xe] }
  0xe7   : > { %13911 = vmatprep.subr.bf16.mxu0 %v15210_v8  ;;  %v12459_v52 = vrot.slane %v1918_v10, 9  ;;  %v1923_v10 = vld [vmem:[#allocation2 + $0x60] sm:$0xe] }
  0xe8   : > { %v1984_v62 = vrot.slane %v1982_v45, 4  ;;  %v12464_v22 = vrot.slane %v1923_v10, 9  ;;  %v15443_v10 = vld [vmem:[#allocation2 + $0x8c] sm:$0x1] }
  0xe9   : > { %13880 = vmatmul.mubr.bf16.gmra.mrb[12].mxu0 %v12439_v60  ;;  %v12488_v60 = vcombine.low %v1969_v7, %v1972_v12  ;;  %v1990_v41 = vsel %vm16312_vm5, %v12459_v52, %v1989_v63  ;;  %v15216_v7 = vld [vmem:[%s19153_s1 + $0xd8] sm:$0xff]   ;;  %v2012_v12 = vrot.slane %v2010_v13, 4 }
  0xea   : > { %13883 = vmatprep.mubr.bf16.mxu0 %v12440_v54  ;;  %13912 = vmatpush3.bf16.msra.mxu0 %v15210_v8  ;;  %v12457_v8 = vrot.slane %v1916_v3, 9  ;;  %v15428_v54 = vld [vmem:[#allocation2 + $0x14] sm:$0x1]  ;;  %v12491_v21 = vcombine.low %v1990_v41, %v1993_v37  ;;  %v12492_v3 = vcombine.low %v1997_v9, %v2000_v59  ;;  %v1925_v37 = vld [vmem:[#allocation2 + $0x78] sm:$0xe]  ;;  %v12465_v59 = vrot.slane %v1924_v35, 9 }
  0xeb   : > { %13913 = vmatprep.subr.bf16.mxu0 %v15211_v50  ;;  %v1978_v1 = vrot.slane %v15428_v54, 5  ;;  %v15219_v41 = vld [vmem:[%s19153_s1 + $0xf0] sm:$0xff]  }
  0xee   : > { %13914 = vmatpush3.bf16.msra.mxu0 %v15211_v50  ;;  %v1977_v50 = vrot.slane %v1975_v6, 4 }
  0xef   : > { %13947 = vmatprep.subr.bf16.mxu0 %v16290_v18 }
  0xf0   : > { %v1979_v14 = vsel %vm16312_vm5, %v1977_v50, %v1978_v1  ;;  %v2017_v50 = vrot.slane %v16278_v44, 5  ;;  %v15435_v44 = vld [vmem:[#allocation2 + $0x5c] sm:$0x1] }
  0xf1   : > { %13884 = vmatmul.mubr.bf16.gmra.mrb[16].mxu0 %v12441_v23  ;;  %v12458_v23 = vrot.slane %v1917_v2, 9  ;;  %v2005_v2 = vrot.slane %v2003_v43, 4 }
  0xf2   : > { %13887 = vmatprep.mubr.bf16.mxu0 %v12442_v17  ;;  %v15429_v17 = vld [vmem:[#allocation2 + $0x20] sm:$0x1] }
  0xf3   : > { %v1985_v55 = vrot.slane %v15429_v17, 5  ;;  %v1983_v15 = vsel %vm16312_vm5, %v12458_v23, %v1982_v45  ;;  %v1922_v23 = vld [vmem:[#allocation2 + $0x54] sm:$0xe] }
  0xf4   : > { %v12463_v63 = vrot.slane %v1922_v23, 9 }
  0xf9   : > { %13888 = vmatmul.mubr.bf16.gmra.mrb[20].mxu0 %v12443_v49  ;;  %v1976_v49 = vsel %vm16312_vm5, %v12457_v8, %v1975_v6  ;;  %v2006_v6 = vrot.slane %v15432_v29, 5  ;;  %v15220_v29 = vld [vmem:[%s19153_s1 + $0xf8] sm:$0xff]  }
  0xfa   : > { %13891 = vmatprep.mubr.bf16.mxu0 %v12444_v0  ;;  %v1986_v0 = vsel %vm16312_vm5, %v1984_v62, %v1985_v55  ;;  %v12489_v4 = vcombine.low %v1976_v49, %v1979_v14  ;;  %v15434_v62 = vld [vmem:[#allocation2 + $0x64] sm:$0xf] }
  0xfb   : > { %v12490_v24 = vcombine.low %v1983_v15, %v1986_v0  ;;  %v2024_v17 = vrot.slane %v15434_v62, 5  ;;  %v15217_v55 = vld [vmem:[%s19153_s1 + $0xe0] sm:$0xff]   ;;  %v2019_v15 = vrot.slane %v2017_v50, 4  ;;  %v2020_v0 = vrot.slane %v15435_v44, 5 }
  0xfd   : > { %v2026_v32 = vrot.slane %v2024_v17, 4  ;;  %v2021_v40 = vsel %vm16312_vm5, %v2019_v15, %v2020_v0  ;;  %v2025_v56 = vsel %vm16312_vm5, %v12464_v22, %v2024_v17  ;;  %v2055_v15 = vrot.slane %v16144_v5, 5  ;;  %v1928_v22 = vld [vmem:[#allocation2 + $0x9c] sm:$0xe] }
  0xfe   : > { %v2066_v5 = vrot.slane %v16183_v34, 5  ;;  %v12469_v31 = vrot.slane %v1928_v22, 9  ;;  %v2073_v34 = vrot.slane %v16222_v61, 5 }
 0x100   : > { %v2068_v35 = vrot.slane %v2066_v5, 4 }
 0x101   : > { %13892 = vmatmul.mubr.bf16.gmra.mrb[24].mxu0 %v12445_v36  ;;  %v1920_v36 = vld [vmem:[#allocation2 + $0x3c] sm:$0xe] }
 0x102   : > { %13895 = vmatprep.mubr.bf16.mxu0 %v12446_v47  ;;  %v1921_v47 = vld [vmem:[#allocation2 + $0x48] sm:$0xe]  ;;  %v12461_v46 = vrot.slane %v1920_v36, 9  ;;  %v2038_v36 = vrot.slane %v15438_v51, 5  ;;  %v2069_v51 = vrot.slane %v16205_v27, 5 }
 0x103   : > { %v12462_v45 = vrot.slane %v1921_v47, 9  ;;  %v15439_v47 = vld [vmem:[#allocation2 + $0x74] sm:$0x1] }
 0x104   : > { %v2004_v53 = vsel %vm16312_vm5, %v12461_v46, %v2003_v43  ;;  %v2040_v46 = vrot.slane %v2038_v36, 4 }
 0x105   : > { %v2011_v54 = vsel %vm16312_vm5, %v12462_v45, %v2010_v13  ;;  %v2034_v13 = vrot.slane %v15439_v47, 5  ;;  %v278_v47 = vld [vmem:[#allocation2 + $0xc8] sm:$0x1] }
 0x109   : > { %13896 = vmatmul.mubr.bf16.gmra.mrb[28].mxu0 %v12447_v38  ;;  %v15433_v38 = vld [vmem:[#allocation2 + $0x50] sm:$0x1] }
 0x10a   : > { %13915 = vmatprep.mubr.bf16.mxu0 %v12488_v60  ;;  %v2013_v8 = vrot.slane %v15433_v38, 5  ;;  %v2007_v60 = vsel %vm16312_vm5, %v2005_v2, %v2006_v6  ;;  %v2032_v6 = vsel %vm16312_vm5, %v12465_v59, %v2031_v11  ;;  %v2075_v59 = vrot.slane %v2073_v34, 4 }
 0x10b   : > { %v12493_v49 = vcombine.low %v2004_v53, %v2007_v60  ;;  %v15442_v60 = vld [vmem:[#allocation2 + $0x94] sm:$0xf] }
 0x10c   : > { %v2014_v1 = vsel %vm16312_vm5, %v2012_v12, %v2013_v8  ;;  %v15441_v12 = vld [vmem:[#allocation2 + $0x88] sm:$0xf] }
 0x10d   : > { %v12494_v14 = vcombine.low %v2011_v54, %v2014_v1  ;;  %v2045_v38 = vrot.slane %v15441_v12, 5  ;;  %v15222_v54 = vld [vmem:[%s19153_s1 + $0x100] sm:$0xff]   ;;  %v1927_v1 = vld [vmem:[#allocation2 + $0x90] sm:$0xe] }
 0x10e   : > { %v15228_v12 = vld [vmem:[%s19153_s1 + $0x110] sm:$0xff]  }
 0x111   : > { %13916 = vmatmul.mubr.bf16.vlgmr.msra.gmra.mrb[0].mxu0 %v12489_v4  ;;  %v15436_v4 = vld [vmem:[#allocation2 + $0x68] sm:$0x1] }
 0x112   : > { %13948 = vmatpush3.bf16.msra.mxu0 %v16290_v18  ;;  %13919 = vmatprep.mubr.bf16.mxu0 %v12490_v24  ;;  %v15215_v18 = vld [vmem:[%s19153_s1 + $0xd0] sm:$0xff]   ;;  %v2027_v52 = vrot.slane %v15436_v4, 5  ;;  %v15218_v24 = vld [vmem:[%s19153_s1 + $0xe8] sm:$0xff]  }
 0x113   : > { %13949 = vmatprep.subr.bf16.mxu0 %v15214_v30 }
 0x114   : > { %v2028_v58 = vsel %vm16312_vm5, %v2026_v32, %v2027_v52  ;;  %v2059_v32 = vrot.slane %v16158_v25, 5 }
 0x115   : > { %v12496_v9 = vcombine.low %v2025_v56, %v2028_v58  ;;  %v2062_v56 = vrot.slane %v16194_v33, 5  ;;  %v2070_v33 = vsel %vm16312_vm5, %v2068_v35, %v2069_v51  ;;  %v15232_v35 = vld [vmem:[#allocation2 + $0x60] sm:$0xff]  }
 0x116   : > { %13950 = vmatpush3.bf16.msra.mxu0 %v15214_v30  ;;  %v2018_v30 = vsel %vm16312_vm5, %v12463_v63, %v2017_v50  ;;  %v2052_v50 = vrot.slane %v15442_v60, 5  ;;  %v2060_v25 = vsel %vm16312_vm5, %v12469_v31, %v2059_v32 }
 0x117   : > { %13951 = vmatprep.subr.bf16.mxu0 %v15215_v18  ;;  %v12495_v43 = vcombine.low %v2018_v30, %v2021_v40 }
 0x118   : > { %v2054_v63 = vrot.slane %v2052_v50, 4 }
 0x119   : > { %13920 = vmatmul.mubr.bf16.gmra.mrb[4].mxu0 %v12491_v21  ;;  %v12466_v21 = vrot.slane %v1925_v37, 9  ;;  %v1930_v37 = vld [vmem:[#allocation2 + $0xb4] sm:$0xe] }
 0x11a   : > { %13923 = vmatprep.mubr.bf16.mxu0 %v12492_v3  ;;  %13952 = vmatpush3.bf16.msra.mxu0 %v15215_v18  ;;  %v2033_v18 = vrot.slane %v2031_v11, 4  ;;  %v15440_v3 = vld [vmem:[#allocation2 + $0x80] sm:$0x1]  ;;  %v2056_v52 = vsel %vm16312_vm5, %v2054_v63, %v2055_v15  ;;  %v2061_v11 = vrot.slane %v2059_v32, 4  ;;  %v12471_v27 = vrot.slane %v1930_v37, 9 }
 0x11b   : > { %13953 = vmatprep.subr.bf16.mxu0 %v15216_v7  ;;  %v2041_v2 = vrot.slane %v15440_v3, 5  ;;  %v2039_v8 = vsel %vm16312_vm5, %v12466_v21, %v2038_v36  ;;  %v279_v21 = vsel %vm15549_vm8, 0, %v278_v47  ;;  %v15221_v3 = vld [vmem:[#allocation2 + $0xc] sm:$0xff]   ;;  %vm6164_vm8 = vcmask 1043456  }
 0x11c   : > { %v2035_v45 = vsel %vm16312_vm5, %v2033_v18, %v2034_v13  ;;  %v2063_v36 = vsel %vm16312_vm5, %v2061_v11, %v2062_v56  ;;  %v2076_v18 = vrot.slane %v16228_v28, 5  ;;  %v2074_v13 = vsel %vm16312_vm5, %v12471_v27, %v2073_v34  ;;  %280 = vst [vmem:[#allocation2 + $0xc8] sm:$0x1] %v279_v21  ;;  %v2795_v47 = vld [vmem:[#allocation2 + $0x30] sm:$0xf]  ;;  %vm17348_vm9 = vmand %vm6164_vm8, %vm231_vm7 }
 0x11d   : > { %v2042_v53 = vsel %vm16312_vm5, %v2040_v46, %v2041_v2  ;;  %v12497_v23 = vcombine.low %v2032_v6, %v2035_v45  ;;  %v15223_v2 = vld [vmem:[#allocation2 + $0x18] sm:$0xff]   ;;  %v15225_v6 = vld [vmem:[%s19153_s1 + $0x108] sm:$0xff]   ;;  %vm12003_vm7 = vcmask 1045504  }
 0x11e   : > { %13954 = vmatpush3.bf16.msra.mxu0 %v15216_v7  ;;  %v1926_v7 = vld [vmem:[#allocation2 + $0x84] sm:$0xe]  ;;  %v12498_v62 = vcombine.low %v2039_v8, %v2042_v53  ;;  %v2077_v61 = vsel %vm16312_vm5, %v2075_v59, %v2076_v18  ;;  %v15231_v8 = vld [vmem:[%s19153_s1 + $0x118] sm:$0xff]   ;;  %v2786_v53 = vld [vmem:[#allocation2 + $0xc] sm:$0xf] }
 0x11f   : > { %13955 = vmatprep.subr.bf16.mxu0 %v15217_v55  ;;  %v12467_v17 = vrot.slane %v1926_v7, 9  ;;  %v12503_v46 = vcombine.low %v2074_v13, %v2077_v61  ;;  %v15226_v7 = vld [vmem:[#allocation2 + $0x30] sm:$0xff]   ;;  %v16487_v13 = vld [vmem:[%s19153_s1 + $0x140] sm:$0xff]  }
 0x121   : > { %13924 = vmatmul.mubr.bf16.gmra.mrb[8].mxu0 %v12493_v49  ;;  %v2048_v49 = vrot.slane %v15443_v10, 5  ;;  %v2046_v44 = vsel %vm16312_vm5, %v12467_v17, %v2045_v38  ;;  %v2844_v17 = vshll.u32 %v16443_v57, 16  ;;  %v15229_v10 = vld [vmem:[#allocation2 + $0x48] sm:$0xff]  }
 0x122   : > { %13927 = vmatprep.mubr.bf16.mxu0 %v12494_v14  ;;  %13956 = vmatpush3.bf16.msra.mxu0 %v15217_v55  ;;  %v2047_v55 = vrot.slane %v2045_v38, 4  ;;  %v12468_v14 = vrot.slane %v1927_v1, 9  ;;  %v15227_v38 = vld [vmem:[#allocation2 + $0x3c] sm:$0xff]  }
 0x123   : > { %13957 = vmatprep.subr.bf16.mxu0 %v15218_v24  ;;  %v395_v28 = vld [vmem:[#allocation2 + $0xc8] sm:$0x1]  ;;  %v15234_v1 = vld [vmem:[%s19153_s1 + $0x120] sm:$0xff]  }
 0x124   : > { %v2049_v0 = vsel %vm16312_vm5, %v2047_v55, %v2048_v49  ;;  %v2053_v4 = vsel %vm16312_vm5, %v12468_v14, %v2052_v50  ;;  %v396_v45 = vsel %vm15599_vm14, 0, %v395_v28  ;;  %v2789_v50 = vld [vmem:[#allocation2 + $0x18] sm:$0xf]  ;;  %v16453_v55 = vld [vmem:[#allocation2 + $0x1c] sm:$0xf] }
 0x125   : > { %v12499_v30 = vcombine.low %v2046_v44, %v2049_v0  ;;  %v12500_v40 = vcombine.low %v2053_v4, %v2056_v52  ;;  %397 = vst [vmem:[#allocation2 + $0xc8] sm:$0x1] %v396_v45  ;;  %v2859_v49 = vshrl.u32 %v2789_v50, 16  ;;  %v15230_v14 = vld [vmem:[#allocation2 + $0x54] sm:$0xff]   ;;  %v2862_v15 = vshll.u32 %v2789_v50, 16  ;;  %v15237_v44 = vld [vmem:[%s19153_s1 + $0x128] sm:$0xff]  }
 0x126   : > { %13958 = vmatpush3.bf16.msra.mxu0 %v15218_v24  ;;  %v1929_v24 = vld [vmem:[#allocation2 + $0xa8] sm:$0xe]  ;;  %v16460_v0 = vld [vmem:[#allocation2 + $0x20] sm:$0x1]  ;;  %v2868_v22 = vshll.u32 %v16453_v55, 16  ;;  %v2872_v32 = vshrl.u32 %v16453_v55, 16 }
 0x127   : > { %13959 = vmatprep.subr.bf16.mxu0 %v15219_v41  ;;  %v12470_v58 = vrot.slane %v1929_v24, 9  ;;  %v2850_v24 = vrot.slane %v2848_v42, 4  ;;  %v2861_v11 = vrot.slane %v2859_v49, 4  ;;  %v2864_v56 = vrot.slane %v2862_v15, 5  ;;  %v15239_v42 = vld [vmem:[#allocation2 + $0x9c] sm:$0xff]  }
 0x128   : > { %v16472_v51 = vrot.slane %v2868_v22, 5  ;;  %v2907_v45 = vshrl.u32 %v2795_v47, 16  ;;  %v16509_v15 = vld [vmem:[#allocation2 + $0x40] sm:$0xf] }
 0x129   : > { %13928 = vmatmul.mubr.bf16.gmra.mrb[12].mxu0 %v12495_v43  ;;  %v12501_v43 = vcombine.low %v2060_v25, %v2063_v36  ;;  %v2874_v25 = vrot.slane %v2872_v32, 4  ;;  %v15233_v36 = vld [vmem:[#allocation2 + $0x6c] sm:$0xff]   ;;  %v2865_v27 = vor.u32 %v2864_v56, %v2861_v11 }
 0x12a   : > { %13931 = vmatprep.mubr.bf16.mxu0 %v12496_v9  ;;  %13960 = vmatpush3.bf16.msra.mxu0 %v15219_v41  ;;  %v2067_v41 = vsel %vm16312_vm5, %v12470_v58, %v2066_v5  ;;  %v16464_v5 = vrot.slane %v2844_v17, 5  ;;  %v2878_v58 = vshll.u32 %v16460_v0, 16 }
 0x12b   : > { %13961 = vmatprep.subr.bf16.mxu0 %v15220_v29  ;;  %v12502_v9 = vcombine.low %v2067_v41, %v2070_v33  ;;  %v15243_v33 = vld [vmem:[%s19153_s1 + $0x138] sm:$0xff]   ;;  %v16489_v61 = vrot.slane %v2865_v27, 4 }
 0x12c   : > { %v866_v60 = vld [vmem:[#allocation2 + $0xc8] sm:$0x1]  ;;  %v16491_v21 = vrot.slane %v2878_v58, 5  ;;  %v2940_v58 = vshll.u32 %v16509_v15, 16 }
 0x12d   : > { %v867_v19 = vsel %vm15663_vm1, %v703_v26, %v866_v60  ;;  %v2910_v26 = vshll.u32 %v2795_v47, 16  ;;  %v2798_v60 = vld [vmem:[#allocation2 + $0x3c] sm:$0xf]  ;;  %v16523_v47 = vld [vmem:[#allocation2 + $0x4c] sm:$0xf] }
 0x12e   : > { %13962 = vmatpush3.bf16.msra.mxu0 %v15220_v29  ;;  %v15224_v29 = vld [vmem:[#allocation2 + $0x24] sm:$0xff]   ;;  %868 = vst [vmem:[#allocation2 + $0xc8] sm:$0x1] %v867_v19  ;;  %v2909_v19 = vrot.slane %v2907_v45, 4  ;;  %v2931_v49 = vshrl.u32 %v2798_v60, 16 }
 0x12f   : > { %13995 = vmatprep.subr.bf16.mxu0 %v15222_v54 }
 0x131   : > { %13932 = vmatmul.mubr.bf16.gmra.mrb[16].mxu0 %v12497_v23  ;;  %v2835_v23 = vshrl.u32 %v2786_v53, 16 }
 0x132   : > { %13935 = vmatprep.mubr.bf16.mxu0 %v12498_v62  ;;  %v2838_v62 = vshll.u32 %v2786_v53, 16 }
 0x133   : > { %v2837_v4 = vrot.slane %v2835_v23, 4 }
 0x134   : > { %v2840_v52 = vrot.slane %v2838_v62, 5  ;;  %v15238_v62 = vld [vmem:[#allocation2 + $0x90] sm:$0xff]  }
 0x136   : > { %v2841_v37 = vor.u32 %v2840_v52, %v2837_v4 }
 0x138   : > { %v16480_v59 = vrot.slane %v2841_v37, 4  ;;  %v2944_v37 = vshrl.u32 %v16509_v15, 16 }
 0x139   : > { %13936 = vmatmul.mubr.bf16.gmra.mrb[20].mxu0 %v12499_v30  ;;  %v2792_v30 = vld [vmem:[#allocation2 + $0x24] sm:$0xf] }
 0x13a   : > { %13939 = vmatprep.mubr.bf16.mxu0 %v12500_v40  ;;  %v15240_v40 = vld [vmem:[%s19153_s1 + $0x130] sm:$0xff]   ;;  %v2883_v34 = vshrl.u32 %v2792_v30, 16  ;;  %v2886_v41 = vshll.u32 %v2792_v30, 16  ;;  %v2946_v45 = vrot.slane %v2944_v37, 4 }
 0x13c   : > { %v2888_v28 = vrot.slane %v2886_v41, 5  ;;  %v16519_v41 = vld [vmem:[#allocation2 + $0x44] sm:$0x1] }
 0x141   : > { %13940 = vmatmul.mubr.bf16.gmra.mrb[24].mxu0 %v12501_v43  ;;  %v2851_v43 = vor.u32 %v2850_v24, %v16464_v5 }
 0x142   : > { %13943 = vmatprep.mubr.bf16.mxu0 %v12502_v9  ;;  %v16478_v9 = vld [vmem:[#allocation2 + $0x28] sm:$0xf] }
 0x143   : > { %v16482_v18 = vrot.slane %v2851_v43, 4  ;;  %v2801_v43 = vld [vmem:[#allocation2 + $0x48] sm:$0xf] }
 0x149   : > { %13944 = vmatmul.mubr.bf16.gmra.mrb[28].mxu0 %v12503_v46  ;;  %v2892_v46 = vshll.u32 %v16478_v9, 16 }
 0x14a   : > { %13963 = vmatprep.mubr.bf16.mxu0 %v15221_v3  ;;  %v2896_v3 = vshrl.u32 %v16478_v9, 16 }
 0x14c   : > { %v2898_v53 = vrot.slane %v2896_v3, 4 }
 0x151   : > { %13964 = vmatmul.mubr.bf16.vlgmr.msra.gmra.mrb[0].mxu0 %v15223_v2  ;;  %v15235_v2 = vld [vmem:[#allocation2 + $0x78] sm:$0xff]  }
 0x152   : > { %13996 = vmatpush3.bf16.msra.mxu0 %v15222_v54  ;;  %13967 = vmatprep.mubr.bf16.mxu0 %v15224_v29  ;;  %v16447_v54 = vld [vmem:[#allocation2 + $0x14] sm:$0x1]  ;;  %v2885_v29 = vrot.slane %v2883_v34, 4 }
 0x153   : > { %13997 = vmatprep.subr.bf16.mxu0 %v15225_v6  ;;  %v2854_v63 = vshll.u32 %v16447_v54, 16  ;;  %v15242_v34 = vld [vmem:[#allocation2 + $0xb4] sm:$0xff]  }
 0x155   : > { %v16469_v31 = vrot.slane %v2854_v63, 5  ;;  %v2875_v63 = vor.u32 %v2874_v25, %v16472_v51 }
 0x156   : > { %13998 = vmatpush3.bf16.msra.mxu0 %v15225_v6  ;;  %v15236_v6 = vld [vmem:[#allocation2 + $0x84] sm:$0xff]  }
 0x157   : > { %13999 = vmatprep.subr.bf16.mxu0 %v15228_v12  ;;  %v2876_v4 = vrot.slane %v2875_v63, 4  ;;  %v2857_v3 = vsel %vm15535_vm4, %v16482_v18, %v16469_v31  ;;  %v2871_v18 = vsel %vm15535_vm4, %v16489_v61, %v16472_v51 }
 0x159   : > { %13968 = vmatmul.mubr.bf16.gmra.mrb[4].mxu0 %v15226_v7  ;;  %v16495_v7 = vld [vmem:[#allocation2 + $0x2c] sm:$0x1] }
 0x15a   : > { %13971 = vmatprep.mubr.bf16.mxu0 %v15227_v38  ;;  %14000 = vmatpush3.bf16.msra.mxu0 %v15228_v12  ;;  %v16497_v12 = vld [vmem:[#allocation2 + $0x34] sm:$0xf]  ;;  %v16499_v38 = vld [vmem:[#allocation2 + $0x38] sm:$0x1]  ;;  %v2902_v50 = vshll.u32 %v16495_v7, 16 }
 0x15b   : > { %14001 = vmatprep.subr.bf16.mxu0 %v15231_v8  ;;  %v2916_v23 = vshll.u32 %v16497_v12, 16  ;;  %v2920_v17 = vshrl.u32 %v16497_v12, 16 }
 0x15c   : > { %v2904_v52 = vrot.slane %v2902_v50, 5  ;;  %v16540_v50 = vld [vmem:[#allocation2 + $0x58] sm:$0xf] }
 0x15d   : > { %v16512_v24 = vrot.slane %v2916_v23, 5  ;;  %v2922_v30 = vrot.slane %v2920_v17, 4  ;;  %v2988_v61 = vshll.u32 %v16540_v50, 16 }
 0x15e   : > { %14002 = vmatpush3.bf16.msra.mxu0 %v15231_v8  ;;  %v16502_v8 = vrot.slane %v2892_v46, 5  ;;  %v2847_v46 = vsel %vm15535_vm4, %v16480_v59, %v16464_v5  ;;  %v2968_v5 = vshrl.u32 %v16523_v47, 16  ;;  %v15244_v59 = vld [vmem:[#allocation2 + $0xc0] sm:$0xff]  }
 0x15f   : > { %14003 = vmatprep.subr.bf16.mxu0 %v15234_v1  ;;  %v2923_v27 = vor.u32 %v2922_v30, %v16512_v24  ;;  %v12568_v31 = vcombine.low %v2847_v46, %v2857_v3  ;;  %v16565_v30 = vld [vmem:[#allocation2 + $0x5c] sm:$0x1] }
 0x160   : > { %v2899_v22 = vor.u32 %v2898_v53, %v16502_v8  ;;  %v2964_v53 = vshll.u32 %v16523_v47, 16  ;;  %v2998_v3 = vshll.u32 %v16565_v30, 16 }
 0x161   : > { %13972 = vmatmul.mubr.bf16.gmra.mrb[8].mxu0 %v15229_v10  ;;  %v2926_v10 = vshll.u32 %v16499_v38, 16 }
 0x162   : > { %13975 = vmatprep.mubr.bf16.mxu0 %v15230_v14  ;;  %14004 = vmatpush3.bf16.msra.mxu0 %v15234_v1  ;;  %v2912_v1 = vrot.slane %v2910_v26, 5  ;;  %v2934_v14 = vshll.u32 %v2798_v60, 16  ;;  %v2900_v11 = vrot.slane %v2899_v22, 4  ;;  %v2958_v26 = vshll.u32 %v2801_v43, 16  ;;  %v2804_v60 = vld [vmem:[#allocation2 + $0x54] sm:$0xf] }
 0x163   : > { %14005 = vmatprep.subr.bf16.mxu0 %v15237_v44  ;;  %v16514_v56 = vrot.slane %v2926_v10, 5  ;;  %v2982_v51 = vshll.u32 %v2804_v60, 16 }
 0x164   : > { %v2913_v32 = vor.u32 %v2912_v1, %v2909_v19  ;;  %v2881_v19 = vsel %vm15535_vm4, %v2876_v4, %v16491_v21  ;;  %v2992_v21 = vshrl.u32 %v16540_v50, 16 }
 0x165   : > { %v12569_v63 = vcombine.low %v2871_v18, %v2881_v19 }
 0x166   : > { %14006 = vmatpush3.bf16.msra.mxu0 %v15237_v44  ;;  %v2889_v44 = vor.u32 %v2888_v28, %v2885_v29  ;;  %v16517_v25 = vrot.slane %v2913_v32, 4  ;;  %v16535_v29 = vrot.slane %v2940_v58, 5  ;;  %v2950_v28 = vshll.u32 %v16519_v41, 16 }
 0x167   : > { %14007 = vmatprep.subr.bf16.mxu0 %v15240_v40 }
 0x168   : > { %v2947_v17 = vor.u32 %v2946_v45, %v16535_v29  ;;  %v2919_v32 = vsel %vm15535_vm4, %v16517_v25, %v16512_v24  ;;  %v16574_v24 = vrot.slane %v2988_v61, 5  ;;  %v2994_v25 = vrot.slane %v2992_v21, 4 }
 0x169   : > { %13976 = vmatmul.mubr.bf16.gmra.mrb[12].mxu0 %v15232_v35  ;;  %v15241_v35 = vld [vmem:[#allocation2 + $0xa8] sm:$0xff]  }
 0x16a   : > { %13979 = vmatprep.mubr.bf16.mxu0 %v15233_v36  ;;  %14008 = vmatpush3.bf16.msra.mxu0 %v15240_v40  ;;  %v2890_v40 = vrot.slane %v2889_v44, 4  ;;  %v2933_v36 = vrot.slane %v2931_v49, 4  ;;  %v16555_v49 = vld [vmem:[#allocation2 + $0x50] sm:$0x1]  ;;  %v16559_v44 = vrot.slane %v2964_v53, 5  ;;  %v2948_v58 = vrot.slane %v2947_v17, 4 }
 0x16b   : > { %14009 = vmatprep.subr.bf16.mxu0 %v15243_v33  ;;  %v15246_v53 = vld [vmem:[%s19153_s1 + $0x148] sm:$0xff]  }
 0x16c   : > { %v2895_v1 = vsel %vm15535_vm4, %v2890_v40, %v16502_v8  ;;  %v2970_v8 = vrot.slane %v2968_v5, 4  ;;  %v2807_v40 = vld [vmem:[#allocation2 + $0x60] sm:$0xf] }
 0x16e   : > { %14010 = vmatpush3.bf16.msra.mxu0 %v15243_v33  ;;  %v2936_v33 = vrot.slane %v2934_v14, 5  ;;  %v2979_v14 = vshrl.u32 %v2804_v60, 16  ;;  %v2971_v46 = vor.u32 %v2970_v8, %v16559_v44 }
 0x16f   : > { %14043 = vmatprep.subr.bf16.mxu0 %v16487_v13 }
 0x170   : > { %v2937_v23 = vor.u32 %v2936_v33, %v2933_v36  ;;  %v2974_v36 = vshll.u32 %v16555_v49, 16  ;;  %v2810_v33 = vld [vmem:[#allocation2 + $0x6c] sm:$0xf]  ;;  %v2981_v37 = vrot.slane %v2979_v14, 4  ;;  %v16597_v17 = vrot.slane %v2971_v46, 4 }
 0x171   : > { %13980 = vmatmul.mubr.bf16.gmra.mrb[16].mxu0 %v15235_v2  ;;  %v16533_v2 = vrot.slane %v2923_v27, 4  ;;  %v16576_v27 = vld [vmem:[#allocation2 + $0x70] sm:$0xf]  ;;  %v3027_v45 = vshrl.u32 %v2810_v33, 16  ;;  %v16601_v14 = vld [vmem:[#allocation2 + $0x7c] sm:$0xf] }
 0x172   : > { %13983 = vmatprep.mubr.bf16.mxu0 %v15236_v6  ;;  %v2955_v6 = vshrl.u32 %v2801_v43, 16  ;;  %v2938_v4 = vrot.slane %v2937_v23, 4  ;;  %v2984_v43 = vrot.slane %v2982_v51, 5  ;;  %v3036_v60 = vshll.u32 %v16576_v27, 16  ;;  %v15247_v51 = vld [vmem:[%s19153_s1 + $0x150] sm:$0xff]  }
 0x173   : > { %v16594_v19 = vrot.slane %v2974_v36, 5  ;;  %v2995_v23 = vor.u32 %v2994_v25, %v16574_v24  ;;  %v3029_v8 = vrot.slane %v3027_v45, 4  ;;  %v2816_v45 = vld [vmem:[#allocation2 + $0x84] sm:$0xf] }
 0x174   : > { %v2957_v10 = vrot.slane %v2955_v6, 4  ;;  %v2943_v5 = vsel %vm15535_vm4, %v2938_v4, %v16535_v29  ;;  %v16609_v4 = vld [vmem:[#allocation2 + $0x68] sm:$0x1] }
 0x179   : > { %13984 = vmatmul.mubr.bf16.gmra.mrb[20].mxu0 %v15238_v62  ;;  %v2905_v62 = vsel %vm15535_vm4, %v2900_v11, %v2904_v52  ;;  %v2952_v52 = vrot.slane %v2950_v28, 5  ;;  %v2929_v11 = vsel %vm15535_vm4, %v16533_v2, %v16514_v56  ;;  %v3003_v28 = vshrl.u32 %v2807_v40, 16 }
 0x17a   : > { %13987 = vmatprep.mubr.bf16.mxu0 %v15239_v42  ;;  %v2960_v42 = vrot.slane %v2958_v26, 5  ;;  %v12570_v22 = vcombine.low %v2895_v1, %v2905_v62  ;;  %v3006_v56 = vshll.u32 %v2807_v40, 16  ;;  %v3030_v26 = vshll.u32 %v2810_v33, 16  ;;  %v2813_v62 = vld [vmem:[#allocation2 + $0x78] sm:$0xf] }
 0x17b   : > { %v2953_v18 = vsel %vm15535_vm4, %v2948_v58, %v2952_v52  ;;  %v2985_v1 = vor.u32 %v2984_v43, %v2981_v37  ;;  %v3005_v29 = vrot.slane %v3003_v28, 4  ;;  %v16611_v52 = vrot.slane %v3036_v60, 5 }
 0x17c   : > { %v3051_v58 = vshrl.u32 %v2813_v62, 16  ;;  %v3060_v33 = vshll.u32 %v16601_v14, 16  ;;  %v3064_v37 = vshrl.u32 %v16601_v14, 16  ;;  %v12571_v43 = vcombine.low %v2919_v32, %v2929_v11  ;;  %v16627_v32 = vld [vmem:[#allocation2 + $0x88] sm:$0xf] }
 0x17d   : > { %v2986_v36 = vrot.slane %v2985_v1, 4  ;;  %v12572_v25 = vcombine.low %v2943_v5, %v2953_v18  ;;  %v3075_v1 = vshrl.u32 %v2816_v45, 16 }
 0x17e   : > { %v3053_v5 = vrot.slane %v3051_v58, 4  ;;  %v16642_v18 = vrot.slane %v3060_v33, 5 }
 0x181   : > { %13988 = vmatmul.mubr.bf16.gmra.mrb[24].mxu0 %v15241_v35  ;;  %v2961_v35 = vor.u32 %v2960_v42, %v2957_v10  ;;  %v16599_v10 = vrot.slane %v2998_v3, 5  ;;  %v3008_v42 = vrot.slane %v3006_v56, 5  ;;  %v2977_v3 = vsel %vm15535_vm4, %v16597_v17, %v16594_v19 }
 0x182   : > { %13991 = vmatprep.mubr.bf16.mxu0 %v15242_v34  ;;  %v16572_v34 = vld [vmem:[#allocation2 + $0x64] sm:$0xf]  ;;  %v3066_v19 = vrot.slane %v3064_v37, 4  ;;  %v3088_v17 = vshrl.u32 %v16627_v32, 16  ;;  %v16653_v37 = vld [vmem:[#allocation2 + $0x8c] sm:$0x1] }
 0x183   : > { %v3012_v2 = vshll.u32 %v16572_v34, 16  ;;  %v3016_v6 = vshrl.u32 %v16572_v34, 16  ;;  %v3009_v28 = vor.u32 %v3008_v42, %v3005_v29 }
 0x184   : > { %v3067_v33 = vor.u32 %v3066_v19, %v16642_v18 }
 0x185   : > { %v16607_v61 = vrot.slane %v3012_v2, 5  ;;  %v3018_v21 = vrot.slane %v3016_v6, 4  ;;  %v3022_v2 = vshll.u32 %v16609_v4, 16  ;;  %v3010_v29 = vrot.slane %v3009_v28, 4 }
 0x187   : > { %v3019_v56 = vor.u32 %v3018_v21, %v16607_v61  ;;  %v3024_v42 = vrot.slane %v3022_v2, 5  ;;  %v3015_v2 = vsel %vm15535_vm4, %v3010_v29, %v16607_v61  ;;  %v15250_v61 = vld [vmem:[%s19153_s1 + $0x168] sm:$0xff]  }
 0x189   : > { %13992 = vmatmul.mubr.bf16.gmra.mrb[28].mxu0 %v15244_v59  ;;  %v16588_v59 = vrot.slane %v2961_v35, 4  ;;  %v3054_v35 = vshll.u32 %v2813_v62, 16  ;;  %v3084_v62 = vshll.u32 %v16627_v32, 16 }
 0x18a   : > { %14011 = vmatprep.mubr.bf16.mxu0 %v12568_v31  ;;  %v3040_v31 = vshrl.u32 %v16576_v27, 16 }
 0x18b   : > { %v2967_v46 = vsel %vm15535_vm4, %v16588_v59, %v16559_v44  ;;  %v15248_v44 = vld [vmem:[%s19153_s1 + $0x158] sm:$0xff]   ;;  %v2991_v59 = vsel %vm15535_vm4, %v2986_v36, %v16574_v24  ;;  %v3020_v24 = vrot.slane %v3019_v56, 4  ;;  %v16655_v28 = vrot.slane %v3084_v62, 5 }
 0x18c   : > { %v3042_v40 = vrot.slane %v3040_v31, 4  ;;  %v16640_v31 = vld [vmem:[#allocation2 + $0x80] sm:$0x1]  ;;  %v12573_v36 = vcombine.low %v2967_v46, %v2977_v3  ;;  %v3090_v56 = vrot.slane %v3088_v17, 4 }
 0x18d   : > { %v3070_v58 = vshll.u32 %v16640_v31, 16 }
 0x18e   : > { %v3043_v11 = vor.u32 %v3042_v40, %v16611_v52 }
 0x191   : > { %14012 = vmatmul.mubr.bf16.vlgmr.msra.gmra.mrb[0].mxu0 %v12569_v63  ;;  %v3032_v63 = vrot.slane %v3030_v26, 5 }
 0x192   : > { %14044 = vmatpush3.bf16.msra.mxu0 %v16487_v13  ;;  %14015 = vmatprep.mubr.bf16.mxu0 %v12570_v22  ;;  %v2996_v13 = vrot.slane %v2995_v23, 4  ;;  %v16613_v22 = vld [vmem:[#allocation2 + $0x74] sm:$0x1]  ;;  %v3078_v23 = vshll.u32 %v2816_v45, 16  ;;  %v2822_v45 = vld [vmem:[#allocation2 + $0x9c] sm:$0xf] }
 0x193   : > { %14045 = vmatprep.subr.bf16.mxu0 %v15246_v53  ;;  %v3033_v6 = vor.u32 %v3032_v63, %v3029_v8  ;;  %v3046_v26 = vshll.u32 %v16613_v22, 16  ;;  %v15249_v63 = vld [vmem:[%s19153_s1 + $0x160] sm:$0xff]  }
 0x194   : > { %v3001_v60 = vsel %vm15535_vm4, %v2996_v13, %v16599_v10  ;;  %v3044_v10 = vrot.slane %v3043_v11, 4  ;;  %v16662_v11 = vld [vmem:[#allocation2 + $0xa0] sm:$0xf] }
 0x195   : > { %v3034_v21 = vrot.slane %v3033_v6, 4  ;;  %v3048_v8 = vrot.slane %v3046_v26, 5  ;;  %v12574_v13 = vcombine.low %v2991_v59, %v3001_v60  ;;  %v3025_v6 = vsel %vm15535_vm4, %v3020_v24, %v3024_v42 }
 0x196   : > { %14046 = vmatpush3.bf16.msra.mxu0 %v15246_v53  ;;  %v3056_v53 = vrot.slane %v3054_v35, 5  ;;  %v2819_v35 = vld [vmem:[#allocation2 + $0x90] sm:$0xf]  ;;  %v3072_v59 = vrot.slane %v3070_v58, 5  ;;  %v3094_v60 = vshll.u32 %v16653_v37, 16  ;;  %v3132_v62 = vshll.u32 %v16662_v11, 16 }
 0x197   : > { %14047 = vmatprep.subr.bf16.mxu0 %v15247_v51  ;;  %v3099_v46 = vshrl.u32 %v2819_v35, 16  ;;  %v3102_v3 = vshll.u32 %v2819_v35, 16  ;;  %v3039_v26 = vsel %vm15535_vm4, %v3034_v21, %v16611_v52  ;;  %v3126_v52 = vshll.u32 %v2822_v45, 16  ;;  %v16681_v58 = vld [vmem:[#allocation2 + $0x98] sm:$0x1]  ;;  %v15251_v35 = vld [vmem:[%s19153_s1 + $0x170] sm:$0xff]  }
 0x198   : > { %v3057_v40 = vor.u32 %v3056_v53, %v3053_v5  ;;  %v3049_v5 = vsel %vm15535_vm4, %v3044_v10, %v3048_v8  ;;  %v3136_v17 = vshrl.u32 %v16662_v11, 16  ;;  %v3091_v24 = vor.u32 %v3090_v56, %v16655_v28 }
 0x199   : > { %14016 = vmatmul.mubr.bf16.gmra.mrb[4].mxu0 %v12571_v43  ;;  %v3077_v43 = vrot.slane %v3075_v1, 4  ;;  %v3101_v42 = vrot.slane %v3099_v46, 4  ;;  %v3104_v21 = vrot.slane %v3102_v3, 5  ;;  %v12575_v10 = vcombine.low %v3015_v2, %v3025_v6  ;;  %v2825_v6 = vld [vmem:[#allocation2 + $0xa8] sm:$0xf] }
 0x19a   : > { %14019 = vmatprep.mubr.bf16.mxu0 %v12572_v25  ;;  %14048 = vmatpush3.bf16.msra.mxu0 %v15247_v51  ;;  %v16651_v51 = vld [vmem:[#allocation2 + $0x94] sm:$0xf]  ;;  %v3080_v25 = vrot.slane %v3078_v23, 5  ;;  %v3058_v53 = vrot.slane %v3057_v40, 4  ;;  %v3123_v23 = vshrl.u32 %v2822_v45, 16  ;;  %v12576_v8 = vcombine.low %v3039_v26, %v3049_v5 }
 0x19b   : > { %14049 = vmatprep.subr.bf16.mxu0 %v15248_v44  ;;  %v3108_v19 = vshll.u32 %v16651_v51, 16  ;;  %v3112_v1 = vshrl.u32 %v16651_v51, 16  ;;  %v3128_v56 = vrot.slane %v3126_v52, 5  ;;  %v16692_v2 = vrot.slane %v3132_v62, 5  ;;  %v16695_v5 = vld [vmem:[#allocation2 + $0xac] sm:$0xf] }
 0x19c   : > { %v3081_v29 = vor.u32 %v3080_v25, %v3077_v43  ;;  %v3063_v40 = vsel %vm15535_vm4, %v3058_v53, %v16642_v18  ;;  %v16690_v43 = vld [vmem:[#allocation2 + $0xa4] sm:$0x1]  ;;  %v3125_v25 = vrot.slane %v3123_v23, 4  ;;  %v3138_v18 = vrot.slane %v3136_v17, 4  ;;  %19202 = vst [vmem:[#allocation6_spill] sm:$0xff] %v16695_v5 }
 0x19d   : > { %19201 = vst [vmem:[#allocation5_spill] sm:$0xff] %v16690_v43  ;;  %v3092_v3 = vrot.slane %v3091_v24, 4  ;;  %v3105_v45 = vor.u32 %v3104_v21, %v3101_v42  ;;  %v3118_v26 = vshll.u32 %v16681_v58, 16  ;;  %v3142_v53 = vshll.u32 %v16690_v43, 16  ;;  %v2828_v23 = vld [vmem:[#allocation2 + $0xb4] sm:$0xf] }
 0x19e   : > { %14050 = vmatpush3.bf16.msra.mxu0 %v15248_v44  ;;  %v3068_v44 = vrot.slane %v3067_v33, 4  ;;  %v3114_v33 = vrot.slane %v3112_v1, 4  ;;  %v3082_v46 = vrot.slane %v3081_v29, 4  ;;  %v3150_v1 = vshll.u32 %v2825_v6, 16  ;;  %v16702_v52 = vld [vmem:[#allocation2 + $0xb8] sm:$0xf] }
 0x19f   : > { %14051 = vmatprep.subr.bf16.mxu0 %v15249_v63  ;;  %19203 = vst [vmem:[#allocation7_spill] sm:$0xff] %v16702_v52  ;;  %v3129_v62 = vor.u32 %v3128_v56, %v3125_v25  ;;  %v3156_v17 = vshll.u32 %v16695_v5, 16  ;;  %v3160_v29 = vshrl.u32 %v16695_v5, 16  ;;  %v3106_v21 = vrot.slane %v3105_v45, 4  ;;  %v16721_v43 = vld [vmem:[#allocation2 + $0xc4] sm:$0xf] }
 0x1a0   : > { %v3087_v24 = vsel %vm15535_vm4, %v3082_v46, %v16655_v28  ;;  %v3184_v25 = vshrl.u32 %v16702_v52, 16  ;;  %v3144_v28 = vrot.slane %v3142_v53, 5 }
 0x1a1   : > { %14020 = vmatmul.mubr.bf16.gmra.mrb[8].mxu0 %v12573_v36  ;;  %v3096_v36 = vrot.slane %v3094_v60, 5 }
 0x1a2   : > { %14023 = vmatprep.mubr.bf16.mxu0 %v12574_v13  ;;  %14052 = vmatpush3.bf16.msra.mxu0 %v15249_v63  ;;  %v3073_v63 = vsel %vm15535_vm4, %v3068_v44, %v3072_v59  ;;  %v16688_v13 = vrot.slane %v3108_v19, 5  ;;  %v15252_v59 = vld [vmem:[%s19153_s1 + $0x178] sm:$0xff]   ;;  %v3147_v19 = vshrl.u32 %v2825_v6, 16  ;;  %v3152_v6 = vrot.slane %v3150_v1, 5 }
 0x1a3   : > { %14053 = vmatprep.subr.bf16.mxu0 %v15250_v61  ;;  %v12577_v44 = vcombine.low %v3063_v40, %v3073_v63  ;;  %v3097_v42 = vsel %vm15535_vm4, %v3092_v3, %v3096_v36  ;;  %v3120_v40 = vrot.slane %v3118_v26, 5  ;;  %v3171_v63 = vshrl.u32 %v2828_v23, 16  ;;  %v16719_v26 = vld [vmem:[#allocation2 + $0xb0] sm:$0x1]  ;;  %v16729_v1 = vld [vmem:[#allocation2 + $0xbc] sm:$0x1] }
 0x1a4   : > { %v3115_v60 = vor.u32 %v3114_v33, %v16688_v13  ;;  %v3180_v33 = vshll.u32 %v16702_v52, 16  ;;  %v3130_v36 = vrot.slane %v3129_v62, 4  ;;  %v3158_v3 = vrot.slane %v3156_v17, 5 }
 0x1a5   : > { %v12578_v45 = vcombine.low %v3087_v24, %v3097_v42  ;;  %v3173_v20 = vrot.slane %v3171_v63, 4  ;;  %v3186_v5 = vrot.slane %v3184_v25, 4  ;;  %v3111_v53 = vsel %vm15535_vm4, %v3106_v21, %v16688_v13 }
 0x1a6   : > { %14054 = vmatpush3.bf16.msra.mxu0 %v15250_v61  ;;  %v3139_v61 = vor.u32 %v3138_v18, %v16692_v2  ;;  %v3116_v56 = vrot.slane %v3115_v60, 4  ;;  %v3149_v18 = vrot.slane %v3147_v19, 4  ;;  %v3182_v52 = vrot.slane %v3180_v33, 5 }
 0x1a7   : > { %14055 = vmatprep.subr.bf16.mxu0 %v15251_v35  ;;  %v3166_v17 = vshll.u32 %v16719_v26, 16  ;;  %v3204_v24 = vshll.u32 %v16721_v43, 16  ;;  %v3208_v42 = vshrl.u32 %v16721_v43, 16 }
 0x1a8   : > { %v3140_v46 = vrot.slane %v3139_v61, 4  ;;  %v3121_v60 = vsel %vm15535_vm4, %v3116_v56, %v3120_v40  ;;  %v3153_v19 = vor.u32 %v3152_v6, %v3149_v18  ;;  %v3187_v40 = vor.u32 %v3186_v5, %v3182_v52 }
 0x1a9   : > { %14024 = vmatmul.mubr.bf16.gmra.mrb[12].mxu0 %v12575_v10  ;;  %v3174_v10 = vshll.u32 %v2828_v23, 16  ;;  %v2831_v23 = vld [vmem:[#allocation2 + $0xc0] sm:$0xf]  ;;  %v12579_v63 = vcombine.low %v3111_v53, %v3121_v60  ;;  %v3168_v25 = vrot.slane %v3166_v17, 5  ;;  %v3206_v18 = vrot.slane %v3204_v24, 5 }
 0x1aa   : > { %14027 = vmatprep.mubr.bf16.mxu0 %v12576_v8  ;;  %14056 = vmatpush3.bf16.msra.mxu0 %v15251_v35  ;;  %v16717_v8 = vld [vmem:[%s19153_s1 + $0x180] sm:$0xff]   ;;  %v3162_v35 = vrot.slane %v3160_v29, 4  ;;  %v3145_v62 = vsel %vm15535_vm4, %v3140_v46, %v3144_v28  ;;  %v3195_v29 = vshrl.u32 %v2831_v23, 16  ;;  %v3198_v13 = vshll.u32 %v2831_v23, 16 }
 0x1ab   : > { %14057 = vmatprep.subr.bf16.mxu0 %v15252_v59  ;;  %v3176_v48 = vrot.slane %v3174_v10, 5  ;;  %v3210_v6 = vrot.slane %v3208_v42, 4  ;;  %v3188_v46 = vrot.slane %v3187_v40, 4 }
 0x1ac   : > { %v3163_v61 = vor.u32 %v3162_v35, %v3158_v3  ;;  %v3197_v56 = vrot.slane %v3195_v29, 4  ;;  %v3200_v28 = vrot.slane %v3198_v13, 5 }
 0x1ad   : > { %v3177_v21 = vor.u32 %v3176_v48, %v3173_v20  ;;  %v3211_v23 = vor.u32 %v3210_v6, %v3206_v18 }
 0x1ae   : > { %14058 = vmatpush3.bf16.msra.mxu0 %v15252_v59  ;;  %v3135_v59 = vsel %vm15535_vm4, %v3130_v36, %v16692_v2  ;;  %v3154_v2 = vrot.slane %v3153_v19, 4  ;;  %v3164_v33 = vrot.slane %v3163_v61, 4  ;;  %v3201_v5 = vor.u32 %v3200_v28, %v3197_v56 }
 0x1af   : > { %14091 = vmatprep.subr.bf16.mxu0 %v16717_v8  ;;  %v12580_v10 = vcombine.low %v3135_v59, %v3145_v62  ;;  %v3178_v36 = vrot.slane %v3177_v21, 4  ;;  %v3606_v59 = vrot.slane %v16443_v57, 5  ;;  %v3540_v62 = vld [vmem:[#allocation2 + $0xc] sm:$0xe]  ;;  %v3212_v29 = vrot.slane %v3211_v23, 4 }
 0x1b0   : > { %v3159_v20 = vsel %vm15535_vm4, %v3154_v2, %v3158_v3  ;;  %v3169_v48 = vsel %vm15535_vm4, %v3164_v33, %v3168_v25  ;;  %v3202_v3 = vrot.slane %v3201_v5, 4  ;;  %v12592_v24 = vrot.slane %v3540_v62, 9 }
 0x1b1   : > { %14028 = vmatmul.mubr.bf16.gmra.mrb[16].mxu0 %v12577_v44  ;;  %v3190_v44 = vshll.u32 %v16729_v1, 16  ;;  %v3183_v60 = vsel %vm15535_vm4, %v3178_v36, %v3182_v52  ;;  %v12581_v61 = vcombine.low %v3159_v20, %v3169_v48  ;;  %v3608_v42 = vrot.slane %v3606_v59, 4  ;;  %v3543_v48 = vld [vmem:[#allocation2 + $0x30] sm:$0xe] }
 0x1b2   : > { %14031 = vmatprep.mubr.bf16.mxu0 %v12578_v45  ;;  %v16740_v45 = vld [vmem:[#allocation2 + $0xc8] sm:$0x1]  ;;  %v3609_v21 = vrot.slane %v16447_v54, 5  ;;  %v3207_v52 = vsel %vm15535_vm4, %v3202_v3, %v3206_v18  ;;  %v3613_v57 = vrot.slane %v16453_v55, 5  ;;  %v3620_v2 = vrot.slane %v16478_v9, 5 }
 0x1b3   : > { %v3192_v35 = vrot.slane %v3190_v44, 5  ;;  %v3214_v53 = vshll.u32 %v16740_v45, 16  ;;  %v3607_v44 = vsel %vm16312_vm5, %v12592_v24, %v3606_v59  ;;  %v3542_v54 = vld [vmem:[#allocation2 + $0x24] sm:$0xe]  ;;  %v3616_v18 = vrot.slane %v16460_v0, 5 }
 0x1b4   : > { %v3615_v28 = vrot.slane %v3613_v57, 4  ;;  %v12594_v6 = vrot.slane %v3542_v54, 9  ;;  %v3622_v36 = vrot.slane %v3620_v2, 4  ;;  %v3623_v55 = vrot.slane %v16495_v7, 5  ;;  %v3544_v7 = vld [vmem:[#allocation2 + $0x3c] sm:$0xe] }
 0x1b5   : > { %v3193_v19 = vsel %vm15535_vm4, %v3188_v46, %v3192_v35  ;;  %v3216_v13 = vrot.slane %v3214_v53, 5  ;;  %v3627_v9 = vrot.slane %v16497_v12, 5  ;;  %v3634_v5 = vrot.slane %v16509_v15, 5  ;;  %v15254_v12 = vld [vmem:[%s19153_s1 + $0x188] sm:$0xff]  }
 0x1b6   : > { %v12582_v17 = vcombine.low %v3183_v60, %v3193_v19  ;;  %v3617_v35 = vsel %vm16312_vm5, %v3615_v28, %v3616_v18  ;;  %v3621_v20 = vsel %vm16312_vm5, %v12594_v6, %v3620_v2  ;;  %v3624_v0 = vsel %vm16312_vm5, %v3622_v36, %v3623_v55  ;;  %v15256_v2 = vld [vmem:[%s19153_s1 + $0x198] sm:$0xff]   ;;  %v15257_v28 = vld [vmem:[%s19153_s1 + $0x1a0] sm:$0xff]   ;;  %v3548_v18 = vld [vmem:[#allocation2 + $0x6c] sm:$0xe] }
 0x1b7   : > { %v3217_v40 = vsel %vm15535_vm4, %v3212_v29, %v3216_v13  ;;  %v12626_v53 = vcombine.low %v3621_v20, %v3624_v0  ;;  %v12595_v60 = vrot.slane %v3543_v48, 9  ;;  %v3629_v19 = vrot.slane %v3627_v9, 4 }
 0x1b8   : > { %v12583_v33 = vcombine.low %v3207_v52, %v3217_v40  ;;  %v3630_v59 = vrot.slane %v16499_v38, 5  ;;  %v12596_v62 = vrot.slane %v3544_v7, 9  ;;  %v3641_v38 = vrot.slane %v16523_v47, 5  ;;  %v3549_v7 = vld [vmem:[#allocation2 + $0x78] sm:$0xe] }
 0x1b9   : > { %14032 = vmatmul.mubr.bf16.gmra.mrb[20].mxu0 %v12579_v63  ;;  %v3610_v63 = vsel %vm16312_vm5, %v3608_v42, %v3609_v21  ;;  %v3628_v15 = vsel %vm16312_vm5, %v12595_v60, %v3627_v9  ;;  %v3648_v24 = vrot.slane %v16540_v50, 5  ;;  %v3546_v42 = vld [vmem:[#allocation2 + $0x54] sm:$0xe]  ;;  %v3665_v20 = vrot.slane %v16613_v22, 5  ;;  %v3550_v60 = vld [vmem:[#allocation2 + $0x84] sm:$0xe] }
 0x1ba   : > { %14035 = vmatprep.mubr.bf16.mxu0 %v12580_v10  ;;  %v3541_v10 = vld [vmem:[#allocation2 + $0x18] sm:$0xe]  ;;  %v12624_v25 = vcombine.low %v3607_v44, %v3610_v63  ;;  %v3631_v3 = vsel %vm16312_vm5, %v3629_v19, %v3630_v59  ;;  %v3635_v29 = vsel %vm16312_vm5, %v12596_v62, %v3634_v5  ;;  %v3643_v47 = vrot.slane %v3641_v38, 4 }
 0x1bb   : > { %v12593_v56 = vrot.slane %v3541_v10, 9  ;;  %v12627_v21 = vcombine.low %v3628_v15, %v3631_v3  ;;  %v12598_v44 = vrot.slane %v3546_v42, 9  ;;  %v3650_v63 = vrot.slane %v3648_v24, 4 }
 0x1bc   : > { %v3651_v10 = vrot.slane %v16565_v30, 5  ;;  %v3672_v62 = vrot.slane %v16640_v31, 5  ;;  %v3679_v15 = vrot.slane %v16653_v37, 5  ;;  %v3683_v31 = vrot.slane %v16651_v51, 5 }
 0x1bd   : > { %v3614_v46 = vsel %vm16312_vm5, %v12593_v56, %v3613_v57  ;;  %v3644_v57 = vrot.slane %v16555_v49, 5  ;;  %v3655_v49 = vrot.slane %v16572_v34, 5  ;;  %v3662_v56 = vrot.slane %v16576_v27, 5  ;;  %v15258_v27 = vld [vmem:[%s19153_s1 + $0x1a8] sm:$0xff]  }
 0x1be   : > { %v12625_v23 = vcombine.low %v3614_v46, %v3617_v35  ;;  %v3652_v30 = vsel %vm16312_vm5, %v3650_v63, %v3651_v10  ;;  %v3658_v34 = vrot.slane %v16609_v4, 5  ;;  %v12600_v35 = vrot.slane %v3548_v18, 9 }
 0x1bf   : > { %v3645_v54 = vsel %vm16312_vm5, %v3643_v47, %v3644_v57  ;;  %v3657_v46 = vrot.slane %v3655_v49, 4  ;;  %v3664_v9 = vrot.slane %v3662_v56, 4  ;;  %v3669_v4 = vrot.slane %v16601_v14, 5 }
 0x1c0   : > { %v3685_v51 = vrot.slane %v3683_v31, 4 }
 0x1c1   : > { %14036 = vmatmul.mubr.bf16.gmra.mrb[24].mxu0 %v12581_v61  ;;  %v3636_v61 = vrot.slane %v3634_v5, 4  ;;  %v3659_v48 = vsel %vm16312_vm5, %v3657_v46, %v3658_v34  ;;  %v3663_v5 = vsel %vm16312_vm5, %v12600_v35, %v3662_v56  ;;  %v3666_v22 = vsel %vm16312_vm5, %v3664_v9, %v3665_v20 }
 0x1c2   : > { %14039 = vmatprep.mubr.bf16.mxu0 %v12582_v17  ;;  %v3637_v17 = vrot.slane %v16519_v41, 5  ;;  %v15255_v41 = vld [vmem:[%s19153_s1 + $0x190] sm:$0xff]   ;;  %v12632_v59 = vcombine.low %v3663_v5, %v3666_v22  ;;  %v3671_v14 = vrot.slane %v3669_v4, 4  ;;  %v3707_v34 = vrot.slane %v16729_v1, 5 }
 0x1c3   : > { %v3711_v20 = vrot.slane %v16721_v43, 5  ;;  %v3714_v22 = vrot.slane %v16740_v45, 5  ;;  %v15268_v45 = vld [vmem:[%s19153_s1 + $0x1d0] sm:$0xff]  }
 0x1c4   : > { %v3638_v13 = vsel %vm16312_vm5, %v3636_v61, %v3637_v17  ;;  %v12602_v61 = vrot.slane %v3550_v60, 9  ;;  %v15263_v60 = vld [vmem:[#allocation2 + $0x24] sm:$0xff]  }
 0x1c5   : > { %v12628_v52 = vcombine.low %v3635_v29, %v3638_v13  ;;  %v3551_v13 = vld [vmem:[#allocation2 + $0x90] sm:$0xe]  ;;  %v3713_v5 = vrot.slane %v3711_v20, 4 }
 0x1c7   : > { %v3715_v43 = vsel %vm16312_vm5, %v3713_v5, %v3714_v22  ;;  %v16928_v22 = vld [vmem:[#allocation2 + $0x38] sm:$0x1] }
 0x1c9   : > { %14040 = vmatmul.mubr.bf16.gmra.mrb[28].mxu0 %v12583_v33  ;;  %v3649_v33 = vsel %vm16312_vm5, %v12598_v44, %v3648_v24  ;;  %v3552_v24 = vld [vmem:[#allocation2 + $0x9c] sm:$0xe]  ;;  %v19204_v44 = vld [vmem:[#allocation5_spill] sm:$0xff] }
 0x1ca   : > { %14059 = vmatprep.mubr.bf16.mxu0 %v12624_v25  ;;  %v3547_v25 = vld [vmem:[#allocation2 + $0x60] sm:$0xe]  ;;  %v12630_v36 = vcombine.low %v3649_v33, %v3652_v30  ;;  %v12604_v47 = vrot.slane %v3552_v24, 9  ;;  %v3693_v63 = vrot.slane %v19204_v44, 5  ;;  %v19206_v33 = vld [vmem:[#allocation7_spill] sm:$0xff]  ;;  %v15275_v24 = vld [vmem:[#allocation2 + $0x84] sm:$0xff]  }
 0x1cb   : > { %v12599_v55 = vrot.slane %v3547_v25, 9  ;;  %v3704_v30 = vrot.slane %v19206_v33, 5  ;;  %v3554_v25 = vld [vmem:[#allocation2 + $0xb4] sm:$0xe] }
 0x1cd   : > { %v3656_v0 = vsel %vm16312_vm5, %v12599_v55, %v3655_v49  ;;  %v3553_v49 = vld [vmem:[#allocation2 + $0xa8] sm:$0xe]  ;;  %v12606_v55 = vrot.slane %v3554_v25, 9  ;;  %v3706_v46 = vrot.slane %v3704_v30, 4 }
 0x1ce   : > { %v12631_v19 = vcombine.low %v3656_v0, %v3659_v48  ;;  %v12605_v18 = vrot.slane %v3553_v49, 9  ;;  %v3555_v0 = vld [vmem:[#allocation2 + $0xc0] sm:$0xe] }
 0x1cf   : > { %v12607_v1 = vrot.slane %v3555_v0, 9 }
 0x1d1   : > { %14060 = vmatmul.mubr.bf16.vlgmr.msra.gmra.mrb[0].mxu0 %v12625_v23  ;;  %v3676_v23 = vrot.slane %v16627_v32, 5  ;;  %v15260_v32 = vld [vmem:[%s19153_s1 + $0x1b8] sm:$0xff]  }
 0x1d2   : > { %14092 = vmatpush3.bf16.msra.mxu0 %v16717_v8  ;;  %14063 = vmatprep.mubr.bf16.mxu0 %v12626_v53  ;;  %v3545_v8 = vld [vmem:[#allocation2 + $0x48] sm:$0xe]  ;;  %v15259_v53 = vld [vmem:[%s19153_s1 + $0x1b0] sm:$0xff]  }
 0x1d3   : > { %14093 = vmatprep.subr.bf16.mxu0 %v15254_v12  ;;  %v12597_v40 = vrot.slane %v3545_v8, 9  ;;  %v3678_v17 = vrot.slane %v3676_v23, 4  ;;  %v3677_v29 = vsel %vm16312_vm5, %v12602_v61, %v3676_v23  ;;  %v15262_v8 = vld [vmem:[%s19153_s1 + $0x1c0] sm:$0xff]  }
 0x1d4   : > { %v15274_v61 = vld [vmem:[%s19153_s1 + $0x1e0] sm:$0xff]  }
 0x1d5   : > { %v3642_v50 = vsel %vm16312_vm5, %v12597_v40, %v3641_v38  ;;  %v3673_v38 = vsel %vm16312_vm5, %v3671_v14, %v3672_v62  ;;  %v3680_v37 = vsel %vm16312_vm5, %v3678_v17, %v3679_v15  ;;  %v3686_v40 = vrot.slane %v16681_v58, 5  ;;  %v15267_v14 = vld [vmem:[#allocation2 + $0x48] sm:$0xff]   ;;  %v15271_v62 = vld [vmem:[%s19153_s1 + $0x1d8] sm:$0xff]   ;;  %v15270_v15 = vld [vmem:[#allocation2 + $0x60] sm:$0xff]  }
 0x1d6   : > { %14094 = vmatpush3.bf16.msra.mxu0 %v15254_v12  ;;  %v12629_v6 = vcombine.low %v3642_v50, %v3645_v54  ;;  %v12601_v12 = vrot.slane %v3549_v7, 9  ;;  %v3712_v7 = vsel %vm16312_vm5, %v12607_v1, %v3711_v20  ;;  %v15269_v17 = vld [vmem:[#allocation2 + $0x54] sm:$0xff]   ;;  %v16925_v1 = vld [vmem:[#allocation2 + $0x40] sm:$0xf] }
 0x1d7   : > { %14095 = vmatprep.subr.bf16.mxu0 %v15255_v41  ;;  %v3687_v10 = vsel %vm16312_vm5, %v3685_v51, %v3686_v40  ;;  %v12639_v23 = vcombine.low %v3712_v7, %v3715_v43  ;;  %v15276_v40 = vld [vmem:[#allocation2 + $0x90] sm:$0xff]  }
 0x1d8   : > { %v3670_v3 = vsel %vm16312_vm5, %v12601_v12, %v3669_v4  ;;  %v15266_v12 = vld [vmem:[#allocation2 + $0x3c] sm:$0xff]  }
 0x1d9   : > { %14064 = vmatmul.mubr.bf16.gmra.mrb[4].mxu0 %v12627_v21  ;;  %v12633_v42 = vcombine.low %v3670_v3, %v3673_v38  ;;  %v12634_v21 = vcombine.low %v3677_v29, %v3680_v37  ;;  %v15280_v3 = vld [vmem:[%s19153_s1 + $0x1f0] sm:$0xff]   ;;  %v15283_v29 = vld [vmem:[%s19153_s1 + $0x1f8] sm:$0xff]  }
 0x1da   : > { %14067 = vmatprep.mubr.bf16.mxu0 %v12628_v52  ;;  %14096 = vmatpush3.bf16.msra.mxu0 %v15255_v41  ;;  %v3690_v41 = vrot.slane %v16662_v11, 5  ;;  %v12603_v52 = vrot.slane %v3551_v13, 9  ;;  %v15272_v38 = vld [vmem:[#allocation2 + $0x6c] sm:$0xff]   ;;  %v4425_v37 = vld [vmem:[#allocation2 + $0x18] sm:$0xf] }
 0x1db   : > { %14097 = vmatprep.subr.bf16.mxu0 %v15256_v2  ;;  %v16897_v13 = vld [vmem:[#allocation2 + $0x1c] sm:$0xf] }
 0x1dc   : > { %v3692_v57 = vrot.slane %v3690_v41, 4  ;;  %v3684_v11 = vsel %vm16312_vm5, %v12603_v52, %v3683_v31  ;;  %v3691_v54 = vsel %vm16312_vm5, %v12604_v47, %v3690_v41  ;;  %v15273_v31 = vld [vmem:[#allocation2 + $0x78] sm:$0xff]   ;;  %v16902_v41 = vld [vmem:[%s19153_s1 + $0x200] sm:$0xff]   ;;  %v4483_v52 = vshll.u32 %v16897_v13, 16  ;;  %v16907_v47 = vld [vmem:[#allocation2 + $0x28] sm:$0xf] }
 0x1dd   : > { %v12635_v56 = vcombine.low %v3684_v11, %v3687_v10  ;;  %v4487_v51 = vshrl.u32 %v16897_v13, 16  ;;  %v4507_v49 = vshll.u32 %v16907_v47, 16  ;;  %v4511_v33 = vshrl.u32 %v16907_v47, 16 }
 0x1de   : > { %14098 = vmatpush3.bf16.msra.mxu0 %v15256_v2  ;;  %v19205_v2 = vld [vmem:[#allocation6_spill] sm:$0xff]  ;;  %v3694_v58 = vsel %vm16312_vm5, %v3692_v57, %v3693_v63 }
 0x1df   : > { %14099 = vmatprep.subr.bf16.mxu0 %v15257_v28  ;;  %v3697_v50 = vrot.slane %v19205_v2, 5  ;;  %v4431_v63 = vld [vmem:[#allocation2 + $0x30] sm:$0xf]  ;;  %v16909_v2 = vrot.slane %v4483_v52, 5  ;;  %v16923_v20 = vrot.slane %v4507_v49, 5 }
 0x1e1   : > { %14068 = vmatmul.mubr.bf16.gmra.mrb[8].mxu0 %v12629_v6  ;;  %v3699_v6 = vrot.slane %v3697_v50, 4  ;;  %v3698_v35 = vsel %vm16312_vm5, %v12605_v18, %v3697_v50  ;;  %v4489_v50 = vrot.slane %v4487_v51, 4  ;;  %v4440_v51 = vld [vmem:[#allocation2 + $0x54] sm:$0xf] }
 0x1e2   : > { %14071 = vmatprep.mubr.bf16.mxu0 %v12630_v36  ;;  %14100 = vmatpush3.bf16.msra.mxu0 %v15257_v28  ;;  %v12636_v28 = vcombine.low %v3691_v54, %v3694_v58  ;;  %v3700_v36 = vrot.slane %v16719_v26, 5  ;;  %v3708_v26 = vsel %vm16312_vm5, %v3706_v46, %v3707_v34  ;;  %v16911_v54 = vld [vmem:[#allocation2 + $0x34] sm:$0xf]  ;;  %v16913_v58 = vld [vmem:[#allocation2 + $0x20] sm:$0x1] }
 0x1e3   : > { %14101 = vmatprep.subr.bf16.mxu0 %v15258_v27  ;;  %v4531_v18 = vshll.u32 %v16911_v54, 16  ;;  %v4490_v46 = vor.u32 %v4489_v50, %v16909_v2  ;;  %v4493_v34 = vshll.u32 %v16913_v58, 16 }
 0x1e4   : > { %v3701_v9 = vsel %vm16312_vm5, %v3699_v6, %v3700_v36  ;;  %v4535_v6 = vshrl.u32 %v16911_v54, 16  ;;  %v15278_v36 = vld [vmem:[#allocation2 + $0x9c] sm:$0xff]  }
 0x1e5   : > { %v12637_v48 = vcombine.low %v3698_v35, %v3701_v9  ;;  %v16921_v35 = vld [vmem:[#allocation2 + $0x2c] sm:$0x1]  ;;  %v16930_v7 = vrot.slane %v4531_v18, 5  ;;  %v4594_v18 = vshrl.u32 %v4440_v51, 16 }
 0x1e6   : > { %14102 = vmatpush3.bf16.msra.mxu0 %v15258_v27  ;;  %v3705_v27 = vsel %vm16312_vm5, %v12606_v55, %v3704_v30  ;;  %v15279_v9 = vld [vmem:[#allocation2 + $0xa8] sm:$0xff]   ;;  %v4517_v5 = vshll.u32 %v16921_v35, 16  ;;  %v4537_v43 = vrot.slane %v4535_v6, 4 }
 0x1e7   : > { %14103 = vmatprep.subr.bf16.mxu0 %v15259_v53  ;;  %v12638_v4 = vcombine.low %v3705_v27, %v3708_v26  ;;  %v4513_v27 = vrot.slane %v4511_v33, 4  ;;  %v16961_v33 = vld [vmem:[#allocation2 + $0x58] sm:$0xf] }
 0x1e9   : > { %14072 = vmatmul.mubr.bf16.gmra.mrb[12].mxu0 %v12631_v19  ;;  %v15264_v19 = vld [vmem:[#allocation2 + $0x30] sm:$0xff]  }
 0x1ea   : > { %14075 = vmatprep.mubr.bf16.mxu0 %v12632_v59  ;;  %14104 = vmatpush3.bf16.msra.mxu0 %v15259_v53  ;;  %v15261_v53 = vld [vmem:[#allocation2 + $0x18] sm:$0xff]   ;;  %v15265_v59 = vld [vmem:[%s19153_s1 + $0x1c8] sm:$0xff]  }
 0x1eb   : > { %14105 = vmatprep.subr.bf16.mxu0 %v15260_v32 }
 0x1ee   : > { %14106 = vmatpush3.bf16.msra.mxu0 %v15260_v32  ;;  %v15277_v32 = vld [vmem:[%s19153_s1 + $0x1e8] sm:$0xff]  }
 0x1ef   : > { %14139 = vmatprep.subr.bf16.mxu0 %v15262_v8 }
 0x1f1   : > { %14076 = vmatmul.mubr.bf16.gmra.mrb[16].mxu0 %v12633_v42  ;;  %v4474_v42 = vshrl.u32 %v4425_v37, 16 }
 0x1f2   : > { %14079 = vmatprep.mubr.bf16.mxu0 %v12634_v21  ;;  %v4477_v21 = vshll.u32 %v4425_v37, 16 }
 0x1f3   : > { %v4476_v11 = vrot.slane %v4474_v42, 4 }
 0x1f4   : > { %v4479_v10 = vrot.slane %v4477_v21, 5 }
 0x1f6   : > { %v4480_v55 = vor.u32 %v4479_v10, %v4476_v11 }
 0x1f9   : > { %14080 = vmatmul.mubr.bf16.gmra.mrb[20].mxu0 %v12635_v56  ;;  %v4522_v56 = vshrl.u32 %v4431_v63, 16 }
 0x1fa   : > { %14083 = vmatprep.mubr.bf16.mxu0 %v12636_v28  ;;  %v4525_v28 = vshll.u32 %v4431_v63, 16 }
 0x1fb   : > { %v4524_v0 = vrot.slane %v4522_v56, 4 }
 0x201   : > { %14084 = vmatmul.mubr.bf16.gmra.mrb[24].mxu0 %v12637_v48  ;;  %v4527_v48 = vrot.slane %v4525_v28, 5 }
 0x202   : > { %14087 = vmatprep.mubr.bf16.mxu0 %v12638_v4  ;;  %v4434_v4 = vld [vmem:[#allocation2 + $0x3c] sm:$0xf] }
 0x209   : > { %14088 = vmatmul.mubr.bf16.gmra.mrb[28].mxu0 %v12639_v23  ;;  %v4481_v23 = vrot.slane %v4480_v55, 4 }
 0x20a   : > { %14107 = vmatprep.mubr.bf16.mxu0 %v15261_v53  ;;  %v4491_v53 = vrot.slane %v4490_v46, 4  ;;  %v16969_v46 = vld [vmem:[#allocation2 + $0xd0] sm:$0xf] }
 0x211   : > { %14108 = vmatmul.mubr.bf16.vlgmr.msra.gmra.mrb[0].mxu0 %v15263_v60  ;;  %v4495_v60 = vrot.slane %v4493_v34, 5  ;;  %v16971_v34 = vld [vmem:[#allocation2 + $0xd4] sm:$0x1] }
 0x212   : > { %14140 = vmatpush3.bf16.msra.mxu0 %v15262_v8  ;;  %14111 = vmatprep.mubr.bf16.mxu0 %v15264_v19  ;;  %v4428_v8 = vld [vmem:[#allocation2 + $0x24] sm:$0xf]  ;;  %v4437_v19 = vld [vmem:[#allocation2 + $0x48] sm:$0xf] }
 0x213   : > { %14141 = vmatprep.subr.bf16.mxu0 %v15265_v59  ;;  %v4498_v57 = vshrl.u32 %v4428_v8, 16  ;;  %v4501_v44 = vshll.u32 %v4428_v8, 16  ;;  %v4573_v37 = vshll.u32 %v4437_v19, 16  ;;  %v15281_v8 = vld [vmem:[#allocation2 + $0xb4] sm:$0xff]   ;;  %v4496_v42 = vsel %vm15535_vm4, %v4491_v53, %v4495_v60  ;;  %v16981_v53 = vld [vmem:[#allocation2 + $0x64] sm:$0xf] }
 0x215   : > { %v4500_v30 = vrot.slane %v4498_v57, 4  ;;  %v4503_v25 = vrot.slane %v4501_v44, 5  ;;  %v4575_v28 = vrot.slane %v4573_v37, 5  ;;  %v4631_v37 = vshrl.u32 %v16981_v53, 16 }
 0x216   : > { %14142 = vmatpush3.bf16.msra.mxu0 %v15265_v59  ;;  %v4514_v59 = vor.u32 %v4513_v27, %v16923_v20 }
 0x217   : > { %14143 = vmatprep.subr.bf16.mxu0 %v15268_v45  ;;  %v4504_v26 = vor.u32 %v4503_v25, %v4500_v30  ;;  %v16965_v25 = vld [vmem:[#allocation2 + $0x50] sm:$0x1] }
 0x218   : > { %v16952_v57 = vrot.slane %v4514_v59, 4  ;;  %v4589_v59 = vshll.u32 %v16965_v25, 16 }
 0x219   : > { %14112 = vmatmul.mubr.bf16.gmra.mrb[4].mxu0 %v15266_v12  ;;  %v4549_v12 = vshll.u32 %v4434_v4, 16 }
 0x21a   : > { %14115 = vmatprep.mubr.bf16.mxu0 %v15267_v14  ;;  %14144 = vmatpush3.bf16.msra.mxu0 %v15268_v45  ;;  %v4546_v45 = vshrl.u32 %v4434_v4, 16  ;;  %v4555_v14 = vshll.u32 %v16925_v1, 16  ;;  %v5353_v4 = vrot.slane %v16971_v34, 5 }
 0x21b   : > { %14145 = vmatprep.subr.bf16.mxu0 %v15271_v62  ;;  %v4551_v63 = vrot.slane %v4549_v12, 5  ;;  %v15284_v12 = vld [vmem:[#allocation2 + $0xcc] sm:$0xff]  }
 0x21c   : > { %v4548_v44 = vrot.slane %v4546_v45, 4  ;;  %v16954_v11 = vrot.slane %v4555_v14, 5 }
 0x21e   : > { %14146 = vmatpush3.bf16.msra.mxu0 %v15271_v62  ;;  %v16934_v62 = vld [vmem:[#allocation2 + $0x4c] sm:$0xf]  ;;  %v4552_v27 = vor.u32 %v4551_v63, %v4548_v44 }
 0x21f   : > { %14147 = vmatprep.subr.bf16.mxu0 %v15274_v61  ;;  %v4579_v21 = vshll.u32 %v16934_v62, 16  ;;  %v4583_v52 = vshrl.u32 %v16934_v62, 16 }
 0x220   : > { %v17010_v44 = vrot.slane %v4552_v27, 4 }
 0x221   : > { %14116 = vmatmul.mubr.bf16.gmra.mrb[8].mxu0 %v15269_v17  ;;  %v4528_v17 = vor.u32 %v4527_v48, %v4524_v0  ;;  %v4585_v55 = vrot.slane %v4583_v52, 4  ;;  %v5194_v0 = vld [vmem:[#allocation2 + $0xcc] sm:$0xe]  ;;  %v5350_v48 = vrot.slane %v16969_v46, 5 }
 0x222   : > { %14119 = vmatprep.mubr.bf16.mxu0 %v15270_v15  ;;  %14148 = vmatpush3.bf16.msra.mxu0 %v15274_v61  ;;  %v16936_v61 = vrot.slane %v4504_v26, 4  ;;  %v4541_v15 = vshll.u32 %v16928_v22, 16  ;;  %v4443_v26 = vld [vmem:[#allocation2 + $0x60] sm:$0xf]  ;;  %v12743_v60 = vrot.slane %v5194_v0, 9 }
 0x223   : > { %14149 = vmatprep.subr.bf16.mxu0 %v15277_v32  ;;  %v16956_v10 = vrot.slane %v4528_v17, 4  ;;  %v5352_v45 = vrot.slane %v5350_v48, 4  ;;  %v4618_v17 = vshrl.u32 %v4443_v26, 16 }
 0x224   : > { %v16958_v50 = vrot.slane %v4541_v15, 5  ;;  %v16988_v15 = vsel %vm16312_vm5, %v12743_v60, %v5350_v48 }
 0x225   : > { %19207 = vst [vmem:[#allocation5_spill] sm:$0xff] %v16988_v15  ;;  %v17160_v15 = vld [vmem:[#allocation2 + $0xb8] sm:$0xf] }
 0x226   : > { %14150 = vmatpush3.bf16.msra.mxu0 %v15277_v32  ;;  %v4559_v32 = vshrl.u32 %v16925_v1, 16  ;;  %19211 = vst [vmem:[#allocation9_spill] sm:$0xff] %v17160_v15 }
 0x227   : > { %14151 = vmatprep.subr.bf16.mxu0 %v15280_v3 }
 0x229   : > { %14120 = vmatmul.mubr.bf16.gmra.mrb[12].mxu0 %v15272_v38  ;;  %v4538_v38 = vor.u32 %v4537_v43, %v16930_v7  ;;  %v4603_v43 = vshll.u32 %v16961_v33, 16 }
 0x22a   : > { %14123 = vmatprep.mubr.bf16.mxu0 %v15273_v31  ;;  %14152 = vmatpush3.bf16.msra.mxu0 %v15280_v3  ;;  %v16940_v3 = vrot.slane %v4517_v5, 5  ;;  %v16943_v31 = vld [vmem:[#allocation2 + $0x44] sm:$0x1]  ;;  %v4597_v5 = vshll.u32 %v4440_v51, 16 }
 0x22b   : > { %14153 = vmatprep.subr.bf16.mxu0 %v15283_v29  ;;  %v4565_v49 = vshll.u32 %v16943_v31, 16  ;;  %v16963_v30 = vrot.slane %v4538_v38, 4  ;;  %v4621_v38 = vshll.u32 %v4443_v26, 16 }
 0x22c   : > { %v4520_v51 = vsel %vm15535_vm4, %v16952_v57, %v16940_v3  ;;  %v4446_v57 = vld [vmem:[#allocation2 + $0x6c] sm:$0xf] }
 0x22d   : > { %v17012_v63 = vrot.slane %v4565_v49, 5  ;;  %v4633_v49 = vrot.slane %v4631_v37, 4  ;;  %v17057_v37 = vld [vmem:[#allocation2 + $0x74] sm:$0x1] }
 0x22e   : > { %14154 = vmatpush3.bf16.msra.mxu0 %v15283_v29  ;;  %v4570_v29 = vshrl.u32 %v4437_v19, 16 }
 0x22f   : > { %14187 = vmatprep.subr.bf16.mxu0 %v16902_v41 }
 0x230   : > { %v4572_v56 = vrot.slane %v4570_v29, 4  ;;  %v4627_v29 = vshll.u32 %v16981_v53, 16 }
 0x231   : > { %14124 = vmatmul.mubr.bf16.gmra.mrb[16].mxu0 %v15275_v24  ;;  %v4486_v24 = vsel %vm15535_vm4, %v4481_v23, %v16909_v2  ;;  %v4561_v2 = vrot.slane %v4559_v32, 4  ;;  %v4607_v23 = vshrl.u32 %v16961_v33, 16  ;;  %v16990_v32 = vld [vmem:[#allocation2 + $0x5c] sm:$0x1] }
 0x232   : > { %14127 = vmatprep.mubr.bf16.mxu0 %v15276_v40  ;;  %v15282_v40 = vld [vmem:[#allocation2 + $0xc0] sm:$0xff]   ;;  %v12704_v6 = vcombine.low %v4486_v24, %v4496_v42  ;;  %v4576_v14 = vor.u32 %v4575_v28, %v4572_v56  ;;  %v4599_v24 = vrot.slane %v4597_v5, 5  ;;  %v16998_v42 = vrot.slane %v4603_v43, 5 }
 0x233   : > { %v4562_v19 = vor.u32 %v4561_v2, %v16954_v11  ;;  %v4544_v2 = vsel %vm15535_vm4, %v16963_v30, %v16958_v50  ;;  %v17020_v28 = vrot.slane %v4589_v59, 5  ;;  %v4613_v3 = vshll.u32 %v16990_v32, 16  ;;  %v17028_v30 = vld [vmem:[#allocation2 + $0x68] sm:$0x1]  ;;  %v4449_v59 = vld [vmem:[#allocation2 + $0x78] sm:$0xf] }
 0x234   : > { %v4577_v27 = vrot.slane %v4576_v14, 4  ;;  %v4642_v5 = vshrl.u32 %v4446_v57, 16  ;;  %v4645_v43 = vshll.u32 %v4446_v57, 16  ;;  %v4637_v14 = vshll.u32 %v17028_v30, 16 }
 0x235   : > { %v17018_v56 = vrot.slane %v4562_v19, 4 }
 0x239   : > { %14128 = vmatmul.mubr.bf16.gmra.mrb[20].mxu0 %v15278_v36  ;;  %v16967_v36 = vrot.slane %v4579_v21, 5  ;;  %v4609_v21 = vrot.slane %v4607_v23, 4  ;;  %v4568_v23 = vsel %vm15535_vm4, %v17018_v56, %v17012_v63  ;;  %v17061_v63 = vld [vmem:[#allocation2 + $0x88] sm:$0xf] }
 0x23a   : > { %14131 = vmatprep.mubr.bf16.mxu0 %v15279_v9  ;;  %v4510_v9 = vsel %vm15535_vm4, %v16936_v61, %v16923_v20  ;;  %v4596_v20 = vrot.slane %v4594_v18, 4  ;;  %v4620_v18 = vrot.slane %v4618_v17, 4 }
 0x23b   : > { %v4586_v61 = vor.u32 %v4585_v55, %v16967_v36  ;;  %v17025_v55 = vld [vmem:[#allocation2 + $0x70] sm:$0xf]  ;;  %v4610_v50 = vor.u32 %v4609_v21, %v16998_v42  ;;  %v12705_v48 = vcombine.low %v4510_v9, %v4520_v51  ;;  %v15286_v9 = vld [vmem:[%s19153_s1 + $0x208] sm:$0xff]   ;;  %v4666_v21 = vshrl.u32 %v4449_v59, 16 }
 0x23c   : > { %v4600_v0 = vor.u32 %v4599_v24, %v4596_v20  ;;  %v4651_v60 = vshll.u32 %v17025_v55, 16  ;;  %v4655_v19 = vshrl.u32 %v17025_v55, 16  ;;  %v17040_v20 = vld [vmem:[#allocation2 + $0x7c] sm:$0xf]  ;;  %v4452_v24 = vld [vmem:[#allocation2 + $0x84] sm:$0xf] }
 0x23d   : > { %v4587_v26 = vrot.slane %v4586_v61, 4  ;;  %v4582_v61 = vsel %vm15535_vm4, %v4577_v27, %v16967_v36  ;;  %v4669_v51 = vshll.u32 %v4449_v59, 16  ;;  %v4644_v36 = vrot.slane %v4642_v5, 4 }
 0x23e   : > { %v17063_v56 = vrot.slane %v4651_v60, 5  ;;  %v4690_v27 = vshrl.u32 %v4452_v24, 16 }
 0x23f   : > { %v4592_v17 = vsel %vm15535_vm4, %v4587_v26, %v17020_v28  ;;  %v4657_v28 = vrot.slane %v4655_v19, 4  ;;  %v4693_v26 = vshll.u32 %v4452_v24, 16  ;;  %v4671_v5 = vrot.slane %v4669_v51, 5 }
 0x240   : > { %v12708_v60 = vcombine.low %v4582_v61, %v4592_v17  ;;  %v4692_v17 = vrot.slane %v4690_v27, 4 }
 0x241   : > { %14132 = vmatmul.mubr.bf16.gmra.mrb[24].mxu0 %v15281_v8  ;;  %v16996_v8 = vsel %vm16312_vm5, %v5352_v45, %v5353_v4  ;;  %v17045_v45 = vrot.slane %v4613_v3, 5  ;;  %v4658_v59 = vor.u32 %v4657_v28, %v17063_v56  ;;  %v4695_v24 = vrot.slane %v4693_v26, 5 }
 0x242   : > { %14135 = vmatprep.mubr.bf16.mxu0 %v15282_v40  ;;  %19208 = vst [vmem:[#allocation6_spill] sm:$0xff] %v16996_v8  ;;  %v4534_v40 = vsel %vm15535_vm4, %v16956_v10, %v16930_v7  ;;  %v4623_v7 = vrot.slane %v4621_v38, 5  ;;  %v17023_v10 = vrot.slane %v4627_v29, 5  ;;  %v17055_v38 = vrot.slane %v4600_v0, 4 }
 0x243   : > { %v12706_v4 = vcombine.low %v4534_v40, %v4544_v2  ;;  %v4611_v29 = vrot.slane %v4610_v50, 4  ;;  %v4675_v40 = vshll.u32 %v17040_v20, 16  ;;  %v4647_v2 = vrot.slane %v4645_v43, 5 }
 0x244   : > { %v4699_v0 = vshll.u32 %v17061_v63, 16  ;;  %v4703_v50 = vshrl.u32 %v17061_v63, 16  ;;  %v4696_v27 = vor.u32 %v4695_v24, %v4692_v17 }
 0x245   : > { %v4648_v19 = vor.u32 %v4647_v2, %v4644_v36  ;;  %v17104_v36 = vrot.slane %v4658_v59, 4 }
 0x249   : > { %14136 = vmatmul.mubr.bf16.gmra.mrb[28].mxu0 %v15284_v12  ;;  %v4624_v12 = vor.u32 %v4623_v7, %v4620_v18  ;;  %v4639_v18 = vrot.slane %v4637_v14, 5  ;;  %v4661_v7 = vshll.u32 %v17057_v37, 16  ;;  %v4616_v14 = vsel %vm15535_vm4, %v4611_v29, %v17045_v45 }
 0x24a   : > { %14155 = vmatprep.mubr.bf16.mxu0 %v12704_v6  ;;  %v4558_v6 = vsel %vm15535_vm4, %v17010_v44, %v16954_v11  ;;  %v4634_v11 = vor.u32 %v4633_v49, %v17023_v10  ;;  %v4679_v44 = vshrl.u32 %v17040_v20, 16  ;;  %v15287_v49 = vld [vmem:[%s19153_s1 + $0x210] sm:$0xff]  }
 0x24b   : > { %v4625_v3 = vrot.slane %v4624_v12, 4  ;;  %v12707_v43 = vcombine.low %v4558_v6, %v4568_v23  ;;  %v17075_v12 = vld [vmem:[#allocation2 + $0x80] sm:$0x1]  ;;  %v15288_v23 = vld [vmem:[%s19153_s1 + $0x218] sm:$0xff]   ;;  %v17090_v61 = vrot.slane %v4661_v7, 5 }
 0x24c   : > { %v4635_v57 = vrot.slane %v4634_v11, 4  ;;  %v4606_v11 = vsel %vm15535_vm4, %v17055_v38, %v16998_v42  ;;  %v4705_v42 = vrot.slane %v4703_v50, 4  ;;  %v17094_v38 = vld [vmem:[#allocation2 + $0x94] sm:$0xf]  ;;  %v4685_v51 = vshll.u32 %v17075_v12, 16  ;;  %v15289_v7 = vld [vmem:[%s19153_s1 + $0x220] sm:$0xff]  }
 0x24d   : > { %v4630_v6 = vsel %vm15535_vm4, %v4625_v3, %v17023_v10  ;;  %v4723_v3 = vshll.u32 %v17094_v38, 16  ;;  %v4458_v50 = vld [vmem:[#allocation2 + $0x9c] sm:$0xf] }
 0x24e   : > { %v4640_v45 = vsel %vm15535_vm4, %v4635_v57, %v4639_v18  ;;  %v4727_v57 = vshrl.u32 %v17094_v38, 16  ;;  %v12709_v18 = vcombine.low %v4606_v11, %v4616_v14  ;;  %v17123_v14 = vld [vmem:[#allocation2 + $0xa0] sm:$0xf]  ;;  %v4738_v24 = vshrl.u32 %v4458_v50, 16 }
 0x250   : > { %v4729_v17 = vrot.slane %v4727_v57, 4 }
 0x251   : > { %14156 = vmatmul.mubr.bf16.vlgmr.msra.gmra.mrb[0].mxu0 %v12705_v48  ;;  %v4668_v48 = vrot.slane %v4666_v21, 4  ;;  %v17092_v21 = vrot.slane %v4699_v0, 5 }
 0x252   : > { %14188 = vmatpush3.bf16.msra.mxu0 %v16902_v41  ;;  %14159 = vmatprep.mubr.bf16.mxu0 %v12706_v4  ;;  %v17072_v41 = vrot.slane %v4675_v40, 5  ;;  %v4681_v4 = vrot.slane %v4679_v44, 4  ;;  %v17100_v40 = vld [vmem:[#allocation2 + $0x8c] sm:$0x1]  ;;  %v17102_v44 = vrot.slane %v4648_v19, 4  ;;  %v4664_v19 = vsel %vm15535_vm4, %v17104_v36, %v17090_v61 }
 0x253   : > { %14189 = vmatprep.subr.bf16.mxu0 %v15286_v9  ;;  %v4672_v29 = vor.u32 %v4671_v5, %v4668_v48  ;;  %v4706_v26 = vor.u32 %v4705_v42, %v17092_v21  ;;  %v4709_v0 = vshll.u32 %v17100_v40, 16  ;;  %v12710_v48 = vcombine.low %v4630_v6, %v4640_v45  ;;  %v4461_v6 = vld [vmem:[#allocation2 + $0xa8] sm:$0xf]  ;;  %v17127_v45 = vld [vmem:[#allocation2 + $0xac] sm:$0xf] }
 0x254   : > { %v4682_v10 = vor.u32 %v4681_v4, %v17072_v41  ;;  %v4741_v42 = vshll.u32 %v4458_v50, 16  ;;  %v15290_v61 = vld [vmem:[%s19153_s1 + $0x228] sm:$0xff]   ;;  %v4762_v36 = vshrl.u32 %v4461_v6, 16  ;;  %v4771_v57 = vshll.u32 %v17127_v45, 16 }
 0x255   : > { %v4673_v5 = vrot.slane %v4672_v29, 4  ;;  %v4707_v29 = vrot.slane %v4706_v26, 4  ;;  %v4740_v50 = vrot.slane %v4738_v24, 4  ;;  %v17155_v24 = vld [vmem:[#allocation2 + $0xb0] sm:$0x1] }
 0x256   : > { %14190 = vmatpush3.bf16.msra.mxu0 %v15286_v9  ;;  %v4455_v9 = vld [vmem:[#allocation2 + $0x90] sm:$0xf]  ;;  %v4683_v4 = vrot.slane %v4682_v10, 4  ;;  %v4711_v10 = vrot.slane %v4709_v0, 5  ;;  %v4743_v52 = vrot.slane %v4741_v42, 5  ;;  %19210 = vst [vmem:[#allocation8_spill] sm:$0xff] %v17155_v24 }
 0x257   : > { %14191 = vmatprep.subr.bf16.mxu0 %v15287_v49  ;;  %v4714_v2 = vshrl.u32 %v4455_v9, 16  ;;  %v4717_v28 = vshll.u32 %v4455_v9, 16  ;;  %v17125_v9 = vrot.slane %v4723_v3, 5 }
 0x259   : > { %14160 = vmatmul.mubr.bf16.gmra.mrb[4].mxu0 %v12707_v43  ;;  %v17113_v43 = vld [vmem:[#allocation2 + $0x98] sm:$0x1]  ;;  %v4716_v59 = vrot.slane %v4714_v2, 4  ;;  %v4719_v11 = vrot.slane %v4717_v28, 5  ;;  %v4765_v2 = vshll.u32 %v4461_v6, 16  ;;  %v4678_v28 = vsel %vm15535_vm4, %v4673_v5, %v17072_v41 }
 0x25a   : > { %14163 = vmatprep.mubr.bf16.mxu0 %v12708_v60  ;;  %14192 = vmatpush3.bf16.msra.mxu0 %v15287_v49  ;;  %v4687_v49 = vrot.slane %v4685_v51, 5  ;;  %v4654_v60 = vsel %vm15535_vm4, %v17102_v44, %v17063_v56  ;;  %v4697_v56 = vrot.slane %v4696_v27, 4  ;;  %v4733_v51 = vshll.u32 %v17113_v43, 16 }
 0x25b   : > { %14193 = vmatprep.subr.bf16.mxu0 %v15288_v23  ;;  %v4747_v44 = vshll.u32 %v17123_v14, 16  ;;  %v4775_v27 = vshrl.u32 %v17127_v45, 16  ;;  %v4720_v26 = vor.u32 %v4719_v11, %v4716_v59  ;;  %v4730_v0 = vor.u32 %v4729_v17, %v17125_v9 }
 0x25c   : > { %v4688_v3 = vsel %vm15535_vm4, %v4683_v4, %v4687_v49  ;;  %v4712_v41 = vsel %vm15535_vm4, %v4707_v29, %v4711_v10  ;;  %v4735_v5 = vrot.slane %v4733_v51, 5  ;;  %v17148_v4 = vld [vmem:[#allocation2 + $0xa4] sm:$0x1]  ;;  %v4764_v59 = vrot.slane %v4762_v36, 4 }
 0x25d   : > { %19209 = vst [vmem:[#allocation7_spill] sm:$0xff] %v17148_v4  ;;  %v4767_v11 = vrot.slane %v4765_v2, 5  ;;  %v12711_v6 = vcombine.low %v4654_v60, %v4664_v19  ;;  %v12712_v17 = vcombine.low %v4678_v28, %v4688_v3  ;;  %v4777_v42 = vrot.slane %v4775_v27, 4  ;;  %v15292_v60 = vld [vmem:[%s19153_s1 + $0x238] sm:$0xff]   ;;  %v4467_v28 = vld [vmem:[#allocation2 + $0xc0] sm:$0xf] }
 0x25e   : > { %14194 = vmatpush3.bf16.msra.mxu0 %v15288_v23  ;;  %v4751_v23 = vshrl.u32 %v17123_v14, 16  ;;  %v4721_v29 = vrot.slane %v4720_v26, 4  ;;  %v4731_v10 = vrot.slane %v4730_v0, 4  ;;  %v4744_v51 = vor.u32 %v4743_v52, %v4740_v50  ;;  %v17167_v3 = vld [vmem:[#allocation2 + $0xc4] sm:$0xf] }
 0x25f   : > { %14195 = vmatprep.subr.bf16.mxu0 %v15289_v7  ;;  %v4757_v8 = vshll.u32 %v17148_v4, 16  ;;  %v4781_v36 = vshll.u32 %v17155_v24, 16  ;;  %v4799_v27 = vshrl.u32 %v17160_v15, 16  ;;  %v17179_v24 = vld [vmem:[#allocation2 + $0xbc] sm:$0x1] }
 0x260   : > { %v4753_v49 = vrot.slane %v4751_v23, 4  ;;  %v4768_v23 = vor.u32 %v4767_v11, %v4764_v59  ;;  %v4726_v26 = vsel %vm15535_vm4, %v4721_v29, %v17125_v9  ;;  %v4736_v0 = vsel %vm15535_vm4, %v4731_v10, %v4735_v5  ;;  %v4470_v4 = vld [vmem:[#allocation2 + $0xcc] sm:$0xf] }
 0x261   : > { %14164 = vmatmul.mubr.bf16.gmra.mrb[8].mxu0 %v12709_v18  ;;  %v4702_v18 = vsel %vm15535_vm4, %v4697_v56, %v17092_v21  ;;  %v17157_v21 = vrot.slane %v4771_v57, 5  ;;  %v4464_v56 = vld [vmem:[#allocation2 + $0xb4] sm:$0xf]  ;;  %v4795_v57 = vshll.u32 %v17160_v15, 16  ;;  %v4745_v50 = vrot.slane %v4744_v51, 4 }
 0x262   : > { %14167 = vmatprep.mubr.bf16.mxu0 %v12710_v48  ;;  %14196 = vmatpush3.bf16.msra.mxu0 %v15289_v7  ;;  %v15291_v7 = vld [vmem:[%s19153_s1 + $0x230] sm:$0xff]   ;;  %v17153_v48 = vrot.slane %v4747_v44, 5  ;;  %v12713_v44 = vcombine.low %v4702_v18, %v4712_v41  ;;  %v4786_v2 = vshrl.u32 %v4464_v56, 16  ;;  %v4759_v18 = vrot.slane %v4757_v8, 5 }
 0x263   : > { %14197 = vmatprep.subr.bf16.mxu0 %v15290_v61  ;;  %v4778_v52 = vor.u32 %v4777_v42, %v17157_v21  ;;  %v4810_v41 = vshrl.u32 %v4467_v28, 16  ;;  %v4819_v59 = vshll.u32 %v17167_v3, 16  ;;  %v4823_v11 = vshrl.u32 %v17167_v3, 16 }
 0x264   : > { %v4754_v19 = vor.u32 %v4753_v49, %v17153_v48  ;;  %v4813_v49 = vshll.u32 %v4467_v28, 16  ;;  %v4769_v42 = vrot.slane %v4768_v23, 4  ;;  %v4797_v29 = vrot.slane %v4795_v57, 5 }
 0x265   : > { %v4779_v15 = vrot.slane %v4778_v52, 4  ;;  %v4801_v5 = vrot.slane %v4799_v27, 4  ;;  %v12714_v10 = vcombine.low %v4726_v26, %v4736_v0  ;;  %v4812_v8 = vrot.slane %v4810_v41, 4 }
 0x266   : > { %14198 = vmatpush3.bf16.msra.mxu0 %v15290_v61  ;;  %v4789_v61 = vshll.u32 %v4464_v56, 16  ;;  %v4788_v56 = vrot.slane %v4786_v2, 4  ;;  %v4821_v51 = vrot.slane %v4819_v59, 5  ;;  %v4825_v28 = vrot.slane %v4823_v11, 4  ;;  %v17187_v2 = vld [vmem:[#allocation2 + $0xc8] sm:$0x1] }
 0x267   : > { %14199 = vmatprep.subr.bf16.mxu0 %v15291_v7  ;;  %v4802_v57 = vor.u32 %v4801_v5, %v4797_v29  ;;  %v4834_v27 = vshrl.u32 %v4470_v4, 16  ;;  %v4843_v26 = vshll.u32 %v16969_v46, 16  ;;  %v4847_v0 = vshrl.u32 %v16969_v46, 16 }
 0x268   : > { %v4791_v9 = vrot.slane %v4789_v61, 5 }
 0x269   : > { %14168 = vmatmul.mubr.bf16.gmra.mrb[12].mxu0 %v12711_v6  ;;  %v4755_v6 = vrot.slane %v4754_v19, 4  ;;  %v4750_v19 = vsel %vm15535_vm4, %v4745_v50, %v17153_v48  ;;  %v4837_v48 = vshll.u32 %v4470_v4, 16 }
 0x26a   : > { %14171 = vmatprep.mubr.bf16.mxu0 %v12712_v17  ;;  %14200 = vmatpush3.bf16.msra.mxu0 %v15291_v7  ;;  %v4783_v17 = vrot.slane %v4781_v36, 5  ;;  %v4815_v7 = vrot.slane %v4813_v49, 5  ;;  %v4805_v36 = vshll.u32 %v17179_v24, 16  ;;  %v4792_v61 = vor.u32 %v4791_v9, %v4788_v56 }
 0x26b   : > { %14201 = vmatprep.subr.bf16.mxu0 %v15292_v60  ;;  %v4760_v23 = vsel %vm15535_vm4, %v4755_v6, %v4759_v18  ;;  %v4826_v18 = vor.u32 %v4825_v28, %v4821_v51  ;;  %v4836_v6 = vrot.slane %v4834_v27, 4 }
 0x26c   : > { %v4784_v52 = vsel %vm15535_vm4, %v4779_v15, %v4783_v17  ;;  %v4816_v50 = vor.u32 %v4815_v7, %v4812_v8  ;;  %v12715_v41 = vcombine.low %v4750_v19, %v4760_v23  ;;  %v4793_v59 = vrot.slane %v4792_v61, 4 }
 0x26d   : > { %v4807_v11 = vrot.slane %v4805_v36, 5  ;;  %v4839_v15 = vrot.slane %v4837_v48, 5  ;;  %v4849_v17 = vrot.slane %v4847_v0, 4  ;;  %v4827_v9 = vrot.slane %v4826_v18, 4  ;;  %v5179_v36 = vld [vmem:[#allocation2 + $0x18] sm:$0xe] }
 0x26e   : > { %14202 = vmatpush3.bf16.msra.mxu0 %v15292_v60  ;;  %v4774_v60 = vsel %vm15535_vm4, %v4769_v42, %v17157_v21  ;;  %v4803_v21 = vrot.slane %v4802_v57, 4  ;;  %v4845_v42 = vrot.slane %v4843_v26, 5  ;;  %v4817_v56 = vrot.slane %v4816_v50, 4  ;;  %v5180_v18 = vld [vmem:[#allocation2 + $0x24] sm:$0xe] }
 0x26f   : > { %v12716_v49 = vcombine.low %v4774_v60, %v4784_v52  ;;  %v4798_v46 = vsel %vm15535_vm4, %v4793_v59, %v4797_v29  ;;  %v4853_v7 = vshll.u32 %v16971_v34, 16  ;;  %v5245_v23 = vrot.slane %v16897_v13, 5 }
 0x270   : > { %v4808_v5 = vsel %vm15535_vm4, %v4803_v21, %v4807_v11  ;;  %v4850_v8 = vor.u32 %v4849_v17, %v4845_v42  ;;  %v4822_v28 = vsel %vm15535_vm4, %v4817_v56, %v4821_v51  ;;  %v12728_v27 = vrot.slane %v5179_v36, 9 }
 0x271   : > { %14172 = vmatmul.mubr.bf16.gmra.mrb[16].mxu0 %v12713_v44  ;;  %v4829_v44 = vshll.u32 %v17187_v2, 16  ;;  %v12717_v60 = vcombine.low %v4798_v46, %v4808_v5  ;;  %v4855_v57 = vrot.slane %v4853_v7, 5  ;;  %v5247_v48 = vrot.slane %v5245_v23, 4 }
 0x272   : > { %14175 = vmatprep.mubr.bf16.mxu0 %v12714_v10  ;;  %v4840_v10 = vor.u32 %v4839_v15, %v4836_v6  ;;  %v4851_v61 = vrot.slane %v4850_v8, 4  ;;  %v5248_v26 = vrot.slane %v16913_v58, 5  ;;  %v5252_v13 = vrot.slane %v16907_v47, 5  ;;  %v5181_v58 = vld [vmem:[#allocation2 + $0x30] sm:$0xe] }
 0x273   : > { %v4831_v4 = vrot.slane %v4829_v44, 5  ;;  %v5246_v0 = vsel %vm16312_vm5, %v12728_v27, %v5245_v23  ;;  %v5259_v44 = vrot.slane %v16911_v54, 5  ;;  %v12729_v59 = vrot.slane %v5180_v18, 9  ;;  %v5186_v18 = vld [vmem:[#allocation2 + $0x6c] sm:$0xe] }
 0x274   : > { %v4841_v29 = vrot.slane %v4840_v10, 4  ;;  %v4856_v51 = vsel %vm15535_vm4, %v4851_v61, %v4855_v57  ;;  %v5249_v50 = vsel %vm16312_vm5, %v5247_v48, %v5248_v26  ;;  %v5254_v21 = vrot.slane %v5252_v13, 4 }
 0x275   : > { %v4832_v19 = vsel %vm15535_vm4, %v4827_v9, %v4831_v4  ;;  %v5255_v11 = vrot.slane %v16921_v35, 5  ;;  %v12730_v6 = vrot.slane %v5181_v58, 9  ;;  %v5261_v15 = vrot.slane %v5259_v44, 4  ;;  %v5182_v9 = vld [vmem:[#allocation2 + $0x3c] sm:$0xe] }
 0x276   : > { %v12718_v52 = vcombine.low %v4822_v28, %v4832_v19  ;;  %v4846_v34 = vsel %vm15535_vm4, %v4841_v29, %v4845_v42  ;;  %v5262_v47 = vrot.slane %v16928_v22, 5  ;;  %v5253_v42 = vsel %vm16312_vm5, %v12729_v59, %v5252_v13  ;;  %v5183_v22 = vld [vmem:[#allocation2 + $0x48] sm:$0xe] }
 0x277   : > { %v5256_v17 = vsel %vm16312_vm5, %v5254_v21, %v5255_v11  ;;  %v5266_v54 = vrot.slane %v16925_v1, 5  ;;  %v5260_v56 = vsel %vm16312_vm5, %v12730_v6, %v5259_v44  ;;  %v5273_v4 = vrot.slane %v16934_v62, 5 }
 0x278   : > { %v5263_v35 = vsel %vm16312_vm5, %v5261_v15, %v5262_v47  ;;  %v12761_v46 = vcombine.low %v5253_v42, %v5256_v17  ;;  %v12731_v10 = vrot.slane %v5182_v9, 9  ;;  %v5269_v7 = vrot.slane %v16943_v31, 5  ;;  %v5188_v17 = vld [vmem:[#allocation2 + $0x84] sm:$0xe] }
 0x279   : > { %14176 = vmatmul.mubr.bf16.gmra.mrb[20].mxu0 %v12715_v41  ;;  %v12719_v41 = vcombine.low %v4846_v34, %v4856_v51  ;;  %v12762_v5 = vcombine.low %v5260_v56, %v5263_v35  ;;  %v5268_v8 = vrot.slane %v5266_v54, 4  ;;  %v12732_v28 = vrot.slane %v5183_v22, 9 }
 0x27a   : > { %14179 = vmatprep.mubr.bf16.mxu0 %v12716_v49  ;;  %v12760_v49 = vcombine.low %v5246_v0, %v5249_v50  ;;  %v5275_v19 = vrot.slane %v5273_v4, 4  ;;  %v5276_v1 = vrot.slane %v16965_v25, 5  ;;  %v5267_v23 = vsel %vm16312_vm5, %v12731_v10, %v5266_v54  ;;  %v5185_v25 = vld [vmem:[#allocation2 + $0x60] sm:$0xe] }
 0x27b   : > { %v5270_v36 = vsel %vm16312_vm5, %v5268_v8, %v5269_v7  ;;  %v5280_v62 = vrot.slane %v16961_v33, 5  ;;  %v5287_v29 = vrot.slane %v16981_v53, 5  ;;  %v5283_v26 = vrot.slane %v16990_v32, 5 }
 0x27c   : > { %v5277_v31 = vsel %vm16312_vm5, %v5275_v19, %v5276_v1  ;;  %v12763_v61 = vcombine.low %v5267_v23, %v5270_v36  ;;  %v12734_v34 = vrot.slane %v5185_v25, 9  ;;  %v5290_v33 = vrot.slane %v17028_v30, 5  ;;  %v5187_v30 = vld [vmem:[#allocation2 + $0x78] sm:$0xe]  ;;  %v19213_v25 = vld [vmem:[#allocation8_spill] sm:$0xff] }
 0x27d   : > { %v5282_v48 = vrot.slane %v5280_v62, 4  ;;  %v5289_v51 = vrot.slane %v5287_v29, 4  ;;  %v5294_v53 = vrot.slane %v17025_v55, 5  ;;  %v5301_v44 = vrot.slane %v17040_v20, 5 }
 0x27e   : > { %v5288_v50 = vsel %vm16312_vm5, %v12734_v34, %v5287_v29  ;;  %v5297_v21 = vrot.slane %v17057_v37, 5  ;;  %v12736_v11 = vrot.slane %v5187_v30, 9  ;;  %v5304_v55 = vrot.slane %v17075_v12, 5  ;;  %v5189_v12 = vld [vmem:[#allocation2 + $0x90] sm:$0xe] }
 0x27f   : > { %v5284_v0 = vsel %vm16312_vm5, %v5282_v48, %v5283_v26  ;;  %v5291_v32 = vsel %vm16312_vm5, %v5289_v51, %v5290_v33  ;;  %v5296_v59 = vrot.slane %v5294_v53, 4  ;;  %v5303_v6 = vrot.slane %v5301_v44, 4  ;;  %v5192_v34 = vld [vmem:[#allocation2 + $0xb4] sm:$0xe]  ;;  %v5193_v33 = vld [vmem:[#allocation2 + $0xc0] sm:$0xe] }
 0x280   : > { %v5308_v20 = vrot.slane %v17061_v63, 5  ;;  %v5302_v42 = vsel %vm16312_vm5, %v12736_v11, %v5301_v44  ;;  %v5315_v54 = vrot.slane %v17094_v38, 5  ;;  %v12737_v9 = vrot.slane %v5188_v17, 9  ;;  %v6277_v17 = vld [vmem:[#allocation2] sm:$0xf] }
 0x281   : > { %14180 = vmatmul.mubr.bf16.gmra.mrb[24].mxu0 %v12717_v60  ;;  %v5274_v60 = vsel %vm16312_vm5, %v12732_v28, %v5273_v4  ;;  %v5298_v47 = vsel %vm16312_vm5, %v5296_v59, %v5297_v21  ;;  %v5305_v37 = vsel %vm16312_vm5, %v5303_v6, %v5304_v55  ;;  %v5311_v22 = vrot.slane %v17100_v40, 5  ;;  %v5190_v28 = vld [vmem:[#allocation2 + $0x9c] sm:$0xe]  ;;  %v19215_v21 = vld [vmem:[#allocation5_spill] sm:$0xff]  ;;  %v15293_v6 = vld [vmem:[%s19153_s1 + $0x280] sm:$0xff]  }
 0x282   : > { %14183 = vmatprep.mubr.bf16.mxu0 %v12718_v52  ;;  %v5184_v52 = vld [vmem:[#allocation2 + $0x54] sm:$0xe]  ;;  %v12764_v57 = vcombine.low %v5274_v60, %v5277_v31  ;;  %v12768_v35 = vcombine.low %v5302_v42, %v5305_v37  ;;  %v5310_v4 = vrot.slane %v5308_v20, 4  ;;  %v5318_v63 = vrot.slane %v17113_v43, 5  ;;  %v5191_v43 = vld [vmem:[#allocation2 + $0xa8] sm:$0xe]  ;;  %14235 = vmatprep.subr.bf16.mxu1 %v15293_v6 }
 0x283   : > { %v12733_v27 = vrot.slane %v5184_v52, 9  ;;  %v5309_v10 = vsel %vm16312_vm5, %v12737_v9, %v5308_v20  ;;  %v5322_v38 = vrot.slane %v17123_v14, 5  ;;  %v5329_v19 = vrot.slane %v17127_v45, 5  ;;  %v19212_v60 = vld [vmem:[#allocation7_spill] sm:$0xff]  ;;  %v19214_v45 = vld [vmem:[#allocation9_spill] sm:$0xff]  ;;  %14236 = vmatpush3.bf16.msra.mxu1 %v15293_v6  ;;  %v15297_v20 = vld [vmem:[%s19153_s1 + $0x2a0] sm:$0xff]  }
 0x284   : > { %v5312_v8 = vsel %vm16312_vm5, %v5310_v4, %v5311_v22  ;;  %v12739_v36 = vrot.slane %v5190_v28, 9  ;;  %v5325_v31 = vrot.slane %v19212_v60, 5  ;;  %v12740_v52 = vrot.slane %v5191_v43, 9  ;;  %v15294_v55 = vld [vmem:[%s19153_s1 + $0x288] sm:$0xff]   ;;  %v15299_v37 = vld [vmem:[%s19153_s1 + $0x2b0] sm:$0xff]   ;;  %v15300_v4 = vld [vmem:[%s19153_s1 + $0x2b8] sm:$0xff]  }
 0x285   : > { %v5281_v13 = vsel %vm16312_vm5, %v12733_v27, %v5280_v62  ;;  %v12769_v1 = vcombine.low %v5309_v10, %v5312_v8  ;;  %v5324_v62 = vrot.slane %v5322_v38, 4  ;;  %v5331_v29 = vrot.slane %v5329_v19, 4  ;;  %14237 = vmatprep.subr.bf16.mxu1 %v15294_v55  ;;  %v15298_v42 = vld [vmem:[%s19153_s1 + $0x2a8] sm:$0xff]  }
 0x286   : > { %v12765_v58 = vcombine.low %v5281_v13, %v5284_v0  ;;  %v5332_v14 = vrot.slane %v19213_v25, 5  ;;  %v5336_v27 = vrot.slane %v19214_v45, 5  ;;  %v5330_v48 = vsel %vm16312_vm5, %v12740_v52, %v5329_v19 }
 0x287   : > { %v5343_v51 = vrot.slane %v17167_v3, 5  ;;  %v5346_v30 = vrot.slane %v17187_v2, 5  ;;  %v19216_v2 = vld [vmem:[#allocation6_spill] sm:$0xff]  ;;  %14238 = vmatpush3.bf16.msra.mxu1 %v15294_v55 }
 0x288   : > { %v5333_v26 = vsel %vm16312_vm5, %v5331_v29, %v5332_v14  ;;  %v19217_v11 = vcombine.low %v19215_v21, %v19216_v2 }
 0x289   : > { %14184 = vmatmul.mubr.bf16.gmra.mrb[28].mxu0 %v12719_v41  ;;  %v12766_v41 = vcombine.low %v5288_v50, %v5291_v32  ;;  %v12772_v0 = vcombine.low %v5330_v48, %v5333_v26  ;;  %v5338_v50 = vrot.slane %v5336_v27, 4  ;;  %v5339_v32 = vrot.slane %v17179_v24, 5 }
 0x28a   : > { %14203 = vmatprep.mubr.bf16.mxu0 %v12760_v49  ;;  %v12735_v49 = vrot.slane %v5186_v18, 9  ;;  %v12742_v18 = vrot.slane %v5193_v33, 9  ;;  %v5345_v44 = vrot.slane %v5343_v51, 4 }
 0x28c   : > { %v5295_v15 = vsel %vm16312_vm5, %v12735_v49, %v5294_v53  ;;  %v12741_v53 = vrot.slane %v5192_v34, 9  ;;  %v5344_v3 = vsel %vm16312_vm5, %v12742_v18, %v5343_v51  ;;  %v5347_v49 = vsel %vm16312_vm5, %v5345_v44, %v5346_v30 }
 0x28d   : > { %v12767_v56 = vcombine.low %v5295_v15, %v5298_v47  ;;  %v12774_v24 = vcombine.low %v5344_v3, %v5347_v49  ;;  %v15295_v15 = vld [vmem:[%s19153_s1 + $0x290] sm:$0xff]   ;;  %v15296_v47 = vld [vmem:[%s19153_s1 + $0x298] sm:$0xff]   ;;  %v19218_v49 = vmov 0 }
 0x28e   : > { %14239 = vmatprep.subr.bf16.mxu1 %v15295_v15  ;;  %v19219_v49 = vsel %vm17348_vm9, 4294967295, %v19218_v49 }
 0x28f   : > { %14240 = vmatpush3.bf16.msra.mxu1 %v15295_v15  ;;  %19220 = vst [vmem:[#allocation7_spill] sm:$0xff] %v19219_v49 }
 0x290   : > { %14241 = vmatprep.subr.bf16.mxu1 %v15296_v47 }
 0x291   : > { %14204 = vmatmul.mubr.bf16.vlgmr.msra.gmra.mrb[0].mxu0 %v12761_v46  ;;  %v12738_v46 = vrot.slane %v5189_v12, 9  ;;  %v6343_v12 = vshrl.u32 %v6277_v17, 16 }
 0x292   : > { %14207 = vmatprep.mubr.bf16.mxu0 %v12762_v5  ;;  %v5317_v5 = vrot.slane %v5315_v54, 4 }
 0x293   : > { %v5316_v7 = vsel %vm16312_vm5, %v12738_v46, %v5315_v54  ;;  %14242 = vmatpush3.bf16.msra.mxu1 %v15296_v47  ;;  %v6278_v54 = vld [vmem:[#allocation2 + $0x4] sm:$0xf]  ;;  %v6345_v22 = vrot.slane %v6343_v12, 4 }
 0x294   : > { %v5319_v40 = vsel %vm16312_vm5, %v5317_v5, %v5318_v63  ;;  %14243 = vmatprep.subr.bf16.mxu1 %v15297_v20  ;;  %v6356_v9 = vshrl.u32 %v6278_v54, 16  ;;  %v6326_v63 = vld [vmem:[#allocation2 + $0x8] sm:$0x1] }
 0x295   : > { %v12770_v23 = vcombine.low %v5316_v7, %v5319_v40 }
 0x296   : > { %v6358_v10 = vrot.slane %v6356_v9, 4 }
 0x297   : > { %14244 = vmatpush3.bf16.msra.mxu1 %v15297_v20 }
 0x298   : > { %14245 = vmatprep.subr.bf16.mxu1 %v15298_v42 }
 0x299   : > { %14208 = vmatmul.mubr.bf16.gmra.mrb[4].mxu0 %v12763_v61  ;;  %v5323_v61 = vsel %vm16312_vm5, %v12739_v36, %v5322_v38  ;;  %v6362_v38 = vshll.u32 %v6326_v63, 16  ;;  %v17334_v36 = vld [vmem:[%s19153_s1 + $0x240] sm:$0xff]  }
 0x29a   : > { %14211 = vmatprep.mubr.bf16.mxu0 %v12764_v57  ;;  %v5326_v57 = vsel %vm16312_vm5, %v5324_v62, %v5325_v31  ;;  %v17340_v62 = vld [vmem:[%s19154_s2] ss:$0 sm:$0xff] }
 0x29b   : > { %v12771_v13 = vcombine.low %v5323_v61, %v5326_v57  ;;  %14246 = vmatpush3.bf16.msra.mxu1 %v15298_v42  ;;  %v6364_v28 = vrot.slane %v6362_v38, 5 }
 0x29c   : > { %14247 = vmatprep.subr.bf16.mxu1 %v15299_v37 }
 0x29f   : > { %14248 = vmatpush3.bf16.msra.mxu1 %v15299_v37 }
 0x2a0   : > { %14249 = vmatprep.subr.bf16.mxu1 %v15300_v4 }
 0x2a1   : > { %14212 = vmatmul.mubr.bf16.gmra.mrb[8].mxu0 %v12765_v58  ;;  %v5337_v58 = vsel %vm16312_vm5, %v12741_v53, %v5336_v27 }
 0x2a2   : > { %14215 = vmatprep.mubr.bf16.mxu0 %v12766_v41  ;;  %v5340_v41 = vsel %vm16312_vm5, %v5338_v50, %v5339_v32 }
 0x2a3   : > { %v12773_v59 = vcombine.low %v5337_v58, %v5340_v41  ;;  %14250 = vmatpush3.bf16.msra.mxu1 %v15300_v4 }
 0x2a4   : > { %14283 = vmatprep.subr.bf16.mxu1 %v17334_v36 }
 0x2a9   : > { %14216 = vmatmul.mubr.bf16.gmra.mrb[12].mxu0 %v12767_v56  ;;  %v6346_v56 = vshll.u32 %v6277_v17, 16 }
 0x2aa   : > { %14219 = vmatprep.mubr.bf16.mxu0 %v12768_v35  ;;  %v6352_v35 = vshll.u32 %v6278_v54, 16  ;;  %v6176_v54 = vld [vmem:[#allocation2 + $0x20] sm:$0x1] }
 0x2ab   : > { %v6348_v46 = vrot.slane %v6346_v56, 5 }
 0x2ac   : > { %v6354_v5 = vrot.slane %v6352_v35, 5 }
 0x2ad   : > { %v6349_v8 = vor.u32 %v6348_v46, %v6345_v22  ;;  %v6169_v22 = vld [vmem:[#allocation2 + $0x14] sm:$0x1] }
 0x2ae   : > { %v6359_v7 = vor.u32 %v6358_v10, %v6354_v5 }
 0x2af   : > { %v6350_v40 = vrot.slane %v6349_v8, 4 }
 0x2b0   : > { %v6360_v19 = vrot.slane %v6359_v7, 4 }
 0x2b1   : > { %14220 = vmatmul.mubr.bf16.gmra.mrb[16].mxu0 %v12769_v1  ;;  %v6355_v43 = vsel %vm15535_vm4, %v6350_v40, %v6354_v5  ;;  %v15444_v5 = vld [vmem:[#allocation2 + $0xc] sm:$0xf] }
 0x2b2   : > { %14223 = vmatprep.mubr.bf16.mxu0 %v12770_v23  ;;  %v6365_v1 = vsel %vm15535_vm4, %v6360_v19, %v6364_v28 }
 0x2b3   : > { %v12849_v23 = vcombine.low %v6355_v43, %v6365_v1 }
 0x2b5   : > { %14251 = vmatprep.mubr.bf16.mxu1 %v12849_v23 }
 0x2b9   : > { %14224 = vmatmul.mubr.bf16.gmra.mrb[20].mxu0 %v12771_v13 }
 0x2ba   : > { %14227 = vmatprep.mubr.bf16.mxu0 %v12772_v0 }
 0x2c1   : > { %14228 = vmatmul.mubr.bf16.gmra.mrb[24].mxu0 %v12773_v59  ;;  %v6172_v59 = vld [vmem:[#allocation2 + $0x18] sm:$0xf] }
 0x2c2   : > { %14231 = vmatprep.mubr.bf16.mxu0 %v12774_v24 }
 0x2c9   : > { %14232 = vmatmul.mubr.bf16.gmra.mrb[28].mxu0 %v19217_v11 }
 0x364   : > { %v14205_v60 = vpop.f32.mrb[0].mxu0 }
 0x365   : > { %v5686_v31 = vadd.f32 %v14205_v60, %v17340_v62  ;;  %v5518_v52 = vpop.f32.mrb[1].mxu0 }
 0x366   : > { %v5684_v29 = vadd.f32 %v17340_v62, %v5518_v52  ;;  %v14206_v25 = vpop.f32.mrb[2].mxu0 }
 0x367   : > { %v5718_v14 = vmax.f32 %v5686_v31, 0.0  ;;  %v5687_v61 = vadd.f32 %v14206_v25, %v17340_v62  ;;  %v5521_v57 = vpop.f32.mrb[3].mxu0 }
 0x368   : > { %v5716_v45 = vmax.f32 %v5684_v29, 0.0  ;;  %v5685_v27 = vadd.f32 %v17340_v62, %v5521_v57 }
 0x369   : > { %v13265_v48 = vpack.c.bf16 %v5718_v14, %v5718_v14  ;;  %v5719_v26 = vmax.f32 %v5687_v61, 0.0 }
 0x36a   : > { %v13263_v34 = vpack.c.bf16 %v5716_v45, %v5716_v45  ;;  %v5717_v51 = vmax.f32 %v5685_v27, 0.0  ;;  %v6186_v45 = vld [vmem:[#allocation2 + $0x30] sm:$0xf] }
 0x36b   : > { %v5862_v33 = vshrl.u32 %v13265_v48, 16  ;;  %v13266_v13 = vpack.c.bf16 %v5719_v26, %v5719_v26  ;;  %v5865_v0 = vshll.u32 %v13265_v48, 16 }
 0x36c   : > { %v5845_v53 = vshrl.u32 %v13263_v34, 16  ;;  %v5848_v50 = vshll.u32 %v13263_v34, 16  ;;  %v13264_v32 = vpack.c.bf16 %v5717_v51, %v5717_v51  ;;  %v14209_v18 = vpop.f32.mrb[4].mxu0 }
 0x36d   : > { %v5864_v44 = vrot.slane %v5862_v33, 7  ;;  %v5870_v30 = vshrl.u32 %v13266_v13, 16  ;;  %v5873_v58 = vshll.u32 %v13266_v13, 16  ;;  %v5690_v41 = vadd.f32 %v14209_v18, %v17340_v62  ;;  %v5534_v3 = vpop.f32.mrb[5].mxu0  ;;  %v6179_v13 = vld [vmem:[#allocation2 + $0x24] sm:$0xf] }
 0x36e   : > { %v5847_v24 = vrot.slane %v5845_v53, 7  ;;  %v5853_v21 = vshrl.u32 %v13264_v32, 16  ;;  %v5856_v2 = vshll.u32 %v13264_v32, 16  ;;  %v5688_v11 = vadd.f32 %v17340_v62, %v5534_v3  ;;  %v14210_v6 = vpop.f32.mrb[6].mxu0 }
 0x36f   : > { %v5867_v55 = vor.u32 %v5865_v0, %v5864_v44  ;;  %v5868_v15 = vrot.slane %v5864_v44, 4  ;;  %v5872_v47 = vrot.slane %v5870_v30, 7  ;;  %v5722_v20 = vmax.f32 %v5690_v41, 0.0  ;;  %v5537_v42 = vpop.f32.mrb[7].mxu0 }
 0x370   : > { %v5850_v37 = vor.u32 %v5848_v50, %v5847_v24  ;;  %v5851_v17 = vrot.slane %v5847_v24, 4  ;;  %v5855_v12 = vrot.slane %v5853_v21, 7  ;;  %v5720_v56 = vmax.f32 %v5688_v11, 0.0 }
 0x371   : > { %v6173_v35 = vsel %vm17348_vm9, %v5867_v55, %v6172_v59  ;;  %v5875_v9 = vor.u32 %v5873_v58, %v5872_v47  ;;  %v5877_v4 = vrot.slane %v5872_v47, 4  ;;  %v13269_v46 = vpack.c.bf16 %v5722_v20, %v5722_v20  ;;  %v6190_v20 = vld [vmem:[#allocation2 + $0x38] sm:$0x1] }
 0x372   : > { %6174 = vst [vmem:[#allocation2 + $0x18] sm:$0xf] %v6173_v35  ;;  %v6166_v63 = vsel %vm17348_vm9, %v5850_v37, %v15444_v5  ;;  %v5858_v10 = vor.u32 %v5856_v2, %v5855_v12  ;;  %v5860_v8 = vrot.slane %v5855_v12, 4  ;;  %v13267_v38 = vpack.c.bf16 %v5720_v56, %v5720_v56 }
 0x373   : > { %6167 = vst [vmem:[#allocation2 + $0xc] sm:$0xf] %v6166_v63  ;;  %v5876_v40 = vsel %vm15580_vm11, %v5868_v15, %v5875_v9  ;;  %v6177_v19 = vsel %vm15541_vm6, %v5877_v4, %v6176_v54  ;;  %v5896_v43 = vshrl.u32 %v13269_v46, 16  ;;  %v5899_v60 = vshll.u32 %v13269_v46, 16  ;;  %v6200_v63 = vld [vmem:[#allocation2 + $0x48] sm:$0xf] }
 0x374   : > { %6175 = vst [vmem:[#allocation2 + $0x1c] sm:$0xf] %v5876_v40  ;;  %6178 = vst [vmem:[#allocation2 + $0x20] sm:$0x1] %v6177_v19  ;;  %v5859_v1 = vsel %vm15580_vm11, %v5851_v17, %v5858_v10  ;;  %v6170_v23 = vsel %vm15541_vm6, %v5860_v8, %v6169_v22  ;;  %v5879_v31 = vshrl.u32 %v13267_v38, 16  ;;  %v14213_v52 = vpop.f32.mrb[8].mxu0  ;;  %v5691_v25 = vadd.f32 %v14210_v6, %v17340_v62 }
 0x375   : > { %6168 = vst [vmem:[#allocation2 + $0x10] sm:$0xf] %v5859_v1  ;;  %6171 = vst [vmem:[#allocation2 + $0x14] sm:$0x1] %v6170_v23  ;;  %v17365_v29 = vrot.slane %v5896_v43, 7  ;;  %v5689_v14 = vadd.f32 %v17340_v62, %v5537_v42  ;;  %v5694_v61 = vadd.f32 %v14213_v52, %v17340_v62  ;;  %v5550_v57 = vpop.f32.mrb[9].mxu0 }
 0x376   : > { %v5881_v27 = vrot.slane %v5879_v31, 7  ;;  %v5882_v48 = vshll.u32 %v13267_v38, 16  ;;  %v5692_v26 = vadd.f32 %v17340_v62, %v5550_v57  ;;  %v14214_v34 = vpop.f32.mrb[10].mxu0  ;;  %v5723_v0 = vmax.f32 %v5691_v25, 0.0  ;;  %v6183_v42 = vld [vmem:[#allocation2 + $0x2c] sm:$0x1] }
 0x377   : > { %v5901_v51 = vor.u32 %v5899_v60, %v17365_v29  ;;  %v5902_v33 = vrot.slane %v17365_v29, 4  ;;  %v5721_v53 = vmax.f32 %v5689_v14, 0.0  ;;  %v5553_v50 = vpop.f32.mrb[11].mxu0  ;;  %v5726_v44 = vmax.f32 %v5694_v61, 0.0  ;;  %v6193_v60 = vld [vmem:[#allocation2 + $0x3c] sm:$0xf] }
 0x378   : > { %v5884_v32 = vor.u32 %v5882_v48, %v5881_v27  ;;  %v5885_v18 = vrot.slane %v5881_v27, 4  ;;  %v5724_v30 = vmax.f32 %v5692_v26, 0.0  ;;  %v13270_v41 = vpack.c.bf16 %v5723_v0, %v5723_v0 }
 0x379   : > { %v6187_v58 = vsel %vm17348_vm9, %v5901_v51, %v6186_v45  ;;  %v13268_v3 = vpack.c.bf16 %v5721_v53, %v5721_v53  ;;  %v5695_v59 = vadd.f32 %v14214_v34, %v17340_v62  ;;  %v13273_v21 = vpack.c.bf16 %v5726_v44, %v5726_v44 }
 0x37a   : > { %6188 = vst [vmem:[#allocation2 + $0x30] sm:$0xf] %v6187_v58  ;;  %v6180_v24 = vsel %vm17348_vm9, %v5884_v32, %v6179_v13  ;;  %v13271_v2 = vpack.c.bf16 %v5724_v30, %v5724_v30  ;;  %v5693_v11 = vadd.f32 %v17340_v62, %v5553_v50  ;;  %v5904_v6 = vshrl.u32 %v13270_v41, 16  ;;  %v6204_v58 = vld [vmem:[#allocation2 + $0x50] sm:$0x1] }
 0x37b   : > { %6181 = vst [vmem:[#allocation2 + $0x24] sm:$0xf] %v6180_v24  ;;  %v5907_v55 = vshll.u32 %v13270_v41, 16  ;;  %v5887_v15 = vshrl.u32 %v13268_v3, 16  ;;  %v5890_v47 = vshll.u32 %v13268_v3, 16  ;;  %v5930_v37 = vshrl.u32 %v13273_v21, 16 }
 0x37c   : > { %v5933_v17 = vshll.u32 %v13273_v21, 16  ;;  %v5913_v54 = vshrl.u32 %v13271_v2, 16  ;;  %v5916_v12 = vshll.u32 %v13271_v2, 16  ;;  %v14217_v56 = vpop.f32.mrb[12].mxu0  ;;  %v5906_v35 = vrot.slane %v5904_v6, 7 }
 0x37d   : > { %v5889_v9 = vrot.slane %v5887_v15, 7  ;;  %v5727_v4 = vmax.f32 %v5695_v59, 0.0  ;;  %v5725_v22 = vmax.f32 %v5693_v11, 0.0  ;;  %v5566_v46 = vpop.f32.mrb[13].mxu0  ;;  %v17379_v5 = vrot.slane %v5930_v37, 7 }
 0x37e   : > { %v17381_v10 = vrot.slane %v5913_v54, 7  ;;  %v5698_v8 = vadd.f32 %v14217_v56, %v17340_v62  ;;  %v5696_v38 = vadd.f32 %v17340_v62, %v5566_v46  ;;  %v14218_v40 = vpop.f32.mrb[14].mxu0  ;;  %v5909_v19 = vor.u32 %v5907_v55, %v5906_v35  ;;  %v6197_v6 = vld [vmem:[#allocation2 + $0x44] sm:$0x1] }
 0x37f   : > { %v5911_v43 = vrot.slane %v5906_v35, 4  ;;  %v5892_v1 = vor.u32 %v5890_v47, %v5889_v9  ;;  %v5894_v23 = vrot.slane %v5889_v9, 4  ;;  %v5569_v31 = vpop.f32.mrb[15].mxu0  ;;  %v5935_v52 = vor.u32 %v5933_v17, %v17379_v5 }
 0x380   : > { %v5936_v29 = vrot.slane %v17379_v5, 4  ;;  %v5918_v25 = vor.u32 %v5916_v12, %v17381_v10  ;;  %v5919_v14 = vrot.slane %v17381_v10, 4  ;;  %v5910_v61 = vsel %vm15580_vm11, %v5902_v33, %v5909_v19  ;;  %v6207_v19 = vld [vmem:[#allocation2 + $0x54] sm:$0xf] }
 0x381   : > { %v6191_v57 = vsel %vm15541_vm6, %v5911_v43, %v6190_v20  ;;  %v5893_v45 = vsel %vm15580_vm11, %v5885_v18, %v5892_v1  ;;  %v6184_v27 = vsel %vm15541_vm6, %v5894_v23, %v6183_v42  ;;  %6189 = vst [vmem:[#allocation2 + $0x34] sm:$0xf] %v5910_v61  ;;  %v6201_v48 = vsel %vm17348_vm9, %v5935_v52, %v6200_v63 }
 0x382   : > { %6192 = vst [vmem:[#allocation2 + $0x38] sm:$0x1] %v6191_v57  ;;  %6182 = vst [vmem:[#allocation2 + $0x28] sm:$0xf] %v5893_v45  ;;  %v6194_v26 = vsel %vm17348_vm9, %v5918_v25, %v6193_v60  ;;  %v13274_v34 = vpack.c.bf16 %v5727_v4, %v5727_v4  ;;  %v13272_v51 = vpack.c.bf16 %v5725_v22, %v5725_v22  ;;  %v5730_v33 = vmax.f32 %v5698_v8, 0.0 }
 0x383   : > { %6185 = vst [vmem:[#allocation2 + $0x2c] sm:$0x1] %v6184_v27  ;;  %6202 = vst [vmem:[#allocation2 + $0x48] sm:$0xf] %v6201_v48  ;;  %v5728_v13 = vmax.f32 %v5696_v38, 0.0  ;;  %v5699_v0 = vadd.f32 %v14218_v40, %v17340_v62  ;;  %v5697_v53 = vadd.f32 %v17340_v62, %v5569_v31 }
 0x384   : > { %6195 = vst [vmem:[#allocation2 + $0x3c] sm:$0xf] %v6194_v26  ;;  %v5938_v50 = vshrl.u32 %v13274_v34, 16  ;;  %v5941_v32 = vshll.u32 %v13274_v34, 16  ;;  %v5921_v18 = vshrl.u32 %v13272_v51, 16  ;;  %v5924_v44 = vshll.u32 %v13272_v51, 16 }
 0x385   : > { %v14221_v30 = vpop.f32.mrb[16].mxu0  ;;  %v13277_v41 = vpack.c.bf16 %v5730_v33, %v5730_v33  ;;  %v13275_v3 = vpack.c.bf16 %v5728_v13, %v5728_v13  ;;  %v5731_v59 = vmax.f32 %v5699_v0, 0.0  ;;  %v5729_v24 = vmax.f32 %v5697_v53, 0.0  ;;  %v6214_v40 = vld [vmem:[#allocation2 + $0x60] sm:$0xf] }
 0x386   : > { %v5582_v21 = vpop.f32.mrb[17].mxu0  ;;  %v5940_v2 = vrot.slane %v5938_v50, 7  ;;  %v5923_v11 = vrot.slane %v5921_v18, 7  ;;  %v5702_v55 = vadd.f32 %v14221_v30, %v17340_v62  ;;  %v6279_v31 = vld [vmem:[#allocation2 + $0xc] sm:$0xf] }
 0x387   : > { %v5700_v15 = vadd.f32 %v17340_v62, %v5582_v21  ;;  %v14222_v47 = vpop.f32.mrb[18].mxu0  ;;  %v5964_v20 = vshrl.u32 %v13277_v41, 16  ;;  %v5967_v42 = vshll.u32 %v13277_v41, 16  ;;  %v5947_v37 = vshrl.u32 %v13275_v3, 16  ;;  %v6218_v27 = vld [vmem:[#allocation2 + $0x68] sm:$0x1] }
 0x388   : > { %v5950_v17 = vshll.u32 %v13275_v3, 16  ;;  %v5585_v54 = vpop.f32.mrb[19].mxu0  ;;  %v5943_v12 = vor.u32 %v5941_v32, %v5940_v2  ;;  %v5945_v56 = vrot.slane %v5940_v2, 4  ;;  %v5926_v35 = vor.u32 %v5924_v44, %v5923_v11  ;;  %v6211_v48 = vld [vmem:[#allocation2 + $0x5c] sm:$0x1] }
 0x389   : > { %v5928_v9 = vrot.slane %v5923_v11, 4  ;;  %v5966_v4 = vrot.slane %v5964_v20, 7  ;;  %v5949_v22 = vrot.slane %v5947_v37, 7  ;;  %v13278_v46 = vpack.c.bf16 %v5731_v59, %v5731_v59  ;;  %v6280_v44 = vld [vmem:[#allocation2 + $0x10] sm:$0xf] }
 0x38a   : > { %v13276_v5 = vpack.c.bf16 %v5729_v24, %v5729_v24  ;;  %v5944_v63 = vsel %vm15580_vm11, %v5936_v29, %v5943_v12  ;;  %v6205_v10 = vsel %vm15541_vm6, %v5945_v56, %v6204_v58  ;;  %v5927_v8 = vsel %vm15580_vm11, %v5919_v14, %v5926_v35  ;;  %v6228_v37 = vld [vmem:[#allocation2 + $0x78] sm:$0xf]  ;;  %v10582_v16 = vld [vmem:[#allocation2 + $0x24] sm:$0xe] }
 0x38b   : > { %v6198_v38 = vsel %vm15541_vm6, %v5928_v9, %v6197_v6  ;;  %6203 = vst [vmem:[#allocation2 + $0x4c] sm:$0xf] %v5944_v63  ;;  %6206 = vst [vmem:[#allocation2 + $0x50] sm:$0x1] %v6205_v10  ;;  %v5969_v43 = vor.u32 %v5967_v42, %v5966_v4  ;;  %v5970_v1 = vrot.slane %v5966_v4, 4  ;;  %v5952_v23 = vor.u32 %v5950_v17, %v5949_v22 }
 0x38c   : > { %6196 = vst [vmem:[#allocation2 + $0x40] sm:$0xf] %v5927_v8  ;;  %6199 = vst [vmem:[#allocation2 + $0x44] sm:$0x1] %v6198_v38  ;;  %v5953_v60 = vrot.slane %v5949_v22, 4  ;;  %v5972_v52 = vshrl.u32 %v13278_v46, 16  ;;  %v5703_v0 = vadd.f32 %v14222_v47, %v17340_v62  ;;  %v5701_v53 = vadd.f32 %v17340_v62, %v5585_v54 }
 0x38d   : > { %v5975_v29 = vshll.u32 %v13278_v46, 16  ;;  %v5955_v25 = vshrl.u32 %v13276_v5, 16  ;;  %v5958_v61 = vshll.u32 %v13276_v5, 16  ;;  %v17413_v57 = vpop.f32.mrb[20].mxu0  ;;  %v6215_v14 = vsel %vm17348_vm9, %v5969_v43, %v6214_v40  ;;  %v6221_v17 = vld [vmem:[#allocation2 + $0x6c] sm:$0xf] }
 0x38e   : > { %v6208_v45 = vsel %vm17348_vm9, %v5952_v23, %v6207_v19  ;;  %v5734_v26 = vmax.f32 %v5702_v55, 0.0  ;;  %v5732_v34 = vmax.f32 %v5700_v15, 0.0  ;;  %v17419_v51 = vpop.f32.mrb[21].mxu0  ;;  %6216 = vst [vmem:[#allocation2 + $0x60] sm:$0xf] %v6215_v14  ;;  %v5974_v33 = vrot.slane %v5972_v52, 7 }
 0x38f   : > { %6209 = vst [vmem:[#allocation2 + $0x54] sm:$0xf] %v6208_v45  ;;  %v5957_v13 = vrot.slane %v5955_v25, 7  ;;  %v17423_v50 = vpop.f32.mrb[22].mxu0  ;;  %v6367_v30 = vshrl.u32 %v6279_v31, 16  ;;  %v6370_v58 = vshll.u32 %v6279_v31, 16 }
 0x390   : > { %v13281_v32 = vpack.c.bf16 %v5734_v26, %v5734_v26  ;;  %v13279_v18 = vpack.c.bf16 %v5732_v34, %v5732_v34  ;;  %v17425_v41 = vpop.f32.mrb[23].mxu0  ;;  %v5977_v3 = vor.u32 %v5975_v29, %v5974_v33  ;;  %v5979_v59 = vrot.slane %v5974_v33, 4  ;;  %v6327_v9 = vld [vmem:[#allocation2 + $0x14] sm:$0x1]  ;;  %v6282_v14 = vld [vmem:[#allocation2 + $0x1c] sm:$0xf] }
 0x391   : > { %v5960_v24 = vor.u32 %v5958_v61, %v5957_v13  ;;  %v5962_v21 = vrot.slane %v5957_v13, 4  ;;  %v5735_v56 = vmax.f32 %v5703_v0, 0.0  ;;  %v5733_v35 = vmax.f32 %v5701_v53, 0.0 }
 0x392   : > { %v5998_v2 = vshrl.u32 %v13281_v32, 16  ;;  %v6001_v11 = vshll.u32 %v13281_v32, 16  ;;  %v5981_v6 = vshrl.u32 %v13279_v18, 16  ;;  %v5984_v55 = vshll.u32 %v13279_v18, 16  ;;  %v6232_v18 = vld [vmem:[#allocation2 + $0x80] sm:$0x1] }
 0x393   : > { %v5978_v15 = vsel %vm15580_vm11, %v5970_v1, %v5977_v3  ;;  %v6219_v47 = vsel %vm15541_vm6, %v5979_v59, %v6218_v27  ;;  %v5961_v20 = vsel %vm15580_vm11, %v5953_v60, %v5960_v24  ;;  %v6212_v42 = vsel %vm15541_vm6, %v5962_v21, %v6211_v48  ;;  %v6281_v60 = vld [vmem:[#allocation2 + $0x18] sm:$0xf]  ;;  %v6225_v3 = vld [vmem:[#allocation2 + $0x74] sm:$0x1] }
 0x394   : > { %6217 = vst [vmem:[#allocation2 + $0x64] sm:$0xf] %v5978_v15  ;;  %6220 = vst [vmem:[#allocation2 + $0x68] sm:$0x1] %v6219_v47  ;;  %v6000_v54 = vrot.slane %v5998_v2, 7  ;;  %v5983_v12 = vrot.slane %v5981_v6, 7  ;;  %v13282_v19 = vpack.c.bf16 %v5735_v56, %v5735_v56  ;;  %v13280_v43 = vpack.c.bf16 %v5733_v35, %v5733_v35 }
 0x395   : > { %6210 = vst [vmem:[#allocation2 + $0x58] sm:$0xf] %v5961_v20  ;;  %6213 = vst [vmem:[#allocation2 + $0x5c] sm:$0x1] %v6212_v42  ;;  %v6369_v4 = vrot.slane %v6367_v30, 4  ;;  %v6372_v22 = vrot.slane %v6370_v58, 5 }
 0x396   : > { %v6376_v46 = vshll.u32 %v6280_v44, 16  ;;  %v6380_v5 = vshrl.u32 %v6280_v44, 16  ;;  %v17435_v63 = vpop.f32.mrb[24].mxu0  ;;  %v6003_v10 = vor.u32 %v6001_v11, %v6000_v54  ;;  %v6004_v8 = vrot.slane %v6000_v54, 4  ;;  %v6328_v47 = vld [vmem:[#allocation2 + $0x20] sm:$0x1] }
 0x397   : > { %v5986_v38 = vor.u32 %v5984_v55, %v5983_v12  ;;  %v17437_v40 = vpop.f32.mrb[25].mxu0  ;;  %v6373_v1 = vor.u32 %v6372_v22, %v6369_v4  ;;  %v6386_v61 = vshll.u32 %v6327_v9, 16  ;;  %v5987_v27 = vrot.slane %v5983_v12, 4  ;;  %v6283_v12 = vld [vmem:[#allocation2 + $0x24] sm:$0xf] }
 0x398   : > { %v6378_v23 = vrot.slane %v6376_v46, 5  ;;  %v17439_v31 = vpop.f32.mrb[26].mxu0  ;;  %v6229_v52 = vsel %vm17348_vm9, %v6003_v10, %v6228_v37  ;;  %v6382_v25 = vrot.slane %v6380_v5, 4  ;;  %v6006_v48 = vshrl.u32 %v13282_v19, 16 }
 0x399   : > { %v6222_v29 = vsel %vm17348_vm9, %v5986_v38, %v6221_v17  ;;  %v17445_v45 = vpop.f32.mrb[27].mxu0  ;;  %6230 = vst [vmem:[#allocation2 + $0x78] sm:$0xf] %v6229_v52  ;;  %v6009_v26 = vshll.u32 %v13282_v19, 16  ;;  %v5989_v34 = vshrl.u32 %v13280_v43, 16  ;;  %v5992_v33 = vshll.u32 %v13280_v43, 16 }
 0x39a   : > { %6223 = vst [vmem:[#allocation2 + $0x6c] sm:$0xf] %v6222_v29  ;;  %v6374_v13 = vrot.slane %v6373_v1, 4  ;;  %v6383_v0 = vor.u32 %v6382_v25, %v6378_v23  ;;  %v6388_v53 = vrot.slane %v6386_v61, 5  ;;  %v6008_v32 = vrot.slane %v6006_v48, 7 }
 0x39b   : > { %v5991_v44 = vrot.slane %v5989_v34, 7  ;;  %v6391_v30 = vshrl.u32 %v6281_v60, 16  ;;  %v6394_v58 = vshll.u32 %v6281_v60, 16  ;;  %v6400_v21 = vshll.u32 %v6282_v14, 16  ;;  %v17478_v29 = vld [vmem:[#allocation2 + $0x28] sm:$0xf] }
 0x39c   : > { %v6379_v59 = vsel %vm15535_vm4, %v6374_v13, %v6378_v23  ;;  %v6384_v24 = vrot.slane %v6383_v0, 4  ;;  %v6404_v2 = vshrl.u32 %v6282_v14, 16  ;;  %v6011_v11 = vor.u32 %v6009_v26, %v6008_v32  ;;  %v17449_v20 = vpop.f32.mrb[28].mxu0  ;;  %v15303_v13 = vld [vmem:[%s19153_s1 + $0x250] sm:$0xff]  }
 0x39d   : > { %v6013_v6 = vrot.slane %v6008_v32, 4  ;;  %v5994_v55 = vor.u32 %v5992_v33, %v5991_v44  ;;  %v5996_v15 = vrot.slane %v5991_v44, 4  ;;  %v6393_v37 = vrot.slane %v6391_v30, 4  ;;  %v17453_v56 = vpop.f32.mrb[29].mxu0 }
 0x39e   : > { %v6389_v42 = vsel %vm15535_vm4, %v6384_v24, %v6388_v53  ;;  %v6396_v17 = vrot.slane %v6394_v58, 5  ;;  %v6402_v54 = vrot.slane %v6400_v21, 5  ;;  %v6012_v35 = vsel %vm15580_vm11, %v6004_v8, %v6011_v11  ;;  %v17463_v46 = vpop.f32.mrb[30].mxu0  ;;  %v15302_v8 = vld [vmem:[%s19153_s1 + $0x248] sm:$0xff]  }
 0x39f   : > { %v6233_v9 = vsel %vm15541_vm6, %v6013_v6, %v6232_v18  ;;  %v5995_v4 = vsel %vm15580_vm11, %v5987_v27, %v5994_v55  ;;  %v6226_v22 = vsel %vm15541_vm6, %v5996_v15, %v6225_v3  ;;  %6231 = vst [vmem:[#allocation2 + $0x7c] sm:$0xf] %v6012_v35  ;;  %v12850_v5 = vcombine.low %v6379_v59, %v6389_v42  ;;  %v17468_v43 = vpop.f32.mrb[31].mxu0  ;;  %v6235_v6 = vld [vmem:[#allocation2 + $0x84] sm:$0xf]  ;;  %v15304_v42 = vld [vmem:[%s19153_s1 + $0x258] sm:$0xff]  }
 0x3a0   : > { %6234 = vst [vmem:[#allocation2 + $0x80] sm:$0x1] %v6233_v9  ;;  %6224 = vst [vmem:[#allocation2 + $0x70] sm:$0xf] %v5995_v4  ;;  %v6397_v10 = vor.u32 %v6396_v17, %v6393_v37  ;;  %v6406_v38 = vrot.slane %v6404_v2, 4  ;;  %v6410_v19 = vshll.u32 %v6328_v47, 16  ;;  %v5706_v1 = vadd.f32 %v17413_v57, %v17340_v62 }
 0x3a1   : > { %6227 = vst [vmem:[#allocation2 + $0x74] sm:$0x1] %v6226_v22  ;;  %v5704_v23 = vadd.f32 %v17340_v62, %v17419_v51  ;;  %v5707_v60 = vadd.f32 %v17423_v50, %v17340_v62  ;;  %v5705_v52 = vadd.f32 %v17340_v62, %v17425_v41  ;;  %14252 = vmatmul.mubr.bf16.vlgmr.msra.gmra.mrb[0].mxu1 %v12850_v5  ;;  %v6415_v27 = vshrl.u32 %v6283_v12, 16  ;;  %v6242_v2 = vld [vmem:[#allocation2 + $0x90] sm:$0xf] }
 0x3a2   : > { %v6398_v25 = vrot.slane %v6397_v10, 4  ;;  %v6407_v61 = vor.u32 %v6406_v38, %v6402_v54  ;;  %v6412_v14 = vrot.slane %v6410_v19, 5  ;;  %14284 = vmatpush3.bf16.msra.mxu1 %v17334_v36  ;;  %v5738_v48 = vmax.f32 %v5706_v1, 0.0  ;;  %v6239_v35 = vld [vmem:[#allocation2 + $0x8c] sm:$0x1]  ;;  %v15305_v38 = vld [vmem:[%s19153_s1 + $0x260] sm:$0xff]  }
 0x3a3   : > { %v5736_v57 = vmax.f32 %v5704_v23, 0.0  ;;  %v5739_v26 = vmax.f32 %v5707_v60, 0.0  ;;  %v5737_v34 = vmax.f32 %v5705_v52, 0.0  ;;  %14285 = vmatprep.subr.bf16.mxu1 %v15302_v8  ;;  %v6417_v33 = vrot.slane %v6415_v27, 4  ;;  %v17496_v27 = vld [vmem:[#allocation2 + $0x30] sm:$0xf] }
 0x3a4   : > { %v6403_v51 = vsel %vm15535_vm4, %v6398_v25, %v6402_v54  ;;  %v6408_v50 = vrot.slane %v6407_v61, 4  ;;  %v6418_v41 = vshll.u32 %v6283_v12, 16  ;;  %v13285_v0 = vpack.c.bf16 %v5738_v48, %v5738_v48  ;;  %v6246_v54 = vld [vmem:[#allocation2 + $0x98] sm:$0x1] }
 0x3a5   : > { %v13283_v53 = vpack.c.bf16 %v5736_v57, %v5736_v57  ;;  %v13286_v32 = vpack.c.bf16 %v5739_v26, %v5739_v26  ;;  %v13284_v18 = vpack.c.bf16 %v5737_v34, %v5737_v34  ;;  %v6424_v30 = vshll.u32 %v17478_v29, 16 }
 0x3a6   : > { %v6413_v36 = vsel %vm15535_vm4, %v6408_v50, %v6412_v14  ;;  %v6420_v44 = vrot.slane %v6418_v41, 5  ;;  %v6428_v58 = vshrl.u32 %v17478_v29, 16  ;;  %v6032_v59 = vshrl.u32 %v13285_v0, 16  ;;  %14286 = vmatpush3.bf16.msra.mxu1 %v15302_v8  ;;  %v6329_v14 = vld [vmem:[#allocation2 + $0x2c] sm:$0x1] }
 0x3a7   : > { %v12851_v3 = vcombine.low %v6403_v51, %v6413_v36  ;;  %v6035_v24 = vshll.u32 %v13285_v0, 16  ;;  %v6015_v21 = vshrl.u32 %v13283_v53, 16  ;;  %v6018_v11 = vshll.u32 %v13283_v53, 16  ;;  %14287 = vmatprep.subr.bf16.mxu1 %v15303_v13  ;;  %v17502_v51 = vld [vmem:[#allocation2 + $0x34] sm:$0xf] }
 0x3a8   : > { %v6040_v55 = vshrl.u32 %v13286_v32, 16  ;;  %v6043_v15 = vshll.u32 %v13286_v32, 16  ;;  %v6023_v47 = vshrl.u32 %v13284_v18, 16  ;;  %v6034_v37 = vrot.slane %v6032_v59, 7  ;;  %v17504_v50 = vld [vmem:[#allocation2 + $0x38] sm:$0x1] }
 0x3a9   : > { %14255 = vmatprep.mubr.bf16.mxu1 %v12851_v3  ;;  %v6017_v17 = vrot.slane %v6015_v21, 7  ;;  %v6026_v12 = vshll.u32 %v13284_v18, 16  ;;  %v6421_v9 = vor.u32 %v6420_v44, %v6417_v33  ;;  %v6426_v5 = vrot.slane %v6424_v30, 5  ;;  %v15306_v59 = vld [vmem:[%s19153_s1 + $0x268] sm:$0xff]  }
 0x3aa   : > { %v6042_v4 = vrot.slane %v6040_v55, 7  ;;  %v6025_v22 = vrot.slane %v6023_v47, 7  ;;  %v6430_v10 = vrot.slane %v6428_v58, 4  ;;  %v6037_v19 = vor.u32 %v6035_v24, %v6034_v37  ;;  %14288 = vmatpush3.bf16.msra.mxu1 %v15303_v13 }
 0x3ab   : > { %v6038_v8 = vrot.slane %v6034_v37, 4  ;;  %v6020_v1 = vor.u32 %v6018_v11, %v6017_v17  ;;  %v6021_v23 = vrot.slane %v6017_v17, 4  ;;  %14289 = vmatprep.subr.bf16.mxu1 %v15304_v42  ;;  %v6422_v26 = vrot.slane %v6421_v9, 4 }
 0x3ac   : > { %v6045_v60 = vor.u32 %v6043_v15, %v6042_v4  ;;  %v6047_v52 = vrot.slane %v6042_v4, 4  ;;  %v6028_v25 = vor.u32 %v6026_v12, %v6025_v22  ;;  %v6030_v61 = vrot.slane %v6025_v22, 4  ;;  %v15307_v4 = vld [vmem:[%s19153_s1 + $0x270] sm:$0xff]  }
 0x3ad   : > { %v6243_v48 = vsel %vm17348_vm9, %v6037_v19, %v6242_v2  ;;  %v6236_v57 = vsel %vm17348_vm9, %v6020_v1, %v6235_v6  ;;  %v6431_v34 = vor.u32 %v6430_v10, %v6426_v5  ;;  %v6427_v53 = vsel %vm15535_vm4, %v6422_v26, %v6426_v5  ;;  %v15308_v26 = vld [vmem:[%s19153_s1 + $0x278] sm:$0xff]  }
 0x3ae   : > { %6244 = vst [vmem:[#allocation2 + $0x90] sm:$0xf] %v6243_v48  ;;  %6237 = vst [vmem:[#allocation2 + $0x84] sm:$0xf] %v6236_v57  ;;  %v6046_v33 = vsel %vm15580_vm11, %v6038_v8, %v6045_v60  ;;  %v6247_v41 = vsel %vm15541_vm6, %v6047_v52, %v6246_v54  ;;  %v6029_v13 = vsel %vm15580_vm11, %v6021_v23, %v6028_v25  ;;  %v6434_v18 = vshll.u32 %v6329_v14, 16 }
 0x3af   : > { %v6240_v0 = vsel %vm15541_vm6, %v6030_v61, %v6239_v35  ;;  %6245 = vst [vmem:[#allocation2 + $0x94] sm:$0xf] %v6046_v33  ;;  %6248 = vst [vmem:[#allocation2 + $0x98] sm:$0x1] %v6247_v41  ;;  %v6432_v32 = vrot.slane %v6431_v34, 4  ;;  %v6439_v36 = vshrl.u32 %v17496_v27, 16  ;;  %14290 = vmatpush3.bf16.msra.mxu1 %v15304_v42  ;;  %v5710_v2 = vadd.f32 %v17435_v63, %v17340_v62 }
 0x3b0   : > { %6238 = vst [vmem:[#allocation2 + $0x88] sm:$0xf] %v6029_v13  ;;  %6241 = vst [vmem:[#allocation2 + $0x8c] sm:$0x1] %v6240_v0  ;;  %v6442_v44 = vshll.u32 %v17496_v27, 16  ;;  %v6448_v30 = vshll.u32 %v17502_v51, 16  ;;  %14291 = vmatprep.subr.bf16.mxu1 %v15305_v38  ;;  %v5708_v11 = vadd.f32 %v17340_v62, %v17437_v40  ;;  %v5711_v12 = vadd.f32 %v17439_v31, %v17340_v62 }
 0x3b1   : > { %v6452_v58 = vshrl.u32 %v17502_v51, 16  ;;  %v6458_v3 = vshll.u32 %v17504_v50, 16  ;;  %v6436_v24 = vrot.slane %v6434_v18, 5  ;;  %v6441_v21 = vrot.slane %v6439_v36, 4  ;;  %v17528_v42 = vld [vmem:[#allocation2 + $0x3c] sm:$0xf] }
 0x3b2   : > { %v6444_v6 = vrot.slane %v6442_v44, 5  ;;  %v6450_v55 = vrot.slane %v6448_v30, 5  ;;  %v5742_v17 = vmax.f32 %v5710_v2, 0.0  ;;  %v5740_v54 = vmax.f32 %v5708_v11, 0.0  ;;  %v6256_v61 = vld [vmem:[#allocation2 + $0xa8] sm:$0xf] }
 0x3b3   : > { %v6454_v15 = vrot.slane %v6452_v58, 4  ;;  %v6460_v47 = vrot.slane %v6458_v3, 5  ;;  %v6437_v37 = vsel %vm15535_vm4, %v6432_v32, %v6436_v24  ;;  %14292 = vmatpush3.bf16.msra.mxu1 %v15305_v38  ;;  %v5709_v40 = vadd.f32 %v17340_v62, %v17445_v45  ;;  %v6249_v14 = vld [vmem:[#allocation2 + $0x9c] sm:$0xf]  ;;  %v17548_v13 = vld [vmem:[#allocation2 + $0x40] sm:$0xf] }
 0x3b4   : > { %v12852_v35 = vcombine.low %v6427_v53, %v6437_v37  ;;  %v6445_v63 = vor.u32 %v6444_v6, %v6441_v21  ;;  %14293 = vmatprep.subr.bf16.mxu1 %v15306_v59  ;;  %v13289_v22 = vpack.c.bf16 %v5742_v17, %v5742_v17  ;;  %v13287_v5 = vpack.c.bf16 %v5740_v54, %v5740_v54  ;;  %v17550_v44 = vld [vmem:[#allocation2 + $0x44] sm:$0x1]  ;;  %v6260_v24 = vld [vmem:[#allocation2 + $0xb0] sm:$0x1] }
 0x3b5   : > { %v6455_v9 = vor.u32 %v6454_v15, %v6450_v55  ;;  %v5743_v10 = vmax.f32 %v5711_v12, 0.0  ;;  %v6463_v19 = vshrl.u32 %v17528_v42, 16  ;;  %v5741_v38 = vmax.f32 %v5709_v40, 0.0  ;;  %v6253_v21 = vld [vmem:[#allocation2 + $0xa4] sm:$0x1] }
 0x3b6   : > { %14256 = vmatmul.mubr.bf16.gmra.mrb[4].mxu1 %v12852_v35  ;;  %v6446_v8 = vrot.slane %v6445_v63, 4  ;;  %v6466_v1 = vshll.u32 %v17528_v42, 16  ;;  %v6066_v23 = vshrl.u32 %v13289_v22, 16  ;;  %v6069_v60 = vshll.u32 %v13289_v22, 16  ;;  %v17556_v15 = vld [vmem:[%s19153_s1 + $0x2c0] sm:$0xff]  }
 0x3b7   : > { %v6456_v31 = vrot.slane %v6455_v9, 4  ;;  %v6049_v52 = vshrl.u32 %v13287_v5, 16  ;;  %v6052_v62 = vshll.u32 %v13287_v5, 16  ;;  %14294 = vmatpush3.bf16.msra.mxu1 %v15306_v59  ;;  %v13290_v48 = vpack.c.bf16 %v5743_v10, %v5743_v10  ;;  %v17564_v12 = vld [vmem:[#allocation2 + $0x48] sm:$0xf] }
 0x3b8   : > { %v6451_v45 = vsel %vm15535_vm4, %v6446_v8, %v6450_v55  ;;  %v13288_v57 = vpack.c.bf16 %v5741_v38, %v5741_v38  ;;  %14295 = vmatprep.subr.bf16.mxu1 %v15307_v4  ;;  %v6068_v33 = vrot.slane %v6066_v23, 7  ;;  %v6465_v0 = vrot.slane %v6463_v19, 4  ;;  %v17568_v8 = vld [vmem:[#allocation2 + $0x50] sm:$0x1] }
 0x3b9   : > { %v6461_v25 = vsel %vm15535_vm4, %v6456_v31, %v6460_v47  ;;  %v6051_v41 = vrot.slane %v6049_v52, 7  ;;  %v6074_v53 = vshrl.u32 %v13290_v48, 16  ;;  %v6077_v32 = vshll.u32 %v13290_v48, 16  ;;  %v15445_v48 = vld [vmem:[%s19154_s2] ss:$0 sm:$0xff] }
 0x3ba   : > { %v12853_v34 = vcombine.low %v6451_v45, %v6461_v25  ;;  %v6057_v18 = vshrl.u32 %v13288_v57, 16  ;;  %v6060_v36 = vshll.u32 %v13288_v57, 16  ;;  %v6071_v30 = vor.u32 %v6069_v60, %v6068_v33 }
 0x3bb   : > { %v6072_v58 = vrot.slane %v6068_v33, 4  ;;  %v6054_v3 = vor.u32 %v6052_v62, %v6051_v41  ;;  %v6055_v59 = vrot.slane %v6051_v41, 4  ;;  %14296 = vmatpush3.bf16.msra.mxu1 %v15307_v4  ;;  %v6076_v2 = vrot.slane %v6074_v53, 7  ;;  %v17566_v4 = vld [vmem:[#allocation2 + $0x4c] sm:$0xf] }
 0x3bc   : > { %14259 = vmatprep.mubr.bf16.mxu1 %v12853_v34  ;;  %v6059_v11 = vrot.slane %v6057_v18, 7  ;;  %v6468_v6 = vrot.slane %v6466_v1, 5  ;;  %v6472_v55 = vshll.u32 %v17548_v13, 16  ;;  %14297 = vmatprep.subr.bf16.mxu1 %v15308_v26  ;;  %v6257_v47 = vsel %vm17348_vm9, %v6071_v30, %v6256_v61 }
 0x3bd   : > { %v6250_v37 = vsel %vm17348_vm9, %v6054_v3, %v6249_v14  ;;  %v6476_v17 = vshrl.u32 %v17548_v13, 16  ;;  %v6482_v54 = vshll.u32 %v17550_v44, 16  ;;  %6258 = vst [vmem:[#allocation2 + $0xa8] sm:$0xf] %v6257_v47  ;;  %v6079_v35 = vor.u32 %v6077_v32, %v6076_v2 }
 0x3be   : > { %6251 = vst [vmem:[#allocation2 + $0x9c] sm:$0xf] %v6250_v37  ;;  %v6081_v63 = vrot.slane %v6076_v2, 4  ;;  %v6062_v9 = vor.u32 %v6060_v36, %v6059_v11  ;;  %v6064_v40 = vrot.slane %v6059_v11, 4  ;;  %v6469_v22 = vor.u32 %v6468_v6, %v6465_v0  ;;  %v17590_v36 = vld [vmem:[#allocation2 + $0x54] sm:$0xf] }
 0x3bf   : > { %v6474_v5 = vrot.slane %v6472_v55, 5  ;;  %v6478_v10 = vrot.slane %v6476_v17, 4  ;;  %v6484_v19 = vrot.slane %v6482_v54, 5  ;;  %14298 = vmatpush3.bf16.msra.mxu1 %v15308_v26  ;;  %v6080_v31 = vsel %vm15580_vm11, %v6072_v58, %v6079_v35 }
 0x3c0   : > { %v6261_v38 = vsel %vm15541_vm6, %v6081_v63, %v6260_v24  ;;  %v6063_v1 = vsel %vm15580_vm11, %v6055_v59, %v6062_v9  ;;  %v6254_v23 = vsel %vm15541_vm6, %v6064_v40, %v6253_v21  ;;  %14331 = vmatprep.subr.bf16.mxu1 %v17556_v15  ;;  %6259 = vst [vmem:[#allocation2 + $0xac] sm:$0xf] %v6080_v31  ;;  %v6470_v60 = vrot.slane %v6469_v22, 4  ;;  %v6270_v63 = vld [vmem:[#allocation2 + $0xc0] sm:$0xf] }
 0x3c1   : > { %6262 = vst [vmem:[#allocation2 + $0xb0] sm:$0x1] %v6261_v38  ;;  %6252 = vst [vmem:[#allocation2 + $0xa0] sm:$0xf] %v6063_v1  ;;  %v6479_v52 = vor.u32 %v6478_v10, %v6474_v5  ;;  %v6487_v62 = vshrl.u32 %v17564_v12, 16  ;;  %v6490_v45 = vshll.u32 %v17564_v12, 16  ;;  %v5714_v57 = vadd.f32 %v15445_v48, %v17449_v20 }
 0x3c2   : > { %6255 = vst [vmem:[#allocation2 + $0xa4] sm:$0x1] %v6254_v23  ;;  %v6496_v25 = vshll.u32 %v17566_v4, 16  ;;  %v6500_v61 = vshrl.u32 %v17566_v4, 16  ;;  %v6506_v14 = vshll.u32 %v17568_v8, 16  ;;  %v6475_v26 = vsel %vm15535_vm4, %v6470_v60, %v6474_v5 }
 0x3c3   : > { %v6480_v34 = vrot.slane %v6479_v52, 4  ;;  %v6489_v33 = vrot.slane %v6487_v62, 4  ;;  %v6492_v41 = vrot.slane %v6490_v45, 5  ;;  %v5746_v18 = vmax.f32 %v5714_v57, 0.0  ;;  %v17602_v10 = vld [vmem:[#allocation2 + $0x58] sm:$0xf] }
 0x3c4   : > { %v6498_v0 = vrot.slane %v6496_v25, 5  ;;  %v6502_v53 = vrot.slane %v6500_v61, 4  ;;  %v6508_v32 = vrot.slane %v6506_v14, 5  ;;  %v5712_v3 = vadd.f32 %v15445_v48, %v17453_v56  ;;  %v6263_v61 = vld [vmem:[#allocation2 + $0xb4] sm:$0xf] }
 0x3c5   : > { %v6485_v30 = vsel %vm15535_vm4, %v6480_v34, %v6484_v19  ;;  %v6493_v58 = vor.u32 %v6492_v41, %v6489_v33  ;;  %v5715_v20 = vadd.f32 %v15445_v48, %v17463_v46  ;;  %v13293_v21 = vpack.c.bf16 %v5746_v18, %v5746_v18  ;;  %v6274_v34 = vld [vmem:[#allocation2 + $0xc8] sm:$0x1] }
 0x3c6   : > { %v12854_v59 = vcombine.low %v6475_v26, %v6485_v30  ;;  %v6503_v24 = vor.u32 %v6502_v53, %v6498_v0  ;;  %v5713_v2 = vadd.f32 %v15445_v48, %v17468_v43  ;;  %v5744_v6 = vmax.f32 %v5712_v3, 0.0  ;;  %v17609_v3 = vld [vmem:[#allocation2 + $0x5c] sm:$0x1] }
 0x3c7   : > { %v6494_v11 = vrot.slane %v6493_v58, 4  ;;  %v5747_v55 = vmax.f32 %v5715_v20, 0.0  ;;  %v6511_v47 = vshrl.u32 %v17590_v36, 16  ;;  %v6100_v17 = vshrl.u32 %v13293_v21, 16  ;;  %v6267_v58 = vld [vmem:[#allocation2 + $0xbc] sm:$0x1] }
 0x3c8   : > { %14260 = vmatmul.mubr.bf16.gmra.mrb[8].mxu1 %v12854_v59  ;;  %v6504_v37 = vrot.slane %v6503_v24, 4  ;;  %v6103_v54 = vshll.u32 %v13293_v21, 16  ;;  %v5745_v35 = vmax.f32 %v5713_v2, 0.0  ;;  %v13291_v46 = vpack.c.bf16 %v5744_v6, %v5744_v6  ;;  %v17611_v2 = vld [vmem:[#allocation2 + $0x60] sm:$0xf] }
 0x3c9   : > { %v6499_v56 = vsel %vm15535_vm4, %v6494_v11, %v6498_v0  ;;  %v13294_v9 = vpack.c.bf16 %v5747_v55, %v5747_v55  ;;  %v6513_v40 = vrot.slane %v6511_v47, 4  ;;  %v6102_v22 = vrot.slane %v6100_v17, 7  ;;  %v17613_v11 = vld [vmem:[#allocation2 + $0x64] sm:$0xf]  ;;  %v17621_v17 = vld [vmem:[#allocation2 + $0x68] sm:$0x1] }
 0x3ca   : > { %v6509_v43 = vsel %vm15535_vm4, %v6504_v37, %v6508_v32  ;;  %v13292_v5 = vpack.c.bf16 %v5745_v35, %v5745_v35  ;;  %v6514_v19 = vshll.u32 %v17590_v36, 16  ;;  %v6083_v38 = vshrl.u32 %v13291_v46, 16 }
 0x3cb   : > { %v12855_v31 = vcombine.low %v6499_v56, %v6509_v43  ;;  %v6086_v1 = vshll.u32 %v13291_v46, 16  ;;  %v6108_v23 = vshrl.u32 %v13294_v9, 16  ;;  %v6105_v60 = vor.u32 %v6103_v54, %v6102_v22 }
 0x3cc   : > { %v6106_v52 = vrot.slane %v6102_v22, 4  ;;  %v6111_v62 = vshll.u32 %v13294_v9, 16  ;;  %v6091_v45 = vshrl.u32 %v13292_v5, 16  ;;  %v6085_v25 = vrot.slane %v6083_v38, 7  ;;  %v17631_v22 = vld [vmem:[#allocation2 + $0x6c] sm:$0xf] }
 0x3cd   : > { %14263 = vmatprep.mubr.bf16.mxu1 %v12855_v31  ;;  %v6110_v14 = vrot.slane %v6108_v23, 7  ;;  %v6094_v48 = vshll.u32 %v13292_v5, 16  ;;  %v6516_v57 = vrot.slane %v6514_v19, 5  ;;  %v6271_v26 = vsel %vm17348_vm9, %v6105_v60, %v6270_v63 }
 0x3ce   : > { %v6093_v33 = vrot.slane %v6091_v45, 7  ;;  %v6520_v41 = vshll.u32 %v17602_v10, 16  ;;  %v6524_v0 = vshrl.u32 %v17602_v10, 16  ;;  %6272 = vst [vmem:[#allocation2 + $0xc0] sm:$0xf] %v6271_v26  ;;  %v6088_v53 = vor.u32 %v6086_v1, %v6085_v25 }
 0x3cf   : > { %v6089_v32 = vrot.slane %v6085_v25, 4  ;;  %v6113_v18 = vor.u32 %v6111_v62, %v6110_v14  ;;  %v6115_v30 = vrot.slane %v6110_v14, 4  ;;  %v6517_v24 = vor.u32 %v6516_v57, %v6513_v40  ;;  %v17637_v1 = vld [vmem:[#allocation2 + $0x70] sm:$0xf]  ;;  %v17639_v45 = vld [vmem:[#allocation2 + $0x74] sm:$0x1] }
 0x3d0   : > { %v6096_v20 = vor.u32 %v6094_v48, %v6093_v33  ;;  %v6098_v59 = vrot.slane %v6093_v33, 4  ;;  %v6522_v21 = vrot.slane %v6520_v41, 5  ;;  %v6264_v6 = vsel %vm17348_vm9, %v6088_v53, %v6263_v61  ;;  %v17647_v41 = vld [vmem:[#allocation2 + $0x78] sm:$0xf] }
 0x3d1   : > { %v6114_v55 = vsel %vm15580_vm11, %v6106_v52, %v6113_v18  ;;  %v6275_v47 = vsel %vm15541_vm6, %v6115_v30, %v6274_v34  ;;  %v6526_v37 = vrot.slane %v6524_v0, 4  ;;  %6265 = vst [vmem:[#allocation2 + $0xb4] sm:$0xf] %v6264_v6  ;;  %v6518_v56 = vrot.slane %v6517_v24, 4  ;;  %v17649_v0 = vld [vmem:[#allocation2 + $0x7c] sm:$0xf] }
 0x3d2   : > { %6273 = vst [vmem:[#allocation2 + $0xc4] sm:$0xf] %v6114_v55  ;;  %6276 = vst [vmem:[#allocation2 + $0xc8] sm:$0x1] %v6275_v47  ;;  %v6097_v54 = vsel %vm15580_vm11, %v6089_v32, %v6096_v20  ;;  %v6268_v35 = vsel %vm15541_vm6, %v6098_v59, %v6267_v58  ;;  %v6530_v63 = vshll.u32 %v17609_v3, 16  ;;  %v6535_v9 = vshrl.u32 %v17611_v2, 16 }
 0x3d3   : > { %6266 = vst [vmem:[#allocation2 + $0xb8] sm:$0xf] %v6097_v54  ;;  %6269 = vst [vmem:[#allocation2 + $0xbc] sm:$0x1] %v6268_v35  ;;  %v6527_v46 = vor.u32 %v6526_v37, %v6522_v21  ;;  %v6538_v40 = vshll.u32 %v17611_v2, 16  ;;  %v6544_v43 = vshll.u32 %v17613_v11, 16  ;;  %v6523_v5 = vsel %vm15535_vm4, %v6518_v56, %v6522_v21 }
 0x3d4   : > { %v6532_v19 = vrot.slane %v6530_v63, 5  ;;  %v6548_v31 = vshrl.u32 %v17613_v11, 16  ;;  %v6554_v38 = vshll.u32 %v17621_v17, 16  ;;  %v6537_v60 = vrot.slane %v6535_v9, 4  ;;  %v17652_v55 = vld [vmem:[#allocation2 + $0x80] sm:$0x1] }
 0x3d5   : > { %v6528_v23 = vrot.slane %v6527_v46, 4  ;;  %v6540_v52 = vrot.slane %v6538_v40, 5  ;;  %v6546_v62 = vrot.slane %v6544_v43, 5  ;;  %v6559_v14 = vshrl.u32 %v17631_v22, 16  ;;  %v17659_v46 = vld [vmem:[#allocation2 + $0x84] sm:$0xf] }
 0x3d6   : > { %v6550_v25 = vrot.slane %v6548_v31, 4  ;;  %v6556_v61 = vrot.slane %v6554_v38, 5  ;;  %v6562_v48 = vshll.u32 %v17631_v22, 16  ;;  %v6568_v34 = vshll.u32 %v17637_v1, 16  ;;  %v17661_v9 = vld [vmem:[#allocation2 + $0x88] sm:$0xf] }
 0x3d7   : > { %v6533_v57 = vsel %vm15535_vm4, %v6528_v23, %v6532_v19  ;;  %v6541_v26 = vor.u32 %v6540_v52, %v6537_v60  ;;  %v6572_v33 = vshrl.u32 %v17637_v1, 16  ;;  %v6561_v18 = vrot.slane %v6559_v14, 4 }
 0x3d8   : > { %v12856_v53 = vcombine.low %v6523_v5, %v6533_v57  ;;  %v6551_v32 = vor.u32 %v6550_v25, %v6546_v62  ;;  %v6564_v30 = vrot.slane %v6562_v48, 5  ;;  %v6570_v20 = vrot.slane %v6568_v34, 5  ;;  %v17670_v48 = vld [vmem:[#allocation2 + $0x90] sm:$0xf] }
 0x3d9   : > { %v6542_v58 = vrot.slane %v6541_v26, 4  ;;  %v6574_v59 = vrot.slane %v6572_v33, 4  ;;  %v6578_v24 = vshll.u32 %v17639_v45, 16  ;;  %v6583_v47 = vshrl.u32 %v17647_v41, 16  ;;  %v17674_v26 = vld [vmem:[#allocation2 + $0x8c] sm:$0x1] }
 0x3da   : > { %14264 = vmatmul.mubr.bf16.gmra.mrb[12].mxu1 %v12856_v53  ;;  %v6552_v21 = vrot.slane %v6551_v32, 4  ;;  %v6565_v6 = vor.u32 %v6564_v30, %v6561_v18  ;;  %v6586_v37 = vshll.u32 %v17647_v41, 16  ;;  %v6592_v63 = vshll.u32 %v17649_v0, 16  ;;  %v18172_v49 = vld [vmem:[#allocation2 + $0xc4] sm:$0xf] }
 0x3db   : > { %v6547_v54 = vsel %vm15535_vm4, %v6542_v58, %v6546_v62  ;;  %v6575_v35 = vor.u32 %v6574_v59, %v6570_v20  ;;  %v6580_v56 = vrot.slane %v6578_v24, 5  ;;  %v6585_v5 = vrot.slane %v6583_v47, 4  ;;  %v17678_v58 = vld [vmem:[#allocation2 + $0x94] sm:$0xf] }
 0x3dc   : > { %v6557_v40 = vsel %vm15535_vm4, %v6552_v21, %v6556_v61  ;;  %v6566_v43 = vrot.slane %v6565_v6, 4  ;;  %v6588_v19 = vrot.slane %v6586_v37, 5  ;;  %v6594_v23 = vrot.slane %v6592_v63, 5 }
 0x3dd   : > { %v12857_v31 = vcombine.low %v6547_v54, %v6557_v40  ;;  %v6576_v38 = vrot.slane %v6575_v35, 4  ;;  %v6596_v60 = vshrl.u32 %v17649_v0, 16  ;;  %v6602_v25 = vshll.u32 %v17652_v55, 16  ;;  %v17686_v40 = vld [vmem:[#allocation2 + $0x98] sm:$0x1] }
 0x3de   : > { %v6571_v52 = vsel %vm15535_vm4, %v6566_v43, %v6570_v20  ;;  %v6589_v62 = vor.u32 %v6588_v19, %v6585_v5  ;;  %v6607_v14 = vshrl.u32 %v17659_v46, 16  ;;  %v6610_v34 = vshll.u32 %v17659_v46, 16 }
 0x3df   : > { %14267 = vmatprep.mubr.bf16.mxu1 %v12857_v31  ;;  %v6581_v61 = vsel %vm15535_vm4, %v6576_v38, %v6580_v56  ;;  %v6598_v57 = vrot.slane %v6596_v60, 4  ;;  %v6616_v33 = vshll.u32 %v17661_v9, 16  ;;  %v6604_v18 = vrot.slane %v6602_v25, 5  ;;  %v17690_v60 = vld [vmem:[#allocation2 + $0x9c] sm:$0xf] }
 0x3e0   : > { %v12858_v53 = vcombine.low %v6571_v52, %v6581_v61  ;;  %v6590_v32 = vrot.slane %v6589_v62, 4  ;;  %v6609_v30 = vrot.slane %v6607_v14, 4  ;;  %v6612_v59 = vrot.slane %v6610_v34, 5  ;;  %v17694_v14 = vld [vmem:[#allocation2 + $0xa0] sm:$0xf] }
 0x3e1   : > { %v6599_v20 = vor.u32 %v6598_v57, %v6594_v23  ;;  %v6618_v24 = vrot.slane %v6616_v33, 5  ;;  %v6620_v21 = vshrl.u32 %v17661_v9, 16  ;;  %v6626_v47 = vshll.u32 %v17674_v26, 16 }
 0x3e2   : > { %14268 = vmatmul.mubr.bf16.gmra.mrb[16].mxu1 %v12858_v53  ;;  %v6595_v6 = vsel %vm15535_vm4, %v6590_v32, %v6594_v23  ;;  %v6631_v37 = vshrl.u32 %v17670_v48, 16  ;;  %v6634_v54 = vshll.u32 %v17670_v48, 16  ;;  %v6613_v56 = vor.u32 %v6612_v59, %v6609_v30  ;;  %v17697_v53 = vld [vmem:[#allocation2 + $0xa8] sm:$0xf] }
 0x3e3   : > { %v6600_v35 = vrot.slane %v6599_v20, 4  ;;  %v6622_v63 = vrot.slane %v6620_v21, 4  ;;  %v6640_v43 = vshll.u32 %v17678_v58, 16  ;;  %v6628_v5 = vrot.slane %v6626_v47, 5 }
 0x3e4   : > { %v6633_v19 = vrot.slane %v6631_v37, 4  ;;  %v6636_v31 = vrot.slane %v6634_v54, 5  ;;  %v6644_v38 = vshrl.u32 %v17678_v58, 16  ;;  %v6614_v52 = vrot.slane %v6613_v56, 4  ;;  %v17703_v37 = vld [vmem:[#allocation2 + $0xa4] sm:$0x1] }
 0x3e5   : > { %v6605_v23 = vsel %vm15535_vm4, %v6600_v35, %v6604_v18  ;;  %v6623_v62 = vor.u32 %v6622_v63, %v6618_v24  ;;  %v6642_v25 = vrot.slane %v6640_v43, 5  ;;  %v6650_v33 = vshll.u32 %v17686_v40, 16  ;;  %v17709_v63 = vld [vmem:[#allocation2 + $0xac] sm:$0xf] }
 0x3e6   : > { %v12859_v61 = vcombine.low %v6595_v6, %v6605_v23  ;;  %v6637_v57 = vor.u32 %v6636_v31, %v6633_v19  ;;  %v6646_v34 = vrot.slane %v6644_v38, 4  ;;  %v6619_v32 = vsel %vm15535_vm4, %v6614_v52, %v6618_v24  ;;  %v17713_v23 = vld [vmem:[#allocation2 + $0xb0] sm:$0x1]  ;;  %v17715_v52 = vld [vmem:[#allocation2 + $0xb4] sm:$0xf] }
 0x3e7   : > { %v6624_v30 = vrot.slane %v6623_v62, 4  ;;  %v6655_v20 = vshrl.u32 %v17690_v60, 16  ;;  %v6658_v18 = vshll.u32 %v17690_v60, 16  ;;  %v6652_v47 = vrot.slane %v6650_v33, 5 }
 0x3e8   : > { %14271 = vmatprep.mubr.bf16.mxu1 %v12859_v61  ;;  %v6638_v59 = vrot.slane %v6637_v57, 4  ;;  %v6647_v21 = vor.u32 %v6646_v34, %v6642_v25  ;;  %v6664_v6 = vshll.u32 %v17694_v14, 16  ;;  %v6668_v24 = vshrl.u32 %v17694_v14, 16 }
 0x3e9   : > { %v6629_v54 = vsel %vm15535_vm4, %v6624_v30, %v6628_v5  ;;  %v6657_v35 = vrot.slane %v6655_v20, 4  ;;  %v6660_v56 = vrot.slane %v6658_v18, 5  ;;  %v6674_v5 = vshll.u32 %v17703_v37, 16 }
 0x3ea   : > { %v12860_v43 = vcombine.low %v6619_v32, %v6629_v54  ;;  %v6643_v19 = vsel %vm15535_vm4, %v6638_v59, %v6642_v25  ;;  %v6648_v31 = vrot.slane %v6647_v21, 4  ;;  %v6666_v38 = vrot.slane %v6664_v6, 5  ;;  %v17724_v21 = vld [vmem:[#allocation2 + $0xb8] sm:$0xf] }
 0x3eb   : > { %v6661_v62 = vor.u32 %v6660_v56, %v6657_v35  ;;  %v6670_v61 = vrot.slane %v6668_v24, 4  ;;  %v6679_v57 = vshrl.u32 %v17697_v53, 16  ;;  %v6682_v33 = vshll.u32 %v17697_v53, 16 }
 0x3ec   : > { %14272 = vmatmul.mubr.bf16.gmra.mrb[20].mxu1 %v12860_v43  ;;  %v6653_v34 = vsel %vm15535_vm4, %v6648_v31, %v6652_v47  ;;  %v6688_v25 = vshll.u32 %v17709_v63, 16  ;;  %v6692_v32 = vshrl.u32 %v17709_v63, 16  ;;  %v6676_v59 = vrot.slane %v6674_v5, 5 }
 0x3ed   : > { %v12861_v30 = vcombine.low %v6643_v19, %v6653_v34  ;;  %v6662_v20 = vrot.slane %v6661_v62, 4  ;;  %v6671_v18 = vor.u32 %v6670_v61, %v6666_v38  ;;  %v6681_v6 = vrot.slane %v6679_v57, 4  ;;  %v17730_v62 = vld [vmem:[#allocation2 + $0xbc] sm:$0x1] }
 0x3ee   : > { %v6684_v54 = vrot.slane %v6682_v33, 5  ;;  %v6690_v35 = vrot.slane %v6688_v25, 5  ;;  %v6694_v56 = vrot.slane %v6692_v32, 4  ;;  %v6698_v43 = vshll.u32 %v17713_v23, 16 }
 0x3ef   : > { %14275 = vmatprep.mubr.bf16.mxu1 %v12861_v30  ;;  %v6667_v47 = vsel %vm15535_vm4, %v6662_v20, %v6666_v38  ;;  %v6672_v24 = vrot.slane %v6671_v18, 4  ;;  %v6703_v31 = vshrl.u32 %v17715_v52, 16  ;;  %v6706_v61 = vshll.u32 %v17715_v52, 16 }
 0x3f0   : > { %v6685_v28 = vor.u32 %v6684_v54, %v6681_v6  ;;  %v6695_v19 = vor.u32 %v6694_v56, %v6690_v35  ;;  %v6712_v5 = vshll.u32 %v17724_v21, 16  ;;  %v6700_v34 = vrot.slane %v6698_v43, 5 }
 0x3f1   : > { %v6677_v57 = vsel %vm15535_vm4, %v6672_v24, %v6676_v59  ;;  %v6705_v33 = vrot.slane %v6703_v31, 4  ;;  %v6716_v38 = vshrl.u32 %v17724_v21, 16  ;;  %v6708_v20 = vrot.slane %v6706_v61, 5 }
 0x3f2   : > { %v12862_v25 = vcombine.low %v6667_v47, %v6677_v57  ;;  %v6686_v32 = vrot.slane %v6685_v28, 4  ;;  %v6696_v30 = vrot.slane %v6695_v19, 4  ;;  %v6714_v18 = vrot.slane %v6712_v5, 5  ;;  %v15446_v5 = vld [vmem:[#allocation2] sm:$0xf] }
 0x3f3   : > { %v6718_v6 = vrot.slane %v6716_v38, 4  ;;  %v6722_v54 = vshll.u32 %v17730_v62, 16  ;;  %v6709_v59 = vor.u32 %v6708_v20, %v6705_v33  ;;  %v17746_v57 = vld [vmem:[#allocation2 + $0x4] sm:$0xf] }
 0x3f4   : > { %14276 = vmatmul.mubr.bf16.gmra.mrb[24].mxu1 %v12862_v25  ;;  %v6691_v56 = vsel %vm15535_vm4, %v6686_v32, %v6690_v35  ;;  %v6701_v7 = vsel %vm15535_vm4, %v6696_v30, %v6700_v34  ;;  %v12873_v35 = vcombine.low %v15446_v5, %v17746_v57  ;;  %v17749_v34 = vld [vmem:[#allocation2 + $0x10] sm:$0xf]  ;;  %v15313_v25 = vld [vmem:[%s19153_s1 + $0x2c8] sm:$0xff]   ;;  %v15450_v32 = vld [vmem:[#allocation2 + $0x18] sm:$0xf] }
 0x3f5   : > { %v12863_v24 = vcombine.low %v6691_v56, %v6701_v7  ;;  %v6719_v43 = vor.u32 %v6718_v6, %v6714_v18  ;;  %v6710_v31 = vrot.slane %v6709_v59, 4  ;;  %v6724_v28 = vrot.slane %v6722_v54, 5  ;;  %v15448_v7 = vld [vmem:[#allocation2 + $0xc] sm:$0xf]  ;;  %v17755_v30 = vld [vmem:[#allocation2 + $0x1c] sm:$0xf] }
 0x3f6   : > { %v12874_v33 = vcombine.low %v15448_v7, %v17749_v34  ;;  %v12875_v20 = vcombine.low %v15450_v32, %v17755_v30  ;;  %v15452_v6 = vld [vmem:[#allocation2 + $0x24] sm:$0xf]  ;;  %v15319_v56 = vld [vmem:[%s19153_s1 + $0x2d8] sm:$0xff]   ;;  %v12877_v59 = vcombine.low %v17496_v27, %v17502_v51  ;;  %v12879_v27 = vcombine.low %v17564_v12, %v17566_v4  ;;  %v7321_v5 = vld [vmem:[#allocation2] sm:$0xe] }
 0x3f7   : > { %14279 = vmatprep.mubr.bf16.mxu1 %v12863_v24  ;;  %v6720_v47 = vrot.slane %v6719_v43, 4  ;;  %v6715_v19 = vsel %vm15535_vm4, %v6710_v31, %v6714_v18  ;;  %v15316_v18 = vld [vmem:[%s19153_s1 + $0x2d0] sm:$0xff]   ;;  %v12876_v54 = vcombine.low %v15452_v6, %v17478_v29  ;;  %v12878_v29 = vcombine.low %v17528_v42, %v17548_v13  ;;  %v15325_v24 = vld [vmem:[%s19153_s1 + $0x2e8] sm:$0xff]   ;;  %v15331_v31 = vld [vmem:[%s19153_s1 + $0x2f8] sm:$0xff]  }
 0x3f8   : > { %v15328_v43 = vld [vmem:[%s19153_s1 + $0x2f0] sm:$0xff]   ;;  %v12880_v42 = vcombine.low %v17590_v36, %v17602_v10  ;;  %v12881_v12 = vcombine.low %v17611_v2, %v17613_v11  ;;  %v12882_v36 = vcombine.low %v17631_v22, %v17637_v1  ;;  %v12884_v2 = vcombine.low %v17659_v46, %v17661_v9 }
 0x3f9   : > { %v6725_v61 = vsel %vm15535_vm4, %v6720_v47, %v6724_v28  ;;  %v15333_v47 = vld [vmem:[%s19153_s1 + $0x300] sm:$0xff]   ;;  %v12883_v28 = vcombine.low %v17647_v41, %v17649_v0  ;;  %v12886_v22 = vcombine.low %v17690_v60, %v17694_v14  ;;  %v12897_v7 = vrot.slane %v7321_v5, 9  ;;  %v15454_v6 = vld [vmem:[#allocation2 + $0x14] sm:$0x1]  ;;  %v15457_v5 = vld [vmem:[#allocation2 + $0x2c] sm:$0x1] }
 0x3fa   : > { %v12864_v38 = vcombine.low %v6715_v19, %v6725_v61  ;;  %v12885_v19 = vcombine.low %v17670_v48, %v17678_v58  ;;  %v7371_v61 = vrot.slane %v17746_v57, 5  ;;  %v7378_v57 = vrot.slane %v17749_v34, 5 }
 0x3fb   : > { %v12888_v60 = vcombine.low %v17715_v52, %v17724_v21 }
 0x3fc   : > { %14280 = vmatmul.mubr.bf16.gmra.mrb[28].mxu1 %v12864_v38  ;;  %v7373_v41 = vrot.slane %v7371_v61, 4  ;;  %v7372_v46 = vsel %vm16312_vm5, %v12897_v7, %v7371_v61 }
 0x3fd   : > { %14299 = vmatprep.mubr.bf16.mxu1 %v12873_v35  ;;  %v15453_v35 = vld [vmem:[#allocation2 + $0x8] sm:$0x1] }
 0x3fe   : > { %v7374_v38 = vrot.slane %v15453_v35, 5  ;;  %v7325_v35 = vld [vmem:[#allocation2 + $0x30] sm:$0xe] }
 0x400   : > { %v7375_v48 = vsel %vm16312_vm5, %v7373_v41, %v7374_v38  ;;  %v7402_v38 = vrot.slane %v17504_v50, 5 }
 0x401   : > { %v12929_v32 = vcombine.low %v7372_v46, %v7375_v48  ;;  %v12901_v46 = vrot.slane %v7325_v35, 9  ;;  %v7413_v48 = vrot.slane %v17566_v4, 5  ;;  %v7409_v4 = vrot.slane %v17550_v44, 5 }
 0x402   : > { %v7427_v44 = vrot.slane %v17613_v11, 5  ;;  %v7423_v11 = vrot.slane %v17609_v3, 5  ;;  %v7441_v3 = vrot.slane %v17649_v0, 5  ;;  %v7437_v0 = vrot.slane %v17639_v45, 5 }
 0x404   : > { %14300 = vmatmul.mubr.bf16.vlgmr.msra.gmra.mrb[0].mxu1 %v12874_v33  ;;  %v12887_v33 = vcombine.low %v17697_v53, %v17709_v63 }
 0x405   : > { %14332 = vmatpush3.bf16.msra.mxu1 %v17556_v15  ;;  %14303 = vmatprep.mubr.bf16.mxu1 %v12875_v20  ;;  %v15322_v15 = vld [vmem:[%s19153_s1 + $0x2e0] sm:$0xff]   ;;  %v7380_v20 = vrot.slane %v7378_v57, 4 }
 0x406   : > { %14333 = vmatprep.subr.bf16.mxu1 %v15313_v25 }
 0x409   : > { %14334 = vmatpush3.bf16.msra.mxu1 %v15313_v25  ;;  %v7385_v25 = vrot.slane %v17755_v30, 5 }
 0x40a   : > { %14335 = vmatprep.subr.bf16.mxu1 %v15316_v18 }
 0x40b   : > { %v7387_v53 = vrot.slane %v7385_v25, 4 }
 0x40c   : > { %14304 = vmatmul.mubr.bf16.gmra.mrb[4].mxu1 %v12876_v54  ;;  %v7381_v54 = vrot.slane %v15454_v6, 5  ;;  %v7416_v6 = vrot.slane %v17568_v8, 5 }
 0x40d   : > { %14307 = vmatprep.mubr.bf16.mxu1 %v12877_v59  ;;  %14336 = vmatpush3.bf16.msra.mxu1 %v15316_v18  ;;  %v7322_v18 = vld [vmem:[#allocation2 + $0xc] sm:$0xe]  ;;  %v15455_v59 = vld [vmem:[#allocation2 + $0x20] sm:$0x1] }
 0x40e   : > { %14337 = vmatprep.subr.bf16.mxu1 %v15319_v56  ;;  %v7382_v34 = vsel %vm16312_vm5, %v7380_v20, %v7381_v54  ;;  %v7326_v20 = vld [vmem:[#allocation2 + $0x3c] sm:$0xe]  ;;  %v15337_v54 = vld [vmem:[%s19153_s1 + $0x320] sm:$0xff]  }
 0x411   : > { %14338 = vmatpush3.bf16.msra.mxu1 %v15319_v56  ;;  %v7323_v56 = vld [vmem:[#allocation2 + $0x18] sm:$0xe] }
 0x412   : > { %14339 = vmatprep.subr.bf16.mxu1 %v15322_v15 }
 0x414   : > { %14308 = vmatmul.mubr.bf16.gmra.mrb[8].mxu1 %v12878_v29  ;;  %v12898_v29 = vrot.slane %v7322_v18, 9  ;;  %v7415_v18 = vrot.slane %v7413_v48, 4 }
 0x415   : > { %14311 = vmatprep.mubr.bf16.mxu1 %v12879_v27  ;;  %14340 = vmatpush3.bf16.msra.mxu1 %v15322_v15  ;;  %v7388_v15 = vrot.slane %v15455_v59, 5  ;;  %v12899_v27 = vrot.slane %v7323_v56, 9  ;;  %v12902_v56 = vrot.slane %v7326_v20, 9 }
 0x416   : > { %14341 = vmatprep.subr.bf16.mxu1 %v15325_v24 }
 0x417   : > { %v7389_v52 = vsel %vm16312_vm5, %v7387_v53, %v7388_v15  ;;  %v7327_v53 = vld [vmem:[#allocation2 + $0x48] sm:$0xe]  ;;  %v7420_v15 = vrot.slane %v17602_v10, 5 }
 0x419   : > { %14342 = vmatpush3.bf16.msra.mxu1 %v15325_v24  ;;  %v15456_v24 = vld [vmem:[#allocation2 + $0x28] sm:$0xf] }
 0x41a   : > { %14343 = vmatprep.subr.bf16.mxu1 %v15328_v43  ;;  %v7392_v30 = vrot.slane %v15456_v24, 5 }
 0x41c   : > { %14312 = vmatmul.mubr.bf16.gmra.mrb[12].mxu1 %v12880_v42  ;;  %v7379_v42 = vsel %vm16312_vm5, %v12898_v29, %v7378_v57  ;;  %v12903_v29 = vrot.slane %v7327_v53, 9  ;;  %v7451_v53 = vrot.slane %v17674_v26, 5 }
 0x41d   : > { %14315 = vmatprep.mubr.bf16.mxu1 %v12881_v12  ;;  %14344 = vmatpush3.bf16.msra.mxu1 %v15328_v43  ;;  %v7399_v43 = vrot.slane %v17502_v51, 5  ;;  %v7386_v12 = vsel %vm16312_vm5, %v12899_v27, %v7385_v25  ;;  %v7395_v51 = vrot.slane %v15457_v5, 5  ;;  %v15338_v27 = vld [vmem:[%s19153_s1 + $0x328] sm:$0xff]  }
 0x41e   : > { %14345 = vmatprep.subr.bf16.mxu1 %v15331_v31 }
 0x41f   : > { %v7401_v61 = vrot.slane %v7399_v43, 4  ;;  %v7400_v25 = vsel %vm16312_vm5, %v12901_v46, %v7399_v43  ;;  %v7328_v43 = vld [vmem:[#allocation2 + $0x54] sm:$0xe]  ;;  %v7444_v46 = vrot.slane %v17652_v55, 5 }
 0x421   : > { %14346 = vmatpush3.bf16.msra.mxu1 %v15331_v31  ;;  %v12930_v31 = vcombine.low %v7379_v42, %v7382_v34  ;;  %v7417_v34 = vsel %vm16312_vm5, %v7415_v18, %v7416_v6  ;;  %v7429_v42 = vrot.slane %v7427_v44, 4  ;;  %v7333_v6 = vld [vmem:[#allocation2 + $0x90] sm:$0xe] }
 0x422   : > { %14379 = vmatprep.subr.bf16.mxu1 %v15333_v47 }
 0x424   : > { %14316 = vmatmul.mubr.bf16.gmra.mrb[16].mxu1 %v12882_v36  ;;  %v15334_v36 = vld [vmem:[%s19153_s1 + $0x308] sm:$0xff]  }
 0x425   : > { %14319 = vmatprep.mubr.bf16.mxu1 %v12883_v28  ;;  %v12931_v28 = vcombine.low %v7386_v12, %v7389_v52  ;;  %v7422_v52 = vrot.slane %v7420_v15, 4  ;;  %v7430_v12 = vrot.slane %v17621_v17, 5 }
 0x427   : > { %v7431_v5 = vsel %vm16312_vm5, %v7429_v42, %v7430_v12  ;;  %v7476_v42 = vrot.slane %v17724_v21, 5 }
 0x42c   : > { %14320 = vmatmul.mubr.bf16.gmra.mrb[20].mxu1 %v12884_v2  ;;  %v7394_v2 = vrot.slane %v7392_v30, 4 }
 0x42d   : > { %14323 = vmatprep.mubr.bf16.mxu1 %v12885_v19  ;;  %v7324_v19 = vld [vmem:[#allocation2 + $0x24] sm:$0xe] }
 0x42e   : > { %v12900_v7 = vrot.slane %v7324_v19, 9  ;;  %v7396_v41 = vsel %vm16312_vm5, %v7394_v2, %v7395_v51  ;;  %v7424_v2 = vsel %vm16312_vm5, %v7422_v52, %v7423_v11  ;;  %v7434_v19 = vrot.slane %v17637_v1, 5 }
 0x42f   : > { %v7472_v52 = vrot.slane %v17713_v23, 5  ;;  %v7336_v23 = vld [vmem:[#allocation2 + $0xb4] sm:$0xe] }
 0x430   : > { %v7393_v57 = vsel %vm16312_vm5, %v12900_v7, %v7392_v30  ;;  %v7414_v30 = vsel %vm16312_vm5, %v12903_v29, %v7413_v48  ;;  %v7330_v7 = vld [vmem:[#allocation2 + $0x6c] sm:$0xe] }
 0x431   : > { %v12932_v50 = vcombine.low %v7393_v57, %v7396_v41  ;;  %v12935_v10 = vcombine.low %v7414_v30, %v7417_v34  ;;  %v7443_v41 = vrot.slane %v7441_v3, 4  ;;  %v12906_v48 = vrot.slane %v7330_v7, 9  ;;  %v7334_v30 = vld [vmem:[#allocation2 + $0x9c] sm:$0xe] }
 0x432   : > { %v7469_v34 = vrot.slane %v17709_v63, 5  ;;  %v15347_v7 = vld [vmem:[#allocation2 + $0x3c] sm:$0xff]  }
 0x433   : > { %v7445_v45 = vsel %vm16312_vm5, %v7443_v41, %v7444_v46  ;;  %v7435_v55 = vsel %vm16312_vm5, %v12906_v48, %v7434_v19  ;;  %v15354_v41 = vld [vmem:[%s19153_s1 + $0x360] sm:$0xff]   ;;  %v15350_v46 = vld [vmem:[#allocation2 + $0x54] sm:$0xff]  }
 0x434   : > { %14324 = vmatmul.mubr.bf16.gmra.mrb[24].mxu1 %v12886_v22  ;;  %v15335_v22 = vld [vmem:[%s19153_s1 + $0x310] sm:$0xff]   ;;  %v15352_v48 = vld [vmem:[#allocation2 + $0x60] sm:$0xff]  }
 0x435   : > { %14327 = vmatprep.mubr.bf16.mxu1 %v12887_v33  ;;  %v7406_v33 = vrot.slane %v17548_v13, 5 }
 0x437   : > { %v7407_v8 = vsel %vm16312_vm5, %v12902_v56, %v7406_v33 }
 0x43c   : > { %14328 = vmatmul.mubr.bf16.gmra.mrb[28].mxu1 %v12888_v60  ;;  %v7408_v60 = vrot.slane %v7406_v33, 4  ;;  %v7331_v33 = vld [vmem:[#allocation2 + $0x78] sm:$0xe] }
 0x43d   : > { %14347 = vmatprep.mubr.bf16.mxu1 %v12929_v32  ;;  %v15336_v32 = vld [vmem:[%s19153_s1 + $0x318] sm:$0xff]  }
 0x43e   : > { %v7410_v59 = vsel %vm16312_vm5, %v7408_v60, %v7409_v4 }
 0x43f   : > { %v12934_v24 = vcombine.low %v7407_v8, %v7410_v59  ;;  %v7462_v59 = vrot.slane %v17694_v14, 5  ;;  %v7465_v14 = vrot.slane %v17703_v37, 5 }
 0x444   : > { %14348 = vmatmul.mubr.bf16.vlgmr.msra.gmra.mrb[0].mxu1 %v12930_v31  ;;  %v7329_v31 = vld [vmem:[#allocation2 + $0x60] sm:$0xe] }
 0x445   : > { %14380 = vmatpush3.bf16.msra.mxu1 %v15333_v47  ;;  %14351 = vmatprep.mubr.bf16.mxu1 %v12931_v28  ;;  %v7403_v47 = vsel %vm16312_vm5, %v7401_v61, %v7402_v38  ;;  %v12904_v28 = vrot.slane %v7328_v43, 9  ;;  %v12905_v61 = vrot.slane %v7329_v31, 9  ;;  %v15340_v38 = vld [vmem:[%s19153_s1 + $0x338] sm:$0xff]   ;;  %v12910_v43 = vrot.slane %v7334_v30, 9 }
 0x446   : > { %14381 = vmatprep.subr.bf16.mxu1 %v15334_v36  ;;  %v12933_v13 = vcombine.low %v7400_v25, %v7403_v47  ;;  %v17882_v47 = vld [vmem:[%s19153_s1 + $0x340] sm:$0xff]   ;;  %v12907_v25 = vrot.slane %v7331_v33, 9  ;;  %v15357_v33 = vld [vmem:[%s19153_s1 + $0x368] sm:$0xff]  }
 0x447   : > { %v7421_v17 = vsel %vm16312_vm5, %v12904_v28, %v7420_v15  ;;  %v7428_v35 = vsel %vm16312_vm5, %v12905_v61, %v7427_v44  ;;  %v12909_v15 = vrot.slane %v7333_v6, 9  ;;  %v7463_v12 = vsel %vm16312_vm5, %v12910_v43, %v7462_v59 }
 0x448   : > { %v12936_v51 = vcombine.low %v7421_v17, %v7424_v2  ;;  %v12937_v1 = vcombine.low %v7428_v35, %v7431_v5  ;;  %v7442_v60 = vsel %vm16312_vm5, %v12907_v25, %v7441_v3  ;;  %v7478_v2 = vrot.slane %v7476_v42, 4  ;;  %v15341_v17 = vld [vmem:[#allocation2 + $0xc] sm:$0xff]   ;;  %v17948_v25 = vld [vmem:[%s19153_s1 + $0x380] sm:$0xff]  }
 0x449   : > { %14382 = vmatpush3.bf16.msra.mxu1 %v15334_v36  ;;  %v15339_v36 = vld [vmem:[%s19153_s1 + $0x330] sm:$0xff]   ;;  %v12939_v20 = vcombine.low %v7442_v60, %v7445_v45  ;;  %v12912_v61 = vrot.slane %v7336_v23, 9  ;;  %v15345_v35 = vld [vmem:[%s19153_s1 + $0x348] sm:$0xff]   ;;  %v15355_v45 = vld [vmem:[#allocation2 + $0x78] sm:$0xff]  }
 0x44a   : > { %14383 = vmatprep.subr.bf16.mxu1 %v15335_v22 }
 0x44b   : > { %v7477_v5 = vsel %vm16312_vm5, %v12912_v61, %v7476_v42  ;;  %v17969_v42 = vld [vmem:[#allocation2 + $0x34] sm:$0xf] }
 0x44c   : > { %14352 = vmatmul.mubr.bf16.gmra.mrb[4].mxu1 %v12932_v50  ;;  %v7448_v50 = vrot.slane %v17661_v9, 5  ;;  %v7332_v9 = vld [vmem:[#allocation2 + $0x84] sm:$0xe]  ;;  %v8319_v61 = vshll.u32 %v17969_v42, 16 }
 0x44d   : > { %14355 = vmatprep.mubr.bf16.mxu1 %v12933_v13  ;;  %14384 = vmatpush3.bf16.msra.mxu1 %v15335_v22  ;;  %v7436_v22 = vrot.slane %v7434_v19, 4  ;;  %v7479_v19 = vrot.slane %v17730_v62, 5  ;;  %v15348_v62 = vld [vmem:[%s19153_s1 + $0x350] sm:$0xff]  }
 0x44e   : > { %14385 = vmatprep.subr.bf16.mxu1 %v15336_v32  ;;  %v7450_v18 = vrot.slane %v7448_v50, 4 }
 0x44f   : > { %v7438_v57 = vsel %vm16312_vm5, %v7436_v22, %v7437_v0  ;;  %v7480_v21 = vsel %vm16312_vm5, %v7478_v2, %v7479_v19  ;;  %v15351_v22 = vld [vmem:[%s19153_s1 + $0x358] sm:$0xff]   ;;  %v15349_v0 = vld [vmem:[#allocation2 + $0x48] sm:$0xff]  }
 0x450   : > { %v12938_v13 = vcombine.low %v7435_v55, %v7438_v57  ;;  %v7452_v56 = vsel %vm16312_vm5, %v7450_v18, %v7451_v53  ;;  %v12944_v3 = vcombine.low %v7477_v5, %v7480_v21  ;;  %v15363_v57 = vld [vmem:[%s19153_s1 + $0x378] sm:$0xff]   ;;  %v15356_v55 = vld [vmem:[#allocation2 + $0x84] sm:$0xff]   ;;  %v8323_v21 = vshrl.u32 %v17969_v42, 16 }
 0x451   : > { %14386 = vmatpush3.bf16.msra.mxu1 %v15336_v32  ;;  %v7455_v32 = vrot.slane %v17678_v58, 5  ;;  %v7458_v58 = vrot.slane %v17686_v40, 5  ;;  %v17955_v53 = vld [vmem:[#allocation2 + $0x1c] sm:$0xf]  ;;  %v15361_v5 = vld [vmem:[#allocation2 + $0xa8] sm:$0xff]  }
 0x452   : > { %14387 = vmatprep.subr.bf16.mxu1 %v15337_v54 }
 0x453   : > { %v7457_v4 = vrot.slane %v7455_v32, 4  ;;  %v7456_v26 = vsel %vm16312_vm5, %v12909_v15, %v7455_v32  ;;  %v8189_v32 = vld [vmem:[#allocation2 + $0xc] sm:$0xf] }
 0x454   : > { %14356 = vmatmul.mubr.bf16.gmra.mrb[8].mxu1 %v12934_v24  ;;  %v7464_v24 = vrot.slane %v7462_v59, 4  ;;  %v8238_v60 = vshrl.u32 %v8189_v32, 16 }
 0x455   : > { %14359 = vmatprep.mubr.bf16.mxu1 %v12935_v10  ;;  %14388 = vmatpush3.bf16.msra.mxu1 %v15337_v54  ;;  %v12908_v54 = vrot.slane %v7332_v9, 9  ;;  %v7459_v29 = vsel %vm16312_vm5, %v7457_v4, %v7458_v58  ;;  %v7335_v10 = vld [vmem:[#allocation2 + $0xa8] sm:$0xe]  ;;  %v8192_v4 = vld [vmem:[#allocation2 + $0x18] sm:$0xf] }
 0x456   : > { %14389 = vmatprep.subr.bf16.mxu1 %v15338_v27  ;;  %v12941_v40 = vcombine.low %v7456_v26, %v7459_v29  ;;  %v7466_v63 = vsel %vm16312_vm5, %v7464_v24, %v7465_v14  ;;  %v12911_v11 = vrot.slane %v7335_v10, 9  ;;  %v8240_v6 = vrot.slane %v8238_v60, 4  ;;  %v17957_v58 = vld [vmem:[#allocation2 + $0x28] sm:$0xf]  ;;  %v8198_v14 = vld [vmem:[#allocation2 + $0x30] sm:$0xf] }
 0x457   : > { %v7449_v44 = vsel %vm16312_vm5, %v12908_v54, %v7448_v50  ;;  %v15353_v50 = vld [vmem:[#allocation2 + $0x6c] sm:$0xff]   ;;  %v8262_v59 = vshrl.u32 %v8192_v4, 16  ;;  %v8265_v15 = vshll.u32 %v8192_v4, 16  ;;  %v8271_v29 = vshll.u32 %v17955_v53, 16 }
 0x458   : > { %v12940_v8 = vcombine.low %v7449_v44, %v7452_v56  ;;  %v7470_v37 = vsel %vm16312_vm5, %v12911_v11, %v7469_v34  ;;  %v15358_v54 = vld [vmem:[#allocation2 + $0x90] sm:$0xff]   ;;  %v8275_v26 = vshrl.u32 %v17955_v53, 16  ;;  %v8295_v24 = vshll.u32 %v17957_v58, 16 }
 0x459   : > { %14390 = vmatpush3.bf16.msra.mxu1 %v15338_v27  ;;  %v7471_v27 = vrot.slane %v7469_v34, 4  ;;  %v15359_v34 = vld [vmem:[#allocation2 + $0x9c] sm:$0xff]   ;;  %v8299_v30 = vshrl.u32 %v17957_v58, 16  ;;  %v8267_v43 = vrot.slane %v8265_v15, 5  ;;  %v8310_v23 = vshrl.u32 %v8198_v14, 16 }
 0x45a   : > { %14391 = vmatprep.subr.bf16.mxu1 %v15339_v36  ;;  %v8313_v19 = vshll.u32 %v8198_v14, 16  ;;  %v18002_v14 = vld [vmem:[#allocation2 + $0x4c] sm:$0xf] }
 0x45b   : > { %v7473_v31 = vsel %vm16312_vm5, %v7471_v27, %v7472_v52  ;;  %v17965_v27 = vld [vmem:[#allocation2 + $0x14] sm:$0x1]  ;;  %v8264_v52 = vrot.slane %v8262_v59, 4  ;;  %v8301_v2 = vrot.slane %v8299_v30, 4  ;;  %v8204_v59 = vld [vmem:[#allocation2 + $0x48] sm:$0xf] }
 0x45c   : > { %14360 = vmatmul.mubr.bf16.gmra.mrb[12].mxu1 %v12936_v51  ;;  %v12943_v28 = vcombine.low %v7470_v37, %v7473_v31  ;;  %v15343_v51 = vld [vmem:[#allocation2 + $0x18] sm:$0xff]   ;;  %v17972_v31 = vld [vmem:[#allocation2 + $0x20] sm:$0x1] }
 0x45d   : > { %14363 = vmatprep.mubr.bf16.mxu1 %v12937_v1  ;;  %14392 = vmatpush3.bf16.msra.mxu1 %v15339_v36  ;;  %v12942_v36 = vcombine.low %v7463_v12, %v7466_v63  ;;  %v15346_v1 = vld [vmem:[#allocation2 + $0x30] sm:$0xff]   ;;  %v17967_v63 = vrot.slane %v8271_v29, 5  ;;  %v8277_v12 = vrot.slane %v8275_v26, 4 }
 0x45e   : > { %14393 = vmatprep.subr.bf16.mxu1 %v15340_v38 }
 0x461   : > { %14394 = vmatpush3.bf16.msra.mxu1 %v15340_v38  ;;  %v15344_v38 = vld [vmem:[#allocation2 + $0x24] sm:$0xff]  }
 0x462   : > { %14427 = vmatprep.subr.bf16.mxu1 %v17882_v47 }
 0x464   : > { %14364 = vmatmul.mubr.bf16.gmra.mrb[16].mxu1 %v12938_v13  ;;  %v17951_v13 = vld [vmem:[#allocation2 + $0x10] sm:$0xf] }
 0x465   : > { %14367 = vmatprep.mubr.bf16.mxu1 %v12939_v20  ;;  %v8241_v20 = vshll.u32 %v8189_v32, 16  ;;  %v8247_v18 = vshll.u32 %v17951_v13, 16  ;;  %v8251_v9 = vshrl.u32 %v17951_v13, 16 }
 0x467   : > { %v8243_v56 = vrot.slane %v8241_v20, 5  ;;  %v17960_v44 = vrot.slane %v8247_v18, 5 }
 0x469   : > { %v8244_v10 = vor.u32 %v8243_v56, %v8240_v6 }
 0x46c   : > { %14368 = vmatmul.mubr.bf16.gmra.mrb[20].mxu1 %v12940_v8  ;;  %v8253_v8 = vrot.slane %v8251_v9, 4 }
 0x46d   : > { %14371 = vmatprep.mubr.bf16.mxu1 %v12941_v40  ;;  %v8195_v40 = vld [vmem:[#allocation2 + $0x24] sm:$0xf] }
 0x46e   : > { %v8254_v11 = vor.u32 %v8253_v8, %v17960_v44  ;;  %v8289_v37 = vshll.u32 %v8195_v40, 16 }
 0x474   : > { %14372 = vmatmul.mubr.bf16.gmra.mrb[24].mxu1 %v12942_v36  ;;  %v8286_v36 = vshrl.u32 %v8195_v40, 16  ;;  %v18000_v40 = vld [vmem:[#allocation2 + $0x44] sm:$0x1] }
 0x475   : > { %14375 = vmatprep.mubr.bf16.mxu1 %v12943_v28  ;;  %v17974_v28 = vrot.slane %v8295_v24, 5 }
 0x47c   : > { %14376 = vmatmul.mubr.bf16.gmra.mrb[28].mxu1 %v12944_v3  ;;  %v8245_v3 = vrot.slane %v8244_v10, 4  ;;  %v15364_v10 = vld [vmem:[#allocation2 + $0xc0] sm:$0xff]  }
 0x47d   : > { %14395 = vmatprep.mubr.bf16.mxu1 %v15341_v17  ;;  %v8257_v17 = vshll.u32 %v17965_v27, 16 }
 0x47e   : > { %v8250_v60 = vsel %vm15535_vm4, %v8245_v3, %v17960_v44  ;;  %v8371_v3 = vshrl.u32 %v18002_v14, 16 }
 0x47f   : > { %v8259_v20 = vrot.slane %v8257_v17, 5  ;;  %v18013_v17 = vld [vmem:[#allocation2 + $0x58] sm:$0xf] }
 0x484   : > { %14396 = vmatmul.mubr.bf16.vlgmr.msra.gmra.mrb[0].mxu1 %v15343_v51  ;;  %v8281_v51 = vshll.u32 %v17972_v31, 16 }
 0x485   : > { %14428 = vmatpush3.bf16.msra.mxu1 %v17882_v47  ;;  %14399 = vmatprep.mubr.bf16.mxu1 %v15344_v38  ;;  %v15360_v47 = vld [vmem:[%s19153_s1 + $0x370] sm:$0xff]  }
 0x486   : > { %14429 = vmatprep.subr.bf16.mxu1 %v15345_v35  ;;  %v15362_v38 = vld [vmem:[#allocation2 + $0xb4] sm:$0xff]  }
 0x489   : > { %14430 = vmatpush3.bf16.msra.mxu1 %v15345_v35  ;;  %v8201_v35 = vld [vmem:[#allocation2 + $0x3c] sm:$0xf] }
 0x48a   : > { %14431 = vmatprep.subr.bf16.mxu1 %v15348_v62  ;;  %v8334_v32 = vshrl.u32 %v8201_v35, 16 }
 0x48c   : > { %14400 = vmatmul.mubr.bf16.gmra.mrb[4].mxu1 %v15346_v1  ;;  %v8268_v1 = vor.u32 %v8267_v43, %v8264_v52  ;;  %v8336_v24 = vrot.slane %v8334_v32, 4 }
 0x48d   : > { %14403 = vmatprep.mubr.bf16.mxu1 %v15347_v7  ;;  %14432 = vmatpush3.bf16.msra.mxu1 %v15348_v62  ;;  %v8255_v62 = vrot.slane %v8254_v11, 4  ;;  %v8288_v7 = vrot.slane %v8286_v36, 4  ;;  %v8358_v11 = vshrl.u32 %v8204_v59, 16 }
 0x48e   : > { %14433 = vmatprep.subr.bf16.mxu1 %v15351_v22  ;;  %v8269_v4 = vrot.slane %v8268_v1, 4 }
 0x48f   : > { %v8260_v15 = vsel %vm15535_vm4, %v8255_v62, %v8259_v20  ;;  %v8373_v20 = vrot.slane %v8371_v3, 4 }
 0x490   : > { %v13009_v36 = vcombine.low %v8250_v60, %v8260_v15 }
 0x491   : > { %14434 = vmatpush3.bf16.msra.mxu1 %v15351_v22  ;;  %v8278_v22 = vor.u32 %v8277_v12, %v17967_v63  ;;  %v8361_v12 = vshll.u32 %v8204_v59, 16  ;;  %v15366_v59 = vld [vmem:[%s19153_s1 + $0x388] sm:$0xff]  }
 0x492   : > { %14435 = vmatprep.subr.bf16.mxu1 %v15354_v41 }
 0x493   : > { %v8279_v6 = vrot.slane %v8278_v22, 4  ;;  %v8360_v22 = vrot.slane %v8358_v11, 4 }
 0x494   : > { %14404 = vmatmul.mubr.bf16.gmra.mrb[8].mxu1 %v15349_v0  ;;  %v17983_v0 = vld [vmem:[#allocation2 + $0x2c] sm:$0x1] }
 0x495   : > { %14407 = vmatprep.mubr.bf16.mxu1 %v15350_v46  ;;  %14436 = vmatpush3.bf16.msra.mxu1 %v15354_v41  ;;  %v17981_v41 = vld [vmem:[#allocation2 + $0x40] sm:$0xf]  ;;  %v8302_v46 = vor.u32 %v8301_v2, %v17974_v28  ;;  %v8305_v56 = vshll.u32 %v17983_v0, 16 }
 0x496   : > { %14437 = vmatprep.subr.bf16.mxu1 %v15357_v33  ;;  %v8343_v18 = vshll.u32 %v17981_v41, 16  ;;  %v8347_v9 = vshrl.u32 %v17981_v41, 16 }
 0x498   : > { %v18004_v52 = vrot.slane %v8343_v18, 5  ;;  %v8349_v43 = vrot.slane %v8347_v9, 4 }
 0x499   : > { %14438 = vmatpush3.bf16.msra.mxu1 %v15357_v33  ;;  %v8291_v33 = vrot.slane %v8289_v37, 5  ;;  %v8274_v37 = vsel %vm15535_vm4, %v8269_v4, %v17967_v63 }
 0x49a   : > { %14439 = vmatprep.subr.bf16.mxu1 %v15360_v47  ;;  %v8350_v1 = vor.u32 %v8349_v43, %v18004_v52 }
 0x49b   : > { %v8292_v29 = vor.u32 %v8291_v33, %v8288_v7  ;;  %v8363_v7 = vrot.slane %v8361_v12, 5  ;;  %v18019_v33 = vld [vmem:[#allocation2 + $0x50] sm:$0x1] }
 0x49c   : > { %14408 = vmatmul.mubr.bf16.gmra.mrb[12].mxu1 %v15352_v48  ;;  %v8315_v48 = vrot.slane %v8313_v19, 5  ;;  %v8207_v19 = vld [vmem:[#allocation2 + $0x54] sm:$0xf]  ;;  %v8351_v15 = vrot.slane %v8350_v1, 4 }
 0x49d   : > { %14411 = vmatprep.mubr.bf16.mxu1 %v15353_v50  ;;  %14440 = vmatpush3.bf16.msra.mxu1 %v15360_v47  ;;  %v8312_v47 = vrot.slane %v8310_v23, 4  ;;  %v17988_v50 = vrot.slane %v8319_v61, 5  ;;  %v8307_v23 = vrot.slane %v8305_v56, 5  ;;  %v8293_v61 = vrot.slane %v8292_v29, 4  ;;  %v18033_v56 = vld [vmem:[#allocation2 + $0x64] sm:$0xf] }
 0x49e   : > { %14441 = vmatprep.subr.bf16.mxu1 %v15363_v57  ;;  %v8364_v29 = vor.u32 %v8363_v7, %v8360_v22 }
 0x49f   : > { %v8316_v26 = vor.u32 %v8315_v48, %v8312_v47  ;;  %v8385_v47 = vshll.u32 %v8207_v19, 16  ;;  %v8391_v48 = vshll.u32 %v18013_v17, 16 }
 0x4a1   : > { %14442 = vmatpush3.bf16.msra.mxu1 %v15363_v57  ;;  %v17986_v57 = vld [vmem:[#allocation2 + $0x38] sm:$0x1] }
 0x4a2   : > { %14475 = vmatprep.subr.bf16.mxu1 %v17948_v25  ;;  %v8329_v8 = vshll.u32 %v17986_v57, 16 }
 0x4a4   : > { %14412 = vmatmul.mubr.bf16.gmra.mrb[16].mxu1 %v15355_v45  ;;  %v8325_v45 = vrot.slane %v8323_v21, 4  ;;  %v8331_v21 = vrot.slane %v8329_v8, 5  ;;  %v8213_v8 = vld [vmem:[#allocation2 + $0x6c] sm:$0xf] }
 0x4a5   : > { %14415 = vmatprep.mubr.bf16.mxu1 %v15356_v55  ;;  %v8337_v55 = vshll.u32 %v8201_v35, 16  ;;  %v8317_v35 = vrot.slane %v8316_v26, 4 }
 0x4a6   : > { %v8326_v44 = vor.u32 %v8325_v45, %v17988_v50  ;;  %v8395_v45 = vshrl.u32 %v18013_v17, 16 }
 0x4a7   : > { %v8339_v30 = vrot.slane %v8337_v55, 5  ;;  %v8298_v55 = vsel %vm15535_vm4, %v8293_v61, %v17974_v28  ;;  %v8322_v9 = vsel %vm15535_vm4, %v8317_v35, %v17988_v50  ;;  %v18039_v50 = vrot.slane %v8391_v48, 5 }
 0x4a8   : > { %v8327_v63 = vrot.slane %v8326_v44, 4  ;;  %v8387_v44 = vrot.slane %v8385_v47, 5 }
 0x4a9   : > { %v8340_v62 = vor.u32 %v8339_v30, %v8336_v24  ;;  %v8397_v24 = vrot.slane %v8395_v45, 4  ;;  %v18041_v30 = vld [vmem:[#allocation2 + $0x70] sm:$0xf] }
 0x4aa   : > { %v8332_v4 = vsel %vm15535_vm4, %v8327_v63, %v8331_v21  ;;  %v8443_v3 = vshrl.u32 %v18041_v30, 16 }
 0x4ab   : > { %v8341_v28 = vrot.slane %v8340_v62, 4  ;;  %v18060_v62 = vld [vmem:[#allocation2 + $0x7c] sm:$0xf] }
 0x4ac   : > { %14416 = vmatmul.mubr.bf16.gmra.mrb[20].mxu1 %v15358_v54  ;;  %v8283_v54 = vrot.slane %v8281_v51, 5 }
 0x4ad   : > { %14419 = vmatprep.mubr.bf16.mxu1 %v15359_v34  ;;  %v8303_v34 = vrot.slane %v8302_v46, 4  ;;  %v8382_v46 = vshrl.u32 %v8207_v19, 16  ;;  %v8433_v19 = vshll.u32 %v8213_v8, 16  ;;  %v8346_v61 = vsel %vm15535_vm4, %v8341_v28, %v18004_v52 }
 0x4ae   : > { %v8284_v2 = vsel %vm15535_vm4, %v8279_v6, %v8283_v54  ;;  %v8210_v54 = vld [vmem:[#allocation2 + $0x60] sm:$0xf] }
 0x4af   : > { %v8308_v51 = vsel %vm15535_vm4, %v8303_v34, %v8307_v23  ;;  %v13010_v32 = vcombine.low %v8274_v37, %v8284_v2  ;;  %v8377_v34 = vshll.u32 %v18019_v33, 16  ;;  %v8384_v26 = vrot.slane %v8382_v46, 4 }
 0x4b0   : > { %v13011_v18 = vcombine.low %v8298_v55, %v8308_v51  ;;  %v8406_v11 = vshrl.u32 %v8210_v54, 16  ;;  %v8409_v12 = vshll.u32 %v8210_v54, 16  ;;  %v8415_v37 = vshll.u32 %v18033_v56, 16  ;;  %v15368_v55 = vld [vmem:[%s19153_s1 + $0x398] sm:$0xff]  }
 0x4b1   : > { %v8419_v2 = vshrl.u32 %v18033_v56, 16  ;;  %v8430_v23 = vshrl.u32 %v8213_v8, 16  ;;  %v8365_v51 = vrot.slane %v8364_v29, 4  ;;  %v8379_v35 = vrot.slane %v8377_v34, 5  ;;  %v18077_v29 = vld [vmem:[#allocation2 + $0x68] sm:$0x1] }
 0x4b2   : > { %v8388_v63 = vor.u32 %v8387_v44, %v8384_v26  ;;  %v8408_v22 = vrot.slane %v8406_v11, 4  ;;  %v8411_v7 = vrot.slane %v8409_v12, 5  ;;  %v18063_v46 = vrot.slane %v8415_v37, 5  ;;  %v18079_v8 = vld [vmem:[#allocation2 + $0x74] sm:$0x1]  ;;  %v15369_v12 = vld [vmem:[%s19153_s1 + $0x3a0] sm:$0xff]  }
 0x4b3   : > { %v8421_v47 = vrot.slane %v8419_v2, 4  ;;  %v8432_v48 = vrot.slane %v8430_v23, 4  ;;  %v8435_v45 = vrot.slane %v8433_v19, 5  ;;  %v8219_v23 = vld [vmem:[#allocation2 + $0x84] sm:$0xf] }
 0x4b4   : > { %14420 = vmatmul.mubr.bf16.gmra.mrb[24].mxu1 %v15361_v5  ;;  %v8367_v5 = vshll.u32 %v18002_v14, 16  ;;  %v8389_v54 = vrot.slane %v8388_v63, 4  ;;  %v8412_v34 = vor.u32 %v8411_v7, %v8408_v22  ;;  %v18099_v63 = vld [vmem:[#allocation2 + $0x80] sm:$0x1]  ;;  %v8481_v22 = vshll.u32 %v8219_v23, 16 }
 0x4b5   : > { %14423 = vmatprep.mubr.bf16.mxu1 %v15362_v38  ;;  %v8353_v38 = vshll.u32 %v18000_v40, 16  ;;  %v8422_v44 = vor.u32 %v8421_v47, %v18063_v46  ;;  %v8436_v11 = vor.u32 %v8435_v45, %v8432_v48  ;;  %v15370_v45 = vld [vmem:[%s19153_s1 + $0x3a8] sm:$0xff]  }
 0x4b6   : > { %v18026_v60 = vrot.slane %v8367_v5, 5  ;;  %v8439_v5 = vshll.u32 %v18041_v30, 16 }
 0x4b7   : > { %v8355_v6 = vrot.slane %v8353_v38, 5  ;;  %v8398_v38 = vor.u32 %v8397_v24, %v18039_v50  ;;  %v8437_v7 = vrot.slane %v8436_v11, 4 }
 0x4b8   : > { %v8374_v43 = vor.u32 %v8373_v20, %v18026_v60  ;;  %v18068_v20 = vrot.slane %v8439_v5, 5  ;;  %v8370_v28 = vsel %vm15535_vm4, %v8365_v51, %v18026_v60  ;;  %v8413_v5 = vrot.slane %v8412_v34, 4 }
 0x4b9   : > { %v8356_v21 = vsel %vm15535_vm4, %v8351_v15, %v8355_v6 }
 0x4ba   : > { %v8375_v1 = vrot.slane %v8374_v43, 4  ;;  %v13013_v6 = vcombine.low %v8346_v61, %v8356_v21  ;;  %v8394_v61 = vsel %vm15535_vm4, %v8389_v54, %v18039_v50  ;;  %v8423_v50 = vrot.slane %v8422_v44, 4  ;;  %v18113_v44 = vld [vmem:[#allocation2 + $0xa0] sm:$0xf] }
 0x4bc   : > { %14424 = vmatmul.mubr.bf16.gmra.mrb[28].mxu1 %v15364_v10  ;;  %v13012_v10 = vcombine.low %v8322_v9, %v8332_v4  ;;  %v8463_v9 = vshll.u32 %v18060_v62, 16  ;;  %v8467_v4 = vshrl.u32 %v18060_v62, 16  ;;  %v8380_v15 = vsel %vm15535_vm4, %v8375_v1, %v8379_v35 }
 0x4bd   : > { %14443 = vmatprep.mubr.bf16.mxu1 %v13009_v36  ;;  %v18045_v36 = vld [vmem:[#allocation2 + $0x5c] sm:$0x1]  ;;  %v13014_v19 = vcombine.low %v8370_v28, %v8380_v15  ;;  %v8418_v28 = vsel %vm15535_vm4, %v8413_v5, %v18063_v46  ;;  %v15371_v46 = vld [vmem:[%s19153_s1 + $0x3b0] sm:$0xff]   ;;  %v8535_v5 = vshll.u32 %v18113_v44, 16 }
 0x4be   : > { %v8401_v52 = vshll.u32 %v18045_v36, 16  ;;  %v18088_v37 = vrot.slane %v8463_v9, 5  ;;  %v8469_v2 = vrot.slane %v8467_v4, 4  ;;  %v8222_v9 = vld [vmem:[#allocation2 + $0x90] sm:$0xf]  ;;  %v8473_v4 = vshll.u32 %v18099_v63, 16 }
 0x4c0   : > { %v8403_v26 = vrot.slane %v8401_v52, 5  ;;  %v8478_v52 = vshrl.u32 %v8219_v23, 16  ;;  %v8470_v48 = vor.u32 %v8469_v2, %v18088_v37  ;;  %v18122_v2 = vld [vmem:[#allocation2 + $0x8c] sm:$0x1]  ;;  %v8505_v23 = vshll.u32 %v8222_v9, 16 }
 0x4c2   : > { %v8480_v34 = vrot.slane %v8478_v52, 4 }
 0x4c4   : > { %14444 = vmatmul.mubr.bf16.vlgmr.msra.gmra.mrb[0].mxu1 %v13010_v32  ;;  %v8216_v32 = vld [vmem:[#allocation2 + $0x78] sm:$0xf] }
 0x4c5   : > { %14476 = vmatpush3.bf16.msra.mxu1 %v17948_v25  ;;  %14447 = vmatprep.mubr.bf16.mxu1 %v13011_v18  ;;  %v15367_v25 = vld [vmem:[%s19153_s1 + $0x390] sm:$0xff]   ;;  %v8445_v18 = vrot.slane %v8443_v3, 4  ;;  %v8454_v24 = vshrl.u32 %v8216_v32, 16  ;;  %v8457_v43 = vshll.u32 %v8216_v32, 16  ;;  %v8449_v3 = vshll.u32 %v18079_v8, 16 }
 0x4c6   : > { %14477 = vmatprep.subr.bf16.mxu1 %v15366_v59 }
 0x4c7   : > { %v8446_v60 = vor.u32 %v8445_v18, %v18068_v20  ;;  %v8459_v1 = vrot.slane %v8457_v43, 5  ;;  %v8442_v43 = vsel %vm15535_vm4, %v8437_v7, %v18068_v20 }
 0x4c9   : > { %14478 = vmatpush3.bf16.msra.mxu1 %v15366_v59  ;;  %v8399_v59 = vrot.slane %v8398_v38, 4  ;;  %v8456_v38 = vrot.slane %v8454_v24, 4  ;;  %v8447_v47 = vrot.slane %v8446_v60, 4  ;;  %v8471_v60 = vrot.slane %v8470_v48, 4 }
 0x4ca   : > { %14479 = vmatprep.subr.bf16.mxu1 %v15367_v25 }
 0x4cb   : > { %v8404_v21 = vsel %vm15535_vm4, %v8399_v59, %v8403_v26  ;;  %v18108_v59 = vld [vmem:[#allocation2 + $0x94] sm:$0xf]  ;;  %v8460_v15 = vor.u32 %v8459_v1, %v8456_v38  ;;  %v8483_v26 = vrot.slane %v8481_v22, 5  ;;  %v8497_v22 = vshll.u32 %v18122_v2, 16 }
 0x4cc   : > { %14448 = vmatmul.mubr.bf16.gmra.mrb[4].mxu1 %v13012_v10  ;;  %v18082_v10 = vld [vmem:[#allocation2 + $0x88] sm:$0xf]  ;;  %v13015_v32 = vcombine.low %v8394_v61, %v8404_v21  ;;  %v8515_v61 = vshrl.u32 %v18108_v59, 16  ;;  %v8225_v21 = vld [vmem:[#allocation2 + $0x9c] sm:$0xf] }
 0x4cd   : > { %14451 = vmatprep.mubr.bf16.mxu1 %v13013_v6  ;;  %14480 = vmatpush3.bf16.msra.mxu1 %v15367_v25  ;;  %v8425_v25 = vshll.u32 %v18077_v29, 16  ;;  %v8487_v51 = vshll.u32 %v18082_v10, 16  ;;  %v8491_v35 = vshrl.u32 %v18082_v10, 16  ;;  %v8461_v38 = vrot.slane %v8460_v15, 4 }
 0x4ce   : > { %14481 = vmatprep.subr.bf16.mxu1 %v15368_v55  ;;  %v8484_v1 = vor.u32 %v8483_v26, %v8480_v34  ;;  %v8529_v7 = vshll.u32 %v8225_v21, 16  ;;  %v18147_v34 = vld [vmem:[#allocation2 + $0x98] sm:$0x1] }
 0x4cf   : > { %v8427_v18 = vrot.slane %v8425_v25, 5  ;;  %v18106_v6 = vrot.slane %v8487_v51, 5  ;;  %v8493_v54 = vrot.slane %v8491_v35, 4  ;;  %v8475_v25 = vrot.slane %v8473_v4, 5  ;;  %v18149_v26 = vld [vmem:[#allocation2 + $0xb8] sm:$0xf] }
 0x4d0   : > { %v8485_v15 = vrot.slane %v8484_v1, 4  ;;  %19224 = vst [vmem:[#allocation9_spill] sm:$0xff] %v18149_v26 }
 0x4d1   : > { %14482 = vmatpush3.bf16.msra.mxu1 %v15368_v55  ;;  %v8451_v55 = vrot.slane %v8449_v3, 5  ;;  %v8428_v24 = vsel %vm15535_vm4, %v8423_v50, %v8427_v18  ;;  %v8494_v20 = vor.u32 %v8493_v54, %v18106_v6  ;;  %v8539_v3 = vshrl.u32 %v18113_v44, 16  ;;  %v18142_v54 = vld [vmem:[#allocation2 + $0xac] sm:$0xf] }
 0x4d2   : > { %14483 = vmatprep.subr.bf16.mxu1 %v15369_v12  ;;  %v13016_v51 = vcombine.low %v8418_v28, %v8428_v24  ;;  %v8476_v52 = vsel %vm15535_vm4, %v8471_v60, %v8475_v25  ;;  %v8526_v50 = vshrl.u32 %v8225_v21, 16  ;;  %19223 = vst [vmem:[#allocation8_spill] sm:$0xff] %v18142_v54  ;;  %v8466_v28 = vsel %vm15535_vm4, %v8461_v38, %v18088_v37  ;;  %v8231_v25 = vld [vmem:[#allocation2 + $0xb4] sm:$0xf] }
 0x4d3   : > { %v8452_v11 = vsel %vm15535_vm4, %v8447_v47, %v8451_v55  ;;  %v15372_v47 = vld [vmem:[%s19153_s1 + $0x3b8] sm:$0xff]   ;;  %v8495_v55 = vrot.slane %v8494_v20, 4  ;;  %v8541_v4 = vrot.slane %v8539_v3, 4  ;;  %v13018_v24 = vcombine.low %v8466_v28, %v8476_v52 }
 0x4d4   : > { %14452 = vmatmul.mubr.bf16.gmra.mrb[8].mxu1 %v13014_v19  ;;  %v8511_v19 = vshll.u32 %v18108_v59, 16  ;;  %v13017_v35 = vcombine.low %v8442_v43, %v8452_v11  ;;  %v8499_v43 = vrot.slane %v8497_v22, 5  ;;  %v8528_v11 = vrot.slane %v8526_v50, 4 }
 0x4d5   : > { %14455 = vmatprep.mubr.bf16.mxu1 %v13015_v32  ;;  %14484 = vmatpush3.bf16.msra.mxu1 %v15369_v12  ;;  %v8502_v12 = vshrl.u32 %v8222_v9, 16  ;;  %v8507_v32 = vrot.slane %v8505_v23, 5  ;;  %v8517_v9 = vrot.slane %v8515_v61, 4  ;;  %v8531_v60 = vrot.slane %v8529_v7, 5  ;;  %v18154_v23 = vld [vmem:[%s19153_s1 + $0x3c0] sm:$0xff]  }
 0x4d6   : > { %14485 = vmatprep.subr.bf16.mxu1 %v15370_v45  ;;  %v18138_v18 = vrot.slane %v8511_v19, 5  ;;  %v18157_v61 = vld [vmem:[#allocation2 + $0xa4] sm:$0x1]  ;;  %v8563_v21 = vshrl.u32 %v18142_v54, 16  ;;  %v8500_v20 = vsel %vm15535_vm4, %v8495_v55, %v8499_v43  ;;  %v8583_v3 = vshll.u32 %v18149_v26, 16 }
 0x4d7   : > { %v8504_v48 = vrot.slane %v8502_v12, 4  ;;  %v8228_v12 = vld [vmem:[#allocation2 + $0xa8] sm:$0xf]  ;;  %v8521_v38 = vshll.u32 %v18147_v34, 16  ;;  %v8532_v22 = vor.u32 %v8531_v60, %v8528_v11  ;;  %v8545_v50 = vshll.u32 %v18157_v61, 16 }
 0x4d8   : > { %v8518_v37 = vor.u32 %v8517_v9, %v18138_v18  ;;  %v8550_v1 = vshrl.u32 %v8228_v12, 16  ;;  %v8553_v52 = vshll.u32 %v8228_v12, 16  ;;  %v8574_v7 = vshrl.u32 %v8231_v25, 16  ;;  %v18174_v11 = vld [vmem:[#allocation2 + $0xb0] sm:$0x1] }
 0x4d9   : > { %14486 = vmatpush3.bf16.msra.mxu1 %v15370_v45  ;;  %v18140_v45 = vrot.slane %v8535_v5, 5  ;;  %v8508_v19 = vor.u32 %v8507_v32, %v8504_v48  ;;  %v8577_v48 = vshll.u32 %v8231_v25, 16  ;;  %v8533_v25 = vrot.slane %v8532_v22, 4 }
 0x4da   : > { %14487 = vmatprep.subr.bf16.mxu1 %v15371_v46  ;;  %v8519_v9 = vrot.slane %v8518_v37, 4  ;;  %v8552_v60 = vrot.slane %v8550_v1, 4  ;;  %v8555_v12 = vrot.slane %v8553_v52, 5  ;;  %v8234_v37 = vld [vmem:[#allocation2 + $0xc0] sm:$0xf]  ;;  %v8569_v1 = vshll.u32 %v18174_v11, 16 }
 0x4db   : > { %v8542_v5 = vor.u32 %v8541_v4, %v18140_v45  ;;  %v8565_v4 = vrot.slane %v8563_v21, 4  ;;  %v8509_v28 = vrot.slane %v8508_v19, 4  ;;  %v8607_v21 = vshll.u32 %v18172_v49, 16 }
 0x4dc   : > { %14456 = vmatmul.mubr.bf16.gmra.mrb[12].mxu1 %v13016_v51  ;;  %v8587_v51 = vshrl.u32 %v18149_v26, 16  ;;  %v8547_v26 = vrot.slane %v8545_v50, 5  ;;  %v8598_v52 = vshrl.u32 %v8234_v37, 16  ;;  %v8601_v22 = vshll.u32 %v8234_v37, 16 }
 0x4dd   : > { %14459 = vmatprep.mubr.bf16.mxu1 %v13017_v35  ;;  %14488 = vmatpush3.bf16.msra.mxu1 %v15371_v46  ;;  %v8559_v46 = vshll.u32 %v18142_v54, 16  ;;  %v8490_v35 = vsel %vm15535_vm4, %v8485_v15, %v18106_v6  ;;  %v8543_v43 = vrot.slane %v8542_v5, 4  ;;  %v8585_v6 = vrot.slane %v8583_v3, 5 }
 0x4de   : > { %14489 = vmatprep.subr.bf16.mxu1 %v15372_v47  ;;  %v13019_v32 = vcombine.low %v8490_v35, %v8500_v20  ;;  %v8589_v15 = vrot.slane %v8587_v51, 4  ;;  %v8576_v54 = vrot.slane %v8574_v7, 4  ;;  %v8579_v20 = vrot.slane %v8577_v48, 5 }
 0x4df   : > { %v8561_v55 = vrot.slane %v8559_v46, 5  ;;  %v18178_v46 = vld [vmem:[#allocation2 + $0xbc] sm:$0x1]  ;;  %v8611_v5 = vshrl.u32 %v18172_v49, 16  ;;  %v8514_v3 = vsel %vm15535_vm4, %v8509_v28, %v18138_v18  ;;  %v8548_v51 = vsel %vm15535_vm4, %v8543_v43, %v8547_v26 }
 0x4e0   : > { %v8590_v35 = vor.u32 %v8589_v15, %v8585_v6  ;;  %v8538_v7 = vsel %vm15535_vm4, %v8533_v25, %v18140_v45  ;;  %v8580_v48 = vor.u32 %v8579_v20, %v8576_v54  ;;  %v8609_v18 = vrot.slane %v8607_v21, 5 }
 0x4e1   : > { %14490 = vmatpush3.bf16.msra.mxu1 %v15372_v47  ;;  %v8523_v47 = vrot.slane %v8521_v38, 5  ;;  %v8566_v19 = vor.u32 %v8565_v4, %v8561_v55  ;;  %v8556_v38 = vor.u32 %v8555_v12, %v8552_v60  ;;  %v8613_v28 = vrot.slane %v8611_v5, 4 }
 0x4e2   : > { %14523 = vmatprep.subr.bf16.mxu1 %v18154_v23  ;;  %v8591_v26 = vrot.slane %v8590_v35, 4  ;;  %v8571_v15 = vrot.slane %v8569_v1, 5  ;;  %v8603_v60 = vrot.slane %v8601_v22, 5  ;;  %v8581_v12 = vrot.slane %v8580_v48, 4 }
 0x4e3   : > { %v8567_v4 = vrot.slane %v8566_v19, 4  ;;  %v8557_v43 = vrot.slane %v8556_v38, 4  ;;  %v8614_v54 = vor.u32 %v8613_v28, %v8609_v18  ;;  %v9009_v20 = vrot.slane %v17951_v13, 5 }
 0x4e4   : > { %14460 = vmatmul.mubr.bf16.gmra.mrb[16].mxu1 %v13018_v24  ;;  %v8524_v24 = vsel %vm15535_vm4, %v8519_v9, %v8523_v47  ;;  %v13021_v9 = vcombine.low %v8538_v7, %v8548_v51  ;;  %v8600_v47 = vrot.slane %v8598_v52, 4  ;;  %v8586_v51 = vsel %vm15535_vm4, %v8581_v12, %v8585_v6 }
 0x4e5   : > { %14463 = vmatprep.mubr.bf16.mxu1 %v13019_v32  ;;  %v13020_v50 = vcombine.low %v8514_v3, %v8524_v24  ;;  %v8593_v32 = vshll.u32 %v18178_v46, 16  ;;  %v18192_v24 = vld [vmem:[#allocation2 + $0xc8] sm:$0x1]  ;;  %v8572_v45 = vsel %vm15535_vm4, %v8567_v4, %v8571_v15  ;;  %v8562_v19 = vsel %vm15535_vm4, %v8557_v43, %v8561_v55  ;;  %v8944_v43 = vld [vmem:[#allocation2 + $0x18] sm:$0xe] }
 0x4e6   : > { %v8604_v21 = vor.u32 %v8603_v60, %v8600_v47  ;;  %v8617_v5 = vshll.u32 %v18192_v24, 16  ;;  %v13022_v3 = vcombine.low %v8562_v19, %v8572_v45  ;;  %v8615_v38 = vrot.slane %v8614_v54, 4  ;;  %v8945_v47 = vld [vmem:[#allocation2 + $0x24] sm:$0xe] }
 0x4e7   : > { %v8595_v37 = vrot.slane %v8593_v32, 5  ;;  %v9011_v1 = vrot.slane %v9009_v20, 4  ;;  %v9012_v13 = vrot.slane %v17965_v27, 5  ;;  %v9016_v7 = vrot.slane %v17955_v53, 5 }
 0x4e8   : > { %v8605_v52 = vrot.slane %v8604_v21, 4  ;;  %v8619_v22 = vrot.slane %v8617_v5, 5  ;;  %v9023_v6 = vrot.slane %v17957_v58, 5  ;;  %v9019_v53 = vrot.slane %v17972_v31, 5 }
 0x4e9   : > { %v8596_v25 = vsel %vm15535_vm4, %v8591_v26, %v8595_v37  ;;  %v9013_v32 = vsel %vm16312_vm5, %v9011_v1, %v9012_v13  ;;  %v9018_v27 = vrot.slane %v9016_v7, 4  ;;  %v9026_v60 = vrot.slane %v17983_v0, 5  ;;  %v15374_v0 = vld [vmem:[%s19153_s1 + $0x3c8] sm:$0xff]  }
 0x4ea   : > { %v13023_v35 = vcombine.low %v8586_v51, %v8596_v25  ;;  %v8620_v55 = vsel %vm15535_vm4, %v8615_v38, %v8619_v22  ;;  %v9025_v15 = vrot.slane %v9023_v6, 4  ;;  %v13034_v12 = vrot.slane %v8944_v43, 9 }
 0x4eb   : > { %v9020_v58 = vsel %vm16312_vm5, %v9018_v27, %v9019_v53  ;;  %v13035_v37 = vrot.slane %v8945_v47, 9  ;;  %v9037_v54 = vrot.slane %v17981_v41, 5  ;;  %v9033_v41 = vrot.slane %v17986_v57, 5 }
 0x4ec   : > { %14464 = vmatmul.mubr.bf16.gmra.mrb[20].mxu1 %v13020_v50  ;;  %v8943_v50 = vld [vmem:[#allocation2 + $0xc] sm:$0xe]  ;;  %v9027_v45 = vsel %vm16312_vm5, %v9025_v15, %v9026_v60  ;;  %v9017_v25 = vsel %vm16312_vm5, %v13034_v12, %v9016_v7  ;;  %v9040_v51 = vrot.slane %v18000_v40, 5  ;;  %v9051_v57 = vrot.slane %v18013_v17, 5 }
 0x4ed   : > { %14467 = vmatprep.mubr.bf16.mxu1 %v13021_v9  ;;  %v13033_v48 = vrot.slane %v8943_v50, 9  ;;  %v8610_v9 = vsel %vm15535_vm4, %v8605_v52, %v8609_v18  ;;  %v9030_v18 = vrot.slane %v17969_v42, 5  ;;  %v9024_v31 = vsel %vm16312_vm5, %v13035_v37, %v9023_v6  ;;  %v8946_v42 = vld [vmem:[#allocation2 + $0x30] sm:$0xe]  ;;  %v8949_v6 = vld [vmem:[#allocation2 + $0x54] sm:$0xe] }
 0x4ee   : > { %v13024_v4 = vcombine.low %v8610_v9, %v8620_v55  ;;  %v13067_v19 = vcombine.low %v9024_v31, %v9027_v45  ;;  %v9039_v5 = vrot.slane %v9037_v54, 4  ;;  %v13036_v38 = vrot.slane %v8946_v42, 9  ;;  %v15376_v55 = vld [vmem:[%s19153_s1 + $0x3d8] sm:$0xff]   ;;  %v15378_v60 = vld [vmem:[%s19153_s1 + $0x3e8] sm:$0xff]  }
 0x4ef   : > { %v9010_v28 = vsel %vm16312_vm5, %v13033_v48, %v9009_v20  ;;  %v13066_v20 = vcombine.low %v9017_v25, %v9020_v58  ;;  %v9032_v21 = vrot.slane %v9030_v18, 4  ;;  %v9044_v52 = vrot.slane %v18002_v14, 5  ;;  %v8948_v48 = vld [vmem:[#allocation2 + $0x48] sm:$0xe]  ;;  %v8950_v58 = vld [vmem:[#allocation2 + $0x60] sm:$0xe] }
 0x4f0   : > { %v13065_v26 = vcombine.low %v9010_v28, %v9013_v32  ;;  %v9031_v50 = vsel %vm16312_vm5, %v13036_v38, %v9030_v18  ;;  %v9053_v32 = vrot.slane %v9051_v57, 4  ;;  %v9047_v17 = vrot.slane %v18019_v33, 5  ;;  %v8951_v37 = vld [vmem:[#allocation2 + $0x6c] sm:$0xe] }
 0x4f1   : > { %v9034_v1 = vsel %vm16312_vm5, %v9032_v21, %v9033_v41  ;;  %v9046_v7 = vrot.slane %v9044_v52, 4  ;;  %v9054_v9 = vrot.slane %v18045_v36, 5  ;;  %v13038_v28 = vrot.slane %v8948_v48, 9 }
 0x4f2   : > { %v13068_v40 = vcombine.low %v9031_v50, %v9034_v1  ;;  %v9058_v27 = vrot.slane %v18033_v56, 5  ;;  %v13039_v43 = vrot.slane %v8949_v6, 9  ;;  %v9065_v33 = vrot.slane %v18041_v30, 5  ;;  %v18290_v1 = vld [vmem:[%s19153_s1 + $0x400] sm:$0xff]  }
 0x4f3   : > { %v9055_v15 = vsel %vm16312_vm5, %v9053_v32, %v9054_v9  ;;  %v9045_v36 = vsel %vm16312_vm5, %v13038_v28, %v9044_v52  ;;  %v9061_v30 = vrot.slane %v18077_v29, 5  ;;  %v9068_v45 = vrot.slane %v18079_v8, 5  ;;  %v8955_v32 = vld [vmem:[#allocation2 + $0x9c] sm:$0xe]  ;;  %v19225_v9 = vld [vmem:[#allocation8_spill] sm:$0xff] }
 0x4f4   : > { %14468 = vmatmul.mubr.bf16.gmra.mrb[24].mxu1 %v13022_v3  ;;  %v8947_v3 = vld [vmem:[#allocation2 + $0x3c] sm:$0xe]  ;;  %v9052_v47 = vsel %vm16312_vm5, %v13039_v43, %v9051_v57  ;;  %v9060_v12 = vrot.slane %v9058_v27, 4  ;;  %v9067_v18 = vrot.slane %v9065_v33, 4  ;;  %v13040_v25 = vrot.slane %v8950_v58, 9 }
 0x4f5   : > { %14471 = vmatprep.mubr.bf16.mxu1 %v13023_v35  ;;  %v15375_v35 = vld [vmem:[%s19153_s1 + $0x3d0] sm:$0xff]   ;;  %v13037_v22 = vrot.slane %v8947_v3, 9  ;;  %v13071_v56 = vcombine.low %v9052_v47, %v9055_v15  ;;  %v9072_v31 = vrot.slane %v18060_v62, 5  ;;  %v9079_v29 = vrot.slane %v18082_v10, 5  ;;  %v8952_v3 = vld [vmem:[#allocation2 + $0x78] sm:$0xe] }
 0x4f6   : > { %v9059_v8 = vsel %vm16312_vm5, %v13040_v25, %v9058_v27  ;;  %v9075_v10 = vrot.slane %v18099_v63, 5  ;;  %v9082_v38 = vrot.slane %v18122_v2, 5  ;;  %v13042_v52 = vrot.slane %v8952_v3, 9  ;;  %v19226_v27 = vld [vmem:[#allocation9_spill] sm:$0xff]  ;;  %v15391_v3 = vld [vmem:[%s19153_s1 + $0x418] sm:$0xff]  }
 0x4f7   : > { %v9038_v13 = vsel %vm16312_vm5, %v13037_v22, %v9037_v54  ;;  %v15379_v54 = vld [vmem:[%s19153_s1 + $0x3f0] sm:$0xff]   ;;  %v9074_v41 = vrot.slane %v9072_v31, 4  ;;  %v9093_v50 = vrot.slane %v18113_v44, 5  ;;  %v9089_v48 = vrot.slane %v18147_v34, 5 }
 0x4f8   : > { %v9073_v2 = vsel %vm16312_vm5, %v13042_v52, %v9072_v31  ;;  %v9096_v44 = vrot.slane %v18157_v61, 5  ;;  %v13045_v28 = vrot.slane %v8955_v32, 9  ;;  %v9107_v43 = vrot.slane %v19226_v27, 5  ;;  %v15400_v52 = vld [vmem:[%s19153_s1 + $0x430] sm:$0xff]  }
 0x4f9   : > { %v9076_v22 = vsel %vm16312_vm5, %v9074_v41, %v9075_v10  ;;  %v15386_v41 = vld [vmem:[#allocation2 + $0x3c] sm:$0xff]  }
 0x4fa   : > { %v9094_v34 = vsel %vm16312_vm5, %v13045_v28, %v9093_v50  ;;  %v9109_v47 = vrot.slane %v9107_v43, 4  ;;  %v15394_v10 = vld [vmem:[%s19153_s1 + $0x420] sm:$0xff]  }
 0x4fc   : > { %14472 = vmatmul.mubr.bf16.gmra.mrb[28].mxu1 %v13024_v4  ;;  %v15377_v4 = vld [vmem:[%s19153_s1 + $0x3e0] sm:$0xff]  }
 0x4fd   : > { %14491 = vmatprep.mubr.bf16.mxu1 %v13065_v26  ;;  %v9048_v26 = vsel %vm16312_vm5, %v9046_v7, %v9047_v17  ;;  %v9095_v7 = vrot.slane %v9093_v50, 4  ;;  %v18358_v50 = vld [vmem:[%s19153_s1 + $0x440] sm:$0xff]  }
 0x4fe   : > { %v13070_v53 = vcombine.low %v9045_v36, %v9048_v26 }
 0x4ff   : > { %v9097_v26 = vsel %vm16312_vm5, %v9095_v7, %v9096_v44 }
 0x500   : > { %v13077_v61 = vcombine.low %v9094_v34, %v9097_v26  ;;  %v18365_v26 = vld [vmem:[#allocation2 + $0x20] sm:$0x1] }
 0x504   : > { %14492 = vmatmul.mubr.bf16.vlgmr.msra.gmra.mrb[0].mxu1 %v13066_v20  ;;  %v9062_v20 = vsel %vm16312_vm5, %v9060_v12, %v9061_v30  ;;  %v9110_v12 = vrot.slane %v18178_v46, 5  ;;  %v9114_v30 = vrot.slane %v18172_v49, 5  ;;  %v8958_v46 = vld [vmem:[#allocation2 + $0xc0] sm:$0xe] }
 0x505   : > { %14524 = vmatpush3.bf16.msra.mxu1 %v18154_v23  ;;  %14495 = vmatprep.mubr.bf16.mxu1 %v13067_v19  ;;  %v9041_v23 = vsel %vm16312_vm5, %v9039_v5, %v9040_v51  ;;  %v9069_v19 = vsel %vm16312_vm5, %v9067_v18, %v9068_v45  ;;  %v13072_v21 = vcombine.low %v9059_v8, %v9062_v20  ;;  %v15380_v5 = vld [vmem:[%s19153_s1 + $0x3f8] sm:$0xff]   ;;  %v9081_v51 = vrot.slane %v9079_v29, 4 }
 0x506   : > { %14525 = vmatprep.subr.bf16.mxu1 %v15374_v0  ;;  %v13069_v14 = vcombine.low %v9038_v13, %v9041_v23  ;;  %v9086_v23 = vrot.slane %v18108_v59, 5  ;;  %v8954_v59 = vld [vmem:[#allocation2 + $0x90] sm:$0xe]  ;;  %v9111_v45 = vsel %vm16312_vm5, %v9109_v47, %v9110_v12  ;;  %v9116_v31 = vrot.slane %v9114_v30, 4  ;;  %v18372_v12 = vld [vmem:[#allocation2 + $0x2c] sm:$0x1] }
 0x507   : > { %v9083_v63 = vsel %vm16312_vm5, %v9081_v51, %v9082_v38  ;;  %v13044_v17 = vrot.slane %v8954_v59, 9  ;;  %v15387_v51 = vld [vmem:[#allocation2 + $0x48] sm:$0xff]   ;;  %v9895_v47 = vshll.u32 %v18365_v26, 16 }
 0x508   : > { %v15397_v38 = vld [vmem:[%s19153_s1 + $0x428] sm:$0xff]  }
 0x509   : > { %14526 = vmatpush3.bf16.msra.mxu1 %v15374_v0  ;;  %v13041_v0 = vrot.slane %v8951_v37, 9  ;;  %v9087_v15 = vsel %vm16312_vm5, %v13044_v17, %v9086_v23  ;;  %v18363_v17 = vld [vmem:[#allocation2 + $0x28] sm:$0xf] }
 0x50a   : > { %14527 = vmatprep.subr.bf16.mxu1 %v15375_v35  ;;  %v9909_v27 = vshll.u32 %v18363_v17, 16  ;;  %v9913_v34 = vshrl.u32 %v18363_v17, 16 }
 0x50b   : > { %v9066_v42 = vsel %vm16312_vm5, %v13041_v0, %v9065_v33  ;;  %v9117_v0 = vrot.slane %v18192_v24, 5  ;;  %v15388_v24 = vld [vmem:[%s19153_s1 + $0x410] sm:$0xff]  }
 0x50c   : > { %14496 = vmatmul.mubr.bf16.gmra.mrb[4].mxu1 %v13068_v40  ;;  %v13073_v62 = vcombine.low %v9066_v42, %v9069_v19  ;;  %v13074_v40 = vcombine.low %v9073_v2, %v9076_v22  ;;  %v13048_v19 = vrot.slane %v8958_v46, 9  ;;  %v15383_v42 = vld [vmem:[#allocation2 + $0x24] sm:$0xff]   ;;  %v15392_v22 = vld [vmem:[#allocation2 + $0x6c] sm:$0xff]   ;;  %v9827_v2 = vld [vmem:[#allocation2 + $0x18] sm:$0xf]  ;;  %v9919_v46 = vshll.u32 %v18372_v12, 16 }
 0x50d   : > { %14499 = vmatprep.mubr.bf16.mxu1 %v13069_v14  ;;  %14528 = vmatpush3.bf16.msra.mxu1 %v15375_v35  ;;  %v8953_v35 = vld [vmem:[#allocation2 + $0x84] sm:$0xe]  ;;  %v9088_v14 = vrot.slane %v9086_v23, 4  ;;  %v9118_v49 = vsel %vm16312_vm5, %v9116_v31, %v9117_v0  ;;  %v15403_v23 = vld [vmem:[%s19153_s1 + $0x438] sm:$0xff]   ;;  %v9876_v59 = vshrl.u32 %v9827_v2, 16  ;;  %v9879_v7 = vshll.u32 %v9827_v2, 16 }
 0x50e   : > { %14529 = vmatprep.subr.bf16.mxu1 %v15376_v55  ;;  %v13043_v57 = vrot.slane %v8953_v35, 9  ;;  %v15389_v35 = vld [vmem:[#allocation2 + $0x54] sm:$0xff]   ;;  %v9897_v31 = vrot.slane %v9895_v47, 5  ;;  %v9839_v2 = vld [vmem:[#allocation2 + $0x48] sm:$0xf]  ;;  %v15404_v47 = vld [vmem:[#allocation2 + $0xcc] sm:$0xff]  }
 0x50f   : > { %v9090_v6 = vsel %vm16312_vm5, %v9088_v14, %v9089_v48  ;;  %v15395_v14 = vld [vmem:[#allocation2 + $0x84] sm:$0xff]   ;;  %v15396_v48 = vld [vmem:[#allocation2 + $0x90] sm:$0xff]   ;;  %v9881_v28 = vrot.slane %v9879_v7, 5  ;;  %v18379_v0 = vld [vmem:[#allocation2 + $0x38] sm:$0x1] }
 0x510   : > { %v9080_v13 = vsel %vm16312_vm5, %v13043_v57, %v9079_v29  ;;  %v13076_v33 = vcombine.low %v9087_v15, %v9090_v6  ;;  %v9115_v29 = vsel %vm16312_vm5, %v13048_v19, %v9114_v30  ;;  %v15393_v57 = vld [vmem:[#allocation2 + $0x78] sm:$0xff]   ;;  %v18406_v7 = vld [vmem:[#allocation2 + $0xd0] sm:$0xf] }
 0x511   : > { %14530 = vmatpush3.bf16.msra.mxu1 %v15376_v55  ;;  %v13075_v55 = vcombine.low %v9080_v13, %v9083_v63  ;;  %v13080_v8 = vcombine.low %v9115_v29, %v9118_v49  ;;  %v18353_v63 = vld [vmem:[#allocation2 + $0x1c] sm:$0xf] }
 0x512   : > { %14531 = vmatprep.subr.bf16.mxu1 %v15377_v4  ;;  %v9889_v13 = vshrl.u32 %v18353_v63, 16  ;;  %v9836_v49 = vld [vmem:[#allocation2 + $0x3c] sm:$0xf] }
 0x514   : > { %14500 = vmatmul.mubr.bf16.gmra.mrb[8].mxu1 %v13070_v53  ;;  %v8956_v53 = vld [vmem:[#allocation2 + $0xa8] sm:$0xe]  ;;  %v9891_v44 = vrot.slane %v9889_v13, 4 }
 0x515   : > { %14503 = vmatprep.mubr.bf16.mxu1 %v13071_v56  ;;  %14532 = vmatpush3.bf16.msra.mxu1 %v15377_v4  ;;  %v9100_v4 = vrot.slane %v19225_v9, 5  ;;  %v8957_v56 = vld [vmem:[#allocation2 + $0xb4] sm:$0xe]  ;;  %v13046_v58 = vrot.slane %v8956_v53, 9 }
 0x516   : > { %14533 = vmatprep.subr.bf16.mxu1 %v15378_v60  ;;  %v13047_v37 = vrot.slane %v8957_v56, 9  ;;  %v15399_v56 = vld [vmem:[#allocation2 + $0xa8] sm:$0xff]  }
 0x517   : > { %v9102_v36 = vrot.slane %v9100_v4, 4 }
 0x519   : > { %14534 = vmatpush3.bf16.msra.mxu1 %v15378_v60  ;;  %v9103_v60 = vrot.slane %v18174_v11, 5  ;;  %v9108_v11 = vsel %vm16312_vm5, %v13047_v37, %v9107_v43 }
 0x51a   : > { %14535 = vmatprep.subr.bf16.mxu1 %v15379_v54  ;;  %v13079_v20 = vcombine.low %v9108_v11, %v9111_v45  ;;  %v9915_v45 = vrot.slane %v9913_v34, 4 }
 0x51b   : > { %v9104_v18 = vsel %vm16312_vm5, %v9102_v36, %v9103_v60  ;;  %v15398_v36 = vld [vmem:[#allocation2 + $0x9c] sm:$0xff]   ;;  %v18370_v60 = vld [vmem:[#allocation2 + $0x34] sm:$0xf] }
 0x51c   : > { %14504 = vmatmul.mubr.bf16.gmra.mrb[12].mxu1 %v13072_v21  ;;  %v15381_v21 = vld [vmem:[#allocation2 + $0x18] sm:$0xff]   ;;  %v9937_v11 = vshrl.u32 %v18370_v60, 16 }
 0x51d   : > { %14507 = vmatprep.mubr.bf16.mxu1 %v13073_v62  ;;  %14536 = vmatpush3.bf16.msra.mxu1 %v15379_v54  ;;  %v9101_v54 = vsel %vm16312_vm5, %v13046_v58, %v9100_v4  ;;  %v15384_v62 = vld [vmem:[#allocation2 + $0x30] sm:$0xff]   ;;  %v9878_v4 = vrot.slane %v9876_v59, 4  ;;  %v18374_v58 = vrot.slane %v9909_v27, 5 }
 0x51e   : > { %14537 = vmatprep.subr.bf16.mxu1 %v15380_v5  ;;  %v13078_v25 = vcombine.low %v9101_v54, %v9104_v18  ;;  %v9842_v27 = vld [vmem:[#allocation2 + $0x54] sm:$0xf] }
 0x51f   : > { %v9882_v53 = vor.u32 %v9881_v28, %v9878_v4 }
 0x521   : > { %14538 = vmatpush3.bf16.msra.mxu1 %v15380_v5  ;;  %v15385_v5 = vld [vmem:[%s19153_s1 + $0x408] sm:$0xff]  }
 0x522   : > { %14571 = vmatprep.subr.bf16.mxu1 %v18290_v1 }
 0x524   : > { %14508 = vmatmul.mubr.bf16.gmra.mrb[16].mxu1 %v13074_v40  ;;  %v9885_v40 = vshll.u32 %v18353_v63, 16 }
 0x525   : > { %14511 = vmatprep.mubr.bf16.mxu1 %v13075_v55  ;;  %v9830_v55 = vld [vmem:[#allocation2 + $0x24] sm:$0xf] }
 0x526   : > { %v9887_v32 = vrot.slane %v9885_v40, 5  ;;  %v9900_v6 = vshrl.u32 %v9830_v55, 16  ;;  %v9903_v9 = vshll.u32 %v9830_v55, 16  ;;  %v18399_v40 = vld [vmem:[#allocation2 + $0x58] sm:$0xf] }
 0x528   : > { %v9892_v43 = vor.u32 %v9891_v44, %v9887_v32  ;;  %v9902_v15 = vrot.slane %v9900_v6, 4  ;;  %v10596_v6 = vld [vmem:[#allocation2 + $0xcc] sm:$0xe] }
 0x52a   : > { %v9893_v30 = vrot.slane %v9892_v43, 4  ;;  %v10005_v43 = vshll.u32 %v18399_v40, 16 }
 0x52c   : > { %14512 = vmatmul.mubr.bf16.gmra.mrb[20].mxu1 %v13076_v33  ;;  %v9905_v33 = vrot.slane %v9903_v9, 5  ;;  %v9898_v29 = vsel %vm15535_vm4, %v9893_v30, %v9897_v31  ;;  %v10752_v9 = vrot.slane %v18406_v7, 5  ;;  %v18430_v31 = vrot.slane %v10005_v43, 5 }
 0x52d   : > { %14515 = vmatprep.mubr.bf16.mxu1 %v13077_v61  ;;  %v9833_v61 = vld [vmem:[#allocation2 + $0x30] sm:$0xf] }
 0x52e   : > { %v9924_v18 = vshrl.u32 %v9833_v61, 16  ;;  %v9906_v37 = vor.u32 %v9905_v33, %v9902_v15  ;;  %v9927_v54 = vshll.u32 %v9833_v61, 16  ;;  %v10009_v15 = vshrl.u32 %v18399_v40, 16 }
 0x52f   : > { %v13184_v33 = vrot.slane %v10596_v6, 9 }
 0x530   : > { %v9926_v19 = vrot.slane %v9924_v18, 4  ;;  %v9975_v18 = vshll.u32 %v9839_v2, 16 }
 0x534   : > { %14516 = vmatmul.mubr.bf16.gmra.mrb[24].mxu1 %v13078_v25  ;;  %v9933_v25 = vshll.u32 %v18370_v60, 16 }
 0x535   : > { %14519 = vmatprep.mubr.bf16.mxu1 %v13079_v20  ;;  %v9883_v20 = vrot.slane %v9882_v53, 4  ;;  %v10754_v53 = vrot.slane %v10752_v9, 4 }
 0x53c   : > { %14520 = vmatmul.mubr.bf16.gmra.mrb[28].mxu1 %v13080_v8  ;;  %v18383_v8 = vrot.slane %v9906_v37, 4  ;;  %v18424_v37 = vsel %vm16312_vm5, %v13184_v33, %v10752_v9 }
 0x53d   : > { %14539 = vmatprep.mubr.bf16.mxu1 %v15381_v21  ;;  %v9916_v21 = vor.u32 %v9915_v45, %v18374_v58  ;;  %19227 = vst [vmem:[#allocation5_spill] sm:$0xff] %v18424_v37 }
 0x53e   : > { %v9912_v13 = vsel %vm15535_vm4, %v18383_v8, %v18374_v58  ;;  %v9972_v58 = vshrl.u32 %v9839_v2, 16 }
 0x53f   : > { %v9917_v55 = vrot.slane %v9916_v21, 4 }
 0x544   : > { %14540 = vmatmul.mubr.bf16.vlgmr.msra.gmra.mrb[0].mxu1 %v15383_v42  ;;  %v9929_v42 = vrot.slane %v9927_v54, 5  ;;  %v9996_v54 = vshrl.u32 %v9842_v27, 16 }
 0x545   : > { %14572 = vmatpush3.bf16.msra.mxu1 %v18290_v1  ;;  %14543 = vmatprep.mubr.bf16.mxu1 %v15384_v62  ;;  %v15390_v1 = vld [vmem:[#allocation2 + $0x60] sm:$0xff]   ;;  %v18388_v62 = vrot.slane %v9933_v25, 5  ;;  %v9999_v25 = vshll.u32 %v9842_v27, 16 }
 0x546   : > { %14573 = vmatprep.subr.bf16.mxu1 %v15385_v5 }
 0x549   : > { %14574 = vmatpush3.bf16.msra.mxu1 %v15385_v5  ;;  %v18386_v5 = vld [vmem:[#allocation2 + $0x40] sm:$0xf] }
 0x54a   : > { %14575 = vmatprep.subr.bf16.mxu1 %v15388_v24 }
 0x54c   : > { %14544 = vmatmul.mubr.bf16.gmra.mrb[4].mxu1 %v15386_v41  ;;  %v18390_v41 = vld [vmem:[#allocation2 + $0x4c] sm:$0xf] }
 0x54d   : > { %14547 = vmatprep.mubr.bf16.mxu1 %v15387_v51  ;;  %14576 = vmatpush3.bf16.msra.mxu1 %v15388_v24  ;;  %v9939_v24 = vrot.slane %v9937_v11, 4  ;;  %v9888_v51 = vsel %vm15535_vm4, %v9883_v20, %v9887_v32  ;;  %v9981_v59 = vshll.u32 %v18390_v41, 16  ;;  %v9985_v44 = vshrl.u32 %v18390_v41, 16 }
 0x54e   : > { %14577 = vmatprep.subr.bf16.mxu1 %v15391_v3 }
 0x54f   : > { %v9940_v32 = vor.u32 %v9939_v24, %v18388_v62  ;;  %v18420_v30 = vrot.slane %v9981_v59, 5  ;;  %v9987_v45 = vrot.slane %v9985_v44, 4  ;;  %v18438_v24 = vld [vmem:[#allocation2 + $0x64] sm:$0xf] }
 0x550   : > { %v10029_v59 = vshll.u32 %v18438_v24, 16 }
 0x551   : > { %14578 = vmatpush3.bf16.msra.mxu1 %v15391_v3  ;;  %v15401_v3 = vld [vmem:[#allocation2 + $0xb4] sm:$0xff]   ;;  %v9941_v21 = vrot.slane %v9940_v32, 4  ;;  %v10033_v32 = vshrl.u32 %v18438_v24, 16 }
 0x552   : > { %14579 = vmatprep.subr.bf16.mxu1 %v15394_v10 }
 0x554   : > { %14548 = vmatmul.mubr.bf16.gmra.mrb[8].mxu1 %v15389_v35  ;;  %v9943_v35 = vshll.u32 %v18379_v0, 16 }
 0x555   : > { %14551 = vmatprep.mubr.bf16.mxu1 %v15390_v1  ;;  %14580 = vmatpush3.bf16.msra.mxu1 %v15394_v10  ;;  %v18394_v10 = vrot.slane %v9919_v46, 5  ;;  %v15402_v1 = vld [vmem:[#allocation2 + $0xc0] sm:$0xff]   ;;  %v10011_v46 = vrot.slane %v10009_v15, 4  ;;  %v18456_v15 = vld [vmem:[#allocation2 + $0x70] sm:$0xf] }
 0x556   : > { %14581 = vmatprep.subr.bf16.mxu1 %v15397_v38  ;;  %v9945_v20 = vrot.slane %v9943_v35, 5  ;;  %v18441_v35 = vld [vmem:[#allocation2 + $0x50] sm:$0x1] }
 0x557   : > { %v9991_v9 = vshll.u32 %v18441_v35, 16 }
 0x559   : > { %14582 = vmatpush3.bf16.msra.mxu1 %v15397_v38  ;;  %v9948_v38 = vshrl.u32 %v9836_v49, 16 }
 0x55a   : > { %14583 = vmatprep.subr.bf16.mxu1 %v15400_v52 }
 0x55b   : > { %v9950_v28 = vrot.slane %v9948_v38, 4  ;;  %v9974_v38 = vrot.slane %v9972_v58, 4 }
 0x55c   : > { %14552 = vmatmul.mubr.bf16.gmra.mrb[12].mxu1 %v15392_v22  ;;  %v9951_v22 = vshll.u32 %v9836_v49, 16 }
 0x55d   : > { %14555 = vmatprep.mubr.bf16.mxu1 %v15393_v57  ;;  %14584 = vmatpush3.bf16.msra.mxu1 %v15400_v52  ;;  %v13145_v52 = vcombine.low %v9888_v51, %v9898_v29  ;;  %v9961_v57 = vshrl.u32 %v18386_v5, 16  ;;  %v9922_v29 = vsel %vm15535_vm4, %v9917_v55, %v18394_v10  ;;  %v9998_v10 = vrot.slane %v9996_v54, 4 }
 0x55e   : > { %14585 = vmatprep.subr.bf16.mxu1 %v15403_v23  ;;  %v9953_v34 = vrot.slane %v9951_v22, 5  ;;  %v9988_v22 = vor.u32 %v9987_v45, %v18420_v30  ;;  %v10012_v55 = vor.u32 %v10011_v46, %v18430_v31  ;;  %v13146_v44 = vcombine.low %v9912_v13, %v9922_v29 }
 0x55f   : > { %v10035_v45 = vrot.slane %v10033_v32, 4  ;;  %v10053_v46 = vshll.u32 %v18456_v15, 16 }
 0x561   : > { %14586 = vmatpush3.bf16.msra.mxu1 %v15403_v23  ;;  %v9957_v23 = vshll.u32 %v18386_v5, 16 }
 0x562   : > { %14619 = vmatprep.subr.bf16.mxu1 %v18358_v50 }
 0x563   : > { %v18416_v61 = vrot.slane %v9957_v23, 5  ;;  %v18444_v23 = vld [vmem:[#allocation2 + $0x5c] sm:$0x1] }
 0x564   : > { %14556 = vmatmul.mubr.bf16.gmra.mrb[16].mxu1 %v15395_v14  ;;  %v9930_v14 = vor.u32 %v9929_v42, %v9926_v19  ;;  %v9845_v19 = vld [vmem:[#allocation2 + $0x60] sm:$0xf]  ;;  %v10015_v43 = vshll.u32 %v18444_v23, 16 }
 0x565   : > { %14559 = vmatprep.mubr.bf16.mxu1 %v15396_v48  ;;  %v18408_v48 = vld [vmem:[#allocation2 + $0xd4] sm:$0x1]  ;;  %v10020_v2 = vshrl.u32 %v9845_v19, 16 }
 0x566   : > { %v10755_v4 = vrot.slane %v18408_v48, 5  ;;  %v9931_v8 = vrot.slane %v9930_v14, 4  ;;  %v10023_v14 = vshll.u32 %v9845_v19, 16  ;;  %v10057_v19 = vshrl.u32 %v18456_v15, 16 }
 0x567   : > { %v10022_v13 = vrot.slane %v10020_v2, 4 }
 0x568   : > { %v18428_v11 = vsel %vm16312_vm5, %v10754_v53, %v10755_v4  ;;  %v9936_v6 = vsel %vm15535_vm4, %v9931_v8, %v18388_v62  ;;  %v9848_v53 = vld [vmem:[#allocation2 + $0x6c] sm:$0xf]  ;;  %v10025_v58 = vrot.slane %v10023_v14, 5  ;;  %v10017_v8 = vrot.slane %v10015_v43, 5 }
 0x569   : > { %19228 = vst [vmem:[#allocation6_spill] sm:$0xff] %v18428_v11  ;;  %v15406_v62 = vld [vmem:[%s19153_s1 + $0x448] sm:$0xff]   ;;  %v18484_v14 = vrot.slane %v10053_v46, 5  ;;  %v18502_v46 = vld [vmem:[#allocation2 + $0x94] sm:$0xf] }
 0x56a   : > { %v9872_v11 = vld [vmem:[#allocation2 + $0xcc] sm:$0xf] }
 0x56c   : > { %14560 = vmatmul.mubr.bf16.gmra.mrb[20].mxu1 %v15398_v36  ;;  %v9963_v36 = vrot.slane %v9961_v57, 4  ;;  %v10001_v57 = vrot.slane %v9999_v25, 5  ;;  %v9993_v25 = vrot.slane %v9991_v9, 5 }
 0x56d   : > { %14563 = vmatprep.mubr.bf16.mxu1 %v15399_v56  ;;  %v18418_v56 = vld [vmem:[#allocation2 + $0x44] sm:$0x1] }
 0x56e   : > { %v9967_v42 = vshll.u32 %v18418_v56, 16  ;;  %v9964_v51 = vor.u32 %v9963_v36, %v18416_v61  ;;  %v10002_v36 = vor.u32 %v10001_v57, %v9998_v10  ;;  %v18475_v10 = vld [vmem:[#allocation2 + $0x7c] sm:$0xf] }
 0x56f   : > { %v10077_v9 = vshll.u32 %v18475_v10, 16 }
 0x570   : > { %v9969_v27 = vrot.slane %v9967_v42, 5  ;;  %v10047_v42 = vshll.u32 %v9848_v53, 16 }
 0x574   : > { %14564 = vmatmul.mubr.bf16.gmra.mrb[24].mxu1 %v15401_v3  ;;  %v9954_v3 = vor.u32 %v9953_v34, %v9950_v28  ;;  %v9965_v28 = vrot.slane %v9964_v51, 4  ;;  %v9989_v34 = vrot.slane %v9988_v22, 4  ;;  %v10003_v22 = vrot.slane %v10002_v36, 4  ;;  %v9857_v36 = vld [vmem:[#allocation2 + $0x90] sm:$0xf] }
 0x575   : > { %14567 = vmatprep.mubr.bf16.mxu1 %v15402_v1  ;;  %v9977_v1 = vrot.slane %v9975_v18, 5  ;;  %v18461_v18 = vrot.slane %v10029_v59, 5  ;;  %v10059_v59 = vrot.slane %v10057_v19, 4 }
 0x576   : > { %v9955_v4 = vrot.slane %v9954_v3, 4  ;;  %v9851_v3 = vld [vmem:[#allocation2 + $0x78] sm:$0xf]  ;;  %v9970_v51 = vsel %vm15535_vm4, %v9965_v28, %v9969_v27  ;;  %v10008_v43 = vsel %vm15535_vm4, %v10003_v22, %v18430_v31  ;;  %v15409_v22 = vld [vmem:[%s19153_s1 + $0x460] sm:$0xff]  }
 0x577   : > { %v9978_v33 = vor.u32 %v9977_v1, %v9974_v38  ;;  %v9994_v1 = vsel %vm15535_vm4, %v9989_v34, %v9993_v25  ;;  %v10036_v2 = vor.u32 %v10035_v45, %v18461_v18  ;;  %v10068_v32 = vshrl.u32 %v9851_v3, 16  ;;  %v9854_v34 = vld [vmem:[#allocation2 + $0x84] sm:$0xf]  ;;  %v18499_v45 = vld [vmem:[#allocation2 + $0x88] sm:$0xf] }
 0x578   : > { %v9960_v29 = vsel %vm15535_vm4, %v9955_v4, %v18416_v61  ;;  %v15407_v61 = vld [vmem:[%s19153_s1 + $0x450] sm:$0xff]   ;;  %v10081_v4 = vshrl.u32 %v18475_v10, 16 }
 0x579   : > { %v9979_v38 = vrot.slane %v9978_v33, 4  ;;  %v13148_v28 = vcombine.low %v9960_v29, %v9970_v51  ;;  %v18494_v33 = vld [vmem:[#allocation2 + $0x74] sm:$0x1]  ;;  %v10070_v25 = vrot.slane %v10068_v32, 4  ;;  %v10095_v51 = vshll.u32 %v9854_v34, 16 }
 0x57a   : > { %v10063_v29 = vshll.u32 %v18494_v33, 16 }
 0x57b   : > { %v9984_v27 = vsel %vm15535_vm4, %v9979_v38, %v18420_v30  ;;  %v10037_v30 = vrot.slane %v10036_v2, 4  ;;  %v10101_v38 = vshll.u32 %v18499_v45, 16  ;;  %v10125_v2 = vshll.u32 %v18502_v46, 16 }
 0x57c   : > { %14568 = vmatmul.mubr.bf16.gmra.mrb[28].mxu1 %v15404_v47  ;;  %v10013_v47 = vrot.slane %v10012_v55, 4 }
 0x57d   : > { %14587 = vmatprep.mubr.bf16.mxu1 %v13145_v52  ;;  %v9946_v52 = vsel %vm15535_vm4, %v9941_v21, %v9945_v20  ;;  %v18463_v20 = vld [vmem:[#allocation2 + $0x68] sm:$0x1]  ;;  %v10044_v21 = vshrl.u32 %v9848_v53, 16 }
 0x57e   : > { %v13147_v54 = vcombine.low %v9936_v6, %v9946_v52  ;;  %v10018_v57 = vsel %vm15535_vm4, %v10013_v47, %v10017_v8  ;;  %v10039_v55 = vshll.u32 %v18463_v20, 16  ;;  %v10049_v52 = vrot.slane %v10047_v42, 5  ;;  %v18507_v42 = vld [vmem:[#allocation2 + $0x80] sm:$0x1] }
 0x57f   : > { %v10046_v6 = vrot.slane %v10044_v21, 4  ;;  %v13150_v53 = vcombine.low %v10008_v43, %v10018_v57  ;;  %v18505_v8 = vrot.slane %v10077_v9, 5  ;;  %v10083_v21 = vrot.slane %v10081_v4, 4 }
 0x580   : > { %v10116_v57 = vshrl.u32 %v9857_v36, 16  ;;  %v10087_v4 = vshll.u32 %v18507_v42, 16  ;;  %v18523_v43 = vrot.slane %v10101_v38, 5  ;;  %v18540_v38 = vld [vmem:[#allocation2 + $0x98] sm:$0x1] }
 0x581   : > { %v10050_v19 = vor.u32 %v10049_v52, %v10046_v6  ;;  %v10065_v52 = vrot.slane %v10063_v29, 5  ;;  %v10084_v9 = vor.u32 %v10083_v21, %v18505_v8  ;;  %v18535_v29 = vld [vmem:[#allocation2 + $0x8c] sm:$0x1]  ;;  %v18537_v21 = vld [vmem:[#allocation2 + $0xa0] sm:$0xf] }
 0x582   : > { %19229 = vst [vmem:[#allocation8_spill] sm:$0xff] %v18537_v21 }
 0x583   : > { %v10051_v6 = vrot.slane %v10050_v19, 4  ;;  %v10085_v19 = vrot.slane %v10084_v9, 4  ;;  %v10135_v9 = vshll.u32 %v18540_v38, 16 }
 0x584   : > { %14588 = vmatmul.mubr.bf16.vlgmr.msra.gmra.mrb[0].mxu1 %v13146_v44  ;;  %v10071_v44 = vshll.u32 %v9851_v3, 16  ;;  %v10092_v3 = vshrl.u32 %v9854_v34, 16 }
 0x585   : > { %14620 = vmatpush3.bf16.msra.mxu1 %v18358_v50  ;;  %14591 = vmatprep.mubr.bf16.mxu1 %v13147_v54  ;;  %v10026_v50 = vor.u32 %v10025_v58, %v10022_v13  ;;  %v13149_v13 = vcombine.low %v9984_v27, %v9994_v1  ;;  %v10041_v58 = vrot.slane %v10039_v55, 5  ;;  %v10060_v54 = vor.u32 %v10059_v59, %v18484_v14 }
 0x586   : > { %14621 = vmatprep.subr.bf16.mxu1 %v15406_v62  ;;  %v10073_v31 = vrot.slane %v10071_v44, 5  ;;  %v10105_v1 = vshrl.u32 %v18499_v45, 16  ;;  %v10129_v55 = vshrl.u32 %v18502_v46, 16  ;;  %v10097_v27 = vrot.slane %v10095_v51, 5 }
 0x587   : > { %v10027_v47 = vrot.slane %v10026_v50, 4  ;;  %v10119_v50 = vshll.u32 %v9857_v36, 16  ;;  %v10042_v59 = vsel %vm15535_vm4, %v10037_v30, %v10041_v58  ;;  %v10061_v32 = vrot.slane %v10060_v54, 4  ;;  %v9860_v36 = vld [vmem:[#allocation2 + $0x9c] sm:$0xf]  ;;  %v15410_v30 = vld [vmem:[%s19153_s1 + $0x468] sm:$0xff]  }
 0x588   : > { %v10074_v44 = vor.u32 %v10073_v31, %v10070_v25  ;;  %v10107_v34 = vrot.slane %v10105_v1, 4  ;;  %v10131_v58 = vrot.slane %v10129_v55, 4  ;;  %v10056_v31 = vsel %vm15535_vm4, %v10051_v6, %v18484_v14  ;;  %v9863_v6 = vld [vmem:[#allocation2 + $0xa8] sm:$0xf] }
 0x589   : > { %14622 = vmatpush3.bf16.msra.mxu1 %v15406_v62  ;;  %v15408_v62 = vld [vmem:[%s19153_s1 + $0x458] sm:$0xff]   ;;  %v10140_v1 = vshrl.u32 %v9860_v36, 16  ;;  %v10137_v49 = vrot.slane %v10135_v9, 5 }
 0x58a   : > { %14623 = vmatprep.subr.bf16.mxu1 %v15407_v61  ;;  %v10075_v25 = vrot.slane %v10074_v44, 4  ;;  %v10108_v51 = vor.u32 %v10107_v34, %v18523_v43  ;;  %v10153_v44 = vshrl.u32 %v18537_v21, 16 }
 0x58c   : > { %14592 = vmatmul.mubr.bf16.gmra.mrb[4].mxu1 %v13148_v28  ;;  %v10094_v28 = vrot.slane %v10092_v3, 4  ;;  %v10109_v34 = vrot.slane %v10108_v51, 4  ;;  %v9866_v51 = vld [vmem:[#allocation2 + $0xb4] sm:$0xf] }
 0x58d   : > { %14595 = vmatprep.mubr.bf16.mxu1 %v13149_v13  ;;  %14624 = vmatpush3.bf16.msra.mxu1 %v15407_v61  ;;  %v10032_v61 = vsel %vm15535_vm4, %v10027_v47, %v18461_v18  ;;  %v10118_v18 = vrot.slane %v10116_v57, 4  ;;  %v10121_v13 = vrot.slane %v10119_v50, 5  ;;  %v18525_v47 = vrot.slane %v10125_v2, 5  ;;  %v18542_v50 = vld [vmem:[#allocation2 + $0xac] sm:$0xf] }
 0x58e   : > { %14625 = vmatprep.subr.bf16.mxu1 %v15408_v62  ;;  %v13151_v54 = vcombine.low %v10032_v61, %v10042_v59  ;;  %v10098_v3 = vor.u32 %v10097_v27, %v10094_v28  ;;  %v10143_v57 = vshll.u32 %v9860_v36, 16  ;;  %19230 = vst [vmem:[#allocation9_spill] sm:$0xff] %v18542_v50  ;;  %v10089_v2 = vrot.slane %v10087_v4, 5  ;;  %v15411_v61 = vld [vmem:[%s19153_s1 + $0x470] sm:$0xff]   ;;  %v18559_v36 = vld [vmem:[#allocation2 + $0xa4] sm:$0x1] }
 0x58f   : > { %v10122_v55 = vor.u32 %v10121_v13, %v10118_v18  ;;  %v10132_v14 = vor.u32 %v10131_v58, %v18525_v47  ;;  %v10111_v59 = vshll.u32 %v18535_v29, 16  ;;  %v10173_v4 = vshll.u32 %v18542_v50, 16  ;;  %19231 = vst [vmem:[#allocation10_spill] sm:$0xff] %v18559_v36 }
 0x590   : > { %v10177_v28 = vshrl.u32 %v18542_v50, 16  ;;  %v10099_v27 = vrot.slane %v10098_v3, 4  ;;  %v10145_v18 = vrot.slane %v10143_v57, 5  ;;  %v10155_v3 = vrot.slane %v10153_v44, 4  ;;  %v18568_v57 = vld [vmem:[#allocation2 + $0xb8] sm:$0xf] }
 0x591   : > { %14626 = vmatpush3.bf16.msra.mxu1 %v15408_v62  ;;  %v10066_v62 = vsel %vm15535_vm4, %v10061_v32, %v10065_v52  ;;  %v10149_v32 = vshll.u32 %v18537_v21, 16  ;;  %v10090_v52 = vsel %vm15535_vm4, %v10085_v19, %v10089_v2  ;;  %v10123_v13 = vrot.slane %v10122_v55, 4  ;;  %19232 = vst [vmem:[#allocation11_spill] sm:$0xff] %v18568_v57 }
 0x592   : > { %14627 = vmatprep.subr.bf16.mxu1 %v15409_v22  ;;  %v10133_v58 = vrot.slane %v10132_v14, 4  ;;  %v10113_v19 = vrot.slane %v10111_v59, 5  ;;  %v10104_v55 = vsel %vm15535_vm4, %v10099_v27, %v18523_v43  ;;  %v10159_v59 = vshll.u32 %v18559_v36, 16  ;;  %v9869_v27 = vld [vmem:[#allocation2 + $0xc0] sm:$0xf] }
 0x593   : > { %v18564_v2 = vrot.slane %v10149_v32, 5  ;;  %v18576_v32 = vld [vmem:[#allocation2 + $0xc4] sm:$0xf] }
 0x594   : > { %14596 = vmatmul.mubr.bf16.gmra.mrb[8].mxu1 %v13150_v53  ;;  %v13152_v53 = vcombine.low %v10056_v31, %v10066_v62  ;;  %v10167_v62 = vshll.u32 %v9863_v6, 16  ;;  %v10114_v14 = vsel %vm15535_vm4, %v10109_v34, %v10113_v19  ;;  %19233 = vst [vmem:[#allocation12_spill] sm:$0xff] %v18576_v32  ;;  %v10138_v44 = vsel %vm15535_vm4, %v10133_v58, %v10137_v49 }
 0x595   : > { %14599 = vmatprep.mubr.bf16.mxu1 %v13151_v54  ;;  %14628 = vmatpush3.bf16.msra.mxu1 %v15409_v22  ;;  %v10080_v22 = vsel %vm15535_vm4, %v10075_v25, %v18505_v8  ;;  %v10142_v8 = vrot.slane %v10140_v1, 4  ;;  %v10164_v54 = vshrl.u32 %v9863_v6, 16  ;;  %v15412_v25 = vld [vmem:[%s19153_s1 + $0x478] sm:$0xff]   ;;  %v18566_v1 = vrot.slane %v10173_v4, 5  ;;  %v18583_v6 = vld [vmem:[#allocation2 + $0xb0] sm:$0x1] }
 0x596   : > { %14629 = vmatprep.subr.bf16.mxu1 %v15410_v30  ;;  %v13153_v31 = vcombine.low %v10080_v22, %v10090_v52  ;;  %v10169_v43 = vrot.slane %v10167_v62, 5  ;;  %v10156_v9 = vor.u32 %v10155_v3, %v18564_v2  ;;  %v10188_v4 = vshrl.u32 %v9866_v51, 16 }
 0x597   : > { %v10146_v22 = vor.u32 %v10145_v18, %v10142_v8  ;;  %v10166_v52 = vrot.slane %v10164_v54, 4  ;;  %v10191_v8 = vshll.u32 %v9866_v51, 16  ;;  %v10225_v49 = vshrl.u32 %v18576_v32, 16 }
 0x598   : > { %v13154_v18 = vcombine.low %v10104_v55, %v10114_v14  ;;  %v10161_v54 = vrot.slane %v10159_v59, 5  ;;  %v10212_v19 = vshrl.u32 %v9869_v27, 16  ;;  %v10215_v3 = vshll.u32 %v9869_v27, 16  ;;  %v18592_v55 = vld [vmem:[#allocation2 + $0xbc] sm:$0x1] }
 0x599   : > { %14630 = vmatpush3.bf16.msra.mxu1 %v15410_v30  ;;  %v10179_v30 = vrot.slane %v10177_v28, 4  ;;  %v10197_v28 = vshll.u32 %v18568_v57, 16  ;;  %v10147_v58 = vrot.slane %v10146_v22, 4  ;;  %v10170_v62 = vor.u32 %v10169_v43, %v10166_v52 }
 0x59a   : > { %14631 = vmatprep.subr.bf16.mxu1 %v15411_v61  ;;  %v10157_v37 = vrot.slane %v10156_v9, 4  ;;  %v10193_v50 = vrot.slane %v10191_v8, 5  ;;  %v10236_v14 = vshrl.u32 %v9872_v11, 16  ;;  %v10245_v22 = vshll.u32 %v18406_v7, 16 }
 0x59b   : > { %v10180_v34 = vor.u32 %v10179_v30, %v18566_v1  ;;  %v10199_v36 = vrot.slane %v10197_v28, 5  ;;  %v10249_v59 = vshrl.u32 %v18406_v7, 16  ;;  %v10214_v52 = vrot.slane %v10212_v19, 4 }
 0x59c   : > { %14600 = vmatmul.mubr.bf16.gmra.mrb[12].mxu1 %v13152_v53  ;;  %v10128_v53 = vsel %vm15535_vm4, %v10123_v13, %v18525_v47  ;;  %v10221_v47 = vshll.u32 %v18576_v32, 16  ;;  %v10227_v32 = vrot.slane %v10225_v49, 4  ;;  %v10217_v43 = vrot.slane %v10215_v3, 5 }
 0x59d   : > { %14603 = vmatprep.mubr.bf16.mxu1 %v13153_v31  ;;  %14632 = vmatpush3.bf16.msra.mxu1 %v15411_v61  ;;  %v10201_v61 = vshrl.u32 %v18568_v57, 16  ;;  %v13155_v13 = vcombine.low %v10128_v53, %v10138_v44  ;;  %v10183_v31 = vshll.u32 %v18583_v6, 16  ;;  %v10190_v57 = vrot.slane %v10188_v4, 4 }
 0x59e   : > { %14633 = vmatprep.subr.bf16.mxu1 %v15412_v25  ;;  %v10181_v51 = vrot.slane %v10180_v34, 4  ;;  %v10223_v21 = vrot.slane %v10221_v47, 5  ;;  %v10171_v53 = vrot.slane %v10170_v62, 4  ;;  %v10152_v9 = vsel %vm15535_vm4, %v10147_v58, %v18564_v2 }
 0x59f   : > { %v10203_v30 = vrot.slane %v10201_v61, 4  ;;  %v10185_v44 = vrot.slane %v10183_v31, 5  ;;  %v10162_v4 = vsel %vm15535_vm4, %v10157_v37, %v10161_v54  ;;  %v18601_v61 = vld [vmem:[#allocation2 + $0xc8] sm:$0x1]  ;;  %v10194_v27 = vor.u32 %v10193_v50, %v10190_v57 }
 0x5a0   : > { %v10207_v7 = vshll.u32 %v18592_v55, 16  ;;  %v10228_v34 = vor.u32 %v10227_v32, %v10223_v21  ;;  %v10238_v8 = vrot.slane %v10236_v14, 4  ;;  %v10247_v49 = vrot.slane %v10245_v22, 5 }
 0x5a1   : > { %14634 = vmatpush3.bf16.msra.mxu1 %v15412_v25  ;;  %v10239_v25 = vshll.u32 %v9872_v11, 16  ;;  %v10204_v28 = vor.u32 %v10203_v30, %v10199_v36  ;;  %v10186_v11 = vsel %vm15535_vm4, %v10181_v51, %v10185_v44  ;;  %v10176_v2 = vsel %vm15535_vm4, %v10171_v53, %v18566_v1 }
 0x5a2   : > { %v10218_v37 = vor.u32 %v10217_v43, %v10214_v52  ;;  %v10231_v58 = vshll.u32 %v18601_v61, 16  ;;  %v13157_v54 = vcombine.low %v10176_v2, %v10186_v11  ;;  %v10209_v31 = vrot.slane %v10207_v7, 5 }
 0x5a3   : > { %v10241_v47 = vrot.slane %v10239_v25, 5  ;;  %v10205_v62 = vrot.slane %v10204_v28, 4  ;;  %v10229_v50 = vrot.slane %v10228_v34, 4  ;;  %v10195_v57 = vrot.slane %v10194_v27, 4  ;;  %v10581_v28 = vld [vmem:[#allocation2 + $0x18] sm:$0xe] }
 0x5a4   : > { %14604 = vmatmul.mubr.bf16.gmra.mrb[16].mxu1 %v13154_v18  ;;  %v10251_v18 = vrot.slane %v10249_v59, 4  ;;  %v10255_v3 = vshll.u32 %v18408_v48, 16  ;;  %v10219_v30 = vrot.slane %v10218_v37, 4  ;;  %v10233_v51 = vrot.slane %v10231_v58, 5 }
 0x5a5   : > { %14607 = vmatprep.mubr.bf16.mxu1 %v13155_v13  ;;  %v13156_v13 = vcombine.low %v10152_v9, %v10162_v4  ;;  %v10242_v32 = vor.u32 %v10241_v47, %v10238_v8  ;;  %v10210_v14 = vsel %vm15535_vm4, %v10205_v62, %v10209_v31  ;;  %v10647_v25 = vrot.slane %v18353_v63, 5 }
 0x5a6   : > { %v10252_v19 = vor.u32 %v10251_v18, %v10247_v49  ;;  %v10234_v1 = vsel %vm15535_vm4, %v10229_v50, %v10233_v51  ;;  %v10200_v22 = vsel %vm15535_vm4, %v10195_v57, %v10199_v36  ;;  %v10257_v44 = vrot.slane %v10255_v3, 5  ;;  %v10585_v3 = vld [vmem:[#allocation2 + $0x48] sm:$0xe] }
 0x5a7   : > { %v10243_v59 = vrot.slane %v10242_v32, 4  ;;  %v13158_v52 = vcombine.low %v10200_v22, %v10210_v14  ;;  %v10224_v48 = vsel %vm15535_vm4, %v10219_v30, %v10223_v21  ;;  %v10649_v9 = vrot.slane %v10647_v25, 4  ;;  %v10584_v32 = vld [vmem:[#allocation2 + $0x3c] sm:$0xe] }
 0x5a8   : > { %v10253_v53 = vrot.slane %v10252_v19, 4  ;;  %v13159_v43 = vcombine.low %v10224_v48, %v10234_v1  ;;  %v10650_v36 = vrot.slane %v18365_v26, 5  ;;  %v10654_v11 = vrot.slane %v18363_v17, 5 }
 0x5a9   : > { %v10248_v4 = vsel %vm15535_vm4, %v10243_v59, %v10247_v49  ;;  %v13169_v7 = vrot.slane %v10581_v28, 9  ;;  %v10661_v34 = vrot.slane %v18370_v60, 5  ;;  %v10657_v26 = vrot.slane %v18372_v12, 5 }
 0x5aa   : > { %v10258_v63 = vsel %vm15535_vm4, %v10253_v53, %v10257_v44  ;;  %v10651_v21 = vsel %vm16312_vm5, %v10649_v9, %v10650_v36  ;;  %v10656_v49 = vrot.slane %v10654_v11, 4  ;;  %v10664_v17 = vrot.slane %v18379_v0, 5 }
 0x5ab   : > { %v13160_v27 = vcombine.low %v10248_v4, %v10258_v63  ;;  %v10648_v8 = vsel %vm16312_vm5, %v13169_v7, %v10647_v25  ;;  %v10663_v18 = vrot.slane %v10661_v34, 4  ;;  %v13170_v2 = vrot.slane %v10582_v16, 9 }
 0x5ac   : > { %14608 = vmatmul.mubr.bf16.gmra.mrb[20].mxu1 %v13156_v13  ;;  %v13201_v47 = vcombine.low %v10648_v8, %v10651_v21  ;;  %v10583_v13 = vld [vmem:[#allocation2 + $0x30] sm:$0xe]  ;;  %v10658_v37 = vsel %vm16312_vm5, %v10656_v49, %v10657_v26  ;;  %v10668_v60 = vrot.slane %v18386_v5, 5  ;;  %v10675_v62 = vrot.slane %v18390_v41, 5 }
 0x5ad   : > { %14611 = vmatprep.mubr.bf16.mxu1 %v13157_v54  ;;  %v13171_v58 = vrot.slane %v10583_v13, 9  ;;  %v10665_v54 = vsel %vm16312_vm5, %v10663_v18, %v10664_v17  ;;  %v10655_v31 = vsel %vm16312_vm5, %v13170_v2, %v10654_v11  ;;  %v10671_v5 = vrot.slane %v18418_v56, 5 }
 0x5ae   : > { %v13202_v50 = vcombine.low %v10655_v31, %v10658_v37  ;;  %v10670_v57 = vrot.slane %v10668_v60, 4  ;;  %v10677_v19 = vrot.slane %v10675_v62, 4  ;;  %v10678_v30 = vrot.slane %v18441_v35, 5 }
 0x5af   : > { %v10662_v12 = vsel %vm16312_vm5, %v13171_v58, %v10661_v34  ;;  %v13172_v51 = vrot.slane %v10584_v32, 9  ;;  %v10682_v14 = vrot.slane %v18399_v40, 5  ;;  %v13173_v1 = vrot.slane %v10585_v3, 9  ;;  %v10588_v34 = vld [vmem:[#allocation2 + $0x6c] sm:$0xe] }
 0x5b0   : > { %v13203_v0 = vcombine.low %v10662_v12, %v10665_v54  ;;  %v10672_v41 = vsel %vm16312_vm5, %v10670_v57, %v10671_v5  ;;  %v10679_v25 = vsel %vm16312_vm5, %v10677_v19, %v10678_v30  ;;  %v10689_v22 = vrot.slane %v18438_v24, 5  ;;  %v10590_v58 = vld [vmem:[#allocation2 + $0x84] sm:$0xe]  ;;  %v19235_v19 = vld [vmem:[#allocation9_spill] sm:$0xff] }
 0x5b1   : > { %v10669_v59 = vsel %vm16312_vm5, %v13172_v51, %v10668_v60  ;;  %v10676_v56 = vsel %vm16312_vm5, %v13173_v1, %v10675_v62  ;;  %v10684_v44 = vrot.slane %v10682_v14, 4  ;;  %v10685_v40 = vrot.slane %v18444_v23, 5  ;;  %v10591_v62 = vld [vmem:[#allocation2 + $0x90] sm:$0xe]  ;;  %v19234_v12 = vld [vmem:[#allocation8_spill] sm:$0xff] }
 0x5b2   : > { %v13204_v53 = vcombine.low %v10669_v59, %v10672_v41  ;;  %v13205_v35 = vcombine.low %v10676_v56, %v10679_v25  ;;  %v10691_v48 = vrot.slane %v10689_v22, 4  ;;  %v10692_v9 = vrot.slane %v18463_v20, 5  ;;  %v10592_v41 = vld [vmem:[#allocation2 + $0x9c] sm:$0xe]  ;;  %v19236_v1 = vld [vmem:[#allocation10_spill] sm:$0xff] }
 0x5b3   : > { %v10686_v24 = vsel %vm16312_vm5, %v10684_v44, %v10685_v40  ;;  %v10696_v63 = vrot.slane %v18456_v15, 5  ;;  %v10703_v11 = vrot.slane %v18475_v10, 5  ;;  %v10699_v15 = vrot.slane %v18494_v33, 5  ;;  %v19238_v40 = vld [vmem:[#allocation12_spill] sm:$0xff] }
 0x5b4   : > { %14612 = vmatmul.mubr.bf16.gmra.mrb[24].mxu1 %v13158_v52  ;;  %v10586_v52 = vld [vmem:[#allocation2 + $0x54] sm:$0xe]  ;;  %v10693_v36 = vsel %vm16312_vm5, %v10691_v48, %v10692_v9  ;;  %v10706_v49 = vrot.slane %v18507_v42, 5  ;;  %v13176_v16 = vrot.slane %v10588_v34, 9  ;;  %v10710_v18 = vrot.slane %v18499_v45, 5 }
 0x5b5   : > { %14615 = vmatprep.mubr.bf16.mxu1 %v13159_v43  ;;  %v10587_v43 = vld [vmem:[#allocation2 + $0x60] sm:$0xe]  ;;  %v13174_v4 = vrot.slane %v10586_v52, 9  ;;  %v10698_v21 = vrot.slane %v10696_v63, 4  ;;  %v10705_v8 = vrot.slane %v10703_v11, 4  ;;  %v10717_v17 = vrot.slane %v18502_v46, 5 }
 0x5b6   : > { %v13175_v28 = vrot.slane %v10587_v43, 9  ;;  %v10697_v2 = vsel %vm16312_vm5, %v13176_v16, %v10696_v63  ;;  %v10712_v60 = vrot.slane %v10710_v18, 4  ;;  %v10713_v45 = vrot.slane %v18535_v29, 5 }
 0x5b7   : > { %v10700_v10 = vsel %vm16312_vm5, %v10698_v21, %v10699_v15  ;;  %v10707_v13 = vsel %vm16312_vm5, %v10705_v8, %v10706_v49  ;;  %v10719_v54 = vrot.slane %v10717_v17, 4  ;;  %v10720_v31 = vrot.slane %v18540_v38, 5 }
 0x5b8   : > { %v10690_v23 = vsel %vm16312_vm5, %v13175_v28, %v10689_v22  ;;  %v13208_v37 = vcombine.low %v10697_v2, %v10700_v10  ;;  %v10714_v46 = vsel %vm16312_vm5, %v10712_v60, %v10713_v45  ;;  %v13179_v57 = vrot.slane %v10591_v62, 9  ;;  %v10593_v22 = vld [vmem:[#allocation2 + $0xa8] sm:$0xe]  ;;  %v10594_v28 = vld [vmem:[#allocation2 + $0xb4] sm:$0xe]  ;;  %v13328_v10 = vld [vmem:[#allocation2] sm:$0xff]  }
 0x5b9   : > { %v13207_v20 = vcombine.low %v10690_v23, %v10693_v36  ;;  %v10721_v32 = vsel %vm16312_vm5, %v10719_v54, %v10720_v31  ;;  %v10731_v5 = vrot.slane %v19235_v19, 5  ;;  %v10727_v25 = vrot.slane %v19236_v1, 5 }
 0x5ba   : > { %v10718_v29 = vsel %vm16312_vm5, %v13179_v57, %v10717_v17  ;;  %v10734_v59 = vrot.slane %v18583_v6, 5  ;;  %v13181_v52 = vrot.slane %v10593_v22, 9  ;;  %v10745_v43 = vrot.slane %v19238_v40, 5 }
 0x5bb   : > { %v13211_v38 = vcombine.low %v10718_v29, %v10721_v32  ;;  %v13182_v23 = vrot.slane %v10594_v28, 9  ;;  %vm11840_vm4 = vcmask 1046528  }
 0x5bc   : > { %14616 = vmatmul.mubr.bf16.gmra.mrb[28].mxu1 %v13160_v27  ;;  %v10683_v27 = vsel %vm16312_vm5, %v13174_v4, %v10682_v14  ;;  %v10733_v14 = vrot.slane %v10731_v5, 4  ;;  %v10747_v36 = vrot.slane %v10745_v43, 4 }
 0x5bd   : > { %14635 = vmatprep.mubr.bf16.mxu1 %v13201_v47  ;;  %v13206_v7 = vcombine.low %v10683_v27, %v10686_v24  ;;  %v10589_v47 = vld [vmem:[#allocation2 + $0x78] sm:$0xe]  ;;  %v10732_v24 = vsel %vm16312_vm5, %v13181_v52, %v10731_v5  ;;  %v10595_v27 = vld [vmem:[#allocation2 + $0xc0] sm:$0xe] }
 0x5be   : > { %v13177_v26 = vrot.slane %v10589_v47, 9  ;;  %v10735_v48 = vsel %vm16312_vm5, %v10733_v14, %v10734_v59  ;;  %v13183_v21 = vrot.slane %v10595_v27, 9 }
 0x5bf   : > { %v13213_v6 = vcombine.low %v10732_v24, %v10735_v48 }
 0x5c0   : > { %v10704_v33 = vsel %vm16312_vm5, %v13177_v26, %v10703_v11  ;;  %v10741_v11 = vrot.slane %v18592_v55, 5  ;;  %v10746_v47 = vsel %vm16312_vm5, %v13183_v21, %v10745_v43  ;;  %v19239_v55 = vld [vmem:[#allocation5_spill] sm:$0xff]  ;;  %v18716_v26 = vunpack.c.h.bf16 %v13328_v10 }
 0x5c1   : > { %v13209_v42 = vcombine.low %v10704_v33, %v10707_v13  ;;  %v11680_v13 = vld [vmem:[#allocation2 + $0x8] sm:$0x1] }
 0x5c2   : > { %v11842_v2 = vrot.slane %v18716_v26, 1  ;;  %v12005_v60 = vrot.slane %v18716_v26, 2 }
 0x5c4   : > { %14636 = vmatmul.mubr.bf16.vlgmr.msra.gmra.mrb[0].mxu1 %v13202_v50  ;;  %v13178_v50 = vrot.slane %v10590_v58, 9 }
 0x5c5   : > { %14639 = vmatprep.mubr.bf16.mxu1 %v13203_v0  ;;  %v10724_v0 = vrot.slane %v19234_v12, 5 }
 0x5c6   : > { %v10711_v3 = vsel %vm16312_vm5, %v13178_v50, %v10710_v18  ;;  %v13329_v18 = vunpack.c.l.bf16 %v13328_v10  ;;  %v15458_v10 = vld [vmem:[#allocation2 + $0xc] sm:$0xf] }
 0x5c7   : > { %v13210_v30 = vcombine.low %v10711_v3, %v10714_v46  ;;  %v10726_v51 = vrot.slane %v10724_v0, 4 }
 0x5c8   : > { %v11841_v17 = vrot.slane %v13329_v18, 1 }
 0x5c9   : > { %v10728_v56 = vsel %vm16312_vm5, %v10726_v51, %v10727_v25 }
 0x5ca   : > { %v11843_v33 = vsel %vm11840_vm4, %v11841_v17, %v11842_v2 }
 0x5cb   : > { %v11967_v46 = vadd.f32 %v13329_v18, %v11843_v33 }
 0x5cc   : > { %14640 = vmatmul.mubr.bf16.gmra.mrb[4].mxu1 %v13204_v53  ;;  %v13180_v53 = vrot.slane %v10592_v41, 9 }
 0x5cd   : > { %14643 = vmatprep.mubr.bf16.mxu1 %v13205_v35  ;;  %v19237_v35 = vld [vmem:[#allocation11_spill] sm:$0xff] }
 0x5ce   : > { %v10738_v44 = vrot.slane %v19237_v35, 5  ;;  %v10725_v9 = vsel %vm16312_vm5, %v13180_v53, %v10724_v0 }
 0x5cf   : > { %v13212_v4 = vcombine.low %v10725_v9, %v10728_v56 }
 0x5d0   : > { %v10740_v63 = vrot.slane %v10738_v44, 4  ;;  %v10739_v8 = vsel %vm16312_vm5, %v13182_v23, %v10738_v44 }
 0x5d4   : > { %14644 = vmatmul.mubr.bf16.gmra.mrb[8].mxu1 %v13206_v7  ;;  %v10748_v7 = vrot.slane %v18601_v61, 5  ;;  %v19240_v61 = vld [vmem:[#allocation6_spill] sm:$0xff] }
 0x5d5   : > { %14647 = vmatprep.mubr.bf16.mxu1 %v13207_v20  ;;  %v10742_v20 = vsel %vm16312_vm5, %v10740_v63, %v10741_v11  ;;  %v19241_v16 = vcombine.low %v19239_v55, %v19240_v61 }
 0x5d6   : > { %v10749_v34 = vsel %vm16312_vm5, %v10747_v36, %v10748_v7  ;;  %v13214_v15 = vcombine.low %v10739_v8, %v10742_v20  ;;  %v11573_v20 = vld [vmem:[#allocation2 + $0x18] sm:$0xf] }
 0x5d7   : > { %v13215_v49 = vcombine.low %v10746_v47, %v10749_v34 }
 0x5dc   : > { %14648 = vmatmul.mubr.bf16.gmra.mrb[12].mxu1 %v13208_v37  ;;  %v11734_v37 = vunpack.c.l.bf16 %v11680_v13  ;;  %v11577_v13 = vld [vmem:[#allocation2 + $0x20] sm:$0x1] }
 0x5dd   : > { %14651 = vmatprep.mubr.bf16.mxu1 %v13209_v42  ;;  %v12004_v42 = vrot.slane %v13329_v18, 2 }
 0x5de   : > { %v11844_v54 = vrot.slane %v11734_v37, 1  ;;  %v12007_v22 = vrot.slane %v11734_v37, 2 }
 0x5df   : > { %v12006_v32 = vsel %vm12003_vm7, %v12004_v42, %v12005_v60 }
 0x5e0   : > { %v11845_v3 = vsel %vm11840_vm4, %v11842_v2, %v11844_v54  ;;  %v18734_v41 = vadd.f32 %v12006_v32, %v11967_v46 }
 0x5e1   : > { %v11968_v25 = vadd.f32 %v18716_v26, %v11845_v3 }
 0x5e4   : > { %14652 = vmatmul.mubr.bf16.gmra.mrb[16].mxu1 %v13210_v30 }
 0x5e5   : > { %14655 = vmatprep.mubr.bf16.mxu1 %v13211_v38 }
 0x5ec   : > { %14656 = vmatmul.mubr.bf16.gmra.mrb[20].mxu1 %v13212_v4 }
 0x5ed   : > { %14659 = vmatprep.mubr.bf16.mxu1 %v13213_v6 }
 0x5f4   : > { %14660 = vmatmul.mubr.bf16.gmra.mrb[24].mxu1 %v13214_v15 }
 0x5f5   : > { %14663 = vmatprep.mubr.bf16.mxu1 %v13215_v49 }
 0x5fc   : > { %14664 = vmatmul.mubr.bf16.gmra.mrb[28].mxu1 %v19241_v16 }
 0x697   : > { %v14637_v58 = vpop.f32.mrb[0].mxu1 }
 0x698   : > { %v11089_v45 = vadd.f32 %v14637_v58, %v18722_v39  ;;  %v10920_v62 = vpop.f32.mrb[1].mxu1 }
 0x699   : > { %v11087_v31 = vadd.f32 %v18722_v39, %v10920_v62  ;;  %v14638_v50 = vpop.f32.mrb[2].mxu1 }
 0x69a   : > { %v11121_v12 = vmax.f32 %v11089_v45, 0.0  ;;  %v11090_v0 = vadd.f32 %v14638_v50, %v18722_v39  ;;  %v10923_v57 = vpop.f32.mrb[3].mxu1  ;;  %v11570_v45 = vld [vmem:[#allocation2 + $0x14] sm:$0x1] }
 0x69b   : > { %v11119_v19 = vmax.f32 %v11087_v31, 0.0  ;;  %v11088_v5 = vadd.f32 %v18722_v39, %v10923_v57  ;;  %v12008_v31 = vsel %vm12003_vm7, %v12005_v60, %v12007_v22 }
 0x69c   : > { %v13297_v30 = vpack.c.bf16 %v11121_v12, %v11121_v12  ;;  %v11122_v29 = vmax.f32 %v11090_v0, 0.0 }
 0x69d   : > { %v13295_v38 = vpack.c.bf16 %v11119_v19, %v11119_v19  ;;  %v11120_v51 = vmax.f32 %v11088_v5, 0.0 }
 0x69e   : > { %v11265_v14 = vshrl.u32 %v13297_v30, 16  ;;  %v13298_v1 = vpack.c.bf16 %v11122_v29, %v11122_v29  ;;  %v11268_v59 = vshll.u32 %v13297_v30, 16 }
 0x69f   : > { %v11248_v53 = vshrl.u32 %v13295_v38, 16  ;;  %v11251_v56 = vshll.u32 %v13295_v38, 16  ;;  %v13296_v35 = vpack.c.bf16 %v11120_v51, %v11120_v51  ;;  %v14641_v44 = vpop.f32.mrb[4].mxu1  ;;  %v18760_v51 = vadd.f32 %v12008_v31, %v11968_v25  ;;  %v11591_v31 = vld [vmem:[#allocation2 + $0x38] sm:$0x1] }
 0x6a0   : > { %v11267_v52 = vrot.slane %v11265_v14, 7  ;;  %v11273_v48 = vshrl.u32 %v13298_v1, 16  ;;  %v11276_v40 = vshll.u32 %v13298_v1, 16  ;;  %v11093_v43 = vadd.f32 %v14641_v44, %v18722_v39  ;;  %v10936_v9 = vpop.f32.mrb[5].mxu1 }
 0x6a1   : > { %v11250_v4 = vrot.slane %v11248_v53, 7  ;;  %v11256_v24 = vshrl.u32 %v13296_v35, 16  ;;  %v11259_v6 = vshll.u32 %v13296_v35, 16  ;;  %v11091_v63 = vadd.f32 %v18722_v39, %v10936_v9  ;;  %v14642_v28 = vpop.f32.mrb[6].mxu1 }
 0x6a2   : > { %v11270_v36 = vor.u32 %v11268_v59, %v11267_v52  ;;  %v11271_v11 = vrot.slane %v11267_v52, 4  ;;  %v11275_v27 = vrot.slane %v11273_v48, 7  ;;  %v11125_v7 = vmax.f32 %v11093_v43, 0.0  ;;  %v10939_v23 = vpop.f32.mrb[7].mxu1  ;;  %v11580_v43 = vld [vmem:[#allocation2 + $0x24] sm:$0xf] }
 0x6a3   : > { %v11253_v21 = vor.u32 %v11251_v56, %v11250_v4  ;;  %v11254_v34 = vrot.slane %v11250_v4, 4  ;;  %v11258_v8 = vrot.slane %v11256_v24, 7  ;;  %v11123_v15 = vmax.f32 %v11091_v63, 0.0  ;;  %v11587_v56 = vld [vmem:[#allocation2 + $0x30] sm:$0xf] }
 0x6a4   : > { %v11574_v49 = vsel %vm17348_vm9, %v11270_v36, %v11573_v20  ;;  %v11278_v55 = vor.u32 %v11276_v40, %v11275_v27  ;;  %v11280_v61 = vrot.slane %v11275_v27, 4  ;;  %v13301_v16 = vpack.c.bf16 %v11125_v7, %v11125_v7 }
 0x6a5   : > { %11575 = vst [vmem:[#allocation2 + $0x18] sm:$0xf] %v11574_v49  ;;  %v11567_v18 = vsel %vm17348_vm9, %v11253_v21, %v15458_v10  ;;  %v11261_v17 = vor.u32 %v11259_v6, %v11258_v8  ;;  %v11263_v2 = vrot.slane %v11258_v8, 4  ;;  %v13299_v37 = vpack.c.bf16 %v11123_v15, %v11123_v15 }
 0x6a6   : > { %11568 = vst [vmem:[#allocation2 + $0xc] sm:$0xf] %v11567_v18  ;;  %v11279_v42 = vsel %vm15580_vm11, %v11271_v11, %v11278_v55  ;;  %v11578_v54 = vsel %vm15541_vm6, %v11280_v61, %v11577_v13  ;;  %v11299_v62 = vshrl.u32 %v13301_v16, 16  ;;  %v11302_v12 = vshll.u32 %v13301_v16, 16 }
 0x6a7   : > { %11576 = vst [vmem:[#allocation2 + $0x1c] sm:$0xf] %v11279_v42  ;;  %11579 = vst [vmem:[#allocation2 + $0x20] sm:$0x1] %v11578_v54  ;;  %v11262_v50 = vsel %vm15580_vm11, %v11254_v34, %v11261_v17  ;;  %v11571_v46 = vsel %vm15541_vm6, %v11263_v2, %v11570_v45  ;;  %v11282_v0 = vshrl.u32 %v13299_v37, 16  ;;  %v14645_v57 = vpop.f32.mrb[8].mxu1  ;;  %v11094_v19 = vadd.f32 %v14642_v28, %v18722_v39 }
 0x6a8   : > { %11569 = vst [vmem:[#allocation2 + $0x10] sm:$0xf] %v11262_v50  ;;  %11572 = vst [vmem:[#allocation2 + $0x14] sm:$0x1] %v11571_v46  ;;  %v18754_v32 = vrot.slane %v11299_v62, 7  ;;  %v11092_v26 = vadd.f32 %v18722_v39, %v10939_v23  ;;  %v11097_v60 = vadd.f32 %v14645_v57, %v18722_v39  ;;  %v10952_v5 = vpop.f32.mrb[9].mxu1 }
 0x6a9   : > { %v11284_v3 = vrot.slane %v11282_v0, 7  ;;  %v11285_v30 = vshll.u32 %v13299_v37, 16  ;;  %v11095_v29 = vadd.f32 %v18722_v39, %v10952_v5  ;;  %v14646_v38 = vpop.f32.mrb[10].mxu1  ;;  %v11126_v22 = vmax.f32 %v11094_v19, 0.0  ;;  %v11584_v50 = vld [vmem:[#allocation2 + $0x2c] sm:$0x1] }
 0x6aa   : > { %v11304_v14 = vor.u32 %v11302_v12, %v18754_v32  ;;  %v11305_v1 = vrot.slane %v18754_v32, 4  ;;  %v11124_v59 = vmax.f32 %v11092_v26, 0.0  ;;  %v10955_v53 = vpop.f32.mrb[11].mxu1  ;;  %v11129_v52 = vmax.f32 %v11097_v60, 0.0  ;;  %v11601_v5 = vld [vmem:[#allocation2 + $0x48] sm:$0xf] }
 0x6ab   : > { %v11287_v35 = vor.u32 %v11285_v30, %v11284_v3  ;;  %v11288_v44 = vrot.slane %v11284_v3, 4  ;;  %v11127_v48 = vmax.f32 %v11095_v29, 0.0  ;;  %v13302_v9 = vpack.c.bf16 %v11126_v22, %v11126_v22  ;;  %v11594_v3 = vld [vmem:[#allocation2 + $0x3c] sm:$0xf] }
 0x6ac   : > { %v11588_v40 = vsel %vm17348_vm9, %v11304_v14, %v11587_v56  ;;  %v13300_v4 = vpack.c.bf16 %v11124_v59, %v11124_v59  ;;  %v11098_v25 = vadd.f32 %v14646_v38, %v18722_v39  ;;  %v13305_v6 = vpack.c.bf16 %v11129_v52, %v11129_v52 }
 0x6ad   : > { %11589 = vst [vmem:[#allocation2 + $0x30] sm:$0xf] %v11588_v40  ;;  %v11581_v24 = vsel %vm17348_vm9, %v11287_v35, %v11580_v43  ;;  %v13303_v63 = vpack.c.bf16 %v11127_v48, %v11127_v48  ;;  %v11096_v28 = vadd.f32 %v18722_v39, %v10955_v53  ;;  %v11307_v36 = vshrl.u32 %v13302_v9, 16 }
 0x6ae   : > { %11582 = vst [vmem:[#allocation2 + $0x24] sm:$0xf] %v11581_v24  ;;  %v11310_v11 = vshll.u32 %v13302_v9, 16  ;;  %v11290_v27 = vshrl.u32 %v13300_v4, 16  ;;  %v11293_v7 = vshll.u32 %v13300_v4, 16  ;;  %v11333_v23 = vshrl.u32 %v13305_v6, 16 }
 0x6af   : > { %v11336_v20 = vshll.u32 %v13305_v6, 16  ;;  %v11316_v21 = vshrl.u32 %v13303_v63, 16  ;;  %v11319_v34 = vshll.u32 %v13303_v63, 16  ;;  %v14649_v8 = vpop.f32.mrb[12].mxu1  ;;  %v11309_v15 = vrot.slane %v11307_v36, 7 }
 0x6b0   : > { %v11292_v49 = vrot.slane %v11290_v27, 7  ;;  %v11130_v55 = vmax.f32 %v11098_v25, 0.0  ;;  %v11128_v61 = vmax.f32 %v11096_v28, 0.0  ;;  %v10968_v16 = vpop.f32.mrb[13].mxu1  ;;  %v18770_v10 = vrot.slane %v11333_v23, 7 }
 0x6b1   : > { %v18772_v18 = vrot.slane %v11316_v21, 7  ;;  %v11101_v13 = vadd.f32 %v14649_v8, %v18722_v39  ;;  %v11099_v17 = vadd.f32 %v18722_v39, %v10968_v16  ;;  %v14650_v2 = vpop.f32.mrb[14].mxu1  ;;  %v11312_v37 = vor.u32 %v11310_v11, %v11309_v15 }
 0x6b2   : > { %v11314_v42 = vrot.slane %v11309_v15, 4  ;;  %v11295_v54 = vor.u32 %v11293_v7, %v11292_v49  ;;  %v11297_v45 = vrot.slane %v11292_v49, 4  ;;  %v10971_v62 = vpop.f32.mrb[15].mxu1  ;;  %v11338_v46 = vor.u32 %v11336_v20, %v18770_v10  ;;  %v11605_v49 = vld [vmem:[#allocation2 + $0x50] sm:$0x1] }
 0x6b3   : > { %v11339_v12 = vrot.slane %v18770_v10, 4  ;;  %v11321_v0 = vor.u32 %v11319_v34, %v18772_v18  ;;  %v11322_v57 = vrot.slane %v18772_v18, 4  ;;  %v11313_v32 = vsel %vm15580_vm11, %v11305_v1, %v11312_v37 }
 0x6b4   : > { %v11592_v19 = vsel %vm15541_vm6, %v11314_v42, %v11591_v31  ;;  %v11296_v26 = vsel %vm15580_vm11, %v11288_v44, %v11295_v54  ;;  %v11585_v60 = vsel %vm15541_vm6, %v11297_v45, %v11584_v50  ;;  %11590 = vst [vmem:[#allocation2 + $0x34] sm:$0xf] %v11313_v32  ;;  %v11602_v30 = vsel %vm17348_vm9, %v11338_v46, %v11601_v5  ;;  %v11615_v45 = vld [vmem:[#allocation2 + $0x60] sm:$0xf]  ;;  %v11608_v50 = vld [vmem:[#allocation2 + $0x54] sm:$0xf] }
 0x6b5   : > { %11593 = vst [vmem:[#allocation2 + $0x38] sm:$0x1] %v11592_v19  ;;  %11583 = vst [vmem:[#allocation2 + $0x28] sm:$0xf] %v11296_v26  ;;  %v11595_v29 = vsel %vm17348_vm9, %v11321_v0, %v11594_v3  ;;  %v13306_v38 = vpack.c.bf16 %v11130_v55, %v11130_v55  ;;  %v13304_v14 = vpack.c.bf16 %v11128_v61, %v11128_v61  ;;  %v11133_v1 = vmax.f32 %v11101_v13, 0.0  ;;  %v13363_v19 = vld [vmem:[#allocation2 + $0x18] sm:$0xff]  }
 0x6b6   : > { %11586 = vst [vmem:[#allocation2 + $0x2c] sm:$0x1] %v11585_v60  ;;  %11603 = vst [vmem:[#allocation2 + $0x48] sm:$0xf] %v11602_v30  ;;  %v11131_v22 = vmax.f32 %v11099_v17, 0.0  ;;  %v11102_v59 = vadd.f32 %v14650_v2, %v18722_v39  ;;  %v11100_v53 = vadd.f32 %v18722_v39, %v10971_v62 }
 0x6b7   : > { %11596 = vst [vmem:[#allocation2 + $0x3c] sm:$0xf] %v11595_v29  ;;  %v11341_v56 = vshrl.u32 %v13306_v38, 16  ;;  %v11344_v35 = vshll.u32 %v13306_v38, 16  ;;  %v11324_v44 = vshrl.u32 %v13304_v14, 16  ;;  %v11327_v52 = vshll.u32 %v13304_v14, 16 }
 0x6b8   : > { %v14653_v48 = vpop.f32.mrb[16].mxu1  ;;  %v13309_v40 = vpack.c.bf16 %v11133_v1, %v11133_v1  ;;  %v13307_v43 = vpack.c.bf16 %v11131_v22, %v11131_v22  ;;  %v11134_v9 = vmax.f32 %v11102_v59, 0.0  ;;  %v11132_v4 = vmax.f32 %v11100_v53, 0.0  ;;  %v11598_v55 = vld [vmem:[#allocation2 + $0x44] sm:$0x1] }
 0x6b9   : > { %v10984_v25 = vpop.f32.mrb[17].mxu1  ;;  %v11343_v24 = vrot.slane %v11341_v56, 7  ;;  %v11326_v6 = vrot.slane %v11324_v44, 7  ;;  %v11105_v63 = vadd.f32 %v14653_v48, %v18722_v39  ;;  %v18816_v56 = vunpack.c.l.bf16 %v13363_v19 }
 0x6ba   : > { %v11103_v28 = vadd.f32 %v18722_v39, %v10984_v25  ;;  %v14654_v36 = vpop.f32.mrb[18].mxu1  ;;  %v11367_v11 = vshrl.u32 %v13309_v40, 16  ;;  %v11370_v27 = vshll.u32 %v13309_v40, 16  ;;  %v11350_v7 = vshrl.u32 %v13307_v43, 16  ;;  %v11619_v40 = vld [vmem:[#allocation2 + $0x68] sm:$0x1] }
 0x6bb   : > { %v11353_v23 = vshll.u32 %v13307_v43, 16  ;;  %v10987_v20 = vpop.f32.mrb[19].mxu1  ;;  %v11346_v21 = vor.u32 %v11344_v35, %v11343_v24  ;;  %v11348_v34 = vrot.slane %v11343_v24, 4  ;;  %v11329_v8 = vor.u32 %v11327_v52, %v11326_v6 }
 0x6bc   : > { %v11331_v15 = vrot.slane %v11326_v6, 4  ;;  %v11369_v61 = vrot.slane %v11367_v11, 7  ;;  %v11352_v16 = vrot.slane %v11350_v7, 7  ;;  %v13310_v10 = vpack.c.bf16 %v11134_v9, %v11134_v9 }
 0x6bd   : > { %v13308_v18 = vpack.c.bf16 %v11132_v4, %v11132_v4  ;;  %v11347_v13 = vsel %vm15580_vm11, %v11339_v12, %v11346_v21  ;;  %v11606_v17 = vsel %vm15541_vm6, %v11348_v34, %v11605_v49  ;;  %v11330_v2 = vsel %vm15580_vm11, %v11322_v57, %v11329_v8  ;;  %v11612_v4 = vld [vmem:[#allocation2 + $0x5c] sm:$0x1] }
 0x6be   : > { %v11599_v37 = vsel %vm15541_vm6, %v11331_v15, %v11598_v55  ;;  %11604 = vst [vmem:[#allocation2 + $0x4c] sm:$0xf] %v11347_v13  ;;  %11607 = vst [vmem:[#allocation2 + $0x50] sm:$0x1] %v11606_v17  ;;  %v11372_v42 = vor.u32 %v11370_v27, %v11369_v61  ;;  %v11373_v54 = vrot.slane %v11369_v61, 4  ;;  %v11355_v62 = vor.u32 %v11353_v23, %v11352_v16 }
 0x6bf   : > { %11597 = vst [vmem:[#allocation2 + $0x40] sm:$0xf] %v11330_v2  ;;  %11600 = vst [vmem:[#allocation2 + $0x44] sm:$0x1] %v11599_v37  ;;  %v11356_v31 = vrot.slane %v11352_v16, 4  ;;  %v11375_v46 = vshrl.u32 %v13310_v10, 16  ;;  %v11106_v14 = vadd.f32 %v14654_v36, %v18722_v39  ;;  %v11104_v1 = vadd.f32 %v18722_v39, %v10987_v20 }
 0x6c0   : > { %v11378_v12 = vshll.u32 %v13310_v10, 16  ;;  %v11358_v0 = vshrl.u32 %v13308_v18, 16  ;;  %v11361_v32 = vshll.u32 %v13308_v18, 16  ;;  %v18804_v26 = vpop.f32.mrb[20].mxu1  ;;  %v11616_v57 = vsel %vm17348_vm9, %v11372_v42, %v11615_v45  ;;  %v11629_v18 = vld [vmem:[#allocation2 + $0x78] sm:$0xf] }
 0x6c1   : > { %v11609_v60 = vsel %vm17348_vm9, %v11355_v62, %v11608_v50  ;;  %v11137_v5 = vmax.f32 %v11105_v63, 0.0  ;;  %v11135_v3 = vmax.f32 %v11103_v28, 0.0  ;;  %v18810_v30 = vpop.f32.mrb[21].mxu1  ;;  %11617 = vst [vmem:[#allocation2 + $0x60] sm:$0xf] %v11616_v57  ;;  %v11377_v29 = vrot.slane %v11375_v46, 7 }
 0x6c2   : > { %11610 = vst [vmem:[#allocation2 + $0x54] sm:$0xf] %v11609_v60  ;;  %v11360_v38 = vrot.slane %v11358_v0, 7  ;;  %v18814_v22 = vpop.f32.mrb[22].mxu1  ;;  %v18818_v35 = vunpack.c.h.bf16 %v13363_v19  ;;  %v11681_v28 = vld [vmem:[#allocation2 + $0xc] sm:$0xff]   ;;  %v11138_v21 = vmax.f32 %v11106_v14, 0.0 }
 0x6c3   : > { %v13313_v59 = vpack.c.bf16 %v11137_v5, %v11137_v5  ;;  %v13311_v53 = vpack.c.bf16 %v11135_v3, %v11135_v3  ;;  %v18820_v44 = vpop.f32.mrb[23].mxu1  ;;  %v11380_v52 = vor.u32 %v11378_v12, %v11377_v29  ;;  %v11382_v48 = vrot.slane %v11377_v29, 4  ;;  %v11622_v37 = vld [vmem:[#allocation2 + $0x6c] sm:$0xf] }
 0x6c4   : > { %v11363_v43 = vor.u32 %v11361_v32, %v11360_v38  ;;  %v11365_v9 = vrot.slane %v11360_v38, 4  ;;  %v11136_v34 = vmax.f32 %v11104_v1, 0.0  ;;  %v11735_v8 = vunpack.c.l.bf16 %v11681_v28 }
 0x6c5   : > { %v11401_v25 = vshrl.u32 %v13313_v59, 16  ;;  %v11404_v24 = vshll.u32 %v13313_v59, 16  ;;  %v11384_v6 = vshrl.u32 %v13311_v53, 16  ;;  %v11387_v63 = vshll.u32 %v13311_v53, 16 }
 0x6c6   : > { %v11381_v36 = vsel %vm15580_vm11, %v11373_v54, %v11380_v52  ;;  %v11620_v11 = vsel %vm15541_vm6, %v11382_v48, %v11619_v40  ;;  %v11364_v27 = vsel %vm15580_vm11, %v11356_v31, %v11363_v43  ;;  %v11613_v7 = vsel %vm15541_vm6, %v11365_v9, %v11612_v4  ;;  %v11633_v48 = vld [vmem:[#allocation2 + $0x80] sm:$0x1]  ;;  %v11626_v40 = vld [vmem:[#allocation2 + $0x74] sm:$0x1] }
 0x6c7   : > { %11618 = vst [vmem:[#allocation2 + $0x64] sm:$0xf] %v11381_v36  ;;  %11621 = vst [vmem:[#allocation2 + $0x68] sm:$0x1] %v11620_v11  ;;  %v11403_v23 = vrot.slane %v11401_v25, 7  ;;  %v11386_v20 = vrot.slane %v11384_v6, 7  ;;  %v18830_v15 = vunpack.c.h.bf16 %v11681_v28  ;;  %v13314_v42 = vpack.c.bf16 %v11138_v21, %v11138_v21 }
 0x6c8   : > { %11611 = vst [vmem:[#allocation2 + $0x58] sm:$0xf] %v11364_v27  ;;  %11614 = vst [vmem:[#allocation2 + $0x5c] sm:$0x1] %v11613_v7  ;;  %v11851_v49 = vrot.slane %v18816_v56, 1  ;;  %v11852_v55 = vrot.slane %v18818_v35, 1  ;;  %v13312_v54 = vpack.c.bf16 %v11136_v34, %v11136_v34  ;;  %v11109_v9 = vadd.f32 %v18804_v26, %v18722_v39 }
 0x6c9   : > { %v18834_v61 = vpop.f32.mrb[24].mxu1  ;;  %v11406_v16 = vor.u32 %v11404_v24, %v11403_v23  ;;  %v11407_v10 = vrot.slane %v11403_v23, 4  ;;  %v11389_v13 = vor.u32 %v11387_v63, %v11386_v20  ;;  %v11390_v17 = vrot.slane %v11386_v20, 4  ;;  %v18866_v28 = vld [vmem:[#allocation2 + $0x14] sm:$0x1] }
 0x6ca   : > { %v18836_v2 = vpop.f32.mrb[25].mxu1  ;;  %v11846_v45 = vrot.slane %v11735_v8, 1  ;;  %v11847_v62 = vrot.slane %v18830_v15, 1  ;;  %v11853_v12 = vsel %vm11840_vm4, %v11851_v49, %v11852_v55  ;;  %v12009_v0 = vrot.slane %v11735_v8, 2 }
 0x6cb   : > { %v18839_v31 = vpop.f32.mrb[26].mxu1  ;;  %v11630_v50 = vsel %vm17348_vm9, %v11406_v16, %v11629_v18  ;;  %v11623_v46 = vsel %vm17348_vm9, %v11389_v13, %v11622_v37  ;;  %v11409_v19 = vshrl.u32 %v13314_v42, 16  ;;  %v11412_v57 = vshll.u32 %v13314_v42, 16 }
 0x6cc   : > { %v18848_v32 = vpop.f32.mrb[27].mxu1  ;;  %11631 = vst [vmem:[#allocation2 + $0x78] sm:$0xf] %v11630_v50  ;;  %11624 = vst [vmem:[#allocation2 + $0x6c] sm:$0xf] %v11623_v46  ;;  %v11392_v60 = vshrl.u32 %v13312_v54, 16  ;;  %v11848_v3 = vsel %vm11840_vm4, %v11846_v45, %v11847_v62  ;;  %v11971_v29 = vadd.f32 %v18816_v56, %v11853_v12  ;;  %v11107_v4 = vadd.f32 %v18722_v39, %v18810_v30 }
 0x6cd   : > { %v11395_v5 = vshll.u32 %v13312_v54, 16  ;;  %v12010_v38 = vrot.slane %v18830_v15, 2  ;;  %v12014_v14 = vrot.slane %v18816_v56, 2  ;;  %v11411_v1 = vrot.slane %v11409_v19, 7  ;;  %v11686_v30 = vld [vmem:[#allocation2 + $0x20] sm:$0x1] }
 0x6ce   : > { %v11394_v59 = vrot.slane %v11392_v60, 7  ;;  %v11969_v53 = vadd.f32 %v11848_v3, %v11735_v8  ;;  %v12015_v52 = vrot.slane %v18818_v35, 2  ;;  %v11110_v56 = vadd.f32 %v18814_v22, %v18722_v39  ;;  %v13366_v58 = vld [vmem:[#allocation2 + $0x60] sm:$0xff]  }
 0x6cf   : > { %v12011_v43 = vsel %vm12003_vm7, %v12009_v0, %v12010_v38  ;;  %v11414_v25 = vor.u32 %v11412_v57, %v11411_v1  ;;  %v11416_v24 = vrot.slane %v11411_v1, 4  ;;  %v18868_v36 = vpop.f32.mrb[28].mxu1  ;;  %v11141_v26 = vmax.f32 %v11109_v9, 0.0 }
 0x6d0   : > { %v11397_v6 = vor.u32 %v11395_v5, %v11394_v59  ;;  %v11399_v63 = vrot.slane %v11394_v59, 4  ;;  %v12016_v11 = vsel %vm12003_vm7, %v12014_v14, %v12015_v52  ;;  %v18873_v27 = vadd.f32 %v12011_v43, %v11969_v53  ;;  %v18875_v23 = vpop.f32.mrb[29].mxu1 }
 0x6d1   : > { %v11139_v7 = vmax.f32 %v11107_v4, 0.0  ;;  %v11415_v22 = vsel %vm15580_vm11, %v11407_v10, %v11414_v25  ;;  %v11634_v20 = vsel %vm15541_vm6, %v11416_v24, %v11633_v48  ;;  %v18885_v8 = vpop.f32.mrb[30].mxu1  ;;  %v18887_v49 = vadd.f32 %v12016_v11, %v11971_v29  ;;  %v11636_v4 = vld [vmem:[#allocation2 + $0x84] sm:$0xf] }
 0x6d2   : > { %v11398_v21 = vsel %vm15580_vm11, %v11390_v17, %v11397_v6  ;;  %v11627_v34 = vsel %vm15541_vm6, %v11399_v63, %v11626_v40  ;;  %11632 = vst [vmem:[#allocation2 + $0x7c] sm:$0xf] %v11415_v22  ;;  %11635 = vst [vmem:[#allocation2 + $0x80] sm:$0x1] %v11634_v20  ;;  %v12166_v16 = vadd.f32 %v18873_v27, %v18734_v41  ;;  %v18891_v13 = vpop.f32.mrb[31].mxu1  ;;  %v11142_v37 = vmax.f32 %v11110_v56, 0.0 }
 0x6d3   : > { %11625 = vst [vmem:[#allocation2 + $0x70] sm:$0xf] %v11398_v21  ;;  %11628 = vst [vmem:[#allocation2 + $0x74] sm:$0x1] %v11627_v34  ;;  %v13317_v10 = vpack.c.bf16 %v11141_v26, %v11141_v26  ;;  %v13315_v18 = vpack.c.bf16 %v11139_v7, %v11139_v7  ;;  %v11108_v17 = vadd.f32 %v18722_v39, %v18820_v44  ;;  %v11737_v42 = vunpack.c.l.bf16 %v18866_v28  ;;  %v11643_v40 = vld [vmem:[#allocation2 + $0x90] sm:$0xf] }
 0x6d4   : > { %v11740_v54 = vunpack.c.l.bf16 %v11686_v30  ;;  %v12198_v45 = vadd.f32 %v12166_v16, %v18887_v49  ;;  %v13318_v19 = vpack.c.bf16 %v11142_v37, %v11142_v37  ;;  %v11687_v63 = vld [vmem:[#allocation2 + $0x24] sm:$0xff]   ;;  %v11647_v21 = vld [vmem:[#allocation2 + $0x98] sm:$0x1] }
 0x6d5   : > { %v11435_v50 = vshrl.u32 %v13317_v10, 16  ;;  %v11438_v46 = vshll.u32 %v13317_v10, 16  ;;  %v11418_v12 = vshrl.u32 %v13315_v18, 16  ;;  %v11421_v0 = vshll.u32 %v13315_v18, 16 }
 0x6d6   : > { %v11140_v57 = vmax.f32 %v11108_v17, 0.0  ;;  %v11849_v41 = vrot.slane %v11737_v42, 1  ;;  %v12230_v60 = vmul.f32 0.11111111, %v12198_v45  ;;  %v11854_v29 = vrot.slane %v11740_v54, 1 }
 0x6d7   : > { %v11437_v5 = vrot.slane %v11435_v50, 7  ;;  %v11420_v3 = vrot.slane %v11418_v12, 7  ;;  %v11443_v14 = vshrl.u32 %v13318_v19, 16  ;;  %v11446_v1 = vshll.u32 %v13318_v19, 16  ;;  %v11640_v50 = vld [vmem:[#allocation2 + $0x8c] sm:$0x1] }
 0x6d8   : > { %v13316_v59 = vpack.c.bf16 %v11140_v57, %v11140_v57  ;;  %v11850_v44 = vsel %vm11840_vm4, %v11847_v62, %v11849_v41  ;;  %12262 = vxpose.xlu0.b32.start [1/16] (narrow) %v12230_v60, 8  ;;  %v11855_v6 = vsel %vm11840_vm4, %v11852_v55, %v11854_v29  ;;  %v12012_v20 = vrot.slane %v11737_v42, 2  ;;  %v11689_v41 = vld [vmem:[#allocation2 + $0x2c] sm:$0x1] }
 0x6d9   : > { %v11440_v53 = vor.u32 %v11438_v46, %v11437_v5  ;;  %v11441_v48 = vrot.slane %v11437_v5, 4  ;;  %v11423_v43 = vor.u32 %v11421_v0, %v11420_v3  ;;  %v11424_v9 = vrot.slane %v11420_v3, 4 }
 0x6da   : > { %v11445_v56 = vrot.slane %v11443_v14, 7  ;;  %v11426_v25 = vshrl.u32 %v13316_v59, 16  ;;  %v11429_v24 = vshll.u32 %v13316_v59, 16  ;;  %v11970_v11 = vadd.f32 %v11850_v44, %v18830_v15 }
 0x6db   : > { %v11644_v28 = vsel %vm17348_vm9, %v11440_v53, %v11643_v40  ;;  %v11637_v62 = vsel %vm17348_vm9, %v11423_v43, %v11636_v4  ;;  %v11972_v26 = vadd.f32 %v18818_v35, %v11855_v6  ;;  %v12017_v34 = vrot.slane %v11740_v54, 2 }
 0x6dc   : > { %11645 = vst [vmem:[#allocation2 + $0x90] sm:$0xf] %v11644_v28  ;;  %11638 = vst [vmem:[#allocation2 + $0x84] sm:$0xf] %v11637_v62  ;;  %v11448_v7 = vor.u32 %v11446_v1, %v11445_v56  ;;  %v11450_v30 = vrot.slane %v11445_v56, 4  ;;  %v11428_v22 = vrot.slane %v11426_v25, 7  ;;  %v11741_v55 = vunpack.c.l.bf16 %v11687_v63 }
 0x6dd   : > { %v11742_v16 = vunpack.c.h.bf16 %v11687_v63  ;;  %v12168_v10 = vadd.f32 %v18887_v49, %v18873_v27  ;;  %v12013_v42 = vsel %vm12003_vm7, %v12010_v38, %v12012_v20  ;;  %v12018_v54 = vsel %vm12003_vm7, %v12015_v52, %v12017_v34 }
 0x6de   : > { %v11449_v18 = vsel %vm15580_vm11, %v11441_v48, %v11448_v7  ;;  %v11648_v37 = vsel %vm15541_vm6, %v11450_v30, %v11647_v21  ;;  %v11431_v17 = vor.u32 %v11429_v24, %v11428_v22  ;;  %v11433_v45 = vrot.slane %v11428_v22, 4 }
 0x6df   : > { %11646 = vst [vmem:[#allocation2 + $0x94] sm:$0xf] %v11449_v18  ;;  %11649 = vst [vmem:[#allocation2 + $0x98] sm:$0x1] %v11648_v37  ;;  %v11856_v27 = vrot.slane %v11741_v55, 1  ;;  %v11857_v46 = vrot.slane %v11742_v16, 1  ;;  %v12133_v19 = vadd.f32 %v12013_v42, %v11970_v11  ;;  %v18925_v57 = vadd.f32 %v12018_v54, %v11972_v26 }
 0x6e0   : > { %v11432_v12 = vsel %vm15580_vm11, %v11424_v9, %v11431_v17  ;;  %v11641_v0 = vsel %vm15541_vm6, %v11433_v45, %v11640_v50  ;;  %v12019_v38 = vrot.slane %v11741_v55, 2  ;;  %v12020_v35 = vrot.slane %v11742_v16, 2  ;;  %v13364_v50 = vld [vmem:[#allocation2 + $0x30] sm:$0xff]   ;;  %v11657_v42 = vld [vmem:[#allocation2 + $0xa8] sm:$0xf] }
 0x6e1   : > { %11639 = vst [vmem:[#allocation2 + $0x88] sm:$0xf] %v11432_v12  ;;  %11642 = vst [vmem:[#allocation2 + $0x8c] sm:$0x1] %v11641_v0  ;;  %v11858_v15 = vsel %vm11840_vm4, %v11856_v27, %v11857_v46  ;;  %v11113_v52 = vadd.f32 %v18834_v61, %v18722_v39  ;;  %v12167_v60 = vadd.f32 %v12133_v19, %v18760_v51  ;;  %v11743_v44 = vunpack.c.l.bf16 %v11689_v41  ;;  %v11650_v41 = vld [vmem:[#allocation2 + $0x9c] sm:$0xf] }
 0x6e2   : > { %v11973_v5 = vadd.f32 %v11858_v15, %v11741_v55  ;;  %v11111_v3 = vadd.f32 %v18722_v39, %v18836_v2  ;;  %v11114_v29 = vadd.f32 %v18839_v31, %v18722_v39  ;;  %v12021_v14 = vsel %vm12003_vm7, %v12019_v38, %v12020_v35  ;;  %v11661_v15 = vld [vmem:[#allocation2 + $0xb0] sm:$0x1] }
 0x6e3   : > { %v11145_v1 = vmax.f32 %v11113_v52, 0.0  ;;  %v11112_v59 = vadd.f32 %v18722_v39, %v18848_v32  ;;  %v12199_v53 = vadd.f32 %v12167_v60, %v18925_v57  ;;  %v11859_v9 = vrot.slane %v11743_v44, 1 }
 0x6e4   : > { %v18939_v48 = vadd.f32 %v12021_v14, %v11973_v5  ;;  %v11143_v61 = vmax.f32 %v11111_v3, 0.0  ;;  %v11146_v51 = vmax.f32 %v11114_v29, 0.0  ;;  %v12022_v2 = vrot.slane %v11743_v44, 2  ;;  %v11654_v5 = vld [vmem:[#allocation2 + $0xa4] sm:$0x1] }
 0x6e5   : > { %v13321_v40 = vpack.c.bf16 %v11145_v1, %v11145_v1  ;;  %v11144_v43 = vmax.f32 %v11112_v59, 0.0  ;;  %v12231_v4 = vmul.f32 0.11111111, %v12199_v53  ;;  %v11860_v32 = vsel %vm11840_vm4, %v11857_v46, %v11859_v9  ;;  %v11692_v44 = vld [vmem:[#allocation2 + $0x38] sm:$0x1] }
 0x6e6   : > { %v12200_v31 = vadd.f32 %v12168_v10, %v18939_v48  ;;  %v13319_v56 = vpack.c.bf16 %v11143_v61, %v11143_v61  ;;  %v13322_v25 = vpack.c.bf16 %v11146_v51, %v11146_v51  ;;  %v11974_v55 = vadd.f32 %v11860_v32, %v11742_v16 }
 0x6e7   : > { %v11469_v24 = vshrl.u32 %v13321_v40, 16  ;;  %v11472_v6 = vshll.u32 %v13321_v40, 16  ;;  %v13320_v63 = vpack.c.bf16 %v11144_v43, %v11144_v43  ;;  %12263 = vxpose.xlu0.b32.cont [2/16] (narrow) %v12231_v4, 8  ;;  %v12023_v10 = vsel %vm12003_vm7, %v12020_v35, %v12022_v2 }
 0x6e8   : > { %v12232_v28 = vmul.f32 0.11111111, %v12200_v31  ;;  %v11452_v62 = vshrl.u32 %v13319_v56, 16  ;;  %v11455_v11 = vshll.u32 %v13319_v56, 16  ;;  %v11477_v26 = vshrl.u32 %v13322_v25, 16 }
 0x6e9   : > { %v11471_v7 = vrot.slane %v11469_v24, 7  ;;  %v11480_v30 = vshll.u32 %v13322_v25, 16  ;;  %v11460_v22 = vshrl.u32 %v13320_v63, 16  ;;  %v11463_v20 = vshll.u32 %v13320_v63, 16 }
 0x6ea   : > { %v11454_v21 = vrot.slane %v11452_v62, 7  ;;  %v11479_v34 = vrot.slane %v11477_v26, 7  ;;  %v12169_v45 = vadd.f32 %v18925_v57, %v12133_v19  ;;  %v18947_v35 = vadd.f32 %v12023_v10, %v11974_v55 }
 0x6eb   : > { %v11474_v18 = vor.u32 %v11472_v6, %v11471_v7  ;;  %v11475_v37 = vrot.slane %v11471_v7, 4  ;;  %v11462_v17 = vrot.slane %v11460_v22, 7  ;;  %12264 = vxpose.xlu0.b32.cont [3/16] (narrow) %v12232_v28, 8  ;;  %v13337_v3 = vunpack.c.l.bf16 %v13364_v50  ;;  %v11693_v6 = vld [vmem:[#allocation2 + $0x3c] sm:$0xff]  }
 0x6ec   : > { %v11457_v54 = vor.u32 %v11455_v11, %v11454_v21  ;;  %v11458_v27 = vrot.slane %v11454_v21, 4  ;;  %v11482_v46 = vor.u32 %v11480_v30, %v11479_v34  ;;  %v11484_v12 = vrot.slane %v11479_v34, 4 }
 0x6ed   : > { %v11658_v0 = vsel %vm17348_vm9, %v11474_v18, %v11657_v42  ;;  %v11465_v16 = vor.u32 %v11463_v20, %v11462_v17  ;;  %v11467_v38 = vrot.slane %v11462_v17, 4  ;;  %v12201_v1 = vadd.f32 %v12169_v45, %v18947_v35 }
 0x6ee   : > { %11659 = vst [vmem:[#allocation2 + $0xa8] sm:$0xf] %v11658_v0  ;;  %v11651_v19 = vsel %vm17348_vm9, %v11457_v54, %v11650_v41  ;;  %v11483_v52 = vsel %vm15580_vm11, %v11475_v37, %v11482_v46  ;;  %v11662_v60 = vsel %vm15541_vm6, %v11484_v12, %v11661_v15  ;;  %v13338_v59 = vunpack.c.h.bf16 %v13364_v50  ;;  %v11671_v41 = vld [vmem:[#allocation2 + $0xc0] sm:$0xf] }
 0x6ef   : > { %11652 = vst [vmem:[#allocation2 + $0x9c] sm:$0xf] %v11651_v19  ;;  %11660 = vst [vmem:[#allocation2 + $0xac] sm:$0xf] %v11483_v52  ;;  %v11466_v29 = vsel %vm15580_vm11, %v11458_v27, %v11465_v16  ;;  %v11655_v14 = vsel %vm15541_vm6, %v11467_v38, %v11654_v5  ;;  %v11861_v53 = vrot.slane %v13337_v3, 1  ;;  %v12024_v61 = vrot.slane %v13337_v3, 2 }
 0x6f0   : > { %11663 = vst [vmem:[#allocation2 + $0xb0] sm:$0x1] %v11662_v60  ;;  %11653 = vst [vmem:[#allocation2 + $0xa0] sm:$0xf] %v11466_v29  ;;  %v12170_v51 = vadd.f32 %v18939_v48, %v18887_v49  ;;  %v11117_v40 = vadd.f32 %v18868_v36, %v18722_v39  ;;  %v12233_v43 = vmul.f32 0.11111111, %v12201_v1  ;;  %v11115_v4 = vadd.f32 %v18722_v39, %v18875_v23 }
 0x6f1   : > { %11656 = vst [vmem:[#allocation2 + $0xa4] sm:$0x1] %v11655_v14  ;;  %v11862_v9 = vrot.slane %v13338_v59, 1  ;;  %v12025_v2 = vrot.slane %v13338_v59, 2  ;;  %v11118_v56 = vadd.f32 %v18885_v8, %v18722_v39  ;;  %v11116_v25 = vadd.f32 %v18722_v39, %v18891_v13  ;;  %v11664_v60 = vld [vmem:[#allocation2 + $0xb4] sm:$0xf] }
 0x6f2   : > { %v11149_v31 = vmax.f32 %v11117_v40, 0.0  ;;  %v11746_v24 = vunpack.c.l.bf16 %v11692_v44  ;;  %12265 = vxpose.xlu0.b32.cont [4/16] (narrow) %v12233_v43, 8  ;;  %v11147_v63 = vmax.f32 %v11115_v4, 0.0  ;;  %v12171_v32 = vadd.f32 %v18947_v35, %v18925_v57  ;;  %v11675_v1 = vld [vmem:[#allocation2 + $0xc8] sm:$0x1] }
 0x6f3   : > { %v11863_v49 = vsel %vm11840_vm4, %v11861_v53, %v11862_v9  ;;  %v12026_v36 = vsel %vm12003_vm7, %v12024_v61, %v12025_v2  ;;  %v11150_v62 = vmax.f32 %v11118_v56, 0.0  ;;  %v11148_v11 = vmax.f32 %v11116_v25, 0.0  ;;  %v11695_v61 = vld [vmem:[#allocation2 + $0x44] sm:$0x1]  ;;  %v11668_v43 = vld [vmem:[#allocation2 + $0xbc] sm:$0x1] }
 0x6f4   : > { %v11975_v28 = vadd.f32 %v13337_v3, %v11863_v49  ;;  %v13325_v23 = vpack.c.bf16 %v11149_v31, %v11149_v31  ;;  %v13323_v26 = vpack.c.bf16 %v11147_v63, %v11147_v63  ;;  %v11864_v8 = vrot.slane %v11746_v24, 1  ;;  %v13365_v4 = vld [vmem:[#allocation2 + $0x48] sm:$0xff]  }
 0x6f5   : > { %v12027_v7 = vrot.slane %v11746_v24, 2  ;;  %v18974_v30 = vunpack.c.l.bf16 %v11693_v6  ;;  %v13326_v20 = vpack.c.bf16 %v11150_v62, %v11150_v62  ;;  %v13324_v55 = vpack.c.bf16 %v11148_v11, %v11148_v11 }
 0x6f6   : > { %v18976_v39 = vadd.f32 %v12026_v36, %v11975_v28  ;;  %v11503_v13 = vshrl.u32 %v13325_v23, 16  ;;  %v11506_v22 = vshll.u32 %v13325_v23, 16  ;;  %v11486_v21 = vshrl.u32 %v13323_v26, 16 }
 0x6f7   : > { %v11489_v34 = vshll.u32 %v13323_v26, 16  ;;  %v11865_v10 = vsel %vm11840_vm4, %v11862_v9, %v11864_v8  ;;  %v11511_v37 = vshrl.u32 %v13326_v20, 16  ;;  %v11514_v17 = vshll.u32 %v13326_v20, 16 }
 0x6f8   : > { %v12202_v57 = vadd.f32 %v12170_v51, %v18976_v39  ;;  %v11505_v18 = vrot.slane %v11503_v13, 7  ;;  %v11488_v45 = vrot.slane %v11486_v21, 7  ;;  %v11494_v50 = vshrl.u32 %v13324_v55, 16 }
 0x6f9   : > { %v11497_v42 = vshll.u32 %v13324_v55, 16  ;;  %v11976_v54 = vadd.f32 %v13338_v59, %v11865_v10  ;;  %v11513_v0 = vrot.slane %v11511_v37, 7  ;;  %v12028_v19 = vsel %vm12003_vm7, %v12025_v2, %v12027_v7  ;;  %v11705_v55 = vld [vmem:[#allocation2 + $0x6c] sm:$0xff]  }
 0x6fa   : > { %v12234_v27 = vmul.f32 0.11111111, %v12202_v57  ;;  %v11508_v46 = vor.u32 %v11506_v22, %v11505_v18  ;;  %v11509_v12 = vrot.slane %v11505_v18, 4  ;;  %v11491_v15 = vor.u32 %v11489_v34, %v11488_v45  ;;  %v13367_v22 = vld [vmem:[#allocation2 + $0x78] sm:$0xff]  }
 0x6fb   : > { %v11492_v16 = vrot.slane %v11488_v45, 4  ;;  %v11496_v38 = vrot.slane %v11494_v50, 7  ;;  %v11516_v5 = vor.u32 %v11514_v17, %v11513_v0  ;;  %v11518_v3 = vrot.slane %v11513_v0, 4 }
 0x6fc   : > { %12266 = vxpose.xlu0.b32.cont [5/16] (narrow) %v12234_v27, 8  ;;  %v11672_v52 = vsel %vm17348_vm9, %v11508_v46, %v11671_v41  ;;  %v18983_v29 = vadd.f32 %v12028_v19, %v11976_v54  ;;  %v11665_v14 = vsel %vm17348_vm9, %v11491_v15, %v11664_v60  ;;  %v11748_v53 = vunpack.c.h.bf16 %v11693_v6 }
 0x6fd   : > { %11673 = vst [vmem:[#allocation2 + $0xc0] sm:$0xf] %v11672_v52  ;;  %v11499_v59 = vor.u32 %v11497_v42, %v11496_v38  ;;  %v11501_v44 = vrot.slane %v11496_v38, 4  ;;  %11666 = vst [vmem:[#allocation2 + $0xb4] sm:$0xf] %v11665_v14  ;;  %v11517_v51 = vsel %vm15580_vm11, %v11509_v12, %v11516_v5  ;;  %v11676_v40 = vsel %vm15541_vm6, %v11518_v3, %v11675_v1 }
 0x6fe   : > { %v12203_v9 = vadd.f32 %v12171_v32, %v18983_v29  ;;  %v11866_v2 = vrot.slane %v18974_v30, 1  ;;  %11674 = vst [vmem:[#allocation2 + $0xc4] sm:$0xf] %v11517_v51  ;;  %11677 = vst [vmem:[#allocation2 + $0xc8] sm:$0x1] %v11676_v40  ;;  %v11867_v56 = vrot.slane %v11748_v53, 1  ;;  %v12172_v49 = vadd.f32 %v18976_v39, %v18939_v48 }
 0x6ff   : > { %v11500_v47 = vsel %vm15580_vm11, %v11492_v16, %v11499_v59  ;;  %v11669_v31 = vsel %vm15541_vm6, %v11501_v44, %v11668_v43  ;;  %v12029_v25 = vrot.slane %v18974_v30, 2  ;;  %v12030_v6 = vrot.slane %v11748_v53, 2  ;;  %v11698_v14 = vld [vmem:[#allocation2 + $0x50] sm:$0x1] }
 0x700   : > { %11667 = vst [vmem:[#allocation2 + $0xb8] sm:$0xf] %v11500_v47  ;;  %11670 = vst [vmem:[#allocation2 + $0xbc] sm:$0x1] %v11669_v31  ;;  %v12235_v24 = vmul.f32 0.11111111, %v12203_v9  ;;  %v11749_v36 = vunpack.c.l.bf16 %v11695_v61  ;;  %v11868_v63 = vsel %vm11840_vm4, %v11866_v2, %v11867_v56  ;;  %v12173_v33 = vadd.f32 %v18983_v29, %v18947_v35 }
 0x701   : > { %v13341_v32 = vunpack.c.l.bf16 %v13365_v4  ;;  %v19003_v28 = vunpack.c.h.bf16 %v13365_v4  ;;  %v11977_v23 = vadd.f32 %v11868_v63, %v18974_v30  ;;  %v12031_v62 = vsel %vm12003_vm7, %v12029_v25, %v12030_v6  ;;  %v11707_v61 = vld [vmem:[#allocation2 + $0x74] sm:$0x1]  ;;  %v11710_v2 = vld [vmem:[#allocation2 + $0x80] sm:$0x1] }
 0x702   : > { %12267 = vxpose.xlu0.b32.cont [6/16] (narrow) %v12235_v24, 8  ;;  %v11869_v11 = vrot.slane %v11749_v36, 1  ;;  %v12032_v26 = vrot.slane %v11749_v36, 2  ;;  %v13345_v34 = vunpack.c.l.bf16 %v13366_v58  ;;  %v19019_v18 = vunpack.c.h.bf16 %v13366_v58 }
 0x703   : > { %v11871_v8 = vrot.slane %v13341_v32, 1  ;;  %v11872_v48 = vrot.slane %v19003_v28, 1  ;;  %v12034_v7 = vrot.slane %v13341_v32, 2  ;;  %v12035_v13 = vrot.slane %v19003_v28, 2 }
 0x704   : > { %v19009_v20 = vadd.f32 %v12031_v62, %v11977_v23  ;;  %v11870_v35 = vsel %vm11840_vm4, %v11867_v56, %v11869_v11  ;;  %v12033_v21 = vsel %vm12003_vm7, %v12030_v6, %v12032_v26  ;;  %v13349_v50 = vunpack.c.l.bf16 %v13367_v22 }
 0x705   : > { %v11978_v30 = vadd.f32 %v11870_v35, %v11748_v53  ;;  %v11873_v10 = vsel %vm11840_vm4, %v11871_v8, %v11872_v48  ;;  %v12036_v57 = vsel %vm12003_vm7, %v12034_v7, %v12035_v13  ;;  %v19026_v54 = vunpack.c.h.bf16 %v13367_v22  ;;  %v11704_v53 = vld [vmem:[#allocation2 + $0x68] sm:$0x1] }
 0x706   : > { %v12204_v37 = vadd.f32 %v12172_v49, %v19009_v20  ;;  %v11979_v17 = vadd.f32 %v13341_v32, %v11873_v10  ;;  %v12174_v45 = vadd.f32 %v19009_v20, %v18976_v39  ;;  %v11759_v27 = vunpack.c.l.bf16 %v11705_v55 }
 0x707   : > { %v19024_v42 = vadd.f32 %v12033_v21, %v11978_v30  ;;  %v19028_v46 = vunpack.c.h.bf16 %v11705_v55  ;;  %v11881_v41 = vrot.slane %v13345_v34, 1  ;;  %v11882_v15 = vrot.slane %v19019_v18, 1 }
 0x708   : > { %v12236_v12 = vmul.f32 0.11111111, %v12204_v37  ;;  %v19030_v0 = vadd.f32 %v12036_v57, %v11979_v17  ;;  %v11886_v38 = vrot.slane %v11759_v27, 1  ;;  %v11891_v39 = vrot.slane %v13349_v50, 1  ;;  %v11699_v37 = vld [vmem:[#allocation2 + $0x54] sm:$0xff]  }
 0x709   : > { %v12205_v16 = vadd.f32 %v12173_v33, %v19024_v42  ;;  %v11887_v19 = vrot.slane %v19028_v46, 1  ;;  %v11883_v60 = vsel %vm11840_vm4, %v11881_v41, %v11882_v15  ;;  %v11892_v5 = vrot.slane %v19026_v54, 1 }
 0x70a   : > { %12268 = vxpose.xlu0.b32.cont [7/16] (narrow) %v12236_v12, 8  ;;  %v12206_v52 = vadd.f32 %v12174_v45, %v19030_v0  ;;  %v12044_v3 = vrot.slane %v13345_v34, 2  ;;  %v11983_v59 = vadd.f32 %v13345_v34, %v11883_v60  ;;  %v12045_v44 = vrot.slane %v19019_v18, 2 }
 0x70b   : > { %v11888_v1 = vsel %vm11840_vm4, %v11886_v38, %v11887_v19  ;;  %v12237_v51 = vmul.f32 0.11111111, %v12205_v16  ;;  %v11893_v40 = vsel %vm11840_vm4, %v11891_v39, %v11892_v5  ;;  %v12049_v9 = vrot.slane %v11759_v27, 2 }
 0x70c   : > { %v11985_v43 = vadd.f32 %v11888_v1, %v11759_v27  ;;  %v12238_v4 = vmul.f32 0.11111111, %v12206_v52  ;;  %v12046_v47 = vsel %vm12003_vm7, %v12044_v3, %v12045_v44  ;;  %v12050_v31 = vrot.slane %v19028_v46, 2  ;;  %v11711_v52 = vld [vmem:[#allocation2 + $0x84] sm:$0xff]  }
 0x70d   : > { %v12054_v56 = vrot.slane %v13349_v50, 2  ;;  %v11987_v25 = vadd.f32 %v13349_v50, %v11893_v40  ;;  %v12055_v24 = vrot.slane %v19026_v54, 2  ;;  %v19044_v6 = vadd.f32 %v12046_v47, %v11983_v59 }
 0x70e   : > { %12269 = vxpose.xlu0.b32.cont [8/16] (narrow) %v12237_v51, 8  ;;  %v11752_v49 = vunpack.c.l.bf16 %v11698_v14  ;;  %v12051_v36 = vsel %vm12003_vm7, %v12049_v9, %v12050_v31  ;;  %v11758_v63 = vunpack.c.l.bf16 %v11704_v53  ;;  %v11761_v33 = vunpack.c.l.bf16 %v11707_v61 }
 0x70f   : > { %v11764_v32 = vunpack.c.l.bf16 %v11710_v2  ;;  %v19047_v58 = vadd.f32 %v12051_v36, %v11985_v43  ;;  %v12175_v11 = vadd.f32 %v19024_v42, %v18983_v29  ;;  %v12056_v26 = vsel %vm12003_vm7, %v12054_v56, %v12055_v24  ;;  %v11713_v43 = vld [vmem:[#allocation2 + $0x8c] sm:$0x1] }
 0x710   : > { %v11874_v23 = vrot.slane %v11752_v49, 1  ;;  %v12037_v62 = vrot.slane %v11752_v49, 2  ;;  %v11884_v8 = vrot.slane %v11758_v63, 1  ;;  %v11889_v7 = vrot.slane %v11761_v33, 1 }
 0x711   : > { %v11894_v22 = vrot.slane %v11764_v32, 1  ;;  %v19052_v35 = vadd.f32 %v12056_v26, %v11987_v25  ;;  %v12182_v21 = vadd.f32 %v19047_v58, %v19044_v6  ;;  %v12047_v55 = vrot.slane %v11758_v63, 2 }
 0x712   : > { %12270 = vxpose.xlu0.b32.cont [9/16] (narrow) %v12238_v4, 8  ;;  %v11875_v34 = vsel %vm11840_vm4, %v11872_v48, %v11874_v23  ;;  %v11885_v29 = vsel %vm11840_vm4, %v11882_v15, %v11884_v8  ;;  %v11890_v10 = vsel %vm11840_vm4, %v11887_v19, %v11889_v7  ;;  %v12038_v45 = vsel %vm12003_vm7, %v12035_v13, %v12037_v62 }
 0x713   : > { %v11980_v30 = vadd.f32 %v19003_v28, %v11875_v34  ;;  %v11895_v57 = vsel %vm11840_vm4, %v11892_v5, %v11894_v22  ;;  %v12214_v17 = vadd.f32 %v12182_v21, %v19052_v35  ;;  %v11984_v50 = vadd.f32 %v19019_v18, %v11885_v29 }
 0x714   : > { %v11986_v48 = vadd.f32 %v11890_v10, %v19028_v46  ;;  %v11988_v12 = vadd.f32 %v19026_v54, %v11895_v57  ;;  %v12052_v41 = vrot.slane %v11761_v33, 2  ;;  %v12057_v15 = vrot.slane %v11764_v32, 2  ;;  %v13368_v32 = vld [vmem:[#allocation2 + $0x90] sm:$0xff]  }
 0x715   : > { %v19069_v27 = vadd.f32 %v12038_v45, %v11980_v30  ;;  %v12246_v16 = vmul.f32 0.11111111, %v12214_v17  ;;  %v12048_v38 = vsel %vm12003_vm7, %v12045_v44, %v12047_v55  ;;  %v11753_v19 = vunpack.c.l.bf16 %v11699_v37  ;;  %v11701_v44 = vld [vmem:[#allocation2 + $0x5c] sm:$0x1] }
 0x716   : > { %v11754_v39 = vunpack.c.h.bf16 %v11699_v37  ;;  %v12053_v13 = vsel %vm12003_vm7, %v12050_v31, %v12052_v41  ;;  %v19075_v60 = vadd.f32 %v12048_v38, %v11984_v50  ;;  %v12058_v18 = vsel %vm12003_vm7, %v12055_v24, %v12057_v15 }
 0x717   : > { %v12207_v28 = vadd.f32 %v12175_v11, %v19069_v27  ;;  %12294 = vxpose.xlu1.b32.start [1/16] (narrow) %v12246_v16, 8  ;;  %v19078_v46 = vadd.f32 %v12053_v13, %v11986_v48  ;;  %v11876_v54 = vrot.slane %v11753_v19, 1  ;;  %v12039_v14 = vrot.slane %v11753_v19, 2  ;;  %v11716_v16 = vld [vmem:[#allocation2 + $0x98] sm:$0x1] }
 0x718   : > { %v11877_v5 = vrot.slane %v11754_v39, 1  ;;  %v12040_v1 = vrot.slane %v11754_v39, 2  ;;  %v11765_v59 = vunpack.c.l.bf16 %v11711_v52  ;;  %v19080_v53 = vadd.f32 %v12058_v18, %v11988_v12 }
 0x719   : > { %v12239_v3 = vmul.f32 0.11111111, %v12207_v28  ;;  %v12183_v61 = vadd.f32 %v19078_v46, %v19075_v60  ;;  %v11766_v40 = vunpack.c.h.bf16 %v11711_v52  ;;  %v11755_v24 = vunpack.c.l.bf16 %v11701_v44 }
 0x71a   : > { %v11878_v51 = vsel %vm11840_vm4, %v11876_v54, %v11877_v5  ;;  %v12041_v2 = vsel %vm12003_vm7, %v12039_v14, %v12040_v1  ;;  %v11896_v4 = vrot.slane %v11765_v59, 1  ;;  %v12059_v47 = vrot.slane %v11765_v59, 2 }
 0x71b   : > { %12271 = vxpose.xlu0.b32.cont [10/16] (narrow) %v12239_v3, 8  ;;  %v11981_v9 = vadd.f32 %v11878_v51, %v11753_v19  ;;  %v12215_v31 = vadd.f32 %v12183_v61, %v19080_v53  ;;  %v11897_v56 = vrot.slane %v11766_v40, 1  ;;  %v12060_v25 = vrot.slane %v11766_v40, 2 }
 0x71c   : > { %v12176_v36 = vadd.f32 %v19030_v0, %v19009_v20  ;;  %v12184_v63 = vadd.f32 %v19052_v35, %v19047_v58  ;;  %v11767_v33 = vunpack.c.l.bf16 %v11713_v43  ;;  %v11879_v11 = vrot.slane %v11755_v24, 1 }
 0x71d   : > { %v12144_v49 = vadd.f32 %v12041_v2, %v11981_v9  ;;  %v12247_v23 = vmul.f32 0.11111111, %v12215_v31  ;;  %v11898_v62 = vsel %vm11840_vm4, %v11896_v4, %v11897_v56  ;;  %v12177_v26 = vadd.f32 %v19069_v27, %v19024_v42 }
 0x71e   : > { %v11989_v7 = vadd.f32 %v11898_v62, %v11765_v59  ;;  %v12042_v22 = vrot.slane %v11755_v24, 2  ;;  %v11899_v21 = vrot.slane %v11767_v33, 1  ;;  %v12061_v34 = vsel %vm12003_vm7, %v12059_v47, %v12060_v25 }
 0x71f   : > { %v12208_v8 = vadd.f32 %v12176_v36, %v12144_v49  ;;  %12295 = vxpose.xlu1.b32.cont [2/16] (narrow) %v12247_v23, 8  ;;  %v11880_v20 = vsel %vm11840_vm4, %v11877_v5, %v11879_v11  ;;  %v12062_v55 = vrot.slane %v11767_v33, 2  ;;  %v13353_v30 = vunpack.c.l.bf16 %v13368_v32  ;;  %v11719_v23 = vld [vmem:[#allocation2 + $0xa4] sm:$0x1] }
 0x720   : > { %v12152_v10 = vadd.f32 %v12061_v34, %v11989_v7  ;;  %v11982_v57 = vadd.f32 %v11880_v20, %v11754_v39  ;;  %v12178_v37 = vadd.f32 %v12144_v49, %v19030_v0  ;;  %v12043_v17 = vsel %vm12003_vm7, %v12040_v1, %v12042_v22  ;;  %v11717_v1 = vld [vmem:[#allocation2 + $0x9c] sm:$0xff]  }
 0x721   : > { %v12240_v29 = vmul.f32 0.11111111, %v12208_v8  ;;  %v11900_v42 = vsel %vm11840_vm4, %v11897_v56, %v11899_v21  ;;  %v12185_v45 = vadd.f32 %v19080_v53, %v19078_v46  ;;  %v13354_v50 = vunpack.c.h.bf16 %v13368_v32 }
 0x722   : > { %v12216_v48 = vadd.f32 %v12184_v63, %v12152_v10  ;;  %v12145_v12 = vadd.f32 %v12043_v17, %v11982_v57  ;;  %v11990_v41 = vadd.f32 %v11900_v42, %v11766_v40  ;;  %v11901_v15 = vrot.slane %v13353_v30, 1 }
 0x723   : > { %12272 = vxpose.xlu0.b32.cont [11/16] (narrow) %v12240_v29, 8  ;;  %v12063_v38 = vsel %vm12003_vm7, %v12060_v25, %v12062_v55  ;;  %v11902_v19 = vrot.slane %v13354_v50, 1  ;;  %v12064_v39 = vrot.slane %v13353_v30, 2  ;;  %v12065_v52 = vrot.slane %v13354_v50, 2  ;;  %v11722_v55 = vld [vmem:[#allocation2 + $0xb0] sm:$0x1] }
 0x724   : > { %v12248_v0 = vmul.f32 0.11111111, %v12216_v48  ;;  %v12209_v28 = vadd.f32 %v12177_v26, %v12145_v12  ;;  %v19102_v13 = vadd.f32 %v12063_v38, %v11990_v41  ;;  %v12210_v18 = vadd.f32 %v12178_v37, %v19044_v6 }
 0x725   : > { %v11903_v54 = vsel %vm11840_vm4, %v11901_v15, %v11902_v19  ;;  %v12186_v5 = vadd.f32 %v12152_v10, %v19052_v35  ;;  %v12179_v3 = vadd.f32 %v12145_v12, %v19069_v27  ;;  %v11770_v14 = vunpack.c.l.bf16 %v11716_v16 }
 0x726   : > { %12296 = vxpose.xlu1.b32.cont [3/16] (narrow) %v12248_v0, 8  ;;  %v12241_v59 = vmul.f32 0.11111111, %v12209_v28  ;;  %v12217_v44 = vadd.f32 %v12185_v45, %v19102_v13  ;;  %v11991_v61 = vadd.f32 %v13353_v30, %v11903_v54  ;;  %v12066_v51 = vsel %vm12003_vm7, %v12064_v39, %v12065_v52 }
 0x727   : > { %v12211_v40 = vadd.f32 %v12179_v3, %v19075_v60  ;;  %v11904_v43 = vrot.slane %v11770_v14, 1  ;;  %v12067_v9 = vrot.slane %v11770_v14, 2  ;;  %v12180_v2 = vadd.f32 %v19044_v6, %v12144_v49  ;;  %v13369_v6 = vld [vmem:[#allocation2 + $0xa8] sm:$0xff]  }
 0x728   : > { %12273 = vxpose.xlu0.b32.cont [12/16] (narrow) %v12241_v59, 8  ;;  %v12249_v4 = vmul.f32 0.11111111, %v12217_v44  ;;  %v12154_v35 = vadd.f32 %v12066_v51, %v11991_v61  ;;  %v11771_v47 = vunpack.c.l.bf16 %v11717_v1  ;;  %v11772_v27 = vunpack.c.h.bf16 %v11717_v1 }
 0x729   : > { %v12242_v31 = vmul.f32 0.11111111, %v12210_v18  ;;  %v11905_v56 = vsel %vm11840_vm4, %v11902_v19, %v11904_v43  ;;  %v12187_v25 = vadd.f32 %v19102_v13, %v19080_v53  ;;  %v12212_v24 = vadd.f32 %v12180_v2, %v19047_v58  ;;  %v11725_v18 = vld [vmem:[#allocation2 + $0xbc] sm:$0x1] }
 0x72a   : > { %12297 = vxpose.xlu1.b32.cont [4/16] (narrow) %v12249_v4, 8  ;;  %v12218_v36 = vadd.f32 %v12186_v5, %v12154_v35  ;;  %v11992_v63 = vadd.f32 %v13354_v50, %v11905_v56  ;;  %v11906_v33 = vrot.slane %v11771_v47, 1  ;;  %v11907_v32 = vrot.slane %v11772_v27, 1 }
 0x72b   : > { %v12243_v49 = vmul.f32 0.11111111, %v12211_v40  ;;  %v12068_v62 = vsel %vm12003_vm7, %v12065_v52, %v12067_v9  ;;  %v12069_v11 = vrot.slane %v11771_v47, 2  ;;  %v12070_v26 = vrot.slane %v11772_v27, 2 }
 0x72c   : > { %12274 = vxpose.xlu0.b32.cont [13/16] (narrow) %v12242_v31, 8  ;;  %v12250_v8 = vmul.f32 0.11111111, %v12218_v36  ;;  %v12155_v7 = vadd.f32 %v12068_v62, %v11992_v63  ;;  %v12244_v22 = vmul.f32 0.11111111, %v12212_v24  ;;  %v11908_v53 = vsel %vm11840_vm4, %v11906_v33, %v11907_v32  ;;  %v13370_v63 = vld [vmem:[#allocation2 + $0xc0] sm:$0xff]  }
 0x72d   : > { %v11993_v21 = vadd.f32 %v11908_v53, %v11771_v47  ;;  %v12188_v58 = vadd.f32 %v12154_v35, %v12152_v10  ;;  %v11773_v34 = vunpack.c.l.bf16 %v11719_v23  ;;  %v13357_v20 = vunpack.c.l.bf16 %v13369_v6  ;;  %v11728_v23 = vld [vmem:[#allocation2 + $0xc8] sm:$0x1] }
 0x72e   : > { %12298 = vxpose.xlu1.b32.cont [5/16] (narrow) %v12250_v8, 8  ;;  %v12219_v30 = vadd.f32 %v12187_v25, %v12155_v7  ;;  %v12071_v29 = vsel %vm12003_vm7, %v12069_v11, %v12070_v26  ;;  %v12181_v57 = vadd.f32 %v19075_v60, %v12145_v12  ;;  %v13358_v37 = vunpack.c.h.bf16 %v13369_v6  ;;  %v11723_v60 = vld [vmem:[#allocation2 + $0xb4] sm:$0xff]  }
 0x72f   : > { %v19120_v17 = vadd.f32 %v12071_v29, %v11993_v21  ;;  %v11909_v42 = vrot.slane %v11773_v34, 1  ;;  %v12072_v45 = vrot.slane %v11773_v34, 2  ;;  %v11911_v50 = vrot.slane %v13357_v20, 1 }
 0x730   : > { %12275 = vxpose.xlu0.b32.cont [14/16] (narrow) %v12243_v49, 8  ;;  %v12251_v48 = vmul.f32 0.11111111, %v12219_v30  ;;  %v12213_v41 = vadd.f32 %v12181_v57, %v19078_v46  ;;  %v11912_v10 = vrot.slane %v13358_v37, 1  ;;  %v11776_v15 = vunpack.c.l.bf16 %v11722_v55 }
 0x731   : > { %v12220_v16 = vadd.f32 %v12188_v58, %v19120_v17  ;;  %v11910_v38 = vsel %vm11840_vm4, %v11907_v32, %v11909_v42  ;;  %v12189_v19 = vadd.f32 %v12155_v7, %v19102_v13  ;;  %v12074_v39 = vrot.slane %v13357_v20, 2 }
 0x732   : > { %12299 = vxpose.xlu1.b32.cont [6/16] (narrow) %v12251_v48, 8  ;;  %v11994_v12 = vadd.f32 %v11910_v38, %v11772_v27  ;;  %v12073_v52 = vsel %vm12003_vm7, %v12070_v26, %v12072_v45  ;;  %v11913_v0 = vsel %vm11840_vm4, %v11911_v50, %v11912_v10  ;;  %v12075_v28 = vrot.slane %v13358_v37, 2  ;;  %v11731_v50 = vld [vmem:[#allocation2 + $0xd4] sm:$0x1] }
 0x733   : > { %v12252_v54 = vmul.f32 0.11111111, %v12220_v16  ;;  %v11995_v46 = vadd.f32 %v13357_v20, %v11913_v0  ;;  %v12190_v5 = vadd.f32 %v19120_v17, %v12154_v35  ;;  %v11914_v3 = vrot.slane %v11776_v15, 1 }
 0x734   : > { %12276 = vxpose.xlu0.b32.cont [15/16] (narrow) %v12244_v22, 8  ;;  %v12157_v14 = vadd.f32 %v12073_v52, %v11994_v12  ;;  %v12077_v1 = vrot.slane %v11776_v15, 2  ;;  %v11777_v59 = vunpack.c.l.bf16 %v11723_v60  ;;  %v11778_v13 = vunpack.c.h.bf16 %v11723_v60  ;;  %v11729_v22 = vld [vmem:[#allocation2 + $0xcc] sm:$0xff]  }
 0x735   : > { %v12245_v44 = vmul.f32 0.11111111, %v12213_v41  ;;  %v12076_v61 = vsel %vm12003_vm7, %v12074_v39, %v12075_v28  ;;  %v11915_v51 = vsel %vm11840_vm4, %v11912_v10, %v11914_v3  ;;  %v11779_v40 = vunpack.c.l.bf16 %v11725_v18 }
 0x736   : > { %12300 = vxpose.xlu1.b32.cont [7/16] (narrow) %v12252_v54, 8  ;;  %v12221_v43 = vadd.f32 %v12189_v19, %v12157_v14  ;;  %v12158_v9 = vadd.f32 %v12076_v61, %v11995_v46  ;;  %v11996_v2 = vadd.f32 %v13358_v37, %v11915_v51  ;;  %v11916_v4 = vrot.slane %v11777_v59, 1 }
 0x737   : > { %v12191_v47 = vadd.f32 %v12157_v14, %v12155_v7  ;;  %v11917_v27 = vrot.slane %v11778_v13, 1  ;;  %v12079_v35 = vrot.slane %v11777_v59, 2  ;;  %v12080_v31 = vrot.slane %v11778_v13, 2 }
 0x738   : > { %12277 = vxpose.xlu0.b32.end [16/16] (narrow) %v12245_v44, 8  ;;  %v12253_v56 = vmul.f32 0.11111111, %v12221_v43  ;;  %v12222_v25 = vadd.f32 %v12190_v5, %v12158_v9  ;;  %v12078_v24 = vsel %vm12003_vm7, %v12075_v28, %v12077_v1  ;;  %v11919_v36 = vrot.slane %v11779_v40, 1 }
 0x739   : > { %v12159_v33 = vadd.f32 %v12078_v24, %v11996_v2  ;;  %v11918_v32 = vsel %vm11840_vm4, %v11916_v4, %v11917_v27  ;;  %v12081_v49 = vsel %vm12003_vm7, %v12079_v35, %v12080_v31  ;;  %v12082_v26 = vrot.slane %v11779_v40, 2 }
 0x73a   : > { %12301 = vxpose.xlu1.b32.cont [8/16] (narrow) %v12253_v56, 8  ;;  %v11997_v6 = vadd.f32 %v11918_v32, %v11777_v59  ;;  %v11920_v62 = vsel %vm11840_vm4, %v11917_v27, %v11919_v36  ;;  %v13361_v8 = vunpack.c.l.bf16 %v13370_v63  ;;  %v13362_v7 = vunpack.c.h.bf16 %v13370_v63 }
 0x73b   : > { %v12223_v11 = vadd.f32 %v12191_v47, %v12159_v33  ;;  %v12254_v53 = vmul.f32 0.11111111, %v12222_v25  ;;  %v11998_v58 = vadd.f32 %v11920_v62, %v11778_v13  ;;  %v11782_v34 = vunpack.c.l.bf16 %v11728_v23 }
 0x73c   : > { %v12160_v21 = vadd.f32 %v12081_v49, %v11997_v6  ;;  %v11921_v20 = vrot.slane %v13361_v8, 1  ;;  %v11922_v55 = vrot.slane %v13362_v7, 1  ;;  %v12192_v30 = vadd.f32 %v12158_v9, %v19120_v17 }
 0x73d   : > { %v11783_v29 = vunpack.c.l.bf16 %v11729_v22  ;;  %v12255_v57 = vmul.f32 0.11111111, %v12223_v11  ;;  %v12083_v37 = vsel %vm12003_vm7, %v12080_v31, %v12082_v26  ;;  %v11924_v45 = vrot.slane %v11782_v34, 1 }
 0x73e   : > { %12302 = vxpose.xlu1.b32.cont [9/16] (narrow) %v12254_v53, 8  ;;  %v11923_v42 = vsel %vm11840_vm4, %v11921_v20, %v11922_v55  ;;  %v12224_v48 = vadd.f32 %v12192_v30, %v12160_v21  ;;  %v12161_v41 = vadd.f32 %v12083_v37, %v11998_v58  ;;  %v12084_v10 = vrot.slane %v13361_v8, 2 }
 0x73f   : > { %v12085_v15 = vrot.slane %v13362_v7, 2  ;;  %v11784_v16 = vunpack.c.h.bf16 %v11729_v22  ;;  %v12193_v38 = vadd.f32 %v12159_v33, %v12157_v14  ;;  %v11999_v19 = vadd.f32 %v13361_v8, %v11923_v42 }
 0x740   : > { %v11926_v39 = vrot.slane %v11783_v29, 1  ;;  %v11785_v60 = vunpack.c.l.bf16 %v11731_v50  ;;  %v12194_v12 = vadd.f32 %v12160_v21, %v12158_v9  ;;  %v11925_v17 = vsel %vm11840_vm4, %v11922_v55, %v11924_v45 }
 0x741   : > { %v11927_v52 = vrot.slane %v11784_v16, 1  ;;  %v12256_v0 = vmul.f32 0.11111111, %v12224_v48  ;;  %v12225_v28 = vadd.f32 %v12193_v38, %v12161_v41  ;;  %v12086_v18 = vsel %vm12003_vm7, %v12084_v10, %v12085_v15 }
 0x742   : > { %12303 = vxpose.xlu1.b32.cont [10/16] (narrow) %v12255_v57, 8  ;;  %v12087_v54 = vrot.slane %v11782_v34, 2  ;;  %v12089_v5 = vrot.slane %v11783_v29, 2  ;;  %v12090_v3 = vrot.slane %v11784_v16, 2  ;;  %v11929_v1 = vrot.slane %v11785_v60, 1 }
 0x743   : > { %v11928_v46 = vsel %vm11840_vm4, %v11926_v39, %v11927_v52  ;;  %v12162_v59 = vadd.f32 %v12086_v18, %v11999_v19  ;;  %v12000_v14 = vadd.f32 %v13362_v7, %v11925_v17  ;;  %v12257_v13 = vmul.f32 0.11111111, %v12225_v28 }
 0x744   : > { %v12195_v61 = vadd.f32 %v12161_v41, %v12159_v33  ;;  %v12001_v51 = vadd.f32 %v11928_v46, %v11783_v29  ;;  %v12088_v40 = vsel %vm12003_vm7, %v12085_v15, %v12087_v54  ;;  %v12091_v43 = vsel %vm12003_vm7, %v12089_v5, %v12090_v3 }
 0x745   : > { %v12226_v44 = vadd.f32 %v12194_v12, %v12162_v59  ;;  %v11930_v9 = vsel %vm11840_vm4, %v11927_v52, %v11929_v1  ;;  %v12092_v2 = vrot.slane %v11785_v60, 2  ;;  %v12163_v4 = vadd.f32 %v12088_v40, %v12000_v14 }
 0x746   : > { %12304 = vxpose.xlu1.b32.cont [11/16] (narrow) %v12256_v0, 8  ;;  %v12196_v47 = vadd.f32 %v12162_v59, %v12160_v21  ;;  %v12164_v31 = vadd.f32 %v12091_v43, %v12001_v51  ;;  %v12002_v56 = vadd.f32 %v11930_v9, %v11784_v16 }
 0x747   : > { %v12258_v27 = vmul.f32 0.11111111, %v12226_v44  ;;  %v12227_v35 = vadd.f32 %v12195_v61, %v12163_v4  ;;  %v12093_v25 = vsel %vm12003_vm7, %v12090_v3, %v12092_v2  ;;  %v12197_v33 = vadd.f32 %v12163_v4, %v12161_v41 }
 0x748   : > { %v12228_v36 = vadd.f32 %v12196_v47, %v12164_v31  ;;  %v12165_v63 = vadd.f32 %v12093_v25, %v12002_v56 }
 0x749   : > { %v12259_v24 = vmul.f32 0.11111111, %v12227_v35 }
 0x74a   : > { %12305 = vxpose.xlu1.b32.cont [12/16] (narrow) %v12257_v13, 8  ;;  %v12260_v32 = vmul.f32 0.11111111, %v12228_v36  ;;  %v12229_v23 = vadd.f32 %v12197_v33, %v12165_v63 }
 0x74c   : > { %v12261_v6 = vmul.f32 0.11111111, %v12229_v23 }
 0x74e   : > { %12306 = vxpose.xlu1.b32.cont [13/16] (narrow) %v12258_v27, 8 }
 0x752   : > { %12307 = vxpose.xlu1.b32.cont [14/16] (narrow) %v12259_v24, 8 }
 0x756   : > { %12308 = vxpose.xlu1.b32.cont [15/16] (narrow) %v12260_v32, 8 }
 0x75a   : > { %12309 = vxpose.xlu1.b32.end [16/16] (narrow) %v12261_v6, 8 }
 0x77c   : > { %v12278_v49 = vpop.trf.xlu0 }
 0x77d   : > { %12326 = vst [vmem:[%s170_s16] sm:$0xff] %v12278_v49 }
 0x79e   : > { %v12310_v62 = vpop.trf.xlu1 }
 0x79f   : > { %12327 = vst [vmem:[%s170_s16 + $0x8] sm:$0xff] %v12310_v62 }
 0x7a0 PF: > { %s13_s12 = sadd.s32 1, %s15465_s12  }
 0x7a1   : > { %p10_p4 = scmp.ge.s32.totalorder %s13_s12, 4  }
 0x7a3   :  { %12 = sbr.rel (!%p10_p4) target bundleno = 1 (0x1), region = 83 }

</bundles_post_ra>
